<compile_context>
chip_gen: v5e
topology: v5e:2x2
jax: 0.10.0
libtpu: 0.0.40
codegen_flags: <defaults>
</compile_context>

<pallas_src>
import functools

import jax
import jax.numpy as jnp
from jax.experimental import pallas as pl
from jax.experimental.pallas import tpu as pltpu

LEAKY_SLOPE = 0.2
KERNEL_SIZES = (3, 7, 11)
DILATIONS = (1, 3, 5)


# --------------------------------------------------------------------------
# In-kernel helpers
# --------------------------------------------------------------------------
def _leaky(x, slope):
    # LeakyReLU for 0 < slope < 1: max(x, slope*x). 2 VALU ops (no cmp+select).
    return jnp.maximum(x, x * slope)


# --------------------------------------------------------------------------
# Fused kernel: input_conv -> 3x(AdaIN -> ResBlock -> AdaIN) -> mean
# --------------------------------------------------------------------------
def _fused_kernel(*refs, cin, c, L, padmax, k_in, ksizes, dilations, slope,
                  cdtype):
    n_br = len(ksizes)
    x_ref, n1_ref, n2_ref, inw_ref, inb_ref = refs[:5]
    br_refs = refs[5:5 + 6 * n_br]
    o_ref = refs[5 + 6 * n_br]
    pad_ref = refs[5 + 6 * n_br + 1]        # (max(cin,c), L + 2*padmax) scratch

    # Zero the halo scratch once per grid step.  Only the centre columns
    # [padmax, padmax+L) are ever overwritten, so the halo stays zero and
    # 'same' zero padding falls out of the tap slices for free.
    pad_ref[...] = jnp.zeros(pad_ref.shape, cdtype)

    def store_center(val):
        r = val.shape[0]
        pad_ref[0:r, padmax:padmax + L] = val.astype(cdtype)

    def conv(w, b, rows, K, d):
        # 'same' dilated Conv1d: K per-tap (c, rows) x (rows, L) MXU matmuls
        # accumulated in f32 (scratch-free; identical FLOPs to one big matmul).
        pad = d * (K - 1) // 2
        y = None
        for k in range(K):
            off = padmax - pad + k * d
            tap = pad_ref[0:rows, off:off + L]
            t = jnp.dot(w[k], tap, preferred_element_type=jnp.float32)
            y = t if y is None else y + t
        return y + b                                    # bias (c,1) broadcast

    # ---- input_conv: Conv1d(cin, c, k_in, padding=(k_in-1)//2) ----
    store_center(x_ref[0])
    x0 = conv(inw_ref[...], inb_ref[...], cin, k_in, 1)          # (c, L) f32

    # ---- parallel branches + running mean (all VMEM/vreg resident) ----
    acc = None
    for bidx in range(n_br):
        w1s, b1s, w2s, b2s, aw1, aw2 = br_refs[6 * bidx:6 * bidx + 6]
        K = ksizes[bidx]

        # AdaIN #1: leaky(x + noise * w)
        h = _leaky(x0 + n1_ref[bidx, 0] * aw1[...], slope)

        # ResBlock: 3 (conv1 -> conv2 -> +residual) stages
        for si, d in enumerate(dilations):
            a = _leaky(h, slope)
            store_center(a)
            h1 = conv(w1s[si], b1s[si], c, K, d)
            store_center(_leaky(h1, slope))
            xt = conv(w2s[si], b2s[si], c, K, d)
            h = xt + h

        # AdaIN #2
        y = _leaky(h + n2_ref[bidx, 0] * aw2[...], slope)
        acc = y if acc is None else acc + y

    o_ref[0] = (acc * (1.0 / n_br)).astype(o_ref.dtype)


# --------------------------------------------------------------------------
# Parameter init (deterministic; mirrors module __init__) and preprocessing
# --------------------------------------------------------------------------
def init_params(key, cin, cout):
    k_in, k_blocks = jax.random.split(key)
    params = {
        # input_conv: Conv1d(cin, cout, k=7, pad=3) — synthetic small-normal init.
        "in_w": 0.1 * jax.random.normal(k_in, (cout, cin, 7), jnp.float32),
        "in_b": jnp.zeros((cout,), jnp.float32),
        "blocks": [],
    }
    for bi, ks in enumerate(KERNEL_SIZES):
        bkey = jax.random.fold_in(k_blocks, bi)
        res = []
        for di, _d in enumerate(DILATIONS):
            k1, k2 = jax.random.split(jax.random.fold_in(bkey, di))
            res.append({
                # ResBlock.init_weights: normal(0, 0.01), bias = 0.
                # weight_norm is the identity reparametrization at init.
                "w1": 0.01 * jax.random.normal(k1, (cout, cout, ks), jnp.float32),
                "b1": jnp.zeros((cout,), jnp.float32),
                "w2": 0.01 * jax.random.normal(k2, (cout, cout, ks), jnp.float32),
                "b2": jnp.zeros((cout,), jnp.float32),
            })
        params["blocks"].append({
            "adain1_w": jnp.ones((cout,), jnp.float32),   # AdaIN weight = ones(C)
            "adain2_w": jnp.ones((cout,), jnp.float32),
            "res": res,
        })
    return params


def preprocess_params(params, compute_dtype):
    """One-time: transpose to per-tap (K, Cout, Cin), stack stages, cast."""
    def prep_w(w):                      # (Cout, Cin, K) -> (K, Cout, Cin)
        return jnp.transpose(w, (2, 0, 1)).astype(compute_dtype)

    cout = params["in_w"].shape[0]
    kp = {
        "in_w": prep_w(params["in_w"]),
        "in_b": params["in_b"].reshape(cout, 1).astype(jnp.float32),
        "blocks": [],
    }
    for bp in params["blocks"]:
        kp["blocks"].append({
            "w1": jnp.stack([prep_w(rp["w1"]) for rp in bp["res"]]),
            "b1": jnp.stack([rp["b1"].reshape(cout, 1) for rp in bp["res"]]
                            ).astype(jnp.float32),
            "w2": jnp.stack([prep_w(rp["w2"]) for rp in bp["res"]]),
            "b2": jnp.stack([rp["b2"].reshape(cout, 1) for rp in bp["res"]]
                            ).astype(jnp.float32),
            "aw1": bp["adain1_w"].reshape(cout, 1).astype(jnp.float32),
            "aw2": bp["adain2_w"].reshape(cout, 1).astype(jnp.float32),
        })
    return kp


# --------------------------------------------------------------------------
# ParallelResBlock forward: ONE pallas_call
# --------------------------------------------------------------------------
def parallel_res_block(kp, x, noise_key):
    n, cin, length = x.shape
    in_w = kp["in_w"]                         # (k_in, c, cin)
    k_in, c, _ = in_w.shape
    blocks = kp["blocks"]
    n_br = len(blocks)
    ksizes = tuple(int(b["w1"].shape[1]) for b in blocks)
    n_stage = int(blocks[0]["w1"].shape[0])
    cdtype = in_w.dtype
    padmax = max([d * (k - 1) // 2 for k in ksizes for d in DILATIONS]
                 + [(k_in - 1) // 2])

    # Fresh Gaussian noise per (branch, AdaIN layer, sample) — torch.randn_like.
    noise = jax.random.normal(noise_key, (2, n_br, n, c, length), jnp.float32)
    n1, n2 = noise[0], noise[1]

    ins = [x, n1, n2, in_w, kp["in_b"]]
    in_specs = [
        pl.BlockSpec((1, cin, length), lambda i: (i, 0, 0)),
        pl.BlockSpec((n_br, 1, c, length), lambda i: (0, i, 0, 0)),
        pl.BlockSpec((n_br, 1, c, length), lambda i: (0, i, 0, 0)),
        pl.BlockSpec((k_in, c, cin), lambda i: (0, 0, 0)),
        pl.BlockSpec((c, 1), lambda i: (0, 0)),
    ]
    for bp, ks in zip(blocks, ksizes):
        ins += [bp["w1"], bp["b1"], bp["w2"], bp["b2"], bp["aw1"], bp["aw2"]]
        in_specs += [
            pl.BlockSpec((n_stage, ks, c, c), lambda i: (0, 0, 0, 0)),
            pl.BlockSpec((n_stage, c, 1), lambda i: (0, 0, 0)),
            pl.BlockSpec((n_stage, ks, c, c), lambda i: (0, 0, 0, 0)),
            pl.BlockSpec((n_stage, c, 1), lambda i: (0, 0, 0)),
            pl.BlockSpec((c, 1), lambda i: (0, 0)),
            pl.BlockSpec((c, 1), lambda i: (0, 0)),
        ]

    kern = functools.partial(
        _fused_kernel, cin=cin, c=c, L=length, padmax=padmax, k_in=k_in,
        ksizes=ksizes, dilations=DILATIONS, slope=LEAKY_SLOPE, cdtype=cdtype)

    return pl.pallas_call(
        kern,
        out_shape=jax.ShapeDtypeStruct((n, c, length), x.dtype),
        grid=(n,),
        in_specs=in_specs,
        out_specs=pl.BlockSpec((1, c, length), lambda i: (i, 0, 0)),
        scratch_shapes=[pltpu.VMEM((max(cin, c), length + 2 * padmax), cdtype)],
        compiler_params=pltpu.CompilerParams(
            dimension_semantics=("parallel",)),
    )(*ins)


if __name__ == "__main__":
    key = jax.random.PRNGKey(0)
    pkey, xkey, nkey = jax.random.split(key, 3)

    N, CIN, COUT, L = 2, 4, 8, 256
    raw_params = init_params(pkey, CIN, COUT)
    # bf16 matmul operands when channels are 16-aligned (production); f32 at
    # the tiny demo channel counts (per review caveat on sublane packing).
    compute_dtype = jnp.bfloat16 if (COUT % 16 == 0 and CIN % 16 == 0) else jnp.float32
    kparams = preprocess_params(raw_params, compute_dtype)

    x = jax.random.normal(xkey, (N, CIN, L), jnp.float32)

    fwd = jax.jit(parallel_res_block)
    out = jax.block_until_ready(fwd(kparams, x, nkey))

    assert out.shape == (N, COUT, L) and out.dtype == jnp.float32
    assert bool(jnp.all(jnp.isfinite(out)))
    print("KERNEL_OK")
</pallas_src>

<mosaic_0001>
module attributes {stable_mosaic.version = 11 : i64} {
  func.func @_fused_kernel(%arg0: i32, %arg1: memref<1x4x256xf32, #tpu.memory_space<vmem>>, %arg2: memref<3x1x8x256xf32, #tpu.memory_space<vmem>>, %arg3: memref<3x1x8x256xf32, #tpu.memory_space<vmem>>, %arg4: memref<7x8x4xf32, #tpu.memory_space<vmem>>, %arg5: memref<8x1xf32, #tpu.memory_space<vmem>>, %arg6: memref<3x3x8x8xf32, #tpu.memory_space<vmem>>, %arg7: memref<3x8x1xf32, #tpu.memory_space<vmem>>, %arg8: memref<3x3x8x8xf32, #tpu.memory_space<vmem>>, %arg9: memref<3x8x1xf32, #tpu.memory_space<vmem>>, %arg10: memref<8x1xf32, #tpu.memory_space<vmem>>, %arg11: memref<8x1xf32, #tpu.memory_space<vmem>>, %arg12: memref<3x7x8x8xf32, #tpu.memory_space<vmem>>, %arg13: memref<3x8x1xf32, #tpu.memory_space<vmem>>, %arg14: memref<3x7x8x8xf32, #tpu.memory_space<vmem>>, %arg15: memref<3x8x1xf32, #tpu.memory_space<vmem>>, %arg16: memref<8x1xf32, #tpu.memory_space<vmem>>, %arg17: memref<8x1xf32, #tpu.memory_space<vmem>>, %arg18: memref<3x11x8x8xf32, #tpu.memory_space<vmem>>, %arg19: memref<3x8x1xf32, #tpu.memory_space<vmem>>, %arg20: memref<3x11x8x8xf32, #tpu.memory_space<vmem>>, %arg21: memref<3x8x1xf32, #tpu.memory_space<vmem>>, %arg22: memref<8x1xf32, #tpu.memory_space<vmem>>, %arg23: memref<8x1xf32, #tpu.memory_space<vmem>>, %arg24: memref<1x8x256xf32, #tpu.memory_space<vmem>>, %arg25: memref<8x306xf32, #tpu.memory_space<vmem>>) attributes {dimension_semantics = [#tpu.dimension_semantics<parallel>], iteration_bounds = array<i64: 2>, scalar_prefetch = 0 : i64, scratch_operands = 1 : i64, tpu.core_type = #tpu.core_type<tc>, window_params = [{transform_indices = @transform_0, window_bounds = array<i64: 1, 4, 256>}, {transform_indices = @transform_1, window_bounds = array<i64: 3, 1, 8, 256>}, {transform_indices = @transform_2, window_bounds = array<i64: 3, 1, 8, 256>}, {pipeline_mode = #tpu.pipeline_mode<synchronous>, transform_indices = @transform_3, window_bounds = array<i64: 7, 8, 4>}, {pipeline_mode = #tpu.pipeline_mode<synchronous>, transform_indices = @transform_4, window_bounds = array<i64: 8, 1>}, {pipeline_mode = #tpu.pipeline_mode<synchronous>, transform_indices = @transform_5, window_bounds = array<i64: 3, 3, 8, 8>}, {pipeline_mode = #tpu.pipeline_mode<synchronous>, transform_indices = @transform_6, window_bounds = array<i64: 3, 8, 1>}, {pipeline_mode = #tpu.pipeline_mode<synchronous>, transform_indices = @transform_7, window_bounds = array<i64: 3, 3, 8, 8>}, {pipeline_mode = #tpu.pipeline_mode<synchronous>, transform_indices = @transform_8, window_bounds = array<i64: 3, 8, 1>}, {pipeline_mode = #tpu.pipeline_mode<synchronous>, transform_indices = @transform_9, window_bounds = array<i64: 8, 1>}, {pipeline_mode = #tpu.pipeline_mode<synchronous>, transform_indices = @transform_10, window_bounds = array<i64: 8, 1>}, {pipeline_mode = #tpu.pipeline_mode<synchronous>, transform_indices = @transform_11, window_bounds = array<i64: 3, 7, 8, 8>}, {pipeline_mode = #tpu.pipeline_mode<synchronous>, transform_indices = @transform_12, window_bounds = array<i64: 3, 8, 1>}, {pipeline_mode = #tpu.pipeline_mode<synchronous>, transform_indices = @transform_13, window_bounds = array<i64: 3, 7, 8, 8>}, {pipeline_mode = #tpu.pipeline_mode<synchronous>, transform_indices = @transform_14, window_bounds = array<i64: 3, 8, 1>}, {pipeline_mode = #tpu.pipeline_mode<synchronous>, transform_indices = @transform_15, window_bounds = array<i64: 8, 1>}, {pipeline_mode = #tpu.pipeline_mode<synchronous>, transform_indices = @transform_16, window_bounds = array<i64: 8, 1>}, {pipeline_mode = #tpu.pipeline_mode<synchronous>, transform_indices = @transform_17, window_bounds = array<i64: 3, 11, 8, 8>}, {pipeline_mode = #tpu.pipeline_mode<synchronous>, transform_indices = @transform_18, window_bounds = array<i64: 3, 8, 1>}, {pipeline_mode = #tpu.pipeline_mode<synchronous>, transform_indices = @transform_19, window_bounds = array<i64: 3, 11, 8, 8>}, {pipeline_mode = #tpu.pipeline_mode<synchronous>, transform_indices = @transform_20, window_bounds = array<i64: 3, 8, 1>}, {pipeline_mode = #tpu.pipeline_mode<synchronous>, transform_indices = @transform_21, window_bounds = array<i64: 8, 1>}, {pipeline_mode = #tpu.pipeline_mode<synchronous>, transform_indices = @transform_22, window_bounds = array<i64: 8, 1>}, {transform_indices = @transform_23, window_bounds = array<i64: 1, 8, 256>}]} {
    %cst = arith.constant 0.000000e+00 : f32
    %0 = vector.broadcast %cst : f32 to vector<8x306xf32>
    %c0 = arith.constant 0 : index
    %c0_0 = arith.constant 0 : index
    %1 = vector.load %arg25[%c0, %c0_0] : memref<8x306xf32, #tpu.memory_space<vmem>>, vector<8x306xf32>
    tpu.vector_store %arg25[%c0, %c0_0], %0 {strides = array<i32>} : memref<8x306xf32, #tpu.memory_space<vmem>>, vector<8x306xf32>,
    %c0_1 = arith.constant 0 : index
    %c0_2 = arith.constant 0 : index
    %c0_3 = arith.constant 0 : index
    %2 = vector.load %arg1[%c0_1, %c0_2, %c0_3] : memref<1x4x256xf32, #tpu.memory_space<vmem>>, vector<1x4x256xf32>
    %3 = vector.shape_cast %2 : vector<1x4x256xf32> to vector<4x256xf32>
    %c0_4 = arith.constant 0 : index
    %c25 = arith.constant 25 : index
    %4 = vector.load %arg25[%c0_4, %c25] : memref<8x306xf32, #tpu.memory_space<vmem>>, vector<4x256xf32>
    tpu.vector_store %arg25[%c0_4, %c25], %3 {strides = array<i32>} : memref<8x306xf32, #tpu.memory_space<vmem>>, vector<4x256xf32>,
    %c0_5 = arith.constant 0 : index
    %c0_6 = arith.constant 0 : index
    %c0_7 = arith.constant 0 : index
    %5 = vector.load %arg4[%c0_5, %c0_6, %c0_7] : memref<7x8x4xf32, #tpu.memory_space<vmem>>, vector<7x8x4xf32>
    %c0_8 = arith.constant 0 : index
    %c0_9 = arith.constant 0 : index
    %6 = vector.load %arg5[%c0_8, %c0_9] : memref<8x1xf32, #tpu.memory_space<vmem>>, vector<8x1xf32>
    %c0_10 = arith.constant 0 : index
    %c22 = arith.constant 22 : index
    %7 = vector.load %arg25[%c0_10, %c22] : memref<8x306xf32, #tpu.memory_space<vmem>>, vector<4x256xf32>
    %8 = vector.extract_strided_slice %5 {offsets = [0, 0, 0], sizes = [1, 8, 4], strides = [1, 1, 1]} : vector<7x8x4xf32> to vector<1x8x4xf32>
    %9 = vector.shape_cast %8 : vector<1x8x4xf32> to vector<8x4xf32>
    %cst_11 = arith.constant dense<0.000000e+00> : vector<8x256xf32>
    %10 = tpu.matmul %9, %7, %cst_11 {dimension_numbers = #tpu.dot_dimension_numbers<[1], [0], [0], [1], [0, 0, 1, 1], [], []>} : vector<8x4xf32>, vector<4x256xf32>, vector<8x256xf32> -> vector<8x256xf32>
    %c0_12 = arith.constant 0 : index
    %c23 = arith.constant 23 : index
    %11 = vector.load %arg25[%c0_12, %c23] : memref<8x306xf32, #tpu.memory_space<vmem>>, vector<4x256xf32>
    %12 = vector.extract_strided_slice %5 {offsets = [1, 0, 0], sizes = [1, 8, 4], strides = [1, 1, 1]} : vector<7x8x4xf32> to vector<1x8x4xf32>
    %13 = vector.shape_cast %12 : vector<1x8x4xf32> to vector<8x4xf32>
    %cst_13 = arith.constant dense<0.000000e+00> : vector<8x256xf32>
    %14 = tpu.matmul %13, %11, %cst_13 {dimension_numbers = #tpu.dot_dimension_numbers<[1], [0], [0], [1], [0, 0, 1, 1], [], []>} : vector<8x4xf32>, vector<4x256xf32>, vector<8x256xf32> -> vector<8x256xf32>
    %15 = arith.addf %10, %14 : vector<8x256xf32>
    %c0_14 = arith.constant 0 : index
    %c24 = arith.constant 24 : index
    %16 = vector.load %arg25[%c0_14, %c24] : memref<8x306xf32, #tpu.memory_space<vmem>>, vector<4x256xf32>
    %17 = vector.extract_strided_slice %5 {offsets = [2, 0, 0], sizes = [1, 8, 4], strides = [1, 1, 1]} : vector<7x8x4xf32> to vector<1x8x4xf32>
    %18 = vector.shape_cast %17 : vector<1x8x4xf32> to vector<8x4xf32>
    %cst_15 = arith.constant dense<0.000000e+00> : vector<8x256xf32>
    %19 = tpu.matmul %18, %16, %cst_15 {dimension_numbers = #tpu.dot_dimension_numbers<[1], [0], [0], [1], [0, 0, 1, 1], [], []>} : vector<8x4xf32>, vector<4x256xf32>, vector<8x256xf32> -> vector<8x256xf32>
    %20 = arith.addf %15, %19 : vector<8x256xf32>
    %c0_16 = arith.constant 0 : index
    %c25_17 = arith.constant 25 : index
    %21 = vector.load %arg25[%c0_16, %c25_17] : memref<8x306xf32, #tpu.memory_space<vmem>>, vector<4x256xf32>
    %22 = vector.extract_strided_slice %5 {offsets = [3, 0, 0], sizes = [1, 8, 4], strides = [1, 1, 1]} : vector<7x8x4xf32> to vector<1x8x4xf32>
    %23 = vector.shape_cast %22 : vector<1x8x4xf32> to vector<8x4xf32>
    %cst_18 = arith.constant dense<0.000000e+00> : vector<8x256xf32>
    %24 = tpu.matmul %23, %21, %cst_18 {dimension_numbers = #tpu.dot_dimension_numbers<[1], [0], [0], [1], [0, 0, 1, 1], [], []>} : vector<8x4xf32>, vector<4x256xf32>, vector<8x256xf32> -> vector<8x256xf32>
    %25 = arith.addf %20, %24 : vector<8x256xf32>
    %c0_19 = arith.constant 0 : index
    %c26 = arith.constant 26 : index
    %26 = vector.load %arg25[%c0_19, %c26] : memref<8x306xf32, #tpu.memory_space<vmem>>, vector<4x256xf32>
    %27 = vector.extract_strided_slice %5 {offsets = [4, 0, 0], sizes = [1, 8, 4], strides = [1, 1, 1]} : vector<7x8x4xf32> to vector<1x8x4xf32>
    %28 = vector.shape_cast %27 : vector<1x8x4xf32> to vector<8x4xf32>
    %cst_20 = arith.constant dense<0.000000e+00> : vector<8x256xf32>
    %29 = tpu.matmul %28, %26, %cst_20 {dimension_numbers = #tpu.dot_dimension_numbers<[1], [0], [0], [1], [0, 0, 1, 1], [], []>} : vector<8x4xf32>, vector<4x256xf32>, vector<8x256xf32> -> vector<8x256xf32>
    %30 = arith.addf %25, %29 : vector<8x256xf32>
    %c0_21 = arith.constant 0 : index
    %c27 = arith.constant 27 : index
    %31 = vector.load %arg25[%c0_21, %c27] : memref<8x306xf32, #tpu.memory_space<vmem>>, vector<4x256xf32>
    %32 = vector.extract_strided_slice %5 {offsets = [5, 0, 0], sizes = [1, 8, 4], strides = [1, 1, 1]} : vector<7x8x4xf32> to vector<1x8x4xf32>
    %33 = vector.shape_cast %32 : vector<1x8x4xf32> to vector<8x4xf32>
    %cst_22 = arith.constant dense<0.000000e+00> : vector<8x256xf32>
    %34 = tpu.matmul %33, %31, %cst_22 {dimension_numbers = #tpu.dot_dimension_numbers<[1], [0], [0], [1], [0, 0, 1, 1], [], []>} : vector<8x4xf32>, vector<4x256xf32>, vector<8x256xf32> -> vector<8x256xf32>
    %35 = arith.addf %30, %34 : vector<8x256xf32>
    %c0_23 = arith.constant 0 : index
    %c28 = arith.constant 28 : index
    %36 = vector.load %arg25[%c0_23, %c28] : memref<8x306xf32, #tpu.memory_space<vmem>>, vector<4x256xf32>
    %37 = vector.extract_strided_slice %5 {offsets = [6, 0, 0], sizes = [1, 8, 4], strides = [1, 1, 1]} : vector<7x8x4xf32> to vector<1x8x4xf32>
    %38 = vector.shape_cast %37 : vector<1x8x4xf32> to vector<8x4xf32>
    %cst_24 = arith.constant dense<0.000000e+00> : vector<8x256xf32>
    %39 = tpu.matmul %38, %36, %cst_24 {dimension_numbers = #tpu.dot_dimension_numbers<[1], [0], [0], [1], [0, 0, 1, 1], [], []>} : vector<8x4xf32>, vector<4x256xf32>, vector<8x256xf32> -> vector<8x256xf32>
    %40 = arith.addf %35, %39 : vector<8x256xf32>
    %41 = vector.broadcast %6 : vector<8x1xf32> to vector<8x256xf32>
    %42 = arith.addf %40, %41 : vector<8x256xf32>
    %c0_25 = arith.constant 0 : index
    %c0_26 = arith.constant 0 : index
    %c0_27 = arith.constant 0 : index
    %c0_28 = arith.constant 0 : index
    %43 = vector.load %arg2[%c0_25, %c0_26, %c0_27, %c0_28] : memref<3x1x8x256xf32, #tpu.memory_space<vmem>>, vector<1x1x8x256xf32>
    %44 = vector.shape_cast %43 : vector<1x1x8x256xf32> to vector<8x256xf32>
    %c0_29 = arith.constant 0 : index
    %c0_30 = arith.constant 0 : index
    %45 = vector.load %arg10[%c0_29, %c0_30] : memref<8x1xf32, #tpu.memory_space<vmem>>, vector<8x1xf32>
    %46 = vector.broadcast %45 : vector<8x1xf32> to vector<8x256xf32>
    %47 = arith.mulf %44, %46 : vector<8x256xf32>
    %48 = arith.addf %42, %47 : vector<8x256xf32>
    %cst_31 = arith.constant 2.000000e-01 : f32
    %49 = vector.broadcast %cst_31 : f32 to vector<8x256xf32>
    %50 = arith.mulf %48, %49 : vector<8x256xf32>
    %51 = arith.maximumf %48, %50 : vector<8x256xf32>
    %cst_32 = arith.constant 2.000000e-01 : f32
    %52 = vector.broadcast %cst_32 : f32 to vector<8x256xf32>
    %53 = arith.mulf %51, %52 : vector<8x256xf32>
    %54 = arith.maximumf %51, %53 : vector<8x256xf32>
    %c0_33 = arith.constant 0 : index
    %c25_34 = arith.constant 25 : index
    %55 = vector.load %arg25[%c0_33, %c25_34] : memref<8x306xf32, #tpu.memory_space<vmem>>, vector<8x256xf32>
    tpu.vector_store %arg25[%c0_33, %c25_34], %54 {strides = array<i32>} : memref<8x306xf32, #tpu.memory_space<vmem>>, vector<8x256xf32>,
    %c0_35 = arith.constant 0 : index
    %c0_36 = arith.constant 0 : index
    %c0_37 = arith.constant 0 : index
    %c0_38 = arith.constant 0 : index
    %56 = vector.load %arg6[%c0_35, %c0_36, %c0_37, %c0_38] : memref<3x3x8x8xf32, #tpu.memory_space<vmem>>, vector<1x3x8x8xf32>
    %57 = vector.shape_cast %56 : vector<1x3x8x8xf32> to vector<3x8x8xf32>
    %c0_39 = arith.constant 0 : index
    %c0_40 = arith.constant 0 : index
    %c0_41 = arith.constant 0 : index
    %58 = vector.load %arg7[%c0_39, %c0_40, %c0_41] : memref<3x8x1xf32, #tpu.memory_space<vmem>>, vector<1x8x1xf32>
    %59 = vector.shape_cast %58 : vector<1x8x1xf32> to vector<8x1xf32>
    %c0_42 = arith.constant 0 : index
    %c24_43 = arith.constant 24 : index
    %60 = vector.load %arg25[%c0_42, %c24_43] : memref<8x306xf32, #tpu.memory_space<vmem>>, vector<8x256xf32>
    %61 = vector.extract_strided_slice %57 {offsets = [0, 0, 0], sizes = [1, 8, 8], strides = [1, 1, 1]} : vector<3x8x8xf32> to vector<1x8x8xf32>
    %62 = vector.shape_cast %61 : vector<1x8x8xf32> to vector<8x8xf32>
    %cst_44 = arith.constant dense<0.000000e+00> : vector<8x256xf32>
    %63 = tpu.matmul %62, %60, %cst_44 {dimension_numbers = #tpu.dot_dimension_numbers<[1], [0], [0], [1], [0, 0, 1, 1], [], []>} : vector<8x8xf32>, vector<8x256xf32>, vector<8x256xf32> -> vector<8x256xf32>
    %c0_45 = arith.constant 0 : index
    %c25_46 = arith.constant 25 : index
    %64 = vector.load %arg25[%c0_45, %c25_46] : memref<8x306xf32, #tpu.memory_space<vmem>>, vector<8x256xf32>
    %65 = vector.extract_strided_slice %57 {offsets = [1, 0, 0], sizes = [1, 8, 8], strides = [1, 1, 1]} : vector<3x8x8xf32> to vector<1x8x8xf32>
    %66 = vector.shape_cast %65 : vector<1x8x8xf32> to vector<8x8xf32>
    %cst_47 = arith.constant dense<0.000000e+00> : vector<8x256xf32>
    %67 = tpu.matmul %66, %64, %cst_47 {dimension_numbers = #tpu.dot_dimension_numbers<[1], [0], [0], [1], [0, 0, 1, 1], [], []>} : vector<8x8xf32>, vector<8x256xf32>, vector<8x256xf32> -> vector<8x256xf32>
    %68 = arith.addf %63, %67 : vector<8x256xf32>
    %c0_48 = arith.constant 0 : index
    %c26_49 = arith.constant 26 : index
    %69 = vector.load %arg25[%c0_48, %c26_49] : memref<8x306xf32, #tpu.memory_space<vmem>>, vector<8x256xf32>
    %70 = vector.extract_strided_slice %57 {offsets = [2, 0, 0], sizes = [1, 8, 8], strides = [1, 1, 1]} : vector<3x8x8xf32> to vector<1x8x8xf32>
    %71 = vector.shape_cast %70 : vector<1x8x8xf32> to vector<8x8xf32>
    %cst_50 = arith.constant dense<0.000000e+00> : vector<8x256xf32>
    %72 = tpu.matmul %71, %69, %cst_50 {dimension_numbers = #tpu.dot_dimension_numbers<[1], [0], [0], [1], [0, 0, 1, 1], [], []>} : vector<8x8xf32>, vector<8x256xf32>, vector<8x256xf32> -> vector<8x256xf32>
    %73 = arith.addf %68, %72 : vector<8x256xf32>
    %74 = vector.broadcast %59 : vector<8x1xf32> to vector<8x256xf32>
    %75 = arith.addf %73, %74 : vector<8x256xf32>
    %cst_51 = arith.constant 2.000000e-01 : f32
    %76 = vector.broadcast %cst_51 : f32 to vector<8x256xf32>
    %77 = arith.mulf %75, %76 : vector<8x256xf32>
    %78 = arith.maximumf %75, %77 : vector<8x256xf32>
    %c0_52 = arith.constant 0 : index
    %c25_53 = arith.constant 25 : index
    %79 = vector.load %arg25[%c0_52, %c25_53] : memref<8x306xf32, #tpu.memory_space<vmem>>, vector<8x256xf32>
    tpu.vector_store %arg25[%c0_52, %c25_53], %78 {strides = array<i32>} : memref<8x306xf32, #tpu.memory_space<vmem>>, vector<8x256xf32>,
    %c0_54 = arith.constant 0 : index
    %c0_55 = arith.constant 0 : index
    %c0_56 = arith.constant 0 : index
    %c0_57 = arith.constant 0 : index
    %80 = vector.load %arg8[%c0_54, %c0_55, %c0_56, %c0_57] : memref<3x3x8x8xf32, #tpu.memory_space<vmem>>, vector<1x3x8x8xf32>
    %81 = vector.shape_cast %80 : vector<1x3x8x8xf32> to vector<3x8x8xf32>
    %c0_58 = arith.constant 0 : index
    %c0_59 = arith.constant 0 : index
    %c0_60 = arith.constant 0 : index
    %82 = vector.load %arg9[%c0_58, %c0_59, %c0_60] : memref<3x8x1xf32, #tpu.memory_space<vmem>>, vector<1x8x1xf32>
    %83 = vector.shape_cast %82 : vector<1x8x1xf32> to vector<8x1xf32>
    %c0_61 = arith.constant 0 : index
    %c24_62 = arith.constant 24 : index
    %84 = vector.load %arg25[%c0_61, %c24_62] : memref<8x306xf32, #tpu.memory_space<vmem>>, vector<8x256xf32>
    %85 = vector.extract_strided_slice %81 {offsets = [0, 0, 0], sizes = [1, 8, 8], strides = [1, 1, 1]} : vector<3x8x8xf32> to vector<1x8x8xf32>
    %86 = vector.shape_cast %85 : vector<1x8x8xf32> to vector<8x8xf32>
    %cst_63 = arith.constant dense<0.000000e+00> : vector<8x256xf32>
    %87 = tpu.matmul %86, %84, %cst_63 {dimension_numbers = #tpu.dot_dimension_numbers<[1], [0], [0], [1], [0, 0, 1, 1], [], []>} : vector<8x8xf32>, vector<8x256xf32>, vector<8x256xf32> -> vector<8x256xf32>
    %c0_64 = arith.constant 0 : index
    %c25_65 = arith.constant 25 : index
    %88 = vector.load %arg25[%c0_64, %c25_65] : memref<8x306xf32, #tpu.memory_space<vmem>>, vector<8x256xf32>
    %89 = vector.extract_strided_slice %81 {offsets = [1, 0, 0], sizes = [1, 8, 8], strides = [1, 1, 1]} : vector<3x8x8xf32> to vector<1x8x8xf32>
    %90 = vector.shape_cast %89 : vector<1x8x8xf32> to vector<8x8xf32>
    %cst_66 = arith.constant dense<0.000000e+00> : vector<8x256xf32>
    %91 = tpu.matmul %90, %88, %cst_66 {dimension_numbers = #tpu.dot_dimension_numbers<[1], [0], [0], [1], [0, 0, 1, 1], [], []>} : vector<8x8xf32>, vector<8x256xf32>, vector<8x256xf32> -> vector<8x256xf32>
    %92 = arith.addf %87, %91 : vector<8x256xf32>
    %c0_67 = arith.constant 0 : index
    %c26_68 = arith.constant 26 : index
    %93 = vector.load %arg25[%c0_67, %c26_68] : memref<8x306xf32, #tpu.memory_space<vmem>>, vector<8x256xf32>
    %94 = vector.extract_strided_slice %81 {offsets = [2, 0, 0], sizes = [1, 8, 8], strides = [1, 1, 1]} : vector<3x8x8xf32> to vector<1x8x8xf32>
    %95 = vector.shape_cast %94 : vector<1x8x8xf32> to vector<8x8xf32>
    %cst_69 = arith.constant dense<0.000000e+00> : vector<8x256xf32>
    %96 = tpu.matmul %95, %93, %cst_69 {dimension_numbers = #tpu.dot_dimension_numbers<[1], [0], [0], [1], [0, 0, 1, 1], [], []>} : vector<8x8xf32>, vector<8x256xf32>, vector<8x256xf32> -> vector<8x256xf32>
    %97 = arith.addf %92, %96 : vector<8x256xf32>
    %98 = vector.broadcast %83 : vector<8x1xf32> to vector<8x256xf32>
    %99 = arith.addf %97, %98 : vector<8x256xf32>
    %100 = arith.addf %99, %51 : vector<8x256xf32>
    %cst_70 = arith.constant 2.000000e-01 : f32
    %101 = vector.broadcast %cst_70 : f32 to vector<8x256xf32>
    %102 = arith.mulf %100, %101 : vector<8x256xf32>
    %103 = arith.maximumf %100, %102 : vector<8x256xf32>
    %c0_71 = arith.constant 0 : index
    %c25_72 = arith.constant 25 : index
    %104 = vector.load %arg25[%c0_71, %c25_72] : memref<8x306xf32, #tpu.memory_space<vmem>>, vector<8x256xf32>
    tpu.vector_store %arg25[%c0_71, %c25_72], %103 {strides = array<i32>} : memref<8x306xf32, #tpu.memory_space<vmem>>, vector<8x256xf32>,
    %c1 = arith.constant 1 : index
    %c0_73 = arith.constant 0 : index
    %c0_74 = arith.constant 0 : index
    %c0_75 = arith.constant 0 : index
    %105 = vector.load %arg6[%c1, %c0_73, %c0_74, %c0_75] : memref<3x3x8x8xf32, #tpu.memory_space<vmem>>, vector<1x3x8x8xf32>
    %106 = vector.shape_cast %105 : vector<1x3x8x8xf32> to vector<3x8x8xf32>
    %c1_76 = arith.constant 1 : index
    %c0_77 = arith.constant 0 : index
    %c0_78 = arith.constant 0 : index
    %107 = vector.load %arg7[%c1_76, %c0_77, %c0_78] : memref<3x8x1xf32, #tpu.memory_space<vmem>>, vector<1x8x1xf32>
    %108 = vector.shape_cast %107 : vector<1x8x1xf32> to vector<8x1xf32>
    %c0_79 = arith.constant 0 : index
    %c22_80 = arith.constant 22 : index
    %109 = vector.load %arg25[%c0_79, %c22_80] : memref<8x306xf32, #tpu.memory_space<vmem>>, vector<8x256xf32>
    %110 = vector.extract_strided_slice %106 {offsets = [0, 0, 0], sizes = [1, 8, 8], strides = [1, 1, 1]} : vector<3x8x8xf32> to vector<1x8x8xf32>
    %111 = vector.shape_cast %110 : vector<1x8x8xf32> to vector<8x8xf32>
    %cst_81 = arith.constant dense<0.000000e+00> : vector<8x256xf32>
    %112 = tpu.matmul %111, %109, %cst_81 {dimension_numbers = #tpu.dot_dimension_numbers<[1], [0], [0], [1], [0, 0, 1, 1], [], []>} : vector<8x8xf32>, vector<8x256xf32>, vector<8x256xf32> -> vector<8x256xf32>
    %c0_82 = arith.constant 0 : index
    %c25_83 = arith.constant 25 : index
    %113 = vector.load %arg25[%c0_82, %c25_83] : memref<8x306xf32, #tpu.memory_space<vmem>>, vector<8x256xf32>
    %114 = vector.extract_strided_slice %106 {offsets = [1, 0, 0], sizes = [1, 8, 8], strides = [1, 1, 1]} : vector<3x8x8xf32> to vector<1x8x8xf32>
    %115 = vector.shape_cast %114 : vector<1x8x8xf32> to vector<8x8xf32>
    %cst_84 = arith.constant dense<0.000000e+00> : vector<8x256xf32>
    %116 = tpu.matmul %115, %113, %cst_84 {dimension_numbers = #tpu.dot_dimension_numbers<[1], [0], [0], [1], [0, 0, 1, 1], [], []>} : vector<8x8xf32>, vector<8x256xf32>, vector<8x256xf32> -> vector<8x256xf32>
    %117 = arith.addf %112, %116 : vector<8x256xf32>
    %c0_85 = arith.constant 0 : index
    %c28_86 = arith.constant 28 : index
    %118 = vector.load %arg25[%c0_85, %c28_86] : memref<8x306xf32, #tpu.memory_space<vmem>>, vector<8x256xf32>
    %119 = vector.extract_strided_slice %106 {offsets = [2, 0, 0], sizes = [1, 8, 8], strides = [1, 1, 1]} : vector<3x8x8xf32> to vector<1x8x8xf32>
    %120 = vector.shape_cast %119 : vector<1x8x8xf32> to vector<8x8xf32>
    %cst_87 = arith.constant dense<0.000000e+00> : vector<8x256xf32>
    %121 = tpu.matmul %120, %118, %cst_87 {dimension_numbers = #tpu.dot_dimension_numbers<[1], [0], [0], [1], [0, 0, 1, 1], [], []>} : vector<8x8xf32>, vector<8x256xf32>, vector<8x256xf32> -> vector<8x256xf32>
    %122 = arith.addf %117, %121 : vector<8x256xf32>
    %123 = vector.broadcast %108 : vector<8x1xf32> to vector<8x256xf32>
    %124 = arith.addf %122, %123 : vector<8x256xf32>
    %cst_88 = arith.constant 2.000000e-01 : f32
    %125 = vector.broadcast %cst_88 : f32 to vector<8x256xf32>
    %126 = arith.mulf %124, %125 : vector<8x256xf32>
    %127 = arith.maximumf %124, %126 : vector<8x256xf32>
    %c0_89 = arith.constant 0 : index
    %c25_90 = arith.constant 25 : index
    %128 = vector.load %arg25[%c0_89, %c25_90] : memref<8x306xf32, #tpu.memory_space<vmem>>, vector<8x256xf32>
    tpu.vector_store %arg25[%c0_89, %c25_90], %127 {strides = array<i32>} : memref<8x306xf32, #tpu.memory_space<vmem>>, vector<8x256xf32>,
    %c1_91 = arith.constant 1 : index
    %c0_92 = arith.constant 0 : index
    %c0_93 = arith.constant 0 : index
    %c0_94 = arith.constant 0 : index
    %129 = vector.load %arg8[%c1_91, %c0_92, %c0_93, %c0_94] : memref<3x3x8x8xf32, #tpu.memory_space<vmem>>, vector<1x3x8x8xf32>
    %130 = vector.shape_cast %129 : vector<1x3x8x8xf32> to vector<3x8x8xf32>
    %c1_95 = arith.constant 1 : index
    %c0_96 = arith.constant 0 : index
    %c0_97 = arith.constant 0 : index
    %131 = vector.load %arg9[%c1_95, %c0_96, %c0_97] : memref<3x8x1xf32, #tpu.memory_space<vmem>>, vector<1x8x1xf32>
    %132 = vector.shape_cast %131 : vector<1x8x1xf32> to vector<8x1xf32>
    %c0_98 = arith.constant 0 : index
    %c22_99 = arith.constant 22 : index
    %133 = vector.load %arg25[%c0_98, %c22_99] : memref<8x306xf32, #tpu.memory_space<vmem>>, vector<8x256xf32>
    %134 = vector.extract_strided_slice %130 {offsets = [0, 0, 0], sizes = [1, 8, 8], strides = [1, 1, 1]} : vector<3x8x8xf32> to vector<1x8x8xf32>
    %135 = vector.shape_cast %134 : vector<1x8x8xf32> to vector<8x8xf32>
    %cst_100 = arith.constant dense<0.000000e+00> : vector<8x256xf32>
    %136 = tpu.matmul %135, %133, %cst_100 {dimension_numbers = #tpu.dot_dimension_numbers<[1], [0], [0], [1], [0, 0, 1, 1], [], []>} : vector<8x8xf32>, vector<8x256xf32>, vector<8x256xf32> -> vector<8x256xf32>
    %c0_101 = arith.constant 0 : index
    %c25_102 = arith.constant 25 : index
    %137 = vector.load %arg25[%c0_101, %c25_102] : memref<8x306xf32, #tpu.memory_space<vmem>>, vector<8x256xf32>
    %138 = vector.extract_strided_slice %130 {offsets = [1, 0, 0], sizes = [1, 8, 8], strides = [1, 1, 1]} : vector<3x8x8xf32> to vector<1x8x8xf32>
    %139 = vector.shape_cast %138 : vector<1x8x8xf32> to vector<8x8xf32>
    %cst_103 = arith.constant dense<0.000000e+00> : vector<8x256xf32>
    %140 = tpu.matmul %139, %137, %cst_103 {dimension_numbers = #tpu.dot_dimension_numbers<[1], [0], [0], [1], [0, 0, 1, 1], [], []>} : vector<8x8xf32>, vector<8x256xf32>, vector<8x256xf32> -> vector<8x256xf32>
    %141 = arith.addf %136, %140 : vector<8x256xf32>
    %c0_104 = arith.constant 0 : index
    %c28_105 = arith.constant 28 : index
    %142 = vector.load %arg25[%c0_104, %c28_105] : memref<8x306xf32, #tpu.memory_space<vmem>>, vector<8x256xf32>
    %143 = vector.extract_strided_slice %130 {offsets = [2, 0, 0], sizes = [1, 8, 8], strides = [1, 1, 1]} : vector<3x8x8xf32> to vector<1x8x8xf32>
    %144 = vector.shape_cast %143 : vector<1x8x8xf32> to vector<8x8xf32>
    %cst_106 = arith.constant dense<0.000000e+00> : vector<8x256xf32>
    %145 = tpu.matmul %144, %142, %cst_106 {dimension_numbers = #tpu.dot_dimension_numbers<[1], [0], [0], [1], [0, 0, 1, 1], [], []>} : vector<8x8xf32>, vector<8x256xf32>, vector<8x256xf32> -> vector<8x256xf32>
    %146 = arith.addf %141, %145 : vector<8x256xf32>
    %147 = vector.broadcast %132 : vector<8x1xf32> to vector<8x256xf32>
    %148 = arith.addf %146, %147 : vector<8x256xf32>
    %149 = arith.addf %148, %100 : vector<8x256xf32>
    %cst_107 = arith.constant 2.000000e-01 : f32
    %150 = vector.broadcast %cst_107 : f32 to vector<8x256xf32>
    %151 = arith.mulf %149, %150 : vector<8x256xf32>
    %152 = arith.maximumf %149, %151 : vector<8x256xf32>
    %c0_108 = arith.constant 0 : index
    %c25_109 = arith.constant 25 : index
    %153 = vector.load %arg25[%c0_108, %c25_109] : memref<8x306xf32, #tpu.memory_space<vmem>>, vector<8x256xf32>
    tpu.vector_store %arg25[%c0_108, %c25_109], %152 {strides = array<i32>} : memref<8x306xf32, #tpu.memory_space<vmem>>, vector<8x256xf32>,
    %c2 = arith.constant 2 : index
    %c0_110 = arith.constant 0 : index
    %c0_111 = arith.constant 0 : index
    %c0_112 = arith.constant 0 : index
    %154 = vector.load %arg6[%c2, %c0_110, %c0_111, %c0_112] : memref<3x3x8x8xf32, #tpu.memory_space<vmem>>, vector<1x3x8x8xf32>
    %155 = vector.shape_cast %154 : vector<1x3x8x8xf32> to vector<3x8x8xf32>
    %c2_113 = arith.constant 2 : index
    %c0_114 = arith.constant 0 : index
    %c0_115 = arith.constant 0 : index
    %156 = vector.load %arg7[%c2_113, %c0_114, %c0_115] : memref<3x8x1xf32, #tpu.memory_space<vmem>>, vector<1x8x1xf32>
    %157 = vector.shape_cast %156 : vector<1x8x1xf32> to vector<8x1xf32>
    %c0_116 = arith.constant 0 : index
    %c20 = arith.constant 20 : index
    %158 = vector.load %arg25[%c0_116, %c20] : memref<8x306xf32, #tpu.memory_space<vmem>>, vector<8x256xf32>
    %159 = vector.extract_strided_slice %155 {offsets = [0, 0, 0], sizes = [1, 8, 8], strides = [1, 1, 1]} : vector<3x8x8xf32> to vector<1x8x8xf32>
    %160 = vector.shape_cast %159 : vector<1x8x8xf32> to vector<8x8xf32>
    %cst_117 = arith.constant dense<0.000000e+00> : vector<8x256xf32>
    %161 = tpu.matmul %160, %158, %cst_117 {dimension_numbers = #tpu.dot_dimension_numbers<[1], [0], [0], [1], [0, 0, 1, 1], [], []>} : vector<8x8xf32>, vector<8x256xf32>, vector<8x256xf32> -> vector<8x256xf32>
    %c0_118 = arith.constant 0 : index
    %c25_119 = arith.constant 25 : index
    %162 = vector.load %arg25[%c0_118, %c25_119] : memref<8x306xf32, #tpu.memory_space<vmem>>, vector<8x256xf32>
    %163 = vector.extract_strided_slice %155 {offsets = [1, 0, 0], sizes = [1, 8, 8], strides = [1, 1, 1]} : vector<3x8x8xf32> to vector<1x8x8xf32>
    %164 = vector.shape_cast %163 : vector<1x8x8xf32> to vector<8x8xf32>
    %cst_120 = arith.constant dense<0.000000e+00> : vector<8x256xf32>
    %165 = tpu.matmul %164, %162, %cst_120 {dimension_numbers = #tpu.dot_dimension_numbers<[1], [0], [0], [1], [0, 0, 1, 1], [], []>} : vector<8x8xf32>, vector<8x256xf32>, vector<8x256xf32> -> vector<8x256xf32>
    %166 = arith.addf %161, %165 : vector<8x256xf32>
    %c0_121 = arith.constant 0 : index
    %c30 = arith.constant 30 : index
    %167 = vector.load %arg25[%c0_121, %c30] : memref<8x306xf32, #tpu.memory_space<vmem>>, vector<8x256xf32>
    %168 = vector.extract_strided_slice %155 {offsets = [2, 0, 0], sizes = [1, 8, 8], strides = [1, 1, 1]} : vector<3x8x8xf32> to vector<1x8x8xf32>
    %169 = vector.shape_cast %168 : vector<1x8x8xf32> to vector<8x8xf32>
    %cst_122 = arith.constant dense<0.000000e+00> : vector<8x256xf32>
    %170 = tpu.matmul %169, %167, %cst_122 {dimension_numbers = #tpu.dot_dimension_numbers<[1], [0], [0], [1], [0, 0, 1, 1], [], []>} : vector<8x8xf32>, vector<8x256xf32>, vector<8x256xf32> -> vector<8x256xf32>
    %171 = arith.addf %166, %170 : vector<8x256xf32>
    %172 = vector.broadcast %157 : vector<8x1xf32> to vector<8x256xf32>
    %173 = arith.addf %171, %172 : vector<8x256xf32>
    %cst_123 = arith.constant 2.000000e-01 : f32
    %174 = vector.broadcast %cst_123 : f32 to vector<8x256xf32>
    %175 = arith.mulf %173, %174 : vector<8x256xf32>
    %176 = arith.maximumf %173, %175 : vector<8x256xf32>
    %c0_124 = arith.constant 0 : index
    %c25_125 = arith.constant 25 : index
    %177 = vector.load %arg25[%c0_124, %c25_125] : memref<8x306xf32, #tpu.memory_space<vmem>>, vector<8x256xf32>
    tpu.vector_store %arg25[%c0_124, %c25_125], %176 {strides = array<i32>} : memref<8x306xf32, #tpu.memory_space<vmem>>, vector<8x256xf32>,
    %c2_126 = arith.constant 2 : index
    %c0_127 = arith.constant 0 : index
    %c0_128 = arith.constant 0 : index
    %c0_129 = arith.constant 0 : index
    %178 = vector.load %arg8[%c2_126, %c0_127, %c0_128, %c0_129] : memref<3x3x8x8xf32, #tpu.memory_space<vmem>>, vector<1x3x8x8xf32>
    %179 = vector.shape_cast %178 : vector<1x3x8x8xf32> to vector<3x8x8xf32>
    %c2_130 = arith.constant 2 : index
    %c0_131 = arith.constant 0 : index
    %c0_132 = arith.constant 0 : index
    %180 = vector.load %arg9[%c2_130, %c0_131, %c0_132] : memref<3x8x1xf32, #tpu.memory_space<vmem>>, vector<1x8x1xf32>
    %181 = vector.shape_cast %180 : vector<1x8x1xf32> to vector<8x1xf32>
    %c0_133 = arith.constant 0 : index
    %c20_134 = arith.constant 20 : index
    %182 = vector.load %arg25[%c0_133, %c20_134] : memref<8x306xf32, #tpu.memory_space<vmem>>, vector<8x256xf32>
    %183 = vector.extract_strided_slice %179 {offsets = [0, 0, 0], sizes = [1, 8, 8], strides = [1, 1, 1]} : vector<3x8x8xf32> to vector<1x8x8xf32>
    %184 = vector.shape_cast %183 : vector<1x8x8xf32> to vector<8x8xf32>
    %cst_135 = arith.constant dense<0.000000e+00> : vector<8x256xf32>
    %185 = tpu.matmul %184, %182, %cst_135 {dimension_numbers = #tpu.dot_dimension_numbers<[1], [0], [0], [1], [0, 0, 1, 1], [], []>} : vector<8x8xf32>, vector<8x256xf32>, vector<8x256xf32> -> vector<8x256xf32>
    %c0_136 = arith.constant 0 : index
    %c25_137 = arith.constant 25 : index
    %186 = vector.load %arg25[%c0_136, %c25_137] : memref<8x306xf32, #tpu.memory_space<vmem>>, vector<8x256xf32>
    %187 = vector.extract_strided_slice %179 {offsets = [1, 0, 0], sizes = [1, 8, 8], strides = [1, 1, 1]} : vector<3x8x8xf32> to vector<1x8x8xf32>
    %188 = vector.shape_cast %187 : vector<1x8x8xf32> to vector<8x8xf32>
    %cst_138 = arith.constant dense<0.000000e+00> : vector<8x256xf32>
    %189 = tpu.matmul %188, %186, %cst_138 {dimension_numbers = #tpu.dot_dimension_numbers<[1], [0], [0], [1], [0, 0, 1, 1], [], []>} : vector<8x8xf32>, vector<8x256xf32>, vector<8x256xf32> -> vector<8x256xf32>
    %190 = arith.addf %185, %189 : vector<8x256xf32>
    %c0_139 = arith.constant 0 : index
    %c30_140 = arith.constant 30 : index
    %191 = vector.load %arg25[%c0_139, %c30_140] : memref<8x306xf32, #tpu.memory_space<vmem>>, vector<8x256xf32>
    %192 = vector.extract_strided_slice %179 {offsets = [2, 0, 0], sizes = [1, 8, 8], strides = [1, 1, 1]} : vector<3x8x8xf32> to vector<1x8x8xf32>
    %193 = vector.shape_cast %192 : vector<1x8x8xf32> to vector<8x8xf32>
    %cst_141 = arith.constant dense<0.000000e+00> : vector<8x256xf32>
    %194 = tpu.matmul %193, %191, %cst_141 {dimension_numbers = #tpu.dot_dimension_numbers<[1], [0], [0], [1], [0, 0, 1, 1], [], []>} : vector<8x8xf32>, vector<8x256xf32>, vector<8x256xf32> -> vector<8x256xf32>
    %195 = arith.addf %190, %194 : vector<8x256xf32>
    %196 = vector.broadcast %181 : vector<8x1xf32> to vector<8x256xf32>
    %197 = arith.addf %195, %196 : vector<8x256xf32>
    %198 = arith.addf %197, %149 : vector<8x256xf32>
    %c0_142 = arith.constant 0 : index
    %c0_143 = arith.constant 0 : index
    %c0_144 = arith.constant 0 : index
    %c0_145 = arith.constant 0 : index
    %199 = vector.load %arg3[%c0_142, %c0_143, %c0_144, %c0_145] : memref<3x1x8x256xf32, #tpu.memory_space<vmem>>, vector<1x1x8x256xf32>
    %200 = vector.shape_cast %199 : vector<1x1x8x256xf32> to vector<8x256xf32>
    %c0_146 = arith.constant 0 : index
    %c0_147 = arith.constant 0 : index
    %201 = vector.load %arg11[%c0_146, %c0_147] : memref<8x1xf32, #tpu.memory_space<vmem>>, vector<8x1xf32>
    %202 = vector.broadcast %201 : vector<8x1xf32> to vector<8x256xf32>
    %203 = arith.mulf %200, %202 : vector<8x256xf32>
    %204 = arith.addf %198, %203 : vector<8x256xf32>
    %cst_148 = arith.constant 2.000000e-01 : f32
    %205 = vector.broadcast %cst_148 : f32 to vector<8x256xf32>
    %206 = arith.mulf %204, %205 : vector<8x256xf32>
    %207 = arith.maximumf %204, %206 : vector<8x256xf32>
    %c1_149 = arith.constant 1 : index
    %c0_150 = arith.constant 0 : index
    %c0_151 = arith.constant 0 : index
    %c0_152 = arith.constant 0 : index
    %208 = vector.load %arg2[%c1_149, %c0_150, %c0_151, %c0_152] : memref<3x1x8x256xf32, #tpu.memory_space<vmem>>, vector<1x1x8x256xf32>
    %209 = vector.shape_cast %208 : vector<1x1x8x256xf32> to vector<8x256xf32>
    %c0_153 = arith.constant 0 : index
    %c0_154 = arith.constant 0 : index
    %210 = vector.load %arg16[%c0_153, %c0_154] : memref<8x1xf32, #tpu.memory_space<vmem>>, vector<8x1xf32>
    %211 = vector.broadcast %210 : vector<8x1xf32> to vector<8x256xf32>
    %212 = arith.mulf %209, %211 : vector<8x256xf32>
    %213 = arith.addf %42, %212 : vector<8x256xf32>
    %cst_155 = arith.constant 2.000000e-01 : f32
    %214 = vector.broadcast %cst_155 : f32 to vector<8x256xf32>
    %215 = arith.mulf %213, %214 : vector<8x256xf32>
    %216 = arith.maximumf %213, %215 : vector<8x256xf32>
    %cst_156 = arith.constant 2.000000e-01 : f32
    %217 = vector.broadcast %cst_156 : f32 to vector<8x256xf32>
    %218 = arith.mulf %216, %217 : vector<8x256xf32>
    %219 = arith.maximumf %216, %218 : vector<8x256xf32>
    %c0_157 = arith.constant 0 : index
    %c25_158 = arith.constant 25 : index
    %220 = vector.load %arg25[%c0_157, %c25_158] : memref<8x306xf32, #tpu.memory_space<vmem>>, vector<8x256xf32>
    tpu.vector_store %arg25[%c0_157, %c25_158], %219 {strides = array<i32>} : memref<8x306xf32, #tpu.memory_space<vmem>>, vector<8x256xf32>,
    %c0_159 = arith.constant 0 : index
    %c0_160 = arith.constant 0 : index
    %c0_161 = arith.constant 0 : index
    %c0_162 = arith.constant 0 : index
    %221 = vector.load %arg12[%c0_159, %c0_160, %c0_161, %c0_162] : memref<3x7x8x8xf32, #tpu.memory_space<vmem>>, vector<1x7x8x8xf32>
    %222 = vector.shape_cast %221 : vector<1x7x8x8xf32> to vector<7x8x8xf32>
    %c0_163 = arith.constant 0 : index
    %c0_164 = arith.constant 0 : index
    %c0_165 = arith.constant 0 : index
    %223 = vector.load %arg13[%c0_163, %c0_164, %c0_165] : memref<3x8x1xf32, #tpu.memory_space<vmem>>, vector<1x8x1xf32>
    %224 = vector.shape_cast %223 : vector<1x8x1xf32> to vector<8x1xf32>
    %c0_166 = arith.constant 0 : index
    %c22_167 = arith.constant 22 : index
    %225 = vector.load %arg25[%c0_166, %c22_167] : memref<8x306xf32, #tpu.memory_space<vmem>>, vector<8x256xf32>
    %226 = vector.extract_strided_slice %222 {offsets = [0, 0, 0], sizes = [1, 8, 8], strides = [1, 1, 1]} : vector<7x8x8xf32> to vector<1x8x8xf32>
    %227 = vector.shape_cast %226 : vector<1x8x8xf32> to vector<8x8xf32>
    %cst_168 = arith.constant dense<0.000000e+00> : vector<8x256xf32>
    %228 = tpu.matmul %227, %225, %cst_168 {dimension_numbers = #tpu.dot_dimension_numbers<[1], [0], [0], [1], [0, 0, 1, 1], [], []>} : vector<8x8xf32>, vector<8x256xf32>, vector<8x256xf32> -> vector<8x256xf32>
    %c0_169 = arith.constant 0 : index
    %c23_170 = arith.constant 23 : index
    %229 = vector.load %arg25[%c0_169, %c23_170] : memref<8x306xf32, #tpu.memory_space<vmem>>, vector<8x256xf32>
    %230 = vector.extract_strided_slice %222 {offsets = [1, 0, 0], sizes = [1, 8, 8], strides = [1, 1, 1]} : vector<7x8x8xf32> to vector<1x8x8xf32>
    %231 = vector.shape_cast %230 : vector<1x8x8xf32> to vector<8x8xf32>
    %cst_171 = arith.constant dense<0.000000e+00> : vector<8x256xf32>
    %232 = tpu.matmul %231, %229, %cst_171 {dimension_numbers = #tpu.dot_dimension_numbers<[1], [0], [0], [1], [0, 0, 1, 1], [], []>} : vector<8x8xf32>, vector<8x256xf32>, vector<8x256xf32> -> vector<8x256xf32>
    %233 = arith.addf %228, %232 : vector<8x256xf32>
    %c0_172 = arith.constant 0 : index
    %c24_173 = arith.constant 24 : index
    %234 = vector.load %arg25[%c0_172, %c24_173] : memref<8x306xf32, #tpu.memory_space<vmem>>, vector<8x256xf32>
    %235 = vector.extract_strided_slice %222 {offsets = [2, 0, 0], sizes = [1, 8, 8], strides = [1, 1, 1]} : vector<7x8x8xf32> to vector<1x8x8xf32>
    %236 = vector.shape_cast %235 : vector<1x8x8xf32> to vector<8x8xf32>
    %cst_174 = arith.constant dense<0.000000e+00> : vector<8x256xf32>
    %237 = tpu.matmul %236, %234, %cst_174 {dimension_numbers = #tpu.dot_dimension_numbers<[1], [0], [0], [1], [0, 0, 1, 1], [], []>} : vector<8x8xf32>, vector<8x256xf32>, vector<8x256xf32> -> vector<8x256xf32>
    %238 = arith.addf %233, %237 : vector<8x256xf32>
    %c0_175 = arith.constant 0 : index
    %c25_176 = arith.constant 25 : index
    %239 = vector.load %arg25[%c0_175, %c25_176] : memref<8x306xf32, #tpu.memory_space<vmem>>, vector<8x256xf32>
    %240 = vector.extract_strided_slice %222 {offsets = [3, 0, 0], sizes = [1, 8, 8], strides = [1, 1, 1]} : vector<7x8x8xf32> to vector<1x8x8xf32>
    %241 = vector.shape_cast %240 : vector<1x8x8xf32> to vector<8x8xf32>
    %cst_177 = arith.constant dense<0.000000e+00> : vector<8x256xf32>
    %242 = tpu.matmul %241, %239, %cst_177 {dimension_numbers = #tpu.dot_dimension_numbers<[1], [0], [0], [1], [0, 0, 1, 1], [], []>} : vector<8x8xf32>, vector<8x256xf32>, vector<8x256xf32> -> vector<8x256xf32>
    %243 = arith.addf %238, %242 : vector<8x256xf32>
    %c0_178 = arith.constant 0 : index
    %c26_179 = arith.constant 26 : index
    %244 = vector.load %arg25[%c0_178, %c26_179] : memref<8x306xf32, #tpu.memory_space<vmem>>, vector<8x256xf32>
    %245 = vector.extract_strided_slice %222 {offsets = [4, 0, 0], sizes = [1, 8, 8], strides = [1, 1, 1]} : vector<7x8x8xf32> to vector<1x8x8xf32>
    %246 = vector.shape_cast %245 : vector<1x8x8xf32> to vector<8x8xf32>
    %cst_180 = arith.constant dense<0.000000e+00> : vector<8x256xf32>
    %247 = tpu.matmul %246, %244, %cst_180 {dimension_numbers = #tpu.dot_dimension_numbers<[1], [0], [0], [1], [0, 0, 1, 1], [], []>} : vector<8x8xf32>, vector<8x256xf32>, vector<8x256xf32> -> vector<8x256xf32>
    %248 = arith.addf %243, %247 : vector<8x256xf32>
    %c0_181 = arith.constant 0 : index
    %c27_182 = arith.constant 27 : index
    %249 = vector.load %arg25[%c0_181, %c27_182] : memref<8x306xf32, #tpu.memory_space<vmem>>, vector<8x256xf32>
    %250 = vector.extract_strided_slice %222 {offsets = [5, 0, 0], sizes = [1, 8, 8], strides = [1, 1, 1]} : vector<7x8x8xf32> to vector<1x8x8xf32>
    %251 = vector.shape_cast %250 : vector<1x8x8xf32> to vector<8x8xf32>
    %cst_183 = arith.constant dense<0.000000e+00> : vector<8x256xf32>
    %252 = tpu.matmul %251, %249, %cst_183 {dimension_numbers = #tpu.dot_dimension_numbers<[1], [0], [0], [1], [0, 0, 1, 1], [], []>} : vector<8x8xf32>, vector<8x256xf32>, vector<8x256xf32> -> vector<8x256xf32>
    %253 = arith.addf %248, %252 : vector<8x256xf32>
    %c0_184 = arith.constant 0 : index
    %c28_185 = arith.constant 28 : index
    %254 = vector.load %arg25[%c0_184, %c28_185] : memref<8x306xf32, #tpu.memory_space<vmem>>, vector<8x256xf32>
    %255 = vector.extract_strided_slice %222 {offsets = [6, 0, 0], sizes = [1, 8, 8], strides = [1, 1, 1]} : vector<7x8x8xf32> to vector<1x8x8xf32>
    %256 = vector.shape_cast %255 : vector<1x8x8xf32> to vector<8x8xf32>
    %cst_186 = arith.constant dense<0.000000e+00> : vector<8x256xf32>
    %257 = tpu.matmul %256, %254, %cst_186 {dimension_numbers = #tpu.dot_dimension_numbers<[1], [0], [0], [1], [0, 0, 1, 1], [], []>} : vector<8x8xf32>, vector<8x256xf32>, vector<8x256xf32> -> vector<8x256xf32>
    %258 = arith.addf %253, %257 : vector<8x256xf32>
    %259 = vector.broadcast %224 : vector<8x1xf32> to vector<8x256xf32>
    %260 = arith.addf %258, %259 : vector<8x256xf32>
    %cst_187 = arith.constant 2.000000e-01 : f32
    %261 = vector.broadcast %cst_187 : f32 to vector<8x256xf32>
    %262 = arith.mulf %260, %261 : vector<8x256xf32>
    %263 = arith.maximumf %260, %262 : vector<8x256xf32>
    %c0_188 = arith.constant 0 : index
    %c25_189 = arith.constant 25 : index
    %264 = vector.load %arg25[%c0_188, %c25_189] : memref<8x306xf32, #tpu.memory_space<vmem>>, vector<8x256xf32>
    tpu.vector_store %arg25[%c0_188, %c25_189], %263 {strides = array<i32>} : memref<8x306xf32, #tpu.memory_space<vmem>>, vector<8x256xf32>,
    %c0_190 = arith.constant 0 : index
    %c0_191 = arith.constant 0 : index
    %c0_192 = arith.constant 0 : index
    %c0_193 = arith.constant 0 : index
    %265 = vector.load %arg14[%c0_190, %c0_191, %c0_192, %c0_193] : memref<3x7x8x8xf32, #tpu.memory_space<vmem>>, vector<1x7x8x8xf32>
    %266 = vector.shape_cast %265 : vector<1x7x8x8xf32> to vector<7x8x8xf32>
    %c0_194 = arith.constant 0 : index
    %c0_195 = arith.constant 0 : index
    %c0_196 = arith.constant 0 : index
    %267 = vector.load %arg15[%c0_194, %c0_195, %c0_196] : memref<3x8x1xf32, #tpu.memory_space<vmem>>, vector<1x8x1xf32>
    %268 = vector.shape_cast %267 : vector<1x8x1xf32> to vector<8x1xf32>
    %c0_197 = arith.constant 0 : index
    %c22_198 = arith.constant 22 : index
    %269 = vector.load %arg25[%c0_197, %c22_198] : memref<8x306xf32, #tpu.memory_space<vmem>>, vector<8x256xf32>
    %270 = vector.extract_strided_slice %266 {offsets = [0, 0, 0], sizes = [1, 8, 8], strides = [1, 1, 1]} : vector<7x8x8xf32> to vector<1x8x8xf32>
    %271 = vector.shape_cast %270 : vector<1x8x8xf32> to vector<8x8xf32>
    %cst_199 = arith.constant dense<0.000000e+00> : vector<8x256xf32>
    %272 = tpu.matmul %271, %269, %cst_199 {dimension_numbers = #tpu.dot_dimension_numbers<[1], [0], [0], [1], [0, 0, 1, 1], [], []>} : vector<8x8xf32>, vector<8x256xf32>, vector<8x256xf32> -> vector<8x256xf32>
    %c0_200 = arith.constant 0 : index
    %c23_201 = arith.constant 23 : index
    %273 = vector.load %arg25[%c0_200, %c23_201] : memref<8x306xf32, #tpu.memory_space<vmem>>, vector<8x256xf32>
    %274 = vector.extract_strided_slice %266 {offsets = [1, 0, 0], sizes = [1, 8, 8], strides = [1, 1, 1]} : vector<7x8x8xf32> to vector<1x8x8xf32>
    %275 = vector.shape_cast %274 : vector<1x8x8xf32> to vector<8x8xf32>
    %cst_202 = arith.constant dense<0.000000e+00> : vector<8x256xf32>
    %276 = tpu.matmul %275, %273, %cst_202 {dimension_numbers = #tpu.dot_dimension_numbers<[1], [0], [0], [1], [0, 0, 1, 1], [], []>} : vector<8x8xf32>, vector<8x256xf32>, vector<8x256xf32> -> vector<8x256xf32>
    %277 = arith.addf %272, %276 : vector<8x256xf32>
    %c0_203 = arith.constant 0 : index
    %c24_204 = arith.constant 24 : index
    %278 = vector.load %arg25[%c0_203, %c24_204] : memref<8x306xf32, #tpu.memory_space<vmem>>, vector<8x256xf32>
    %279 = vector.extract_strided_slice %266 {offsets = [2, 0, 0], sizes = [1, 8, 8], strides = [1, 1, 1]} : vector<7x8x8xf32> to vector<1x8x8xf32>
    %280 = vector.shape_cast %279 : vector<1x8x8xf32> to vector<8x8xf32>
    %cst_205 = arith.constant dense<0.000000e+00> : vector<8x256xf32>
    %281 = tpu.matmul %280, %278, %cst_205 {dimension_numbers = #tpu.dot_dimension_numbers<[1], [0], [0], [1], [0, 0, 1, 1], [], []>} : vector<8x8xf32>, vector<8x256xf32>, vector<8x256xf32> -> vector<8x256xf32>
    %282 = arith.addf %277, %281 : vector<8x256xf32>
    %c0_206 = arith.constant 0 : index
    %c25_207 = arith.constant 25 : index
    %283 = vector.load %arg25[%c0_206, %c25_207] : memref<8x306xf32, #tpu.memory_space<vmem>>, vector<8x256xf32>
    %284 = vector.extract_strided_slice %266 {offsets = [3, 0, 0], sizes = [1, 8, 8], strides = [1, 1, 1]} : vector<7x8x8xf32> to vector<1x8x8xf32>
    %285 = vector.shape_cast %284 : vector<1x8x8xf32> to vector<8x8xf32>
    %cst_208 = arith.constant dense<0.000000e+00> : vector<8x256xf32>
    %286 = tpu.matmul %285, %283, %cst_208 {dimension_numbers = #tpu.dot_dimension_numbers<[1], [0], [0], [1], [0, 0, 1, 1], [], []>} : vector<8x8xf32>, vector<8x256xf32>, vector<8x256xf32> -> vector<8x256xf32>
    %287 = arith.addf %282, %286 : vector<8x256xf32>
    %c0_209 = arith.constant 0 : index
    %c26_210 = arith.constant 26 : index
    %288 = vector.load %arg25[%c0_209, %c26_210] : memref<8x306xf32, #tpu.memory_space<vmem>>, vector<8x256xf32>
    %289 = vector.extract_strided_slice %266 {offsets = [4, 0, 0], sizes = [1, 8, 8], strides = [1, 1, 1]} : vector<7x8x8xf32> to vector<1x8x8xf32>
    %290 = vector.shape_cast %289 : vector<1x8x8xf32> to vector<8x8xf32>
    %cst_211 = arith.constant dense<0.000000e+00> : vector<8x256xf32>
    %291 = tpu.matmul %290, %288, %cst_211 {dimension_numbers = #tpu.dot_dimension_numbers<[1], [0], [0], [1], [0, 0, 1, 1], [], []>} : vector<8x8xf32>, vector<8x256xf32>, vector<8x256xf32> -> vector<8x256xf32>
    %292 = arith.addf %287, %291 : vector<8x256xf32>
    %c0_212 = arith.constant 0 : index
    %c27_213 = arith.constant 27 : index
    %293 = vector.load %arg25[%c0_212, %c27_213] : memref<8x306xf32, #tpu.memory_space<vmem>>, vector<8x256xf32>
    %294 = vector.extract_strided_slice %266 {offsets = [5, 0, 0], sizes = [1, 8, 8], strides = [1, 1, 1]} : vector<7x8x8xf32> to vector<1x8x8xf32>
    %295 = vector.shape_cast %294 : vector<1x8x8xf32> to vector<8x8xf32>
    %cst_214 = arith.constant dense<0.000000e+00> : vector<8x256xf32>
    %296 = tpu.matmul %295, %293, %cst_214 {dimension_numbers = #tpu.dot_dimension_numbers<[1], [0], [0], [1], [0, 0, 1, 1], [], []>} : vector<8x8xf32>, vector<8x256xf32>, vector<8x256xf32> -> vector<8x256xf32>
    %297 = arith.addf %292, %296 : vector<8x256xf32>
    %c0_215 = arith.constant 0 : index
    %c28_216 = arith.constant 28 : index
    %298 = vector.load %arg25[%c0_215, %c28_216] : memref<8x306xf32, #tpu.memory_space<vmem>>, vector<8x256xf32>
    %299 = vector.extract_strided_slice %266 {offsets = [6, 0, 0], sizes = [1, 8, 8], strides = [1, 1, 1]} : vector<7x8x8xf32> to vector<1x8x8xf32>
    %300 = vector.shape_cast %299 : vector<1x8x8xf32> to vector<8x8xf32>
    %cst_217 = arith.constant dense<0.000000e+00> : vector<8x256xf32>
    %301 = tpu.matmul %300, %298, %cst_217 {dimension_numbers = #tpu.dot_dimension_numbers<[1], [0], [0], [1], [0, 0, 1, 1], [], []>} : vector<8x8xf32>, vector<8x256xf32>, vector<8x256xf32> -> vector<8x256xf32>
    %302 = arith.addf %297, %301 : vector<8x256xf32>
    %303 = vector.broadcast %268 : vector<8x1xf32> to vector<8x256xf32>
    %304 = arith.addf %302, %303 : vector<8x256xf32>
    %305 = arith.addf %304, %216 : vector<8x256xf32>
    %cst_218 = arith.constant 2.000000e-01 : f32
    %306 = vector.broadcast %cst_218 : f32 to vector<8x256xf32>
    %307 = arith.mulf %305, %306 : vector<8x256xf32>
    %308 = arith.maximumf %305, %307 : vector<8x256xf32>
    %c0_219 = arith.constant 0 : index
    %c25_220 = arith.constant 25 : index
    %309 = vector.load %arg25[%c0_219, %c25_220] : memref<8x306xf32, #tpu.memory_space<vmem>>, vector<8x256xf32>
    tpu.vector_store %arg25[%c0_219, %c25_220], %308 {strides = array<i32>} : memref<8x306xf32, #tpu.memory_space<vmem>>, vector<8x256xf32>,
    %c1_221 = arith.constant 1 : index
    %c0_222 = arith.constant 0 : index
    %c0_223 = arith.constant 0 : index
    %c0_224 = arith.constant 0 : index
    %310 = vector.load %arg12[%c1_221, %c0_222, %c0_223, %c0_224] : memref<3x7x8x8xf32, #tpu.memory_space<vmem>>, vector<1x7x8x8xf32>
    %311 = vector.shape_cast %310 : vector<1x7x8x8xf32> to vector<7x8x8xf32>
    %c1_225 = arith.constant 1 : index
    %c0_226 = arith.constant 0 : index
    %c0_227 = arith.constant 0 : index
    %312 = vector.load %arg13[%c1_225, %c0_226, %c0_227] : memref<3x8x1xf32, #tpu.memory_space<vmem>>, vector<1x8x1xf32>
    %313 = vector.shape_cast %312 : vector<1x8x1xf32> to vector<8x1xf32>
    %c0_228 = arith.constant 0 : index
    %c16 = arith.constant 16 : index
    %314 = vector.load %arg25[%c0_228, %c16] : memref<8x306xf32, #tpu.memory_space<vmem>>, vector<8x256xf32>
    %315 = vector.extract_strided_slice %311 {offsets = [0, 0, 0], sizes = [1, 8, 8], strides = [1, 1, 1]} : vector<7x8x8xf32> to vector<1x8x8xf32>
    %316 = vector.shape_cast %315 : vector<1x8x8xf32> to vector<8x8xf32>
    %cst_229 = arith.constant dense<0.000000e+00> : vector<8x256xf32>
    %317 = tpu.matmul %316, %314, %cst_229 {dimension_numbers = #tpu.dot_dimension_numbers<[1], [0], [0], [1], [0, 0, 1, 1], [], []>} : vector<8x8xf32>, vector<8x256xf32>, vector<8x256xf32> -> vector<8x256xf32>
    %c0_230 = arith.constant 0 : index
    %c19 = arith.constant 19 : index
    %318 = vector.load %arg25[%c0_230, %c19] : memref<8x306xf32, #tpu.memory_space<vmem>>, vector<8x256xf32>
    %319 = vector.extract_strided_slice %311 {offsets = [1, 0, 0], sizes = [1, 8, 8], strides = [1, 1, 1]} : vector<7x8x8xf32> to vector<1x8x8xf32>
    %320 = vector.shape_cast %319 : vector<1x8x8xf32> to vector<8x8xf32>
    %cst_231 = arith.constant dense<0.000000e+00> : vector<8x256xf32>
    %321 = tpu.matmul %320, %318, %cst_231 {dimension_numbers = #tpu.dot_dimension_numbers<[1], [0], [0], [1], [0, 0, 1, 1], [], []>} : vector<8x8xf32>, vector<8x256xf32>, vector<8x256xf32> -> vector<8x256xf32>
    %322 = arith.addf %317, %321 : vector<8x256xf32>
    %c0_232 = arith.constant 0 : index
    %c22_233 = arith.constant 22 : index
    %323 = vector.load %arg25[%c0_232, %c22_233] : memref<8x306xf32, #tpu.memory_space<vmem>>, vector<8x256xf32>
    %324 = vector.extract_strided_slice %311 {offsets = [2, 0, 0], sizes = [1, 8, 8], strides = [1, 1, 1]} : vector<7x8x8xf32> to vector<1x8x8xf32>
    %325 = vector.shape_cast %324 : vector<1x8x8xf32> to vector<8x8xf32>
    %cst_234 = arith.constant dense<0.000000e+00> : vector<8x256xf32>
    %326 = tpu.matmul %325, %323, %cst_234 {dimension_numbers = #tpu.dot_dimension_numbers<[1], [0], [0], [1], [0, 0, 1, 1], [], []>} : vector<8x8xf32>, vector<8x256xf32>, vector<8x256xf32> -> vector<8x256xf32>
    %327 = arith.addf %322, %326 : vector<8x256xf32>
    %c0_235 = arith.constant 0 : index
    %c25_236 = arith.constant 25 : index
    %328 = vector.load %arg25[%c0_235, %c25_236] : memref<8x306xf32, #tpu.memory_space<vmem>>, vector<8x256xf32>
    %329 = vector.extract_strided_slice %311 {offsets = [3, 0, 0], sizes = [1, 8, 8], strides = [1, 1, 1]} : vector<7x8x8xf32> to vector<1x8x8xf32>
    %330 = vector.shape_cast %329 : vector<1x8x8xf32> to vector<8x8xf32>
    %cst_237 = arith.constant dense<0.000000e+00> : vector<8x256xf32>
    %331 = tpu.matmul %330, %328, %cst_237 {dimension_numbers = #tpu.dot_dimension_numbers<[1], [0], [0], [1], [0, 0, 1, 1], [], []>} : vector<8x8xf32>, vector<8x256xf32>, vector<8x256xf32> -> vector<8x256xf32>
    %332 = arith.addf %327, %331 : vector<8x256xf32>
    %c0_238 = arith.constant 0 : index
    %c28_239 = arith.constant 28 : index
    %333 = vector.load %arg25[%c0_238, %c28_239] : memref<8x306xf32, #tpu.memory_space<vmem>>, vector<8x256xf32>
    %334 = vector.extract_strided_slice %311 {offsets = [4, 0, 0], sizes = [1, 8, 8], strides = [1, 1, 1]} : vector<7x8x8xf32> to vector<1x8x8xf32>
    %335 = vector.shape_cast %334 : vector<1x8x8xf32> to vector<8x8xf32>
    %cst_240 = arith.constant dense<0.000000e+00> : vector<8x256xf32>
    %336 = tpu.matmul %335, %333, %cst_240 {dimension_numbers = #tpu.dot_dimension_numbers<[1], [0], [0], [1], [0, 0, 1, 1], [], []>} : vector<8x8xf32>, vector<8x256xf32>, vector<8x256xf32> -> vector<8x256xf32>
    %337 = arith.addf %332, %336 : vector<8x256xf32>
    %c0_241 = arith.constant 0 : index
    %c31 = arith.constant 31 : index
    %338 = vector.load %arg25[%c0_241, %c31] : memref<8x306xf32, #tpu.memory_space<vmem>>, vector<8x256xf32>
    %339 = vector.extract_strided_slice %311 {offsets = [5, 0, 0], sizes = [1, 8, 8], strides = [1, 1, 1]} : vector<7x8x8xf32> to vector<1x8x8xf32>
    %340 = vector.shape_cast %339 : vector<1x8x8xf32> to vector<8x8xf32>
    %cst_242 = arith.constant dense<0.000000e+00> : vector<8x256xf32>
    %341 = tpu.matmul %340, %338, %cst_242 {dimension_numbers = #tpu.dot_dimension_numbers<[1], [0], [0], [1], [0, 0, 1, 1], [], []>} : vector<8x8xf32>, vector<8x256xf32>, vector<8x256xf32> -> vector<8x256xf32>
    %342 = arith.addf %337, %341 : vector<8x256xf32>
    %c0_243 = arith.constant 0 : index
    %c34 = arith.constant 34 : index
    %343 = vector.load %arg25[%c0_243, %c34] : memref<8x306xf32, #tpu.memory_space<vmem>>, vector<8x256xf32>
    %344 = vector.extract_strided_slice %311 {offsets = [6, 0, 0], sizes = [1, 8, 8], strides = [1, 1, 1]} : vector<7x8x8xf32> to vector<1x8x8xf32>
    %345 = vector.shape_cast %344 : vector<1x8x8xf32> to vector<8x8xf32>
    %cst_244 = arith.constant dense<0.000000e+00> : vector<8x256xf32>
    %346 = tpu.matmul %345, %343, %cst_244 {dimension_numbers = #tpu.dot_dimension_numbers<[1], [0], [0], [1], [0, 0, 1, 1], [], []>} : vector<8x8xf32>, vector<8x256xf32>, vector<8x256xf32> -> vector<8x256xf32>
    %347 = arith.addf %342, %346 : vector<8x256xf32>
    %348 = vector.broadcast %313 : vector<8x1xf32> to vector<8x256xf32>
    %349 = arith.addf %347, %348 : vector<8x256xf32>
    %cst_245 = arith.constant 2.000000e-01 : f32
    %350 = vector.broadcast %cst_245 : f32 to vector<8x256xf32>
    %351 = arith.mulf %349, %350 : vector<8x256xf32>
    %352 = arith.maximumf %349, %351 : vector<8x256xf32>
    %c0_246 = arith.constant 0 : index
    %c25_247 = arith.constant 25 : index
    %353 = vector.load %arg25[%c0_246, %c25_247] : memref<8x306xf32, #tpu.memory_space<vmem>>, vector<8x256xf32>
    tpu.vector_store %arg25[%c0_246, %c25_247], %352 {strides = array<i32>} : memref<8x306xf32, #tpu.memory_space<vmem>>, vector<8x256xf32>,
    %c1_248 = arith.constant 1 : index
    %c0_249 = arith.constant 0 : index
    %c0_250 = arith.constant 0 : index
    %c0_251 = arith.constant 0 : index
    %354 = vector.load %arg14[%c1_248, %c0_249, %c0_250, %c0_251] : memref<3x7x8x8xf32, #tpu.memory_space<vmem>>, vector<1x7x8x8xf32>
    %355 = vector.shape_cast %354 : vector<1x7x8x8xf32> to vector<7x8x8xf32>
    %c1_252 = arith.constant 1 : index
    %c0_253 = arith.constant 0 : index
    %c0_254 = arith.constant 0 : index
    %356 = vector.load %arg15[%c1_252, %c0_253, %c0_254] : memref<3x8x1xf32, #tpu.memory_space<vmem>>, vector<1x8x1xf32>
    %357 = vector.shape_cast %356 : vector<1x8x1xf32> to vector<8x1xf32>
    %c0_255 = arith.constant 0 : index
    %c16_256 = arith.constant 16 : index
    %358 = vector.load %arg25[%c0_255, %c16_256] : memref<8x306xf32, #tpu.memory_space<vmem>>, vector<8x256xf32>
    %359 = vector.extract_strided_slice %355 {offsets = [0, 0, 0], sizes = [1, 8, 8], strides = [1, 1, 1]} : vector<7x8x8xf32> to vector<1x8x8xf32>
    %360 = vector.shape_cast %359 : vector<1x8x8xf32> to vector<8x8xf32>
    %cst_257 = arith.constant dense<0.000000e+00> : vector<8x256xf32>
    %361 = tpu.matmul %360, %358, %cst_257 {dimension_numbers = #tpu.dot_dimension_numbers<[1], [0], [0], [1], [0, 0, 1, 1], [], []>} : vector<8x8xf32>, vector<8x256xf32>, vector<8x256xf32> -> vector<8x256xf32>
    %c0_258 = arith.constant 0 : index
    %c19_259 = arith.constant 19 : index
    %362 = vector.load %arg25[%c0_258, %c19_259] : memref<8x306xf32, #tpu.memory_space<vmem>>, vector<8x256xf32>
    %363 = vector.extract_strided_slice %355 {offsets = [1, 0, 0], sizes = [1, 8, 8], strides = [1, 1, 1]} : vector<7x8x8xf32> to vector<1x8x8xf32>
    %364 = vector.shape_cast %363 : vector<1x8x8xf32> to vector<8x8xf32>
    %cst_260 = arith.constant dense<0.000000e+00> : vector<8x256xf32>
    %365 = tpu.matmul %364, %362, %cst_260 {dimension_numbers = #tpu.dot_dimension_numbers<[1], [0], [0], [1], [0, 0, 1, 1], [], []>} : vector<8x8xf32>, vector<8x256xf32>, vector<8x256xf32> -> vector<8x256xf32>
    %366 = arith.addf %361, %365 : vector<8x256xf32>
    %c0_261 = arith.constant 0 : index
    %c22_262 = arith.constant 22 : index
    %367 = vector.load %arg25[%c0_261, %c22_262] : memref<8x306xf32, #tpu.memory_space<vmem>>, vector<8x256xf32>
    %368 = vector.extract_strided_slice %355 {offsets = [2, 0, 0], sizes = [1, 8, 8], strides = [1, 1, 1]} : vector<7x8x8xf32> to vector<1x8x8xf32>
    %369 = vector.shape_cast %368 : vector<1x8x8xf32> to vector<8x8xf32>
    %cst_263 = arith.constant dense<0.000000e+00> : vector<8x256xf32>
    %370 = tpu.matmul %369, %367, %cst_263 {dimension_numbers = #tpu.dot_dimension_numbers<[1], [0], [0], [1], [0, 0, 1, 1], [], []>} : vector<8x8xf32>, vector<8x256xf32>, vector<8x256xf32> -> vector<8x256xf32>
    %371 = arith.addf %366, %370 : vector<8x256xf32>
    %c0_264 = arith.constant 0 : index
    %c25_265 = arith.constant 25 : index
    %372 = vector.load %arg25[%c0_264, %c25_265] : memref<8x306xf32, #tpu.memory_space<vmem>>, vector<8x256xf32>
    %373 = vector.extract_strided_slice %355 {offsets = [3, 0, 0], sizes = [1, 8, 8], strides = [1, 1, 1]} : vector<7x8x8xf32> to vector<1x8x8xf32>
    %374 = vector.shape_cast %373 : vector<1x8x8xf32> to vector<8x8xf32>
    %cst_266 = arith.constant dense<0.000000e+00> : vector<8x256xf32>
    %375 = tpu.matmul %374, %372, %cst_266 {dimension_numbers = #tpu.dot_dimension_numbers<[1], [0], [0], [1], [0, 0, 1, 1], [], []>} : vector<8x8xf32>, vector<8x256xf32>, vector<8x256xf32> -> vector<8x256xf32>
    %376 = arith.addf %371, %375 : vector<8x256xf32>
    %c0_267 = arith.constant 0 : index
    %c28_268 = arith.constant 28 : index
    %377 = vector.load %arg25[%c0_267, %c28_268] : memref<8x306xf32, #tpu.memory_space<vmem>>, vector<8x256xf32>
    %378 = vector.extract_strided_slice %355 {offsets = [4, 0, 0], sizes = [1, 8, 8], strides = [1, 1, 1]} : vector<7x8x8xf32> to vector<1x8x8xf32>
    %379 = vector.shape_cast %378 : vector<1x8x8xf32> to vector<8x8xf32>
    %cst_269 = arith.constant dense<0.000000e+00> : vector<8x256xf32>
    %380 = tpu.matmul %379, %377, %cst_269 {dimension_numbers = #tpu.dot_dimension_numbers<[1], [0], [0], [1], [0, 0, 1, 1], [], []>} : vector<8x8xf32>, vector<8x256xf32>, vector<8x256xf32> -> vector<8x256xf32>
    %381 = arith.addf %376, %380 : vector<8x256xf32>
    %c0_270 = arith.constant 0 : index
    %c31_271 = arith.constant 31 : index
    %382 = vector.load %arg25[%c0_270, %c31_271] : memref<8x306xf32, #tpu.memory_space<vmem>>, vector<8x256xf32>
    %383 = vector.extract_strided_slice %355 {offsets = [5, 0, 0], sizes = [1, 8, 8], strides = [1, 1, 1]} : vector<7x8x8xf32> to vector<1x8x8xf32>
    %384 = vector.shape_cast %383 : vector<1x8x8xf32> to vector<8x8xf32>
    %cst_272 = arith.constant dense<0.000000e+00> : vector<8x256xf32>
    %385 = tpu.matmul %384, %382, %cst_272 {dimension_numbers = #tpu.dot_dimension_numbers<[1], [0], [0], [1], [0, 0, 1, 1], [], []>} : vector<8x8xf32>, vector<8x256xf32>, vector<8x256xf32> -> vector<8x256xf32>
    %386 = arith.addf %381, %385 : vector<8x256xf32>
    %c0_273 = arith.constant 0 : index
    %c34_274 = arith.constant 34 : index
    %387 = vector.load %arg25[%c0_273, %c34_274] : memref<8x306xf32, #tpu.memory_space<vmem>>, vector<8x256xf32>
    %388 = vector.extract_strided_slice %355 {offsets = [6, 0, 0], sizes = [1, 8, 8], strides = [1, 1, 1]} : vector<7x8x8xf32> to vector<1x8x8xf32>
    %389 = vector.shape_cast %388 : vector<1x8x8xf32> to vector<8x8xf32>
    %cst_275 = arith.constant dense<0.000000e+00> : vector<8x256xf32>
    %390 = tpu.matmul %389, %387, %cst_275 {dimension_numbers = #tpu.dot_dimension_numbers<[1], [0], [0], [1], [0, 0, 1, 1], [], []>} : vector<8x8xf32>, vector<8x256xf32>, vector<8x256xf32> -> vector<8x256xf32>
    %391 = arith.addf %386, %390 : vector<8x256xf32>
    %392 = vector.broadcast %357 : vector<8x1xf32> to vector<8x256xf32>
    %393 = arith.addf %391, %392 : vector<8x256xf32>
    %394 = arith.addf %393, %305 : vector<8x256xf32>
    %cst_276 = arith.constant 2.000000e-01 : f32
    %395 = vector.broadcast %cst_276 : f32 to vector<8x256xf32>
    %396 = arith.mulf %394, %395 : vector<8x256xf32>
    %397 = arith.maximumf %394, %396 : vector<8x256xf32>
    %c0_277 = arith.constant 0 : index
    %c25_278 = arith.constant 25 : index
    %398 = vector.load %arg25[%c0_277, %c25_278] : memref<8x306xf32, #tpu.memory_space<vmem>>, vector<8x256xf32>
    tpu.vector_store %arg25[%c0_277, %c25_278], %397 {strides = array<i32>} : memref<8x306xf32, #tpu.memory_space<vmem>>, vector<8x256xf32>,
    %c2_279 = arith.constant 2 : index
    %c0_280 = arith.constant 0 : index
    %c0_281 = arith.constant 0 : index
    %c0_282 = arith.constant 0 : index
    %399 = vector.load %arg12[%c2_279, %c0_280, %c0_281, %c0_282] : memref<3x7x8x8xf32, #tpu.memory_space<vmem>>, vector<1x7x8x8xf32>
    %400 = vector.shape_cast %399 : vector<1x7x8x8xf32> to vector<7x8x8xf32>
    %c2_283 = arith.constant 2 : index
    %c0_284 = arith.constant 0 : index
    %c0_285 = arith.constant 0 : index
    %401 = vector.load %arg13[%c2_283, %c0_284, %c0_285] : memref<3x8x1xf32, #tpu.memory_space<vmem>>, vector<1x8x1xf32>
    %402 = vector.shape_cast %401 : vector<1x8x1xf32> to vector<8x1xf32>
    %c0_286 = arith.constant 0 : index
    %c10 = arith.constant 10 : index
    %403 = vector.load %arg25[%c0_286, %c10] : memref<8x306xf32, #tpu.memory_space<vmem>>, vector<8x256xf32>
    %404 = vector.extract_strided_slice %400 {offsets = [0, 0, 0], sizes = [1, 8, 8], strides = [1, 1, 1]} : vector<7x8x8xf32> to vector<1x8x8xf32>
    %405 = vector.shape_cast %404 : vector<1x8x8xf32> to vector<8x8xf32>
    %cst_287 = arith.constant dense<0.000000e+00> : vector<8x256xf32>
    %406 = tpu.matmul %405, %403, %cst_287 {dimension_numbers = #tpu.dot_dimension_numbers<[1], [0], [0], [1], [0, 0, 1, 1], [], []>} : vector<8x8xf32>, vector<8x256xf32>, vector<8x256xf32> -> vector<8x256xf32>
    %c0_288 = arith.constant 0 : index
    %c15 = arith.constant 15 : index
    %407 = vector.load %arg25[%c0_288, %c15] : memref<8x306xf32, #tpu.memory_space<vmem>>, vector<8x256xf32>
    %408 = vector.extract_strided_slice %400 {offsets = [1, 0, 0], sizes = [1, 8, 8], strides = [1, 1, 1]} : vector<7x8x8xf32> to vector<1x8x8xf32>
    %409 = vector.shape_cast %408 : vector<1x8x8xf32> to vector<8x8xf32>
    %cst_289 = arith.constant dense<0.000000e+00> : vector<8x256xf32>
    %410 = tpu.matmul %409, %407, %cst_289 {dimension_numbers = #tpu.dot_dimension_numbers<[1], [0], [0], [1], [0, 0, 1, 1], [], []>} : vector<8x8xf32>, vector<8x256xf32>, vector<8x256xf32> -> vector<8x256xf32>
    %411 = arith.addf %406, %410 : vector<8x256xf32>
    %c0_290 = arith.constant 0 : index
    %c20_291 = arith.constant 20 : index
    %412 = vector.load %arg25[%c0_290, %c20_291] : memref<8x306xf32, #tpu.memory_space<vmem>>, vector<8x256xf32>
    %413 = vector.extract_strided_slice %400 {offsets = [2, 0, 0], sizes = [1, 8, 8], strides = [1, 1, 1]} : vector<7x8x8xf32> to vector<1x8x8xf32>
    %414 = vector.shape_cast %413 : vector<1x8x8xf32> to vector<8x8xf32>
    %cst_292 = arith.constant dense<0.000000e+00> : vector<8x256xf32>
    %415 = tpu.matmul %414, %412, %cst_292 {dimension_numbers = #tpu.dot_dimension_numbers<[1], [0], [0], [1], [0, 0, 1, 1], [], []>} : vector<8x8xf32>, vector<8x256xf32>, vector<8x256xf32> -> vector<8x256xf32>
    %416 = arith.addf %411, %415 : vector<8x256xf32>
    %c0_293 = arith.constant 0 : index
    %c25_294 = arith.constant 25 : index
    %417 = vector.load %arg25[%c0_293, %c25_294] : memref<8x306xf32, #tpu.memory_space<vmem>>, vector<8x256xf32>
    %418 = vector.extract_strided_slice %400 {offsets = [3, 0, 0], sizes = [1, 8, 8], strides = [1, 1, 1]} : vector<7x8x8xf32> to vector<1x8x8xf32>
    %419 = vector.shape_cast %418 : vector<1x8x8xf32> to vector<8x8xf32>
    %cst_295 = arith.constant dense<0.000000e+00> : vector<8x256xf32>
    %420 = tpu.matmul %419, %417, %cst_295 {dimension_numbers = #tpu.dot_dimension_numbers<[1], [0], [0], [1], [0, 0, 1, 1], [], []>} : vector<8x8xf32>, vector<8x256xf32>, vector<8x256xf32> -> vector<8x256xf32>
    %421 = arith.addf %416, %420 : vector<8x256xf32>
    %c0_296 = arith.constant 0 : index
    %c30_297 = arith.constant 30 : index
    %422 = vector.load %arg25[%c0_296, %c30_297] : memref<8x306xf32, #tpu.memory_space<vmem>>, vector<8x256xf32>
    %423 = vector.extract_strided_slice %400 {offsets = [4, 0, 0], sizes = [1, 8, 8], strides = [1, 1, 1]} : vector<7x8x8xf32> to vector<1x8x8xf32>
    %424 = vector.shape_cast %423 : vector<1x8x8xf32> to vector<8x8xf32>
    %cst_298 = arith.constant dense<0.000000e+00> : vector<8x256xf32>
    %425 = tpu.matmul %424, %422, %cst_298 {dimension_numbers = #tpu.dot_dimension_numbers<[1], [0], [0], [1], [0, 0, 1, 1], [], []>} : vector<8x8xf32>, vector<8x256xf32>, vector<8x256xf32> -> vector<8x256xf32>
    %426 = arith.addf %421, %425 : vector<8x256xf32>
    %c0_299 = arith.constant 0 : index
    %c35 = arith.constant 35 : index
    %427 = vector.load %arg25[%c0_299, %c35] : memref<8x306xf32, #tpu.memory_space<vmem>>, vector<8x256xf32>
    %428 = vector.extract_strided_slice %400 {offsets = [5, 0, 0], sizes = [1, 8, 8], strides = [1, 1, 1]} : vector<7x8x8xf32> to vector<1x8x8xf32>
    %429 = vector.shape_cast %428 : vector<1x8x8xf32> to vector<8x8xf32>
    %cst_300 = arith.constant dense<0.000000e+00> : vector<8x256xf32>
    %430 = tpu.matmul %429, %427, %cst_300 {dimension_numbers = #tpu.dot_dimension_numbers<[1], [0], [0], [1], [0, 0, 1, 1], [], []>} : vector<8x8xf32>, vector<8x256xf32>, vector<8x256xf32> -> vector<8x256xf32>
    %431 = arith.addf %426, %430 : vector<8x256xf32>
    %c0_301 = arith.constant 0 : index
    %c40 = arith.constant 40 : index
    %432 = vector.load %arg25[%c0_301, %c40] : memref<8x306xf32, #tpu.memory_space<vmem>>, vector<8x256xf32>
    %433 = vector.extract_strided_slice %400 {offsets = [6, 0, 0], sizes = [1, 8, 8], strides = [1, 1, 1]} : vector<7x8x8xf32> to vector<1x8x8xf32>
    %434 = vector.shape_cast %433 : vector<1x8x8xf32> to vector<8x8xf32>
    %cst_302 = arith.constant dense<0.000000e+00> : vector<8x256xf32>
    %435 = tpu.matmul %434, %432, %cst_302 {dimension_numbers = #tpu.dot_dimension_numbers<[1], [0], [0], [1], [0, 0, 1, 1], [], []>} : vector<8x8xf32>, vector<8x256xf32>, vector<8x256xf32> -> vector<8x256xf32>
    %436 = arith.addf %431, %435 : vector<8x256xf32>
    %437 = vector.broadcast %402 : vector<8x1xf32> to vector<8x256xf32>
    %438 = arith.addf %436, %437 : vector<8x256xf32>
    %cst_303 = arith.constant 2.000000e-01 : f32
    %439 = vector.broadcast %cst_303 : f32 to vector<8x256xf32>
    %440 = arith.mulf %438, %439 : vector<8x256xf32>
    %441 = arith.maximumf %438, %440 : vector<8x256xf32>
    %c0_304 = arith.constant 0 : index
    %c25_305 = arith.constant 25 : index
    %442 = vector.load %arg25[%c0_304, %c25_305] : memref<8x306xf32, #tpu.memory_space<vmem>>, vector<8x256xf32>
    tpu.vector_store %arg25[%c0_304, %c25_305], %441 {strides = array<i32>} : memref<8x306xf32, #tpu.memory_space<vmem>>, vector<8x256xf32>,
    %c2_306 = arith.constant 2 : index
    %c0_307 = arith.constant 0 : index
    %c0_308 = arith.constant 0 : index
    %c0_309 = arith.constant 0 : index
    %443 = vector.load %arg14[%c2_306, %c0_307, %c0_308, %c0_309] : memref<3x7x8x8xf32, #tpu.memory_space<vmem>>, vector<1x7x8x8xf32>
    %444 = vector.shape_cast %443 : vector<1x7x8x8xf32> to vector<7x8x8xf32>
    %c2_310 = arith.constant 2 : index
    %c0_311 = arith.constant 0 : index
    %c0_312 = arith.constant 0 : index
    %445 = vector.load %arg15[%c2_310, %c0_311, %c0_312] : memref<3x8x1xf32, #tpu.memory_space<vmem>>, vector<1x8x1xf32>
    %446 = vector.shape_cast %445 : vector<1x8x1xf32> to vector<8x1xf32>
    %c0_313 = arith.constant 0 : index
    %c10_314 = arith.constant 10 : index
    %447 = vector.load %arg25[%c0_313, %c10_314] : memref<8x306xf32, #tpu.memory_space<vmem>>, vector<8x256xf32>
    %448 = vector.extract_strided_slice %444 {offsets = [0, 0, 0], sizes = [1, 8, 8], strides = [1, 1, 1]} : vector<7x8x8xf32> to vector<1x8x8xf32>
    %449 = vector.shape_cast %448 : vector<1x8x8xf32> to vector<8x8xf32>
    %cst_315 = arith.constant dense<0.000000e+00> : vector<8x256xf32>
    %450 = tpu.matmul %449, %447, %cst_315 {dimension_numbers = #tpu.dot_dimension_numbers<[1], [0], [0], [1], [0, 0, 1, 1], [], []>} : vector<8x8xf32>, vector<8x256xf32>, vector<8x256xf32> -> vector<8x256xf32>
    %c0_316 = arith.constant 0 : index
    %c15_317 = arith.constant 15 : index
    %451 = vector.load %arg25[%c0_316, %c15_317] : memref<8x306xf32, #tpu.memory_space<vmem>>, vector<8x256xf32>
    %452 = vector.extract_strided_slice %444 {offsets = [1, 0, 0], sizes = [1, 8, 8], strides = [1, 1, 1]} : vector<7x8x8xf32> to vector<1x8x8xf32>
    %453 = vector.shape_cast %452 : vector<1x8x8xf32> to vector<8x8xf32>
    %cst_318 = arith.constant dense<0.000000e+00> : vector<8x256xf32>
    %454 = tpu.matmul %453, %451, %cst_318 {dimension_numbers = #tpu.dot_dimension_numbers<[1], [0], [0], [1], [0, 0, 1, 1], [], []>} : vector<8x8xf32>, vector<8x256xf32>, vector<8x256xf32> -> vector<8x256xf32>
    %455 = arith.addf %450, %454 : vector<8x256xf32>
    %c0_319 = arith.constant 0 : index
    %c20_320 = arith.constant 20 : index
    %456 = vector.load %arg25[%c0_319, %c20_320] : memref<8x306xf32, #tpu.memory_space<vmem>>, vector<8x256xf32>
    %457 = vector.extract_strided_slice %444 {offsets = [2, 0, 0], sizes = [1, 8, 8], strides = [1, 1, 1]} : vector<7x8x8xf32> to vector<1x8x8xf32>
    %458 = vector.shape_cast %457 : vector<1x8x8xf32> to vector<8x8xf32>
    %cst_321 = arith.constant dense<0.000000e+00> : vector<8x256xf32>
    %459 = tpu.matmul %458, %456, %cst_321 {dimension_numbers = #tpu.dot_dimension_numbers<[1], [0], [0], [1], [0, 0, 1, 1], [], []>} : vector<8x8xf32>, vector<8x256xf32>, vector<8x256xf32> -> vector<8x256xf32>
    %460 = arith.addf %455, %459 : vector<8x256xf32>
    %c0_322 = arith.constant 0 : index
    %c25_323 = arith.constant 25 : index
    %461 = vector.load %arg25[%c0_322, %c25_323] : memref<8x306xf32, #tpu.memory_space<vmem>>, vector<8x256xf32>
    %462 = vector.extract_strided_slice %444 {offsets = [3, 0, 0], sizes = [1, 8, 8], strides = [1, 1, 1]} : vector<7x8x8xf32> to vector<1x8x8xf32>
    %463 = vector.shape_cast %462 : vector<1x8x8xf32> to vector<8x8xf32>
    %cst_324 = arith.constant dense<0.000000e+00> : vector<8x256xf32>
    %464 = tpu.matmul %463, %461, %cst_324 {dimension_numbers = #tpu.dot_dimension_numbers<[1], [0], [0], [1], [0, 0, 1, 1], [], []>} : vector<8x8xf32>, vector<8x256xf32>, vector<8x256xf32> -> vector<8x256xf32>
    %465 = arith.addf %460, %464 : vector<8x256xf32>
    %c0_325 = arith.constant 0 : index
    %c30_326 = arith.constant 30 : index
    %466 = vector.load %arg25[%c0_325, %c30_326] : memref<8x306xf32, #tpu.memory_space<vmem>>, vector<8x256xf32>
    %467 = vector.extract_strided_slice %444 {offsets = [4, 0, 0], sizes = [1, 8, 8], strides = [1, 1, 1]} : vector<7x8x8xf32> to vector<1x8x8xf32>
    %468 = vector.shape_cast %467 : vector<1x8x8xf32> to vector<8x8xf32>
    %cst_327 = arith.constant dense<0.000000e+00> : vector<8x256xf32>
    %469 = tpu.matmul %468, %466, %cst_327 {dimension_numbers = #tpu.dot_dimension_numbers<[1], [0], [0], [1], [0, 0, 1, 1], [], []>} : vector<8x8xf32>, vector<8x256xf32>, vector<8x256xf32> -> vector<8x256xf32>
    %470 = arith.addf %465, %469 : vector<8x256xf32>
    %c0_328 = arith.constant 0 : index
    %c35_329 = arith.constant 35 : index
    %471 = vector.load %arg25[%c0_328, %c35_329] : memref<8x306xf32, #tpu.memory_space<vmem>>, vector<8x256xf32>
    %472 = vector.extract_strided_slice %444 {offsets = [5, 0, 0], sizes = [1, 8, 8], strides = [1, 1, 1]} : vector<7x8x8xf32> to vector<1x8x8xf32>
    %473 = vector.shape_cast %472 : vector<1x8x8xf32> to vector<8x8xf32>
    %cst_330 = arith.constant dense<0.000000e+00> : vector<8x256xf32>
    %474 = tpu.matmul %473, %471, %cst_330 {dimension_numbers = #tpu.dot_dimension_numbers<[1], [0], [0], [1], [0, 0, 1, 1], [], []>} : vector<8x8xf32>, vector<8x256xf32>, vector<8x256xf32> -> vector<8x256xf32>
    %475 = arith.addf %470, %474 : vector<8x256xf32>
    %c0_331 = arith.constant 0 : index
    %c40_332 = arith.constant 40 : index
    %476 = vector.load %arg25[%c0_331, %c40_332] : memref<8x306xf32, #tpu.memory_space<vmem>>, vector<8x256xf32>
    %477 = vector.extract_strided_slice %444 {offsets = [6, 0, 0], sizes = [1, 8, 8], strides = [1, 1, 1]} : vector<7x8x8xf32> to vector<1x8x8xf32>
    %478 = vector.shape_cast %477 : vector<1x8x8xf32> to vector<8x8xf32>
    %cst_333 = arith.constant dense<0.000000e+00> : vector<8x256xf32>
    %479 = tpu.matmul %478, %476, %cst_333 {dimension_numbers = #tpu.dot_dimension_numbers<[1], [0], [0], [1], [0, 0, 1, 1], [], []>} : vector<8x8xf32>, vector<8x256xf32>, vector<8x256xf32> -> vector<8x256xf32>
    %480 = arith.addf %475, %479 : vector<8x256xf32>
    %481 = vector.broadcast %446 : vector<8x1xf32> to vector<8x256xf32>
    %482 = arith.addf %480, %481 : vector<8x256xf32>
    %483 = arith.addf %482, %394 : vector<8x256xf32>
    %c1_334 = arith.constant 1 : index
    %c0_335 = arith.constant 0 : index
    %c0_336 = arith.constant 0 : index
    %c0_337 = arith.constant 0 : index
    %484 = vector.load %arg3[%c1_334, %c0_335, %c0_336, %c0_337] : memref<3x1x8x256xf32, #tpu.memory_space<vmem>>, vector<1x1x8x256xf32>
    %485 = vector.shape_cast %484 : vector<1x1x8x256xf32> to vector<8x256xf32>
    %c0_338 = arith.constant 0 : index
    %c0_339 = arith.constant 0 : index
    %486 = vector.load %arg17[%c0_338, %c0_339] : memref<8x1xf32, #tpu.memory_space<vmem>>, vector<8x1xf32>
    %487 = vector.broadcast %486 : vector<8x1xf32> to vector<8x256xf32>
    %488 = arith.mulf %485, %487 : vector<8x256xf32>
    %489 = arith.addf %483, %488 : vector<8x256xf32>
    %cst_340 = arith.constant 2.000000e-01 : f32
    %490 = vector.broadcast %cst_340 : f32 to vector<8x256xf32>
    %491 = arith.mulf %489, %490 : vector<8x256xf32>
    %492 = arith.maximumf %489, %491 : vector<8x256xf32>
    %493 = arith.addf %207, %492 : vector<8x256xf32>
    %c2_341 = arith.constant 2 : index
    %c0_342 = arith.constant 0 : index
    %c0_343 = arith.constant 0 : index
    %c0_344 = arith.constant 0 : index
    %494 = vector.load %arg2[%c2_341, %c0_342, %c0_343, %c0_344] : memref<3x1x8x256xf32, #tpu.memory_space<vmem>>, vector<1x1x8x256xf32>
    %495 = vector.shape_cast %494 : vector<1x1x8x256xf32> to vector<8x256xf32>
    %c0_345 = arith.constant 0 : index
    %c0_346 = arith.constant 0 : index
    %496 = vector.load %arg22[%c0_345, %c0_346] : memref<8x1xf32, #tpu.memory_space<vmem>>, vector<8x1xf32>
    %497 = vector.broadcast %496 : vector<8x1xf32> to vector<8x256xf32>
    %498 = arith.mulf %495, %497 : vector<8x256xf32>
    %499 = arith.addf %42, %498 : vector<8x256xf32>
    %cst_347 = arith.constant 2.000000e-01 : f32
    %500 = vector.broadcast %cst_347 : f32 to vector<8x256xf32>
    %501 = arith.mulf %499, %500 : vector<8x256xf32>
    %502 = arith.maximumf %499, %501 : vector<8x256xf32>
    %cst_348 = arith.constant 2.000000e-01 : f32
    %503 = vector.broadcast %cst_348 : f32 to vector<8x256xf32>
    %504 = arith.mulf %502, %503 : vector<8x256xf32>
    %505 = arith.maximumf %502, %504 : vector<8x256xf32>
    %c0_349 = arith.constant 0 : index
    %c25_350 = arith.constant 25 : index
    %506 = vector.load %arg25[%c0_349, %c25_350] : memref<8x306xf32, #tpu.memory_space<vmem>>, vector<8x256xf32>
    tpu.vector_store %arg25[%c0_349, %c25_350], %505 {strides = array<i32>} : memref<8x306xf32, #tpu.memory_space<vmem>>, vector<8x256xf32>,
    %c0_351 = arith.constant 0 : index
    %c0_352 = arith.constant 0 : index
    %c0_353 = arith.constant 0 : index
    %c0_354 = arith.constant 0 : index
    %507 = vector.load %arg18[%c0_351, %c0_352, %c0_353, %c0_354] : memref<3x11x8x8xf32, #tpu.memory_space<vmem>>, vector<1x11x8x8xf32>
    %508 = vector.shape_cast %507 : vector<1x11x8x8xf32> to vector<11x8x8xf32>
    %c0_355 = arith.constant 0 : index
    %c0_356 = arith.constant 0 : index
    %c0_357 = arith.constant 0 : index
    %509 = vector.load %arg19[%c0_355, %c0_356, %c0_357] : memref<3x8x1xf32, #tpu.memory_space<vmem>>, vector<1x8x1xf32>
    %510 = vector.shape_cast %509 : vector<1x8x1xf32> to vector<8x1xf32>
    %c0_358 = arith.constant 0 : index
    %c20_359 = arith.constant 20 : index
    %511 = vector.load %arg25[%c0_358, %c20_359] : memref<8x306xf32, #tpu.memory_space<vmem>>, vector<8x256xf32>
    %512 = vector.extract_strided_slice %508 {offsets = [0, 0, 0], sizes = [1, 8, 8], strides = [1, 1, 1]} : vector<11x8x8xf32> to vector<1x8x8xf32>
    %513 = vector.shape_cast %512 : vector<1x8x8xf32> to vector<8x8xf32>
    %cst_360 = arith.constant dense<0.000000e+00> : vector<8x256xf32>
    %514 = tpu.matmul %513, %511, %cst_360 {dimension_numbers = #tpu.dot_dimension_numbers<[1], [0], [0], [1], [0, 0, 1, 1], [], []>} : vector<8x8xf32>, vector<8x256xf32>, vector<8x256xf32> -> vector<8x256xf32>
    %c0_361 = arith.constant 0 : index
    %c21 = arith.constant 21 : index
    %515 = vector.load %arg25[%c0_361, %c21] : memref<8x306xf32, #tpu.memory_space<vmem>>, vector<8x256xf32>
    %516 = vector.extract_strided_slice %508 {offsets = [1, 0, 0], sizes = [1, 8, 8], strides = [1, 1, 1]} : vector<11x8x8xf32> to vector<1x8x8xf32>
    %517 = vector.shape_cast %516 : vector<1x8x8xf32> to vector<8x8xf32>
    %cst_362 = arith.constant dense<0.000000e+00> : vector<8x256xf32>
    %518 = tpu.matmul %517, %515, %cst_362 {dimension_numbers = #tpu.dot_dimension_numbers<[1], [0], [0], [1], [0, 0, 1, 1], [], []>} : vector<8x8xf32>, vector<8x256xf32>, vector<8x256xf32> -> vector<8x256xf32>
    %519 = arith.addf %514, %518 : vector<8x256xf32>
    %c0_363 = arith.constant 0 : index
    %c22_364 = arith.constant 22 : index
    %520 = vector.load %arg25[%c0_363, %c22_364] : memref<8x306xf32, #tpu.memory_space<vmem>>, vector<8x256xf32>
    %521 = vector.extract_strided_slice %508 {offsets = [2, 0, 0], sizes = [1, 8, 8], strides = [1, 1, 1]} : vector<11x8x8xf32> to vector<1x8x8xf32>
    %522 = vector.shape_cast %521 : vector<1x8x8xf32> to vector<8x8xf32>
    %cst_365 = arith.constant dense<0.000000e+00> : vector<8x256xf32>
    %523 = tpu.matmul %522, %520, %cst_365 {dimension_numbers = #tpu.dot_dimension_numbers<[1], [0], [0], [1], [0, 0, 1, 1], [], []>} : vector<8x8xf32>, vector<8x256xf32>, vector<8x256xf32> -> vector<8x256xf32>
    %524 = arith.addf %519, %523 : vector<8x256xf32>
    %c0_366 = arith.constant 0 : index
    %c23_367 = arith.constant 23 : index
    %525 = vector.load %arg25[%c0_366, %c23_367] : memref<8x306xf32, #tpu.memory_space<vmem>>, vector<8x256xf32>
    %526 = vector.extract_strided_slice %508 {offsets = [3, 0, 0], sizes = [1, 8, 8], strides = [1, 1, 1]} : vector<11x8x8xf32> to vector<1x8x8xf32>
    %527 = vector.shape_cast %526 : vector<1x8x8xf32> to vector<8x8xf32>
    %cst_368 = arith.constant dense<0.000000e+00> : vector<8x256xf32>
    %528 = tpu.matmul %527, %525, %cst_368 {dimension_numbers = #tpu.dot_dimension_numbers<[1], [0], [0], [1], [0, 0, 1, 1], [], []>} : vector<8x8xf32>, vector<8x256xf32>, vector<8x256xf32> -> vector<8x256xf32>
    %529 = arith.addf %524, %528 : vector<8x256xf32>
    %c0_369 = arith.constant 0 : index
    %c24_370 = arith.constant 24 : index
    %530 = vector.load %arg25[%c0_369, %c24_370] : memref<8x306xf32, #tpu.memory_space<vmem>>, vector<8x256xf32>
    %531 = vector.extract_strided_slice %508 {offsets = [4, 0, 0], sizes = [1, 8, 8], strides = [1, 1, 1]} : vector<11x8x8xf32> to vector<1x8x8xf32>
    %532 = vector.shape_cast %531 : vector<1x8x8xf32> to vector<8x8xf32>
    %cst_371 = arith.constant dense<0.000000e+00> : vector<8x256xf32>
    %533 = tpu.matmul %532, %530, %cst_371 {dimension_numbers = #tpu.dot_dimension_numbers<[1], [0], [0], [1], [0, 0, 1, 1], [], []>} : vector<8x8xf32>, vector<8x256xf32>, vector<8x256xf32> -> vector<8x256xf32>
    %534 = arith.addf %529, %533 : vector<8x256xf32>
    %c0_372 = arith.constant 0 : index
    %c25_373 = arith.constant 25 : index
    %535 = vector.load %arg25[%c0_372, %c25_373] : memref<8x306xf32, #tpu.memory_space<vmem>>, vector<8x256xf32>
    %536 = vector.extract_strided_slice %508 {offsets = [5, 0, 0], sizes = [1, 8, 8], strides = [1, 1, 1]} : vector<11x8x8xf32> to vector<1x8x8xf32>
    %537 = vector.shape_cast %536 : vector<1x8x8xf32> to vector<8x8xf32>
    %cst_374 = arith.constant dense<0.000000e+00> : vector<8x256xf32>
    %538 = tpu.matmul %537, %535, %cst_374 {dimension_numbers = #tpu.dot_dimension_numbers<[1], [0], [0], [1], [0, 0, 1, 1], [], []>} : vector<8x8xf32>, vector<8x256xf32>, vector<8x256xf32> -> vector<8x256xf32>
    %539 = arith.addf %534, %538 : vector<8x256xf32>
    %c0_375 = arith.constant 0 : index
    %c26_376 = arith.constant 26 : index
    %540 = vector.load %arg25[%c0_375, %c26_376] : memref<8x306xf32, #tpu.memory_space<vmem>>, vector<8x256xf32>
    %541 = vector.extract_strided_slice %508 {offsets = [6, 0, 0], sizes = [1, 8, 8], strides = [1, 1, 1]} : vector<11x8x8xf32> to vector<1x8x8xf32>
    %542 = vector.shape_cast %541 : vector<1x8x8xf32> to vector<8x8xf32>
    %cst_377 = arith.constant dense<0.000000e+00> : vector<8x256xf32>
    %543 = tpu.matmul %542, %540, %cst_377 {dimension_numbers = #tpu.dot_dimension_numbers<[1], [0], [0], [1], [0, 0, 1, 1], [], []>} : vector<8x8xf32>, vector<8x256xf32>, vector<8x256xf32> -> vector<8x256xf32>
    %544 = arith.addf %539, %543 : vector<8x256xf32>
    %c0_378 = arith.constant 0 : index
    %c27_379 = arith.constant 27 : index
    %545 = vector.load %arg25[%c0_378, %c27_379] : memref<8x306xf32, #tpu.memory_space<vmem>>, vector<8x256xf32>
    %546 = vector.extract_strided_slice %508 {offsets = [7, 0, 0], sizes = [1, 8, 8], strides = [1, 1, 1]} : vector<11x8x8xf32> to vector<1x8x8xf32>
    %547 = vector.shape_cast %546 : vector<1x8x8xf32> to vector<8x8xf32>
    %cst_380 = arith.constant dense<0.000000e+00> : vector<8x256xf32>
    %548 = tpu.matmul %547, %545, %cst_380 {dimension_numbers = #tpu.dot_dimension_numbers<[1], [0], [0], [1], [0, 0, 1, 1], [], []>} : vector<8x8xf32>, vector<8x256xf32>, vector<8x256xf32> -> vector<8x256xf32>
    %549 = arith.addf %544, %548 : vector<8x256xf32>
    %c0_381 = arith.constant 0 : index
    %c28_382 = arith.constant 28 : index
    %550 = vector.load %arg25[%c0_381, %c28_382] : memref<8x306xf32, #tpu.memory_space<vmem>>, vector<8x256xf32>
    %551 = vector.extract_strided_slice %508 {offsets = [8, 0, 0], sizes = [1, 8, 8], strides = [1, 1, 1]} : vector<11x8x8xf32> to vector<1x8x8xf32>
    %552 = vector.shape_cast %551 : vector<1x8x8xf32> to vector<8x8xf32>
    %cst_383 = arith.constant dense<0.000000e+00> : vector<8x256xf32>
    %553 = tpu.matmul %552, %550, %cst_383 {dimension_numbers = #tpu.dot_dimension_numbers<[1], [0], [0], [1], [0, 0, 1, 1], [], []>} : vector<8x8xf32>, vector<8x256xf32>, vector<8x256xf32> -> vector<8x256xf32>
    %554 = arith.addf %549, %553 : vector<8x256xf32>
    %c0_384 = arith.constant 0 : index
    %c29 = arith.constant 29 : index
    %555 = vector.load %arg25[%c0_384, %c29] : memref<8x306xf32, #tpu.memory_space<vmem>>, vector<8x256xf32>
    %556 = vector.extract_strided_slice %508 {offsets = [9, 0, 0], sizes = [1, 8, 8], strides = [1, 1, 1]} : vector<11x8x8xf32> to vector<1x8x8xf32>
    %557 = vector.shape_cast %556 : vector<1x8x8xf32> to vector<8x8xf32>
    %cst_385 = arith.constant dense<0.000000e+00> : vector<8x256xf32>
    %558 = tpu.matmul %557, %555, %cst_385 {dimension_numbers = #tpu.dot_dimension_numbers<[1], [0], [0], [1], [0, 0, 1, 1], [], []>} : vector<8x8xf32>, vector<8x256xf32>, vector<8x256xf32> -> vector<8x256xf32>
    %559 = arith.addf %554, %558 : vector<8x256xf32>
    %c0_386 = arith.constant 0 : index
    %c30_387 = arith.constant 30 : index
    %560 = vector.load %arg25[%c0_386, %c30_387] : memref<8x306xf32, #tpu.memory_space<vmem>>, vector<8x256xf32>
    %561 = vector.extract_strided_slice %508 {offsets = [10, 0, 0], sizes = [1, 8, 8], strides = [1, 1, 1]} : vector<11x8x8xf32> to vector<1x8x8xf32>
    %562 = vector.shape_cast %561 : vector<1x8x8xf32> to vector<8x8xf32>
    %cst_388 = arith.constant dense<0.000000e+00> : vector<8x256xf32>
    %563 = tpu.matmul %562, %560, %cst_388 {dimension_numbers = #tpu.dot_dimension_numbers<[1], [0], [0], [1], [0, 0, 1, 1], [], []>} : vector<8x8xf32>, vector<8x256xf32>, vector<8x256xf32> -> vector<8x256xf32>
    %564 = arith.addf %559, %563 : vector<8x256xf32>
    %565 = vector.broadcast %510 : vector<8x1xf32> to vector<8x256xf32>
    %566 = arith.addf %564, %565 : vector<8x256xf32>
    %cst_389 = arith.constant 2.000000e-01 : f32
    %567 = vector.broadcast %cst_389 : f32 to vector<8x256xf32>
    %568 = arith.mulf %566, %567 : vector<8x256xf32>
    %569 = arith.maximumf %566, %568 : vector<8x256xf32>
    %c0_390 = arith.constant 0 : index
    %c25_391 = arith.constant 25 : index
    %570 = vector.load %arg25[%c0_390, %c25_391] : memref<8x306xf32, #tpu.memory_space<vmem>>, vector<8x256xf32>
    tpu.vector_store %arg25[%c0_390, %c25_391], %569 {strides = array<i32>} : memref<8x306xf32, #tpu.memory_space<vmem>>, vector<8x256xf32>,
    %c0_392 = arith.constant 0 : index
    %c0_393 = arith.constant 0 : index
    %c0_394 = arith.constant 0 : index
    %c0_395 = arith.constant 0 : index
    %571 = vector.load %arg20[%c0_392, %c0_393, %c0_394, %c0_395] : memref<3x11x8x8xf32, #tpu.memory_space<vmem>>, vector<1x11x8x8xf32>
    %572 = vector.shape_cast %571 : vector<1x11x8x8xf32> to vector<11x8x8xf32>
    %c0_396 = arith.constant 0 : index
    %c0_397 = arith.constant 0 : index
    %c0_398 = arith.constant 0 : index
    %573 = vector.load %arg21[%c0_396, %c0_397, %c0_398] : memref<3x8x1xf32, #tpu.memory_space<vmem>>, vector<1x8x1xf32>
    %574 = vector.shape_cast %573 : vector<1x8x1xf32> to vector<8x1xf32>
    %c0_399 = arith.constant 0 : index
    %c20_400 = arith.constant 20 : index
    %575 = vector.load %arg25[%c0_399, %c20_400] : memref<8x306xf32, #tpu.memory_space<vmem>>, vector<8x256xf32>
    %576 = vector.extract_strided_slice %572 {offsets = [0, 0, 0], sizes = [1, 8, 8], strides = [1, 1, 1]} : vector<11x8x8xf32> to vector<1x8x8xf32>
    %577 = vector.shape_cast %576 : vector<1x8x8xf32> to vector<8x8xf32>
    %cst_401 = arith.constant dense<0.000000e+00> : vector<8x256xf32>
    %578 = tpu.matmul %577, %575, %cst_401 {dimension_numbers = #tpu.dot_dimension_numbers<[1], [0], [0], [1], [0, 0, 1, 1], [], []>} : vector<8x8xf32>, vector<8x256xf32>, vector<8x256xf32> -> vector<8x256xf32>
    %c0_402 = arith.constant 0 : index
    %c21_403 = arith.constant 21 : index
    %579 = vector.load %arg25[%c0_402, %c21_403] : memref<8x306xf32, #tpu.memory_space<vmem>>, vector<8x256xf32>
    %580 = vector.extract_strided_slice %572 {offsets = [1, 0, 0], sizes = [1, 8, 8], strides = [1, 1, 1]} : vector<11x8x8xf32> to vector<1x8x8xf32>
    %581 = vector.shape_cast %580 : vector<1x8x8xf32> to vector<8x8xf32>
    %cst_404 = arith.constant dense<0.000000e+00> : vector<8x256xf32>
    %582 = tpu.matmul %581, %579, %cst_404 {dimension_numbers = #tpu.dot_dimension_numbers<[1], [0], [0], [1], [0, 0, 1, 1], [], []>} : vector<8x8xf32>, vector<8x256xf32>, vector<8x256xf32> -> vector<8x256xf32>
    %583 = arith.addf %578, %582 : vector<8x256xf32>
    %c0_405 = arith.constant 0 : index
    %c22_406 = arith.constant 22 : index
    %584 = vector.load %arg25[%c0_405, %c22_406] : memref<8x306xf32, #tpu.memory_space<vmem>>, vector<8x256xf32>
    %585 = vector.extract_strided_slice %572 {offsets = [2, 0, 0], sizes = [1, 8, 8], strides = [1, 1, 1]} : vector<11x8x8xf32> to vector<1x8x8xf32>
    %586 = vector.shape_cast %585 : vector<1x8x8xf32> to vector<8x8xf32>
    %cst_407 = arith.constant dense<0.000000e+00> : vector<8x256xf32>
    %587 = tpu.matmul %586, %584, %cst_407 {dimension_numbers = #tpu.dot_dimension_numbers<[1], [0], [0], [1], [0, 0, 1, 1], [], []>} : vector<8x8xf32>, vector<8x256xf32>, vector<8x256xf32> -> vector<8x256xf32>
    %588 = arith.addf %583, %587 : vector<8x256xf32>
    %c0_408 = arith.constant 0 : index
    %c23_409 = arith.constant 23 : index
    %589 = vector.load %arg25[%c0_408, %c23_409] : memref<8x306xf32, #tpu.memory_space<vmem>>, vector<8x256xf32>
    %590 = vector.extract_strided_slice %572 {offsets = [3, 0, 0], sizes = [1, 8, 8], strides = [1, 1, 1]} : vector<11x8x8xf32> to vector<1x8x8xf32>
    %591 = vector.shape_cast %590 : vector<1x8x8xf32> to vector<8x8xf32>
    %cst_410 = arith.constant dense<0.000000e+00> : vector<8x256xf32>
    %592 = tpu.matmul %591, %589, %cst_410 {dimension_numbers = #tpu.dot_dimension_numbers<[1], [0], [0], [1], [0, 0, 1, 1], [], []>} : vector<8x8xf32>, vector<8x256xf32>, vector<8x256xf32> -> vector<8x256xf32>
    %593 = arith.addf %588, %592 : vector<8x256xf32>
    %c0_411 = arith.constant 0 : index
    %c24_412 = arith.constant 24 : index
    %594 = vector.load %arg25[%c0_411, %c24_412] : memref<8x306xf32, #tpu.memory_space<vmem>>, vector<8x256xf32>
    %595 = vector.extract_strided_slice %572 {offsets = [4, 0, 0], sizes = [1, 8, 8], strides = [1, 1, 1]} : vector<11x8x8xf32> to vector<1x8x8xf32>
    %596 = vector.shape_cast %595 : vector<1x8x8xf32> to vector<8x8xf32>
    %cst_413 = arith.constant dense<0.000000e+00> : vector<8x256xf32>
    %597 = tpu.matmul %596, %594, %cst_413 {dimension_numbers = #tpu.dot_dimension_numbers<[1], [0], [0], [1], [0, 0, 1, 1], [], []>} : vector<8x8xf32>, vector<8x256xf32>, vector<8x256xf32> -> vector<8x256xf32>
    %598 = arith.addf %593, %597 : vector<8x256xf32>
    %c0_414 = arith.constant 0 : index
    %c25_415 = arith.constant 25 : index
    %599 = vector.load %arg25[%c0_414, %c25_415] : memref<8x306xf32, #tpu.memory_space<vmem>>, vector<8x256xf32>
    %600 = vector.extract_strided_slice %572 {offsets = [5, 0, 0], sizes = [1, 8, 8], strides = [1, 1, 1]} : vector<11x8x8xf32> to vector<1x8x8xf32>
    %601 = vector.shape_cast %600 : vector<1x8x8xf32> to vector<8x8xf32>
    %cst_416 = arith.constant dense<0.000000e+00> : vector<8x256xf32>
    %602 = tpu.matmul %601, %599, %cst_416 {dimension_numbers = #tpu.dot_dimension_numbers<[1], [0], [0], [1], [0, 0, 1, 1], [], []>} : vector<8x8xf32>, vector<8x256xf32>, vector<8x256xf32> -> vector<8x256xf32>
    %603 = arith.addf %598, %602 : vector<8x256xf32>
    %c0_417 = arith.constant 0 : index
    %c26_418 = arith.constant 26 : index
    %604 = vector.load %arg25[%c0_417, %c26_418] : memref<8x306xf32, #tpu.memory_space<vmem>>, vector<8x256xf32>
    %605 = vector.extract_strided_slice %572 {offsets = [6, 0, 0], sizes = [1, 8, 8], strides = [1, 1, 1]} : vector<11x8x8xf32> to vector<1x8x8xf32>
    %606 = vector.shape_cast %605 : vector<1x8x8xf32> to vector<8x8xf32>
    %cst_419 = arith.constant dense<0.000000e+00> : vector<8x256xf32>
    %607 = tpu.matmul %606, %604, %cst_419 {dimension_numbers = #tpu.dot_dimension_numbers<[1], [0], [0], [1], [0, 0, 1, 1], [], []>} : vector<8x8xf32>, vector<8x256xf32>, vector<8x256xf32> -> vector<8x256xf32>
    %608 = arith.addf %603, %607 : vector<8x256xf32>
    %c0_420 = arith.constant 0 : index
    %c27_421 = arith.constant 27 : index
    %609 = vector.load %arg25[%c0_420, %c27_421] : memref<8x306xf32, #tpu.memory_space<vmem>>, vector<8x256xf32>
    %610 = vector.extract_strided_slice %572 {offsets = [7, 0, 0], sizes = [1, 8, 8], strides = [1, 1, 1]} : vector<11x8x8xf32> to vector<1x8x8xf32>
    %611 = vector.shape_cast %610 : vector<1x8x8xf32> to vector<8x8xf32>
    %cst_422 = arith.constant dense<0.000000e+00> : vector<8x256xf32>
    %612 = tpu.matmul %611, %609, %cst_422 {dimension_numbers = #tpu.dot_dimension_numbers<[1], [0], [0], [1], [0, 0, 1, 1], [], []>} : vector<8x8xf32>, vector<8x256xf32>, vector<8x256xf32> -> vector<8x256xf32>
    %613 = arith.addf %608, %612 : vector<8x256xf32>
    %c0_423 = arith.constant 0 : index
    %c28_424 = arith.constant 28 : index
    %614 = vector.load %arg25[%c0_423, %c28_424] : memref<8x306xf32, #tpu.memory_space<vmem>>, vector<8x256xf32>
    %615 = vector.extract_strided_slice %572 {offsets = [8, 0, 0], sizes = [1, 8, 8], strides = [1, 1, 1]} : vector<11x8x8xf32> to vector<1x8x8xf32>
    %616 = vector.shape_cast %615 : vector<1x8x8xf32> to vector<8x8xf32>
    %cst_425 = arith.constant dense<0.000000e+00> : vector<8x256xf32>
    %617 = tpu.matmul %616, %614, %cst_425 {dimension_numbers = #tpu.dot_dimension_numbers<[1], [0], [0], [1], [0, 0, 1, 1], [], []>} : vector<8x8xf32>, vector<8x256xf32>, vector<8x256xf32> -> vector<8x256xf32>
    %618 = arith.addf %613, %617 : vector<8x256xf32>
    %c0_426 = arith.constant 0 : index
    %c29_427 = arith.constant 29 : index
    %619 = vector.load %arg25[%c0_426, %c29_427] : memref<8x306xf32, #tpu.memory_space<vmem>>, vector<8x256xf32>
    %620 = vector.extract_strided_slice %572 {offsets = [9, 0, 0], sizes = [1, 8, 8], strides = [1, 1, 1]} : vector<11x8x8xf32> to vector<1x8x8xf32>
    %621 = vector.shape_cast %620 : vector<1x8x8xf32> to vector<8x8xf32>
    %cst_428 = arith.constant dense<0.000000e+00> : vector<8x256xf32>
    %622 = tpu.matmul %621, %619, %cst_428 {dimension_numbers = #tpu.dot_dimension_numbers<[1], [0], [0], [1], [0, 0, 1, 1], [], []>} : vector<8x8xf32>, vector<8x256xf32>, vector<8x256xf32> -> vector<8x256xf32>
    %623 = arith.addf %618, %622 : vector<8x256xf32>
    %c0_429 = arith.constant 0 : index
    %c30_430 = arith.constant 30 : index
    %624 = vector.load %arg25[%c0_429, %c30_430] : memref<8x306xf32, #tpu.memory_space<vmem>>, vector<8x256xf32>
    %625 = vector.extract_strided_slice %572 {offsets = [10, 0, 0], sizes = [1, 8, 8], strides = [1, 1, 1]} : vector<11x8x8xf32> to vector<1x8x8xf32>
    %626 = vector.shape_cast %625 : vector<1x8x8xf32> to vector<8x8xf32>
    %cst_431 = arith.constant dense<0.000000e+00> : vector<8x256xf32>
    %627 = tpu.matmul %626, %624, %cst_431 {dimension_numbers = #tpu.dot_dimension_numbers<[1], [0], [0], [1], [0, 0, 1, 1], [], []>} : vector<8x8xf32>, vector<8x256xf32>, vector<8x256xf32> -> vector<8x256xf32>
    %628 = arith.addf %623, %627 : vector<8x256xf32>
    %629 = vector.broadcast %574 : vector<8x1xf32> to vector<8x256xf32>
    %630 = arith.addf %628, %629 : vector<8x256xf32>
    %631 = arith.addf %630, %502 : vector<8x256xf32>
    %cst_432 = arith.constant 2.000000e-01 : f32
    %632 = vector.broadcast %cst_432 : f32 to vector<8x256xf32>
    %633 = arith.mulf %631, %632 : vector<8x256xf32>
    %634 = arith.maximumf %631, %633 : vector<8x256xf32>
    %c0_433 = arith.constant 0 : index
    %c25_434 = arith.constant 25 : index
    %635 = vector.load %arg25[%c0_433, %c25_434] : memref<8x306xf32, #tpu.memory_space<vmem>>, vector<8x256xf32>
    tpu.vector_store %arg25[%c0_433, %c25_434], %634 {strides = array<i32>} : memref<8x306xf32, #tpu.memory_space<vmem>>, vector<8x256xf32>,
    %c1_435 = arith.constant 1 : index
    %c0_436 = arith.constant 0 : index
    %c0_437 = arith.constant 0 : index
    %c0_438 = arith.constant 0 : index
    %636 = vector.load %arg18[%c1_435, %c0_436, %c0_437, %c0_438] : memref<3x11x8x8xf32, #tpu.memory_space<vmem>>, vector<1x11x8x8xf32>
    %637 = vector.shape_cast %636 : vector<1x11x8x8xf32> to vector<11x8x8xf32>
    %c1_439 = arith.constant 1 : index
    %c0_440 = arith.constant 0 : index
    %c0_441 = arith.constant 0 : index
    %638 = vector.load %arg19[%c1_439, %c0_440, %c0_441] : memref<3x8x1xf32, #tpu.memory_space<vmem>>, vector<1x8x1xf32>
    %639 = vector.shape_cast %638 : vector<1x8x1xf32> to vector<8x1xf32>
    %c0_442 = arith.constant 0 : index
    %c10_443 = arith.constant 10 : index
    %640 = vector.load %arg25[%c0_442, %c10_443] : memref<8x306xf32, #tpu.memory_space<vmem>>, vector<8x256xf32>
    %641 = vector.extract_strided_slice %637 {offsets = [0, 0, 0], sizes = [1, 8, 8], strides = [1, 1, 1]} : vector<11x8x8xf32> to vector<1x8x8xf32>
    %642 = vector.shape_cast %641 : vector<1x8x8xf32> to vector<8x8xf32>
    %cst_444 = arith.constant dense<0.000000e+00> : vector<8x256xf32>
    %643 = tpu.matmul %642, %640, %cst_444 {dimension_numbers = #tpu.dot_dimension_numbers<[1], [0], [0], [1], [0, 0, 1, 1], [], []>} : vector<8x8xf32>, vector<8x256xf32>, vector<8x256xf32> -> vector<8x256xf32>
    %c0_445 = arith.constant 0 : index
    %c13 = arith.constant 13 : index
    %644 = vector.load %arg25[%c0_445, %c13] : memref<8x306xf32, #tpu.memory_space<vmem>>, vector<8x256xf32>
    %645 = vector.extract_strided_slice %637 {offsets = [1, 0, 0], sizes = [1, 8, 8], strides = [1, 1, 1]} : vector<11x8x8xf32> to vector<1x8x8xf32>
    %646 = vector.shape_cast %645 : vector<1x8x8xf32> to vector<8x8xf32>
    %cst_446 = arith.constant dense<0.000000e+00> : vector<8x256xf32>
    %647 = tpu.matmul %646, %644, %cst_446 {dimension_numbers = #tpu.dot_dimension_numbers<[1], [0], [0], [1], [0, 0, 1, 1], [], []>} : vector<8x8xf32>, vector<8x256xf32>, vector<8x256xf32> -> vector<8x256xf32>
    %648 = arith.addf %643, %647 : vector<8x256xf32>
    %c0_447 = arith.constant 0 : index
    %c16_448 = arith.constant 16 : index
    %649 = vector.load %arg25[%c0_447, %c16_448] : memref<8x306xf32, #tpu.memory_space<vmem>>, vector<8x256xf32>
    %650 = vector.extract_strided_slice %637 {offsets = [2, 0, 0], sizes = [1, 8, 8], strides = [1, 1, 1]} : vector<11x8x8xf32> to vector<1x8x8xf32>
    %651 = vector.shape_cast %650 : vector<1x8x8xf32> to vector<8x8xf32>
    %cst_449 = arith.constant dense<0.000000e+00> : vector<8x256xf32>
    %652 = tpu.matmul %651, %649, %cst_449 {dimension_numbers = #tpu.dot_dimension_numbers<[1], [0], [0], [1], [0, 0, 1, 1], [], []>} : vector<8x8xf32>, vector<8x256xf32>, vector<8x256xf32> -> vector<8x256xf32>
    %653 = arith.addf %648, %652 : vector<8x256xf32>
    %c0_450 = arith.constant 0 : index
    %c19_451 = arith.constant 19 : index
    %654 = vector.load %arg25[%c0_450, %c19_451] : memref<8x306xf32, #tpu.memory_space<vmem>>, vector<8x256xf32>
    %655 = vector.extract_strided_slice %637 {offsets = [3, 0, 0], sizes = [1, 8, 8], strides = [1, 1, 1]} : vector<11x8x8xf32> to vector<1x8x8xf32>
    %656 = vector.shape_cast %655 : vector<1x8x8xf32> to vector<8x8xf32>
    %cst_452 = arith.constant dense<0.000000e+00> : vector<8x256xf32>
    %657 = tpu.matmul %656, %654, %cst_452 {dimension_numbers = #tpu.dot_dimension_numbers<[1], [0], [0], [1], [0, 0, 1, 1], [], []>} : vector<8x8xf32>, vector<8x256xf32>, vector<8x256xf32> -> vector<8x256xf32>
    %658 = arith.addf %653, %657 : vector<8x256xf32>
    %c0_453 = arith.constant 0 : index
    %c22_454 = arith.constant 22 : index
    %659 = vector.load %arg25[%c0_453, %c22_454] : memref<8x306xf32, #tpu.memory_space<vmem>>, vector<8x256xf32>
    %660 = vector.extract_strided_slice %637 {offsets = [4, 0, 0], sizes = [1, 8, 8], strides = [1, 1, 1]} : vector<11x8x8xf32> to vector<1x8x8xf32>
    %661 = vector.shape_cast %660 : vector<1x8x8xf32> to vector<8x8xf32>
    %cst_455 = arith.constant dense<0.000000e+00> : vector<8x256xf32>
    %662 = tpu.matmul %661, %659, %cst_455 {dimension_numbers = #tpu.dot_dimension_numbers<[1], [0], [0], [1], [0, 0, 1, 1], [], []>} : vector<8x8xf32>, vector<8x256xf32>, vector<8x256xf32> -> vector<8x256xf32>
    %663 = arith.addf %658, %662 : vector<8x256xf32>
    %c0_456 = arith.constant 0 : index
    %c25_457 = arith.constant 25 : index
    %664 = vector.load %arg25[%c0_456, %c25_457] : memref<8x306xf32, #tpu.memory_space<vmem>>, vector<8x256xf32>
    %665 = vector.extract_strided_slice %637 {offsets = [5, 0, 0], sizes = [1, 8, 8], strides = [1, 1, 1]} : vector<11x8x8xf32> to vector<1x8x8xf32>
    %666 = vector.shape_cast %665 : vector<1x8x8xf32> to vector<8x8xf32>
    %cst_458 = arith.constant dense<0.000000e+00> : vector<8x256xf32>
    %667 = tpu.matmul %666, %664, %cst_458 {dimension_numbers = #tpu.dot_dimension_numbers<[1], [0], [0], [1], [0, 0, 1, 1], [], []>} : vector<8x8xf32>, vector<8x256xf32>, vector<8x256xf32> -> vector<8x256xf32>
    %668 = arith.addf %663, %667 : vector<8x256xf32>
    %c0_459 = arith.constant 0 : index
    %c28_460 = arith.constant 28 : index
    %669 = vector.load %arg25[%c0_459, %c28_460] : memref<8x306xf32, #tpu.memory_space<vmem>>, vector<8x256xf32>
    %670 = vector.extract_strided_slice %637 {offsets = [6, 0, 0], sizes = [1, 8, 8], strides = [1, 1, 1]} : vector<11x8x8xf32> to vector<1x8x8xf32>
    %671 = vector.shape_cast %670 : vector<1x8x8xf32> to vector<8x8xf32>
    %cst_461 = arith.constant dense<0.000000e+00> : vector<8x256xf32>
    %672 = tpu.matmul %671, %669, %cst_461 {dimension_numbers = #tpu.dot_dimension_numbers<[1], [0], [0], [1], [0, 0, 1, 1], [], []>} : vector<8x8xf32>, vector<8x256xf32>, vector<8x256xf32> -> vector<8x256xf32>
    %673 = arith.addf %668, %672 : vector<8x256xf32>
    %c0_462 = arith.constant 0 : index
    %c31_463 = arith.constant 31 : index
    %674 = vector.load %arg25[%c0_462, %c31_463] : memref<8x306xf32, #tpu.memory_space<vmem>>, vector<8x256xf32>
    %675 = vector.extract_strided_slice %637 {offsets = [7, 0, 0], sizes = [1, 8, 8], strides = [1, 1, 1]} : vector<11x8x8xf32> to vector<1x8x8xf32>
    %676 = vector.shape_cast %675 : vector<1x8x8xf32> to vector<8x8xf32>
    %cst_464 = arith.constant dense<0.000000e+00> : vector<8x256xf32>
    %677 = tpu.matmul %676, %674, %cst_464 {dimension_numbers = #tpu.dot_dimension_numbers<[1], [0], [0], [1], [0, 0, 1, 1], [], []>} : vector<8x8xf32>, vector<8x256xf32>, vector<8x256xf32> -> vector<8x256xf32>
    %678 = arith.addf %673, %677 : vector<8x256xf32>
    %c0_465 = arith.constant 0 : index
    %c34_466 = arith.constant 34 : index
    %679 = vector.load %arg25[%c0_465, %c34_466] : memref<8x306xf32, #tpu.memory_space<vmem>>, vector<8x256xf32>
    %680 = vector.extract_strided_slice %637 {offsets = [8, 0, 0], sizes = [1, 8, 8], strides = [1, 1, 1]} : vector<11x8x8xf32> to vector<1x8x8xf32>
    %681 = vector.shape_cast %680 : vector<1x8x8xf32> to vector<8x8xf32>
    %cst_467 = arith.constant dense<0.000000e+00> : vector<8x256xf32>
    %682 = tpu.matmul %681, %679, %cst_467 {dimension_numbers = #tpu.dot_dimension_numbers<[1], [0], [0], [1], [0, 0, 1, 1], [], []>} : vector<8x8xf32>, vector<8x256xf32>, vector<8x256xf32> -> vector<8x256xf32>
    %683 = arith.addf %678, %682 : vector<8x256xf32>
    %c0_468 = arith.constant 0 : index
    %c37 = arith.constant 37 : index
    %684 = vector.load %arg25[%c0_468, %c37] : memref<8x306xf32, #tpu.memory_space<vmem>>, vector<8x256xf32>
    %685 = vector.extract_strided_slice %637 {offsets = [9, 0, 0], sizes = [1, 8, 8], strides = [1, 1, 1]} : vector<11x8x8xf32> to vector<1x8x8xf32>
    %686 = vector.shape_cast %685 : vector<1x8x8xf32> to vector<8x8xf32>
    %cst_469 = arith.constant dense<0.000000e+00> : vector<8x256xf32>
    %687 = tpu.matmul %686, %684, %cst_469 {dimension_numbers = #tpu.dot_dimension_numbers<[1], [0], [0], [1], [0, 0, 1, 1], [], []>} : vector<8x8xf32>, vector<8x256xf32>, vector<8x256xf32> -> vector<8x256xf32>
    %688 = arith.addf %683, %687 : vector<8x256xf32>
    %c0_470 = arith.constant 0 : index
    %c40_471 = arith.constant 40 : index
    %689 = vector.load %arg25[%c0_470, %c40_471] : memref<8x306xf32, #tpu.memory_space<vmem>>, vector<8x256xf32>
    %690 = vector.extract_strided_slice %637 {offsets = [10, 0, 0], sizes = [1, 8, 8], strides = [1, 1, 1]} : vector<11x8x8xf32> to vector<1x8x8xf32>
    %691 = vector.shape_cast %690 : vector<1x8x8xf32> to vector<8x8xf32>
    %cst_472 = arith.constant dense<0.000000e+00> : vector<8x256xf32>
    %692 = tpu.matmul %691, %689, %cst_472 {dimension_numbers = #tpu.dot_dimension_numbers<[1], [0], [0], [1], [0, 0, 1, 1], [], []>} : vector<8x8xf32>, vector<8x256xf32>, vector<8x256xf32> -> vector<8x256xf32>
    %693 = arith.addf %688, %692 : vector<8x256xf32>
    %694 = vector.broadcast %639 : vector<8x1xf32> to vector<8x256xf32>
    %695 = arith.addf %693, %694 : vector<8x256xf32>
    %cst_473 = arith.constant 2.000000e-01 : f32
    %696 = vector.broadcast %cst_473 : f32 to vector<8x256xf32>
    %697 = arith.mulf %695, %696 : vector<8x256xf32>
    %698 = arith.maximumf %695, %697 : vector<8x256xf32>
    %c0_474 = arith.constant 0 : index
    %c25_475 = arith.constant 25 : index
    %699 = vector.load %arg25[%c0_474, %c25_475] : memref<8x306xf32, #tpu.memory_space<vmem>>, vector<8x256xf32>
    tpu.vector_store %arg25[%c0_474, %c25_475], %698 {strides = array<i32>} : memref<8x306xf32, #tpu.memory_space<vmem>>, vector<8x256xf32>,
    %c1_476 = arith.constant 1 : index
    %c0_477 = arith.constant 0 : index
    %c0_478 = arith.constant 0 : index
    %c0_479 = arith.constant 0 : index
    %700 = vector.load %arg20[%c1_476, %c0_477, %c0_478, %c0_479] : memref<3x11x8x8xf32, #tpu.memory_space<vmem>>, vector<1x11x8x8xf32>
    %701 = vector.shape_cast %700 : vector<1x11x8x8xf32> to vector<11x8x8xf32>
    %c1_480 = arith.constant 1 : index
    %c0_481 = arith.constant 0 : index
    %c0_482 = arith.constant 0 : index
    %702 = vector.load %arg21[%c1_480, %c0_481, %c0_482] : memref<3x8x1xf32, #tpu.memory_space<vmem>>, vector<1x8x1xf32>
    %703 = vector.shape_cast %702 : vector<1x8x1xf32> to vector<8x1xf32>
    %c0_483 = arith.constant 0 : index
    %c10_484 = arith.constant 10 : index
    %704 = vector.load %arg25[%c0_483, %c10_484] : memref<8x306xf32, #tpu.memory_space<vmem>>, vector<8x256xf32>
    %705 = vector.extract_strided_slice %701 {offsets = [0, 0, 0], sizes = [1, 8, 8], strides = [1, 1, 1]} : vector<11x8x8xf32> to vector<1x8x8xf32>
    %706 = vector.shape_cast %705 : vector<1x8x8xf32> to vector<8x8xf32>
    %cst_485 = arith.constant dense<0.000000e+00> : vector<8x256xf32>
    %707 = tpu.matmul %706, %704, %cst_485 {dimension_numbers = #tpu.dot_dimension_numbers<[1], [0], [0], [1], [0, 0, 1, 1], [], []>} : vector<8x8xf32>, vector<8x256xf32>, vector<8x256xf32> -> vector<8x256xf32>
    %c0_486 = arith.constant 0 : index
    %c13_487 = arith.constant 13 : index
    %708 = vector.load %arg25[%c0_486, %c13_487] : memref<8x306xf32, #tpu.memory_space<vmem>>, vector<8x256xf32>
    %709 = vector.extract_strided_slice %701 {offsets = [1, 0, 0], sizes = [1, 8, 8], strides = [1, 1, 1]} : vector<11x8x8xf32> to vector<1x8x8xf32>
    %710 = vector.shape_cast %709 : vector<1x8x8xf32> to vector<8x8xf32>
    %cst_488 = arith.constant dense<0.000000e+00> : vector<8x256xf32>
    %711 = tpu.matmul %710, %708, %cst_488 {dimension_numbers = #tpu.dot_dimension_numbers<[1], [0], [0], [1], [0, 0, 1, 1], [], []>} : vector<8x8xf32>, vector<8x256xf32>, vector<8x256xf32> -> vector<8x256xf32>
    %712 = arith.addf %707, %711 : vector<8x256xf32>
    %c0_489 = arith.constant 0 : index
    %c16_490 = arith.constant 16 : index
    %713 = vector.load %arg25[%c0_489, %c16_490] : memref<8x306xf32, #tpu.memory_space<vmem>>, vector<8x256xf32>
    %714 = vector.extract_strided_slice %701 {offsets = [2, 0, 0], sizes = [1, 8, 8], strides = [1, 1, 1]} : vector<11x8x8xf32> to vector<1x8x8xf32>
    %715 = vector.shape_cast %714 : vector<1x8x8xf32> to vector<8x8xf32>
    %cst_491 = arith.constant dense<0.000000e+00> : vector<8x256xf32>
    %716 = tpu.matmul %715, %713, %cst_491 {dimension_numbers = #tpu.dot_dimension_numbers<[1], [0], [0], [1], [0, 0, 1, 1], [], []>} : vector<8x8xf32>, vector<8x256xf32>, vector<8x256xf32> -> vector<8x256xf32>
    %717 = arith.addf %712, %716 : vector<8x256xf32>
    %c0_492 = arith.constant 0 : index
    %c19_493 = arith.constant 19 : index
    %718 = vector.load %arg25[%c0_492, %c19_493] : memref<8x306xf32, #tpu.memory_space<vmem>>, vector<8x256xf32>
    %719 = vector.extract_strided_slice %701 {offsets = [3, 0, 0], sizes = [1, 8, 8], strides = [1, 1, 1]} : vector<11x8x8xf32> to vector<1x8x8xf32>
    %720 = vector.shape_cast %719 : vector<1x8x8xf32> to vector<8x8xf32>
    %cst_494 = arith.constant dense<0.000000e+00> : vector<8x256xf32>
    %721 = tpu.matmul %720, %718, %cst_494 {dimension_numbers = #tpu.dot_dimension_numbers<[1], [0], [0], [1], [0, 0, 1, 1], [], []>} : vector<8x8xf32>, vector<8x256xf32>, vector<8x256xf32> -> vector<8x256xf32>
    %722 = arith.addf %717, %721 : vector<8x256xf32>
    %c0_495 = arith.constant 0 : index
    %c22_496 = arith.constant 22 : index
    %723 = vector.load %arg25[%c0_495, %c22_496] : memref<8x306xf32, #tpu.memory_space<vmem>>, vector<8x256xf32>
    %724 = vector.extract_strided_slice %701 {offsets = [4, 0, 0], sizes = [1, 8, 8], strides = [1, 1, 1]} : vector<11x8x8xf32> to vector<1x8x8xf32>
    %725 = vector.shape_cast %724 : vector<1x8x8xf32> to vector<8x8xf32>
    %cst_497 = arith.constant dense<0.000000e+00> : vector<8x256xf32>
    %726 = tpu.matmul %725, %723, %cst_497 {dimension_numbers = #tpu.dot_dimension_numbers<[1], [0], [0], [1], [0, 0, 1, 1], [], []>} : vector<8x8xf32>, vector<8x256xf32>, vector<8x256xf32> -> vector<8x256xf32>
    %727 = arith.addf %722, %726 : vector<8x256xf32>
    %c0_498 = arith.constant 0 : index
    %c25_499 = arith.constant 25 : index
    %728 = vector.load %arg25[%c0_498, %c25_499] : memref<8x306xf32, #tpu.memory_space<vmem>>, vector<8x256xf32>
    %729 = vector.extract_strided_slice %701 {offsets = [5, 0, 0], sizes = [1, 8, 8], strides = [1, 1, 1]} : vector<11x8x8xf32> to vector<1x8x8xf32>
    %730 = vector.shape_cast %729 : vector<1x8x8xf32> to vector<8x8xf32>
    %cst_500 = arith.constant dense<0.000000e+00> : vector<8x256xf32>
    %731 = tpu.matmul %730, %728, %cst_500 {dimension_numbers = #tpu.dot_dimension_numbers<[1], [0], [0], [1], [0, 0, 1, 1], [], []>} : vector<8x8xf32>, vector<8x256xf32>, vector<8x256xf32> -> vector<8x256xf32>
    %732 = arith.addf %727, %731 : vector<8x256xf32>
    %c0_501 = arith.constant 0 : index
    %c28_502 = arith.constant 28 : index
    %733 = vector.load %arg25[%c0_501, %c28_502] : memref<8x306xf32, #tpu.memory_space<vmem>>, vector<8x256xf32>
    %734 = vector.extract_strided_slice %701 {offsets = [6, 0, 0], sizes = [1, 8, 8], strides = [1, 1, 1]} : vector<11x8x8xf32> to vector<1x8x8xf32>
    %735 = vector.shape_cast %734 : vector<1x8x8xf32> to vector<8x8xf32>
    %cst_503 = arith.constant dense<0.000000e+00> : vector<8x256xf32>
    %736 = tpu.matmul %735, %733, %cst_503 {dimension_numbers = #tpu.dot_dimension_numbers<[1], [0], [0], [1], [0, 0, 1, 1], [], []>} : vector<8x8xf32>, vector<8x256xf32>, vector<8x256xf32> -> vector<8x256xf32>
    %737 = arith.addf %732, %736 : vector<8x256xf32>
    %c0_504 = arith.constant 0 : index
    %c31_505 = arith.constant 31 : index
    %738 = vector.load %arg25[%c0_504, %c31_505] : memref<8x306xf32, #tpu.memory_space<vmem>>, vector<8x256xf32>
    %739 = vector.extract_strided_slice %701 {offsets = [7, 0, 0], sizes = [1, 8, 8], strides = [1, 1, 1]} : vector<11x8x8xf32> to vector<1x8x8xf32>
    %740 = vector.shape_cast %739 : vector<1x8x8xf32> to vector<8x8xf32>
    %cst_506 = arith.constant dense<0.000000e+00> : vector<8x256xf32>
    %741 = tpu.matmul %740, %738, %cst_506 {dimension_numbers = #tpu.dot_dimension_numbers<[1], [0], [0], [1], [0, 0, 1, 1], [], []>} : vector<8x8xf32>, vector<8x256xf32>, vector<8x256xf32> -> vector<8x256xf32>
    %742 = arith.addf %737, %741 : vector<8x256xf32>
    %c0_507 = arith.constant 0 : index
    %c34_508 = arith.constant 34 : index
    %743 = vector.load %arg25[%c0_507, %c34_508] : memref<8x306xf32, #tpu.memory_space<vmem>>, vector<8x256xf32>
    %744 = vector.extract_strided_slice %701 {offsets = [8, 0, 0], sizes = [1, 8, 8], strides = [1, 1, 1]} : vector<11x8x8xf32> to vector<1x8x8xf32>
    %745 = vector.shape_cast %744 : vector<1x8x8xf32> to vector<8x8xf32>
    %cst_509 = arith.constant dense<0.000000e+00> : vector<8x256xf32>
    %746 = tpu.matmul %745, %743, %cst_509 {dimension_numbers = #tpu.dot_dimension_numbers<[1], [0], [0], [1], [0, 0, 1, 1], [], []>} : vector<8x8xf32>, vector<8x256xf32>, vector<8x256xf32> -> vector<8x256xf32>
    %747 = arith.addf %742, %746 : vector<8x256xf32>
    %c0_510 = arith.constant 0 : index
    %c37_511 = arith.constant 37 : index
    %748 = vector.load %arg25[%c0_510, %c37_511] : memref<8x306xf32, #tpu.memory_space<vmem>>, vector<8x256xf32>
    %749 = vector.extract_strided_slice %701 {offsets = [9, 0, 0], sizes = [1, 8, 8], strides = [1, 1, 1]} : vector<11x8x8xf32> to vector<1x8x8xf32>
    %750 = vector.shape_cast %749 : vector<1x8x8xf32> to vector<8x8xf32>
    %cst_512 = arith.constant dense<0.000000e+00> : vector<8x256xf32>
    %751 = tpu.matmul %750, %748, %cst_512 {dimension_numbers = #tpu.dot_dimension_numbers<[1], [0], [0], [1], [0, 0, 1, 1], [], []>} : vector<8x8xf32>, vector<8x256xf32>, vector<8x256xf32> -> vector<8x256xf32>
    %752 = arith.addf %747, %751 : vector<8x256xf32>
    %c0_513 = arith.constant 0 : index
    %c40_514 = arith.constant 40 : index
    %753 = vector.load %arg25[%c0_513, %c40_514] : memref<8x306xf32, #tpu.memory_space<vmem>>, vector<8x256xf32>
    %754 = vector.extract_strided_slice %701 {offsets = [10, 0, 0], sizes = [1, 8, 8], strides = [1, 1, 1]} : vector<11x8x8xf32> to vector<1x8x8xf32>
    %755 = vector.shape_cast %754 : vector<1x8x8xf32> to vector<8x8xf32>
    %cst_515 = arith.constant dense<0.000000e+00> : vector<8x256xf32>
    %756 = tpu.matmul %755, %753, %cst_515 {dimension_numbers = #tpu.dot_dimension_numbers<[1], [0], [0], [1], [0, 0, 1, 1], [], []>} : vector<8x8xf32>, vector<8x256xf32>, vector<8x256xf32> -> vector<8x256xf32>
    %757 = arith.addf %752, %756 : vector<8x256xf32>
    %758 = vector.broadcast %703 : vector<8x1xf32> to vector<8x256xf32>
    %759 = arith.addf %757, %758 : vector<8x256xf32>
    %760 = arith.addf %759, %631 : vector<8x256xf32>
    %cst_516 = arith.constant 2.000000e-01 : f32
    %761 = vector.broadcast %cst_516 : f32 to vector<8x256xf32>
    %762 = arith.mulf %760, %761 : vector<8x256xf32>
    %763 = arith.maximumf %760, %762 : vector<8x256xf32>
    %c0_517 = arith.constant 0 : index
    %c25_518 = arith.constant 25 : index
    %764 = vector.load %arg25[%c0_517, %c25_518] : memref<8x306xf32, #tpu.memory_space<vmem>>, vector<8x256xf32>
    tpu.vector_store %arg25[%c0_517, %c25_518], %763 {strides = array<i32>} : memref<8x306xf32, #tpu.memory_space<vmem>>, vector<8x256xf32>,
    %c2_519 = arith.constant 2 : index
    %c0_520 = arith.constant 0 : index
    %c0_521 = arith.constant 0 : index
    %c0_522 = arith.constant 0 : index
    %765 = vector.load %arg18[%c2_519, %c0_520, %c0_521, %c0_522] : memref<3x11x8x8xf32, #tpu.memory_space<vmem>>, vector<1x11x8x8xf32>
    %766 = vector.shape_cast %765 : vector<1x11x8x8xf32> to vector<11x8x8xf32>
    %c2_523 = arith.constant 2 : index
    %c0_524 = arith.constant 0 : index
    %c0_525 = arith.constant 0 : index
    %767 = vector.load %arg19[%c2_523, %c0_524, %c0_525] : memref<3x8x1xf32, #tpu.memory_space<vmem>>, vector<1x8x1xf32>
    %768 = vector.shape_cast %767 : vector<1x8x1xf32> to vector<8x1xf32>
    %c0_526 = arith.constant 0 : index
    %c0_527 = arith.constant 0 : index
    %769 = vector.load %arg25[%c0_526, %c0_527] : memref<8x306xf32, #tpu.memory_space<vmem>>, vector<8x256xf32>
    %770 = vector.extract_strided_slice %766 {offsets = [0, 0, 0], sizes = [1, 8, 8], strides = [1, 1, 1]} : vector<11x8x8xf32> to vector<1x8x8xf32>
    %771 = vector.shape_cast %770 : vector<1x8x8xf32> to vector<8x8xf32>
    %cst_528 = arith.constant dense<0.000000e+00> : vector<8x256xf32>
    %772 = tpu.matmul %771, %769, %cst_528 {dimension_numbers = #tpu.dot_dimension_numbers<[1], [0], [0], [1], [0, 0, 1, 1], [], []>} : vector<8x8xf32>, vector<8x256xf32>, vector<8x256xf32> -> vector<8x256xf32>
    %c0_529 = arith.constant 0 : index
    %c5 = arith.constant 5 : index
    %773 = vector.load %arg25[%c0_529, %c5] : memref<8x306xf32, #tpu.memory_space<vmem>>, vector<8x256xf32>
    %774 = vector.extract_strided_slice %766 {offsets = [1, 0, 0], sizes = [1, 8, 8], strides = [1, 1, 1]} : vector<11x8x8xf32> to vector<1x8x8xf32>
    %775 = vector.shape_cast %774 : vector<1x8x8xf32> to vector<8x8xf32>
    %cst_530 = arith.constant dense<0.000000e+00> : vector<8x256xf32>
    %776 = tpu.matmul %775, %773, %cst_530 {dimension_numbers = #tpu.dot_dimension_numbers<[1], [0], [0], [1], [0, 0, 1, 1], [], []>} : vector<8x8xf32>, vector<8x256xf32>, vector<8x256xf32> -> vector<8x256xf32>
    %777 = arith.addf %772, %776 : vector<8x256xf32>
    %c0_531 = arith.constant 0 : index
    %c10_532 = arith.constant 10 : index
    %778 = vector.load %arg25[%c0_531, %c10_532] : memref<8x306xf32, #tpu.memory_space<vmem>>, vector<8x256xf32>
    %779 = vector.extract_strided_slice %766 {offsets = [2, 0, 0], sizes = [1, 8, 8], strides = [1, 1, 1]} : vector<11x8x8xf32> to vector<1x8x8xf32>
    %780 = vector.shape_cast %779 : vector<1x8x8xf32> to vector<8x8xf32>
    %cst_533 = arith.constant dense<0.000000e+00> : vector<8x256xf32>
    %781 = tpu.matmul %780, %778, %cst_533 {dimension_numbers = #tpu.dot_dimension_numbers<[1], [0], [0], [1], [0, 0, 1, 1], [], []>} : vector<8x8xf32>, vector<8x256xf32>, vector<8x256xf32> -> vector<8x256xf32>
    %782 = arith.addf %777, %781 : vector<8x256xf32>
    %c0_534 = arith.constant 0 : index
    %c15_535 = arith.constant 15 : index
    %783 = vector.load %arg25[%c0_534, %c15_535] : memref<8x306xf32, #tpu.memory_space<vmem>>, vector<8x256xf32>
    %784 = vector.extract_strided_slice %766 {offsets = [3, 0, 0], sizes = [1, 8, 8], strides = [1, 1, 1]} : vector<11x8x8xf32> to vector<1x8x8xf32>
    %785 = vector.shape_cast %784 : vector<1x8x8xf32> to vector<8x8xf32>
    %cst_536 = arith.constant dense<0.000000e+00> : vector<8x256xf32>
    %786 = tpu.matmul %785, %783, %cst_536 {dimension_numbers = #tpu.dot_dimension_numbers<[1], [0], [0], [1], [0, 0, 1, 1], [], []>} : vector<8x8xf32>, vector<8x256xf32>, vector<8x256xf32> -> vector<8x256xf32>
    %787 = arith.addf %782, %786 : vector<8x256xf32>
    %c0_537 = arith.constant 0 : index
    %c20_538 = arith.constant 20 : index
    %788 = vector.load %arg25[%c0_537, %c20_538] : memref<8x306xf32, #tpu.memory_space<vmem>>, vector<8x256xf32>
    %789 = vector.extract_strided_slice %766 {offsets = [4, 0, 0], sizes = [1, 8, 8], strides = [1, 1, 1]} : vector<11x8x8xf32> to vector<1x8x8xf32>
    %790 = vector.shape_cast %789 : vector<1x8x8xf32> to vector<8x8xf32>
    %cst_539 = arith.constant dense<0.000000e+00> : vector<8x256xf32>
    %791 = tpu.matmul %790, %788, %cst_539 {dimension_numbers = #tpu.dot_dimension_numbers<[1], [0], [0], [1], [0, 0, 1, 1], [], []>} : vector<8x8xf32>, vector<8x256xf32>, vector<8x256xf32> -> vector<8x256xf32>
    %792 = arith.addf %787, %791 : vector<8x256xf32>
    %c0_540 = arith.constant 0 : index
    %c25_541 = arith.constant 25 : index
    %793 = vector.load %arg25[%c0_540, %c25_541] : memref<8x306xf32, #tpu.memory_space<vmem>>, vector<8x256xf32>
    %794 = vector.extract_strided_slice %766 {offsets = [5, 0, 0], sizes = [1, 8, 8], strides = [1, 1, 1]} : vector<11x8x8xf32> to vector<1x8x8xf32>
    %795 = vector.shape_cast %794 : vector<1x8x8xf32> to vector<8x8xf32>
    %cst_542 = arith.constant dense<0.000000e+00> : vector<8x256xf32>
    %796 = tpu.matmul %795, %793, %cst_542 {dimension_numbers = #tpu.dot_dimension_numbers<[1], [0], [0], [1], [0, 0, 1, 1], [], []>} : vector<8x8xf32>, vector<8x256xf32>, vector<8x256xf32> -> vector<8x256xf32>
    %797 = arith.addf %792, %796 : vector<8x256xf32>
    %c0_543 = arith.constant 0 : index
    %c30_544 = arith.constant 30 : index
    %798 = vector.load %arg25[%c0_543, %c30_544] : memref<8x306xf32, #tpu.memory_space<vmem>>, vector<8x256xf32>
    %799 = vector.extract_strided_slice %766 {offsets = [6, 0, 0], sizes = [1, 8, 8], strides = [1, 1, 1]} : vector<11x8x8xf32> to vector<1x8x8xf32>
    %800 = vector.shape_cast %799 : vector<1x8x8xf32> to vector<8x8xf32>
    %cst_545 = arith.constant dense<0.000000e+00> : vector<8x256xf32>
    %801 = tpu.matmul %800, %798, %cst_545 {dimension_numbers = #tpu.dot_dimension_numbers<[1], [0], [0], [1], [0, 0, 1, 1], [], []>} : vector<8x8xf32>, vector<8x256xf32>, vector<8x256xf32> -> vector<8x256xf32>
    %802 = arith.addf %797, %801 : vector<8x256xf32>
    %c0_546 = arith.constant 0 : index
    %c35_547 = arith.constant 35 : index
    %803 = vector.load %arg25[%c0_546, %c35_547] : memref<8x306xf32, #tpu.memory_space<vmem>>, vector<8x256xf32>
    %804 = vector.extract_strided_slice %766 {offsets = [7, 0, 0], sizes = [1, 8, 8], strides = [1, 1, 1]} : vector<11x8x8xf32> to vector<1x8x8xf32>
    %805 = vector.shape_cast %804 : vector<1x8x8xf32> to vector<8x8xf32>
    %cst_548 = arith.constant dense<0.000000e+00> : vector<8x256xf32>
    %806 = tpu.matmul %805, %803, %cst_548 {dimension_numbers = #tpu.dot_dimension_numbers<[1], [0], [0], [1], [0, 0, 1, 1], [], []>} : vector<8x8xf32>, vector<8x256xf32>, vector<8x256xf32> -> vector<8x256xf32>
    %807 = arith.addf %802, %806 : vector<8x256xf32>
    %c0_549 = arith.constant 0 : index
    %c40_550 = arith.constant 40 : index
    %808 = vector.load %arg25[%c0_549, %c40_550] : memref<8x306xf32, #tpu.memory_space<vmem>>, vector<8x256xf32>
    %809 = vector.extract_strided_slice %766 {offsets = [8, 0, 0], sizes = [1, 8, 8], strides = [1, 1, 1]} : vector<11x8x8xf32> to vector<1x8x8xf32>
    %810 = vector.shape_cast %809 : vector<1x8x8xf32> to vector<8x8xf32>
    %cst_551 = arith.constant dense<0.000000e+00> : vector<8x256xf32>
    %811 = tpu.matmul %810, %808, %cst_551 {dimension_numbers = #tpu.dot_dimension_numbers<[1], [0], [0], [1], [0, 0, 1, 1], [], []>} : vector<8x8xf32>, vector<8x256xf32>, vector<8x256xf32> -> vector<8x256xf32>
    %812 = arith.addf %807, %811 : vector<8x256xf32>
    %c0_552 = arith.constant 0 : index
    %c45 = arith.constant 45 : index
    %813 = vector.load %arg25[%c0_552, %c45] : memref<8x306xf32, #tpu.memory_space<vmem>>, vector<8x256xf32>
    %814 = vector.extract_strided_slice %766 {offsets = [9, 0, 0], sizes = [1, 8, 8], strides = [1, 1, 1]} : vector<11x8x8xf32> to vector<1x8x8xf32>
    %815 = vector.shape_cast %814 : vector<1x8x8xf32> to vector<8x8xf32>
    %cst_553 = arith.constant dense<0.000000e+00> : vector<8x256xf32>
    %816 = tpu.matmul %815, %813, %cst_553 {dimension_numbers = #tpu.dot_dimension_numbers<[1], [0], [0], [1], [0, 0, 1, 1], [], []>} : vector<8x8xf32>, vector<8x256xf32>, vector<8x256xf32> -> vector<8x256xf32>
    %817 = arith.addf %812, %816 : vector<8x256xf32>
    %c0_554 = arith.constant 0 : index
    %c50 = arith.constant 50 : index
    %818 = vector.load %arg25[%c0_554, %c50] : memref<8x306xf32, #tpu.memory_space<vmem>>, vector<8x256xf32>
    %819 = vector.extract_strided_slice %766 {offsets = [10, 0, 0], sizes = [1, 8, 8], strides = [1, 1, 1]} : vector<11x8x8xf32> to vector<1x8x8xf32>
    %820 = vector.shape_cast %819 : vector<1x8x8xf32> to vector<8x8xf32>
    %cst_555 = arith.constant dense<0.000000e+00> : vector<8x256xf32>
    %821 = tpu.matmul %820, %818, %cst_555 {dimension_numbers = #tpu.dot_dimension_numbers<[1], [0], [0], [1], [0, 0, 1, 1], [], []>} : vector<8x8xf32>, vector<8x256xf32>, vector<8x256xf32> -> vector<8x256xf32>
    %822 = arith.addf %817, %821 : vector<8x256xf32>
    %823 = vector.broadcast %768 : vector<8x1xf32> to vector<8x256xf32>
    %824 = arith.addf %822, %823 : vector<8x256xf32>
    %cst_556 = arith.constant 2.000000e-01 : f32
    %825 = vector.broadcast %cst_556 : f32 to vector<8x256xf32>
    %826 = arith.mulf %824, %825 : vector<8x256xf32>
    %827 = arith.maximumf %824, %826 : vector<8x256xf32>
    %c0_557 = arith.constant 0 : index
    %c25_558 = arith.constant 25 : index
    %828 = vector.load %arg25[%c0_557, %c25_558] : memref<8x306xf32, #tpu.memory_space<vmem>>, vector<8x256xf32>
    tpu.vector_store %arg25[%c0_557, %c25_558], %827 {strides = array<i32>} : memref<8x306xf32, #tpu.memory_space<vmem>>, vector<8x256xf32>,
    %c2_559 = arith.constant 2 : index
    %c0_560 = arith.constant 0 : index
    %c0_561 = arith.constant 0 : index
    %c0_562 = arith.constant 0 : index
    %829 = vector.load %arg20[%c2_559, %c0_560, %c0_561, %c0_562] : memref<3x11x8x8xf32, #tpu.memory_space<vmem>>, vector<1x11x8x8xf32>
    %830 = vector.shape_cast %829 : vector<1x11x8x8xf32> to vector<11x8x8xf32>
    %c2_563 = arith.constant 2 : index
    %c0_564 = arith.constant 0 : index
    %c0_565 = arith.constant 0 : index
    %831 = vector.load %arg21[%c2_563, %c0_564, %c0_565] : memref<3x8x1xf32, #tpu.memory_space<vmem>>, vector<1x8x1xf32>
    %832 = vector.shape_cast %831 : vector<1x8x1xf32> to vector<8x1xf32>
    %c0_566 = arith.constant 0 : index
    %c0_567 = arith.constant 0 : index
    %833 = vector.load %arg25[%c0_566, %c0_567] : memref<8x306xf32, #tpu.memory_space<vmem>>, vector<8x256xf32>
    %834 = vector.extract_strided_slice %830 {offsets = [0, 0, 0], sizes = [1, 8, 8], strides = [1, 1, 1]} : vector<11x8x8xf32> to vector<1x8x8xf32>
    %835 = vector.shape_cast %834 : vector<1x8x8xf32> to vector<8x8xf32>
    %cst_568 = arith.constant dense<0.000000e+00> : vector<8x256xf32>
    %836 = tpu.matmul %835, %833, %cst_568 {dimension_numbers = #tpu.dot_dimension_numbers<[1], [0], [0], [1], [0, 0, 1, 1], [], []>} : vector<8x8xf32>, vector<8x256xf32>, vector<8x256xf32> -> vector<8x256xf32>
    %c0_569 = arith.constant 0 : index
    %c5_570 = arith.constant 5 : index
    %837 = vector.load %arg25[%c0_569, %c5_570] : memref<8x306xf32, #tpu.memory_space<vmem>>, vector<8x256xf32>
    %838 = vector.extract_strided_slice %830 {offsets = [1, 0, 0], sizes = [1, 8, 8], strides = [1, 1, 1]} : vector<11x8x8xf32> to vector<1x8x8xf32>
    %839 = vector.shape_cast %838 : vector<1x8x8xf32> to vector<8x8xf32>
    %cst_571 = arith.constant dense<0.000000e+00> : vector<8x256xf32>
    %840 = tpu.matmul %839, %837, %cst_571 {dimension_numbers = #tpu.dot_dimension_numbers<[1], [0], [0], [1], [0, 0, 1, 1], [], []>} : vector<8x8xf32>, vector<8x256xf32>, vector<8x256xf32> -> vector<8x256xf32>
    %841 = arith.addf %836, %840 : vector<8x256xf32>
    %c0_572 = arith.constant 0 : index
    %c10_573 = arith.constant 10 : index
    %842 = vector.load %arg25[%c0_572, %c10_573] : memref<8x306xf32, #tpu.memory_space<vmem>>, vector<8x256xf32>
    %843 = vector.extract_strided_slice %830 {offsets = [2, 0, 0], sizes = [1, 8, 8], strides = [1, 1, 1]} : vector<11x8x8xf32> to vector<1x8x8xf32>
    %844 = vector.shape_cast %843 : vector<1x8x8xf32> to vector<8x8xf32>
    %cst_574 = arith.constant dense<0.000000e+00> : vector<8x256xf32>
    %845 = tpu.matmul %844, %842, %cst_574 {dimension_numbers = #tpu.dot_dimension_numbers<[1], [0], [0], [1], [0, 0, 1, 1], [], []>} : vector<8x8xf32>, vector<8x256xf32>, vector<8x256xf32> -> vector<8x256xf32>
    %846 = arith.addf %841, %845 : vector<8x256xf32>
    %c0_575 = arith.constant 0 : index
    %c15_576 = arith.constant 15 : index
    %847 = vector.load %arg25[%c0_575, %c15_576] : memref<8x306xf32, #tpu.memory_space<vmem>>, vector<8x256xf32>
    %848 = vector.extract_strided_slice %830 {offsets = [3, 0, 0], sizes = [1, 8, 8], strides = [1, 1, 1]} : vector<11x8x8xf32> to vector<1x8x8xf32>
    %849 = vector.shape_cast %848 : vector<1x8x8xf32> to vector<8x8xf32>
    %cst_577 = arith.constant dense<0.000000e+00> : vector<8x256xf32>
    %850 = tpu.matmul %849, %847, %cst_577 {dimension_numbers = #tpu.dot_dimension_numbers<[1], [0], [0], [1], [0, 0, 1, 1], [], []>} : vector<8x8xf32>, vector<8x256xf32>, vector<8x256xf32> -> vector<8x256xf32>
    %851 = arith.addf %846, %850 : vector<8x256xf32>
    %c0_578 = arith.constant 0 : index
    %c20_579 = arith.constant 20 : index
    %852 = vector.load %arg25[%c0_578, %c20_579] : memref<8x306xf32, #tpu.memory_space<vmem>>, vector<8x256xf32>
    %853 = vector.extract_strided_slice %830 {offsets = [4, 0, 0], sizes = [1, 8, 8], strides = [1, 1, 1]} : vector<11x8x8xf32> to vector<1x8x8xf32>
    %854 = vector.shape_cast %853 : vector<1x8x8xf32> to vector<8x8xf32>
    %cst_580 = arith.constant dense<0.000000e+00> : vector<8x256xf32>
    %855 = tpu.matmul %854, %852, %cst_580 {dimension_numbers = #tpu.dot_dimension_numbers<[1], [0], [0], [1], [0, 0, 1, 1], [], []>} : vector<8x8xf32>, vector<8x256xf32>, vector<8x256xf32> -> vector<8x256xf32>
    %856 = arith.addf %851, %855 : vector<8x256xf32>
    %c0_581 = arith.constant 0 : index
    %c25_582 = arith.constant 25 : index
    %857 = vector.load %arg25[%c0_581, %c25_582] : memref<8x306xf32, #tpu.memory_space<vmem>>, vector<8x256xf32>
    %858 = vector.extract_strided_slice %830 {offsets = [5, 0, 0], sizes = [1, 8, 8], strides = [1, 1, 1]} : vector<11x8x8xf32> to vector<1x8x8xf32>
    %859 = vector.shape_cast %858 : vector<1x8x8xf32> to vector<8x8xf32>
    %cst_583 = arith.constant dense<0.000000e+00> : vector<8x256xf32>
    %860 = tpu.matmul %859, %857, %cst_583 {dimension_numbers = #tpu.dot_dimension_numbers<[1], [0], [0], [1], [0, 0, 1, 1], [], []>} : vector<8x8xf32>, vector<8x256xf32>, vector<8x256xf32> -> vector<8x256xf32>
    %861 = arith.addf %856, %860 : vector<8x256xf32>
    %c0_584 = arith.constant 0 : index
    %c30_585 = arith.constant 30 : index
    %862 = vector.load %arg25[%c0_584, %c30_585] : memref<8x306xf32, #tpu.memory_space<vmem>>, vector<8x256xf32>
    %863 = vector.extract_strided_slice %830 {offsets = [6, 0, 0], sizes = [1, 8, 8], strides = [1, 1, 1]} : vector<11x8x8xf32> to vector<1x8x8xf32>
    %864 = vector.shape_cast %863 : vector<1x8x8xf32> to vector<8x8xf32>
    %cst_586 = arith.constant dense<0.000000e+00> : vector<8x256xf32>
    %865 = tpu.matmul %864, %862, %cst_586 {dimension_numbers = #tpu.dot_dimension_numbers<[1], [0], [0], [1], [0, 0, 1, 1], [], []>} : vector<8x8xf32>, vector<8x256xf32>, vector<8x256xf32> -> vector<8x256xf32>
    %866 = arith.addf %861, %865 : vector<8x256xf32>
    %c0_587 = arith.constant 0 : index
    %c35_588 = arith.constant 35 : index
    %867 = vector.load %arg25[%c0_587, %c35_588] : memref<8x306xf32, #tpu.memory_space<vmem>>, vector<8x256xf32>
    %868 = vector.extract_strided_slice %830 {offsets = [7, 0, 0], sizes = [1, 8, 8], strides = [1, 1, 1]} : vector<11x8x8xf32> to vector<1x8x8xf32>
    %869 = vector.shape_cast %868 : vector<1x8x8xf32> to vector<8x8xf32>
    %cst_589 = arith.constant dense<0.000000e+00> : vector<8x256xf32>
    %870 = tpu.matmul %869, %867, %cst_589 {dimension_numbers = #tpu.dot_dimension_numbers<[1], [0], [0], [1], [0, 0, 1, 1], [], []>} : vector<8x8xf32>, vector<8x256xf32>, vector<8x256xf32> -> vector<8x256xf32>
    %871 = arith.addf %866, %870 : vector<8x256xf32>
    %c0_590 = arith.constant 0 : index
    %c40_591 = arith.constant 40 : index
    %872 = vector.load %arg25[%c0_590, %c40_591] : memref<8x306xf32, #tpu.memory_space<vmem>>, vector<8x256xf32>
    %873 = vector.extract_strided_slice %830 {offsets = [8, 0, 0], sizes = [1, 8, 8], strides = [1, 1, 1]} : vector<11x8x8xf32> to vector<1x8x8xf32>
    %874 = vector.shape_cast %873 : vector<1x8x8xf32> to vector<8x8xf32>
    %cst_592 = arith.constant dense<0.000000e+00> : vector<8x256xf32>
    %875 = tpu.matmul %874, %872, %cst_592 {dimension_numbers = #tpu.dot_dimension_numbers<[1], [0], [0], [1], [0, 0, 1, 1], [], []>} : vector<8x8xf32>, vector<8x256xf32>, vector<8x256xf32> -> vector<8x256xf32>
    %876 = arith.addf %871, %875 : vector<8x256xf32>
    %c0_593 = arith.constant 0 : index
    %c45_594 = arith.constant 45 : index
    %877 = vector.load %arg25[%c0_593, %c45_594] : memref<8x306xf32, #tpu.memory_space<vmem>>, vector<8x256xf32>
    %878 = vector.extract_strided_slice %830 {offsets = [9, 0, 0], sizes = [1, 8, 8], strides = [1, 1, 1]} : vector<11x8x8xf32> to vector<1x8x8xf32>
    %879 = vector.shape_cast %878 : vector<1x8x8xf32> to vector<8x8xf32>
    %cst_595 = arith.constant dense<0.000000e+00> : vector<8x256xf32>
    %880 = tpu.matmul %879, %877, %cst_595 {dimension_numbers = #tpu.dot_dimension_numbers<[1], [0], [0], [1], [0, 0, 1, 1], [], []>} : vector<8x8xf32>, vector<8x256xf32>, vector<8x256xf32> -> vector<8x256xf32>
    %881 = arith.addf %876, %880 : vector<8x256xf32>
    %c0_596 = arith.constant 0 : index
    %c50_597 = arith.constant 50 : index
    %882 = vector.load %arg25[%c0_596, %c50_597] : memref<8x306xf32, #tpu.memory_space<vmem>>, vector<8x256xf32>
    %883 = vector.extract_strided_slice %830 {offsets = [10, 0, 0], sizes = [1, 8, 8], strides = [1, 1, 1]} : vector<11x8x8xf32> to vector<1x8x8xf32>
    %884 = vector.shape_cast %883 : vector<1x8x8xf32> to vector<8x8xf32>
    %cst_598 = arith.constant dense<0.000000e+00> : vector<8x256xf32>
    %885 = tpu.matmul %884, %882, %cst_598 {dimension_numbers = #tpu.dot_dimension_numbers<[1], [0], [0], [1], [0, 0, 1, 1], [], []>} : vector<8x8xf32>, vector<8x256xf32>, vector<8x256xf32> -> vector<8x256xf32>
    %886 = arith.addf %881, %885 : vector<8x256xf32>
    %887 = vector.broadcast %832 : vector<8x1xf32> to vector<8x256xf32>
    %888 = arith.addf %886, %887 : vector<8x256xf32>
    %889 = arith.addf %888, %760 : vector<8x256xf32>
    %c2_599 = arith.constant 2 : index
    %c0_600 = arith.constant 0 : index
    %c0_601 = arith.constant 0 : index
    %c0_602 = arith.constant 0 : index
    %890 = vector.load %arg3[%c2_599, %c0_600, %c0_601, %c0_602] : memref<3x1x8x256xf32, #tpu.memory_space<vmem>>, vector<1x1x8x256xf32>
    %891 = vector.shape_cast %890 : vector<1x1x8x256xf32> to vector<8x256xf32>
    %c0_603 = arith.constant 0 : index
    %c0_604 = arith.constant 0 : index
    %892 = vector.load %arg23[%c0_603, %c0_604] : memref<8x1xf32, #tpu.memory_space<vmem>>, vector<8x1xf32>
    %893 = vector.broadcast %892 : vector<8x1xf32> to vector<8x256xf32>
    %894 = arith.mulf %891, %893 : vector<8x256xf32>
    %895 = arith.addf %889, %894 : vector<8x256xf32>
    %cst_605 = arith.constant 2.000000e-01 : f32
    %896 = vector.broadcast %cst_605 : f32 to vector<8x256xf32>
    %897 = arith.mulf %895, %896 : vector<8x256xf32>
    %898 = arith.maximumf %895, %897 : vector<8x256xf32>
    %899 = arith.addf %493, %898 : vector<8x256xf32>
    %cst_606 = arith.constant 0.333333343 : f32
    %900 = vector.broadcast %cst_606 : f32 to vector<8x256xf32>
    %901 = arith.mulf %899, %900 : vector<8x256xf32>
    %c0_607 = arith.constant 0 : index
    %c0_608 = arith.constant 0 : index
    %c0_609 = arith.constant 0 : index
    %902 = vector.load %arg24[%c0_607, %c0_608, %c0_609] : memref<1x8x256xf32, #tpu.memory_space<vmem>>, vector<1x8x256xf32>
    %903 = vector.shape_cast %902 : vector<1x8x256xf32> to vector<8x256xf32>
    %904 = vector.shape_cast %901 : vector<8x256xf32> to vector<1x8x256xf32>
    tpu.vector_store %arg24[%c0_607, %c0_608, %c0_609], %904 {strides = array<i32>} : memref<1x8x256xf32, #tpu.memory_space<vmem>>, vector<1x8x256xf32>,
    return
  }
  func.func @transform_0(%arg0: i32) -> (i32, i32, i32) {
    %c0_i32 = arith.constant 0 : i32
    %c0_i32_0 = arith.constant 0 : i32
    %c0_i32_1 = arith.constant 0 : i32
    return %arg0, %c0_i32, %c0_i32_0 : i32, i32, i32
  }
  func.func @transform_1(%arg0: i32) -> (i32, i32, i32, i32) {
    %c0_i32 = arith.constant 0 : i32
    %c0_i32_0 = arith.constant 0 : i32
    %c0_i32_1 = arith.constant 0 : i32
    %c0_i32_2 = arith.constant 0 : i32
    return %c0_i32, %arg0, %c0_i32_0, %c0_i32_1 : i32, i32, i32, i32
  }
  func.func @transform_2(%arg0: i32) -> (i32, i32, i32, i32) {
    %c0_i32 = arith.constant 0 : i32
    %c0_i32_0 = arith.constant 0 : i32
    %c0_i32_1 = arith.constant 0 : i32
    %c0_i32_2 = arith.constant 0 : i32
    return %c0_i32, %arg0, %c0_i32_0, %c0_i32_1 : i32, i32, i32, i32
  }
  func.func @transform_3(%arg0: i32) -> (i32, i32, i32) {
    %c0_i32 = arith.constant 0 : i32
    %c0_i32_0 = arith.constant 0 : i32
    %c0_i32_1 = arith.constant 0 : i32
    %c0_i32_2 = arith.constant 0 : i32
    return %c0_i32, %c0_i32_0, %c0_i32_1 : i32, i32, i32
  }
  func.func @transform_4(%arg0: i32) -> (i32, i32) {
    %c0_i32 = arith.constant 0 : i32
    %c0_i32_0 = arith.constant 0 : i32
    %c0_i32_1 = arith.constant 0 : i32
    return %c0_i32, %c0_i32_0 : i32, i32
  }
  func.func @transform_5(%arg0: i32) -> (i32, i32, i32, i32) {
    %c0_i32 = arith.constant 0 : i32
    %c0_i32_0 = arith.constant 0 : i32
    %c0_i32_1 = arith.constant 0 : i32
    %c0_i32_2 = arith.constant 0 : i32
    %c0_i32_3 = arith.constant 0 : i32
    return %c0_i32, %c0_i32_0, %c0_i32_1, %c0_i32_2 : i32, i32, i32, i32
  }
  func.func @transform_6(%arg0: i32) -> (i32, i32, i32) {
    %c0_i32 = arith.constant 0 : i32
    %c0_i32_0 = arith.constant 0 : i32
    %c0_i32_1 = arith.constant 0 : i32
    %c0_i32_2 = arith.constant 0 : i32
    return %c0_i32, %c0_i32_0, %c0_i32_1 : i32, i32, i32
  }
  func.func @transform_7(%arg0: i32) -> (i32, i32, i32, i32) {
    %c0_i32 = arith.constant 0 : i32
    %c0_i32_0 = arith.constant 0 : i32
    %c0_i32_1 = arith.constant 0 : i32
    %c0_i32_2 = arith.constant 0 : i32
    %c0_i32_3 = arith.constant 0 : i32
    return %c0_i32, %c0_i32_0, %c0_i32_1, %c0_i32_2 : i32, i32, i32, i32
  }
  func.func @transform_8(%arg0: i32) -> (i32, i32, i32) {
    %c0_i32 = arith.constant 0 : i32
    %c0_i32_0 = arith.constant 0 : i32
    %c0_i32_1 = arith.constant 0 : i32
    %c0_i32_2 = arith.constant 0 : i32
    return %c0_i32, %c0_i32_0, %c0_i32_1 : i32, i32, i32
  }
  func.func @transform_9(%arg0: i32) -> (i32, i32) {
    %c0_i32 = arith.constant 0 : i32
    %c0_i32_0 = arith.constant 0 : i32
    %c0_i32_1 = arith.constant 0 : i32
    return %c0_i32, %c0_i32_0 : i32, i32
  }
  func.func @transform_10(%arg0: i32) -> (i32, i32) {
    %c0_i32 = arith.constant 0 : i32
    %c0_i32_0 = arith.constant 0 : i32
    %c0_i32_1 = arith.constant 0 : i32
    return %c0_i32, %c0_i32_0 : i32, i32
  }
  func.func @transform_11(%arg0: i32) -> (i32, i32, i32, i32) {
    %c0_i32 = arith.constant 0 : i32
    %c0_i32_0 = arith.constant 0 : i32
    %c0_i32_1 = arith.constant 0 : i32
    %c0_i32_2 = arith.constant 0 : i32
    %c0_i32_3 = arith.constant 0 : i32
    return %c0_i32, %c0_i32_0, %c0_i32_1, %c0_i32_2 : i32, i32, i32, i32
  }
  func.func @transform_12(%arg0: i32) -> (i32, i32, i32) {
    %c0_i32 = arith.constant 0 : i32
    %c0_i32_0 = arith.constant 0 : i32
    %c0_i32_1 = arith.constant 0 : i32
    %c0_i32_2 = arith.constant 0 : i32
    return %c0_i32, %c0_i32_0, %c0_i32_1 : i32, i32, i32
  }
  func.func @transform_13(%arg0: i32) -> (i32, i32, i32, i32) {
    %c0_i32 = arith.constant 0 : i32
    %c0_i32_0 = arith.constant 0 : i32
    %c0_i32_1 = arith.constant 0 : i32
    %c0_i32_2 = arith.constant 0 : i32
    %c0_i32_3 = arith.constant 0 : i32
    return %c0_i32, %c0_i32_0, %c0_i32_1, %c0_i32_2 : i32, i32, i32, i32
  }
  func.func @transform_14(%arg0: i32) -> (i32, i32, i32) {
    %c0_i32 = arith.constant 0 : i32
    %c0_i32_0 = arith.constant 0 : i32
    %c0_i32_1 = arith.constant 0 : i32
    %c0_i32_2 = arith.constant 0 : i32
    return %c0_i32, %c0_i32_0, %c0_i32_1 : i32, i32, i32
  }
  func.func @transform_15(%arg0: i32) -> (i32, i32) {
    %c0_i32 = arith.constant 0 : i32
    %c0_i32_0 = arith.constant 0 : i32
    %c0_i32_1 = arith.constant 0 : i32
    return %c0_i32, %c0_i32_0 : i32, i32
  }
  func.func @transform_16(%arg0: i32) -> (i32, i32) {
    %c0_i32 = arith.constant 0 : i32
    %c0_i32_0 = arith.constant 0 : i32
    %c0_i32_1 = arith.constant 0 : i32
    return %c0_i32, %c0_i32_0 : i32, i32
  }
  func.func @transform_17(%arg0: i32) -> (i32, i32, i32, i32) {
    %c0_i32 = arith.constant 0 : i32
    %c0_i32_0 = arith.constant 0 : i32
    %c0_i32_1 = arith.constant 0 : i32
    %c0_i32_2 = arith.constant 0 : i32
    %c0_i32_3 = arith.constant 0 : i32
    return %c0_i32, %c0_i32_0, %c0_i32_1, %c0_i32_2 : i32, i32, i32, i32
  }
  func.func @transform_18(%arg0: i32) -> (i32, i32, i32) {
    %c0_i32 = arith.constant 0 : i32
    %c0_i32_0 = arith.constant 0 : i32
    %c0_i32_1 = arith.constant 0 : i32
    %c0_i32_2 = arith.constant 0 : i32
    return %c0_i32, %c0_i32_0, %c0_i32_1 : i32, i32, i32
  }
  func.func @transform_19(%arg0: i32) -> (i32, i32, i32, i32) {
    %c0_i32 = arith.constant 0 : i32
    %c0_i32_0 = arith.constant 0 : i32
    %c0_i32_1 = arith.constant 0 : i32
    %c0_i32_2 = arith.constant 0 : i32
    %c0_i32_3 = arith.constant 0 : i32
    return %c0_i32, %c0_i32_0, %c0_i32_1, %c0_i32_2 : i32, i32, i32, i32
  }
  func.func @transform_20(%arg0: i32) -> (i32, i32, i32) {
    %c0_i32 = arith.constant 0 : i32
    %c0_i32_0 = arith.constant 0 : i32
    %c0_i32_1 = arith.constant 0 : i32
    %c0_i32_2 = arith.constant 0 : i32
    return %c0_i32, %c0_i32_0, %c0_i32_1 : i32, i32, i32
  }
  func.func @transform_21(%arg0: i32) -> (i32, i32) {
    %c0_i32 = arith.constant 0 : i32
    %c0_i32_0 = arith.constant 0 : i32
    %c0_i32_1 = arith.constant 0 : i32
    return %c0_i32, %c0_i32_0 : i32, i32
  }
  func.func @transform_22(%arg0: i32) -> (i32, i32) {
    %c0_i32 = arith.constant 0 : i32
    %c0_i32_0 = arith.constant 0 : i32
    %c0_i32_1 = arith.constant 0 : i32
    return %c0_i32, %c0_i32_0 : i32, i32
  }
  func.func @transform_23(%arg0: i32) -> (i32, i32, i32) {
    %c0_i32 = arith.constant 0 : i32
    %c0_i32_0 = arith.constant 0 : i32
    %c0_i32_1 = arith.constant 0 : i32
    return %arg0, %c0_i32, %c0_i32_0 : i32, i32, i32
  }
}

</mosaic_0001>

<bundles_post_ra>
// kernel: parallel_res_block.1
= control target key start
LH: loop header
LB: loop body
LE: loop exit
PB: predicated region body
PF: predicated region fallthrough
CT: control target
= control target key end

     0   :  { %s12064_s0 = inlined_call_operand.vmem [shape: f32[2,4,256], index: 0, kind: input, shape index: {}]   ;;  %s12065_s1 = inlined_call_operand.vmem [shape: f32[3,2,8,256], index: 1, kind: input, shape index: {}]   ;;  %s12066_s2 = inlined_call_operand.vmem [shape: f32[3,2,8,256], index: 2, kind: input, shape index: {}]   ;;  %s12067_s3 = inlined_call_operand.vmem [shape: f32[7,8,4], index: 3, kind: input, shape index: {}]   ;;  %s12068_s4 = inlined_call_operand.vmem [shape: f32[8,1], index: 4, kind: input, shape index: {}]   ;;  %s12069_s5 = inlined_call_operand.vmem [shape: f32[3,3,8,8], index: 5, kind: input, shape index: {}]   ;;  %s12070_s6 = inlined_call_operand.vmem [shape: f32[3,8,1], index: 6, kind: input, shape index: {}]   ;;  %s12071_s7 = inlined_call_operand.vmem [shape: f32[3,3,8,8], index: 7, kind: input, shape index: {}]   ;;  %s12072_s8 = inlined_call_operand.vmem [shape: f32[3,8,1], index: 8, kind: input, shape index: {}]   ;;  %s12073_s9 = inlined_call_operand.vmem [shape: f32[8,1], index: 9, kind: input, shape index: {}]   ;;  %s12074_s10 = inlined_call_operand.vmem [shape: f32[8,1], index: 10, kind: input, shape index: {}]   ;;  %s12075_s11 = inlined_call_operand.vmem [shape: f32[3,7,8,8], index: 11, kind: input, shape index: {}]   ;;  %s12076_s12 = inlined_call_operand.vmem [shape: f32[3,8,1], index: 12, kind: input, shape index: {}]   ;;  %s12077_s13 = inlined_call_operand.vmem [shape: f32[3,7,8,8], index: 13, kind: input, shape index: {}]   ;;  %s12078_s14 = inlined_call_operand.vmem [shape: f32[3,8,1], index: 14, kind: input, shape index: {}]   ;;  %s12079_s15 = inlined_call_operand.vmem [shape: f32[8,1], index: 15, kind: input, shape index: {}]   ;;  %s12080_s16 = inlined_call_operand.vmem [shape: f32[8,1], index: 16, kind: input, shape index: {}]   ;;  %s12081_s17 = inlined_call_operand.vmem [shape: f32[3,11,8,8], index: 17, kind: input, shape index: {}]   ;;  %s12082_s18 = inlined_call_operand.vmem [shape: f32[3,8,1], index: 18, kind: input, shape index: {}]   ;;  %s12083_s19 = inlined_call_operand.vmem [shape: f32[3,11,8,8], index: 19, kind: input, shape index: {}]   ;;  %s12084_s20 = inlined_call_operand.vmem [shape: f32[3,8,1], index: 20, kind: input, shape index: {}]   ;;  %s12085_s21 = inlined_call_operand.vmem [shape: f32[8,1], index: 21, kind: input, shape index: {}]   ;;  %s12086_s22 = inlined_call_operand.vmem [shape: f32[8,1], index: 22, kind: input, shape index: {}]   ;;  %s12087_s23 = inlined_call_operand.hbm [shape: f32[2,8,256], index: 23, kind: output, shape index: {}]  }
   0x1   :  { %12154 = sst [smem:[#allocation18_spill]] %s12064_s0 }
   0x2   :  { %12155 = sst [smem:[#allocation19_spill]] %s12065_s1 }
   0x3   :  { %12156 = sst [smem:[#allocation20_spill]] %s12066_s2 }
   0x4   :  { %12157 = sst [smem:[#allocation21_spill]] %s12067_s3 }
   0x5   :  { %12158 = sst [smem:[#allocation22_spill]] %s12068_s4 }
   0x6   :  { %12159 = sst [smem:[#allocation23_spill]] %s12069_s5 }
   0x7   :  { %12160 = sst [smem:[#allocation24_spill]] %s12070_s6 }
   0x8   :  { %12161 = sst [smem:[#allocation25_spill]] %s12071_s7 }
   0x9   :  { %12162 = sst [smem:[#allocation26_spill]] %s12073_s9 }
   0xa   :  { %12163 = sst [smem:[#allocation27_spill]] %s12075_s11 }
   0xb   :  { %12164 = sst [smem:[#allocation28_spill]] %s12078_s14 }
   0xc   :  { %12165 = sst [smem:[#allocation29_spill]] %s12079_s15 }
   0xd   :  { %12166 = sst [smem:[#allocation30_spill]] %s12087_s23 }
   0xe   :  { %28 = vsyncpa [#allocation6], 0 }
   0xf   :  { %30 = vsyncpa [#allocation6 + $0x1], 0  ;;  %s10372_s4 = smov 0   ;;  %s10374_s30 = smov 0  }
  0x10   :  { %s10376_s24 = smov 0   ;;  %s10378_s25 = smov 0  }
  0x11 LB: > { %12167 = sst [smem:[#allocation8_spill]] %s10211_s4  ;;  %s10393_s5 = sadd.s32 4294967295, %s10223_s25   ;;  %s10223_s25 = sphi %s10378_s25, %s12245_s25   ;;  %s10219_s24 = sphi %s10376_s24, %s12248_s24   ;;  %s10215_s30 = sphi %s10374_s30, %s12247_s30   ;;  %s10211_s4 = sphi %s10372_s4, %s12246_s4  }
  0x12   : > { %12168 = sst [smem:[#allocation9_spill]] %s10215_s30  ;;  %s9060_s1 = sadd.s32 4294967294, %s10223_s25  }
  0x13   : > { %12169 = sst [smem:[#allocation10_spill]] %s10219_s24  ;;  %s10397_s26 = sadd.s32 1, %s10223_s25  }
  0x14   : > { %12170 = sst [smem:[#allocation11_spill]] %s10223_s25  ;;  %s69_s2 = sadd.s32 1, %s10219_s24 }
  0x15   : > { %12171 = sst [smem:[#allocation12_spill]] %s10393_s5  ;;  %s66_s6 = ssub.s32 %s10223_s25, %s10397_s26 }
  0x16   : > { %12172 = sst [smem:[#allocation13_spill]] %s10397_s26  ;;  %p76_p0 = scmp.ne.s32.totalorder %s10219_s24, %s10215_s30 }
  0x17   : > { %p67_p1 = scmp.eq.s32.totalorder %s66_s6, 0  ;;  %p77_p2 = scmp.eq.s32.totalorder %s10223_s25, 0 }
  0x18   : > { %p552_p3 = scmp.eq.s32.totalorder %s10393_s5, 1  ;;  %p557_p4 = scmp.ne.s32.totalorder %s10215_s30, %s10211_s4 }
  0x19   : > { %s10409_s27 = scalar_select %p67_p1, %s10219_s24, %s69_s2  }
  0x1a   : > { %p10411_p5 = por %p77_p2, %p76_p0  ;;  %p10415_p6 = por %p552_p3, %p76_p0 }
  0x1b   : > { %12173 = sst [smem:[#allocation14_spill]] %s10409_s27  ;;  %p558_p7 = scmp.eq.s32.totalorder %s9060_s1, 1 }
  0x1c   : > { %s12175_s28 = scalar_select %p10415_p6, 1, 0 }
  0x1d   : > { %p10419_p8 = por %p558_p7, %p557_p4  ;;  %p9062_p9 = scmp.ge.s32.totalorder %s10223_s25, 2 }
  0x1e   : > { %12176 = sst [smem:[#allocation15_spill]] %s12175_s28 }
  0x1f   : > { %s12177_s29 = scalar_select %p10419_p8, 1, 0 }
  0x20   : > { %634 = sbr.rel (%p9062_p9) target bundleno = 69 (0x45), region = 96 }
  0x21   : > { %12178 = sst [smem:[#allocation16_spill]] %s12177_s29 }
  0x25   : > { %645 = sbr.rel (!%p10411_p5) target bundleno = 53 (0x35), region = 104  ;;  %s647_s3 = sand.u32 (%p10411_p5), 1, %s10219_s24  }
  0x26   : > { %s9460_s0 = sshll.u32 (%p10411_p5), %s10223_s25, 4  ;;  %s9464_s2 = smul.u32 (%p10411_p5), 48, %s647_s3 }
  0x27   : > { %s12179_s1 = sld [smem:[#allocation19_spill]] (%p10411_p5) }
  0x28   : > { %s649_s29 = scalar_lea.vmem (%p10411_p5), [#allocation3], %s9464_s2 }
  0x2d   : > { %s652_s26 = scalar_lea.vmem %s12179_s1, %s9460_s0 }
  0x2e   : > { %v665_v0 = vld [vmem:[%s652_s26] sm:$0xff]  ;;  %v667_v1 = vld [vmem:[%s652_s26 + $0x8] sm:$0xff] }
  0x2f   : > { %v669_v2 = vld [vmem:[%s652_s26 + $0x20] sm:$0xff]  ;;  %666 = vst [vmem:[%s649_s29] sm:$0xff] %v665_v0  ;;  %v671_v3 = vld [vmem:[%s652_s26 + $0x28] sm:$0xff] }
  0x30   : > { %668 = vst [vmem:[%s649_s29 + $0x8] sm:$0xff] %v667_v1  ;;  %v673_v4 = vld [vmem:[%s652_s26 + $0x40] sm:$0xff]  ;;  %v675_v5 = vld [vmem:[%s652_s26 + $0x48] sm:$0xff] }
  0x31   : > { %670 = vst [vmem:[%s649_s29 + $0x10] sm:$0xff] %v669_v2 }
  0x32   : > { %672 = vst [vmem:[%s649_s29 + $0x18] sm:$0xff] %v671_v3 }
  0x33   : > { %674 = vst [vmem:[%s649_s29 + $0x20] sm:$0xff] %v673_v4 }
  0x34   : > { %676 = vst [vmem:[%s649_s29 + $0x28] sm:$0xff] %v675_v5 }
  0x35 PF: > { %682 = sbr.rel (!%p10411_p5) target bundleno = 69 (0x45), region = 127  ;;  %s684_s27 = sand.u32 (%p10411_p5), 1, %s10219_s24  }
  0x36   : > { %s9461_s3 = sshll.u32 (%p10411_p5), %s10223_s25, 4  ;;  %s9465_s0 = smul.u32 (%p10411_p5), 48, %s684_s27 }
  0x37   : > { %s12180_s1 = sld [smem:[#allocation20_spill]] (%p10411_p5) }
  0x38   : > { %s686_s26 = scalar_lea.vmem (%p10411_p5), [#allocation4], %s9465_s0 }
  0x3d   : > { %s689_s4 = scalar_lea.vmem %s12180_s1, %s9461_s3 }
  0x3e   : > { %v702_v6 = vld [vmem:[%s689_s4] sm:$0xff]  ;;  %v704_v7 = vld [vmem:[%s689_s4 + $0x8] sm:$0xff] }
  0x3f   : > { %v706_v8 = vld [vmem:[%s689_s4 + $0x20] sm:$0xff]  ;;  %703 = vst [vmem:[%s686_s26] sm:$0xff] %v702_v6  ;;  %v708_v9 = vld [vmem:[%s689_s4 + $0x28] sm:$0xff] }
  0x40   : > { %705 = vst [vmem:[%s686_s26 + $0x8] sm:$0xff] %v704_v7  ;;  %v710_v10 = vld [vmem:[%s689_s4 + $0x40] sm:$0xff]  ;;  %v712_v11 = vld [vmem:[%s689_s4 + $0x48] sm:$0xff] }
  0x41   : > { %707 = vst [vmem:[%s686_s26 + $0x10] sm:$0xff] %v706_v8 }
  0x42   : > { %709 = vst [vmem:[%s686_s26 + $0x18] sm:$0xff] %v708_v9 }
  0x43   : > { %711 = vst [vmem:[%s686_s26 + $0x20] sm:$0xff] %v710_v10 }
  0x44   : > { %713 = vst [vmem:[%s686_s26 + $0x28] sm:$0xff] %v712_v11 }
  0x45 PF: > { %p9067_p10 = scmp.ge.s32.totalorder %s10223_s25, 1  ;;  %p718_p11 = scmp.lt.s32.totalorder %s10223_s25, 3 }
  0x47   : > { %p719_p12 = pnand %p9067_p10, %p718_p11 }
  0x49   : > { %722 = sbr.rel (%p719_p12) target bundleno = 7138 (0x1be2), region = 150 }
  0x4e   : > { %p804_p13 = scmp.lt.s32.totalorder %s10393_s5, 1  ;;  %v10225_v12 = vmov 0.0   ;;  %s12181_s3 = sld [smem:[#allocation18_spill]]  ;;  %vm811_vm0 = vcmask 408576   ;;  %vm827_vm1 = vcmask 1043656   ;;  %vm822_vm2 = vcmask 203776  }
  0x4f   : > { %809 = vst [vmem:[#allocation2] sm:$0xff] %v10225_v12  ;;  %s12109_s6 = smov 25   ;;  %vm830_vm3 = vcmask 199680   ;;  %s12096_s2 = smov 105   ;;  %vm910_vm4 = vcmask 867328   ;;  %vm859_vm5 = vcmask 1043456  }
  0x50   : > { %s805_s7 = scalar_select %p804_p13, %s10393_s5, 1  ;;  %810 = vst [vmem:[#allocation2 + $0x8] sm:$0xff] %v10225_v12  ;;  %vm855_vm6 = vcmask 31744   ;;  %vm1024_vm7 = vcmask 842752   ;;  %v10234_v42 = vmov 0   ;;  %vm852_vm8 = vcmask 859136  }
  0x51   : > { %812 = vst.msk [vmem:[#allocation2 + $0x10] sm:$0xff] %vm811_vm0, %v10225_v12  ;;  %s12100_s1 = smov 106   ;;  %s12106_s26 = smov 104   ;;  %9534 = vset.pattern.permute.xlu0 %v10234_v42  ;;  %9533 = vset.pattern.permute.xlu2 %v10234_v42  ;;  %vm1082_vm9 = vcmask 834560   ;;  %vm966_vm10 = vcmask 850944   ;;  %vm1140_vm11 = vcmask 826368  }
  0x52   : > { %s9462_s29 = sshll.u32 %s805_s7, 3  ;;  %s12111_s7 = smov 103   ;;  %9550 = vset.pattern.permute.xlu1 %v10234_v42  ;;  %vm1198_vm12 = vcmask 818176   ;;  %vm1287_vm13 = vcmask 1047752   ;;  %vm1311_vm14 = vcmask 64512   ;;  %vm2151_vm15 = vcmask 883712  }
  0x53   : > { %s12098_s4 = smov 101   ;;  %s12102_s27 = smov 100   ;;  %vm2205_vm0 = vcmask 801792  }
  0x54   : > { %s808_s0 = scalar_lea.vmem %s12181_s3, %s9462_s29  ;;  %s12104_s29 = smov 102  }
  0x55   : > { %v813_v13 = vld [vmem:[%s808_s0] sm:$0xff]  ;;  %s12183_s9 = sld [smem:[#allocation26_spill]]  ;;  %s12186_s0 = smov 104  }
  0x56   : > { %815 = vst [vmem:[#allocation1] ss:$2 sm:$0xff] %v813_v13  ;;  %s12194_s24 = smov 100   ;;  %s12196_s15 = sld [smem:[#allocation29_spill]] }
  0x57   : > { %s12197_s25 = smov 108   ;;  %s12199_s23 = smov 105  }
  0x58   : > { %s12200_s5 = smov 101   ;;  %s12201_s11 = sld [smem:[#allocation27_spill]] }
  0x59   : > { %s12202_s14 = sld [smem:[#allocation28_spill]] }
  0x5b   : > { %v1259_v39 = vld [vmem:[%s12183_s9] sm:$0xff]  ;;  %s12198_s9 = smov 98  }
  0x5d   : > { %v816_v14 = vld.sshfl [vmem:[#allocation1] sm:$0xff pattern:$0x75316420]  ;;  %v817_v15 = vld.sshfl [vmem:[#allocation1 + $0x8] sm:$0xff pattern:$0x75316420] }
  0x5e   : > { %818 = vrot.lane.b32.xlu0 %v816_v14, %s12109_s6 }
  0x66   : > { %820 = vrot.lane.b32.xlu0 %v817_v15, %s12109_s6 }
  0xd0   : > { %v819_v16 = vpop.permute.xlu0 %818 }
  0xd1   : > { %828 = vst.msk [vmem:[#allocation2] sm:$0xf] %vm827_vm1, %v819_v16  ;;  %vm12144_vm1 = vcmask 891904  }
  0xd8   : > { %v821_v17 = vpop.permute.xlu0 %820  ;;  %v840_v18 = vld [vmem:[#allocation2] sm:$0xf] }
  0xd9   : > { %v823_v19 = vsel %vm822_vm2, %v819_v16, %v821_v17  ;;  %831 = vst.msk [vmem:[#allocation2 + $0x10] sm:$0xf] %vm830_vm3, %v821_v17  ;;  %846 = vrot.lane.b32.xlu1 %v840_v18, %s12096_s2  ;;  %vm12147_vm3 = vcmask 916480  }
  0xda   : > { %829 = vst [vmem:[#allocation2 + $0x8] sm:$0xf] %v823_v19 }
  0xe0   : > { %v842_v20 = vld [vmem:[#allocation2 + $0x10] sm:$0xf] }
  0xe1   : > { %908 = vrot.lane.b32.xlu1 %v842_v20, %s12100_s1  ;;  %850 = vrot.lane.b32.xlu2 %v842_v20, %s12096_s2  ;;  %v841_v21 = vld [vmem:[#allocation2 + $0x8] sm:$0xf] }
  0xe2   : > { %906 = vrot.lane.b32.xlu0 %v841_v21, %s12100_s1 }
  0xe9   : > { %964 = vrot.lane.b32.xlu1 %v842_v20, %s12106_s26  ;;  %904 = vrot.lane.b32.xlu2 %v840_v18, %s12100_s1  ;;  %s12187_s1 = smov 102  }
  0xea   : > { %962 = vrot.lane.b32.xlu0 %v841_v21, %s12106_s26 }
  0xf1   : > { %1022 = vrot.lane.b32.xlu1 %v842_v20, %s12111_s7  ;;  %960 = vrot.lane.b32.xlu2 %v840_v18, %s12106_s26  ;;  %s12184_s26 = sld [smem:[#allocation22_spill]] }
  0xf2   : > { %1020 = vrot.lane.b32.xlu0 %v841_v21, %s12111_s7 }
  0xf7   : > { %v839_v40 = vld [vmem:[%s12184_s26] sm:$0xff]  ;;  %s12121_s26 = smov 98  }
  0xf9   : > { %1018 = vrot.lane.b32.xlu2 %v840_v18, %s12111_s7  ;;  %848 = vrot.lane.b32.xlu1 %v841_v21, %s12096_s2  ;;  %s12182_s2 = sld [smem:[#allocation21_spill]] }
  0xfa   : > { %1078 = vrot.lane.b32.xlu0 %v841_v21, %s12104_s29 }
  0xff   : > { %v832_v28 = vld [vmem:[%s12182_s2] sm:$0xff]  ;;  %v835_v36 = vld [vmem:[%s12182_s2 + $0x18] sm:$0xff]  ;;  %v833_v44 = vld [vmem:[%s12182_s2 + $0x8] sm:$0xff] }
 0x100   : > { %v834_v53 = vld [vmem:[%s12182_s2 + $0x10] sm:$0xff]  ;;  %v837_v57 = vld [vmem:[%s12182_s2 + $0x28] sm:$0xff]  ;;  %v836_v59 = vld [vmem:[%s12182_s2 + $0x20] sm:$0xff] }
 0x101   : > { %1076 = vrot.lane.b32.xlu2 %v840_v18, %s12104_s29  ;;  %1080 = vrot.lane.b32.xlu1 %v842_v20, %s12104_s29  ;;  %v838_v1 = vld [vmem:[%s12182_s2 + $0x30] sm:$0xff]  ;;  %s10541_s29 = sand.u32 1, %s10215_s30   ;;  %s12189_s2 = sld [smem:[#allocation24_spill]] }
 0x102   : > { %1136 = vrot.lane.b32.xlu0 %v841_v21, %s12098_s4  ;;  %12185 = sst [smem:[#allocation17_spill]] %s10541_s29 }
 0x103   : > { %s12192_s30 = sld [smem:[#allocation25_spill]] }
 0x109   : > { %1134 = vrot.lane.b32.xlu2 %v840_v18, %s12098_s4  ;;  %1138 = vrot.lane.b32.xlu1 %v842_v20, %s12098_s4  ;;  %s12193_s28 = smov %s12192_s30  ;;  %s12195_s4 = smov 106  }
 0x10a   : > { %1194 = vrot.lane.b32.xlu0 %v841_v21, %s12102_s27 }
 0x111   : > { %1192 = vrot.lane.b32.xlu2 %v840_v18, %s12102_s27  ;;  %1196 = vrot.lane.b32.xlu1 %v842_v20, %s12102_s27  ;;  %s12108_s27 = smul.u32 48, %s10541_s29  ;;  %s12150_s29 = smov 107  }
 0x112   : > { %1262 = vperm.xlu0 %9534, %v1259_v39  }
 0x113   : > { %s10546_s3 = scalar_lea.vmem [#allocation3], %s12108_s27  ;;  %s12188_s27 = sld [smem:[#allocation23_spill]] }
 0x119   : > { %1252 = vperm.xlu2 %9533, %v839_v40  }
 0x13b   : > { %v851_v22 = vpop.permute.xlu2 %850 }
 0x143   : > { %v905_v23 = vpop.permute.xlu2 %904 }
 0x14b   : > { %v847_v24 = vpop.permute.xlu1 %846  ;;  %v961_v26 = vpop.permute.xlu2 %960 }
 0x153   : > { %v909_v25 = vpop.permute.xlu1 %908  ;;  %v1019_v33 = vpop.permute.xlu2 %1018 }
 0x154   : > { %v907_v27 = vpop.permute.xlu0 %906 }
 0x155   : > { %v911_v29 = vsel %vm910_vm4, %v905_v23, %v907_v27  ;;  %v912_v30 = vsel %vm910_vm4, %v907_v27, %v909_v25  ;;  %v1257_v23 = vld [vmem:[%s10546_s3] sm:$0xff]  ;;  %v1258_v27 = vld [vmem:[%s10546_s3 + $0x8] sm:$0xff] }
 0x156   : > { %9075 = vmatpush.msk.msra.mxu2 %vm859_vm5, %v911_v29  ;;  %9077 = vmatpush.msk.msra.mxu3 %vm859_vm5, %v912_v30 }
 0x157   : > { %9076 = vmatmul.msk.f32.vlgmr.msra.gmra.mxu2 %vm855_vm6, %v832_v28  ;;  %9078 = vmatmul.msk.f32.vlgmr.msra.gmra.mxu3 %vm855_vm6, %v832_v28 }
 0x15b   : > { %v965_v31 = vpop.permute.xlu1 %964  ;;  %v1077_v41 = vpop.permute.xlu2 %1076 }
 0x15c   : > { %v963_v32 = vpop.permute.xlu0 %962 }
 0x15d   : > { %v967_v49 = vsel %vm966_vm10, %v961_v26, %v963_v32  ;;  %v968_v50 = vsel %vm966_vm10, %v963_v32, %v965_v31 }
 0x163   : > { %v1023_v34 = vpop.permute.xlu1 %1022  ;;  %v1135_v51 = vpop.permute.xlu2 %1134 }
 0x164   : > { %v1021_v35 = vpop.permute.xlu0 %1020 }
 0x165   : > { %v1025_v37 = vsel %vm1024_vm7, %v1019_v33, %v1021_v35  ;;  %v1026_v38 = vsel %vm1024_vm7, %v1021_v35, %v1023_v34 }
 0x166   : > { %9083 = vmatpush.msk.msrb.mxu2 %vm859_vm5, %v1025_v37  ;;  %9085 = vmatpush.msk.msrb.mxu3 %vm859_vm5, %v1026_v38 }
 0x167   : > { %9084 = vmatmul.msk.f32.vlgmr.msrb.gmra.mxu2 %vm855_vm6, %v835_v36  ;;  %9086 = vmatmul.msk.f32.vlgmr.msrb.gmra.mxu3 %vm855_vm6, %v835_v36 }
 0x16b   : > { %v849_v43 = vpop.permute.xlu1 %848  ;;  %v1193_v60 = vpop.permute.xlu2 %1192 }
 0x16c   : > { %v1079_v45 = vpop.permute.xlu0 %1078  ;;  %v853_v46 = vsel %vm852_vm8, %v847_v24, %v849_v43  ;;  %v854_v47 = vsel %vm852_vm8, %v849_v43, %v851_v22 }
 0x16d   : > { %v1083_v48 = vsel %vm1082_vm9, %v1077_v41, %v1079_v45  ;;  %9071 = vmatpush.msk.msra.mxu0 %vm859_vm5, %v853_v46  ;;  %9073 = vmatpush.msk.msra.mxu1 %vm859_vm5, %v854_v47 }
 0x16e   : > { %9072 = vmatmul.msk.f32.vlgmr.msra.gmra.mxu0 %vm855_vm6, %v833_v44  ;;  %9074 = vmatmul.msk.f32.vlgmr.msra.gmra.mxu1 %vm855_vm6, %v833_v44 }
 0x16f   : > { %9079 = vmatpush.msk.msrb.mxu0 %vm859_vm5, %v967_v49  ;;  %9081 = vmatpush.msk.msrb.mxu1 %vm859_vm5, %v968_v50 }
 0x171   : > { %9087 = vmatpush.msk.msra.mxu0 %vm859_vm5, %v1083_v48 }
 0x173   : > { %v1081_v52 = vpop.permute.xlu1 %1080  ;;  %v1253_v26 = vpop.permute.xlu2 %1252 }
 0x174   : > { %v1084_v54 = vsel %vm1082_vm9, %v1079_v45, %v1081_v52  ;;  %v1137_v55 = vpop.permute.xlu0 %1136 }
 0x175   : > { %v1141_v56 = vsel %vm1140_vm11, %v1135_v51, %v1137_v55  ;;  %9089 = vmatpush.msk.msra.mxu1 %vm859_vm5, %v1084_v54 }
 0x176   : > { %9080 = vmatmul.msk.f32.vlgmr.msrb.gmra.mxu0 %vm855_vm6, %v834_v53  ;;  %9082 = vmatmul.msk.f32.vlgmr.msrb.gmra.mxu1 %vm855_vm6, %v834_v53 }
 0x177   : > { %9091 = vmatpush.msk.msra.mxu2 %vm859_vm5, %v1141_v56 }
 0x178   : > { %9092 = vmatmul.msk.f32.vlgmr.msra.gmra.mxu2 %vm855_vm6, %v837_v57 }
 0x17b   : > { %v1139_v58 = vpop.permute.xlu1 %1138 }
 0x17c   : > { %v1142_v61 = vsel %vm1140_vm11, %v1137_v55, %v1139_v58  ;;  %v1195_v62 = vpop.permute.xlu0 %1194  ;;  %v1291_v58 = vld [vmem:[%s12188_s27] sm:$0xff] }
 0x17d   : > { %v1199_v63 = vsel %vm1198_vm12, %v1193_v60, %v1195_v62  ;;  %9093 = vmatpush.msk.msra.mxu3 %vm859_vm5, %v1142_v61 }
 0x17e   : > { %9088 = vmatmul.msk.f32.vlgmr.msra.gmra.mxu0 %vm855_vm6, %v836_v59  ;;  %9090 = vmatmul.msk.f32.vlgmr.msra.gmra.mxu1 %vm855_vm6, %v836_v59  ;;  %v1294_v59 = vld [vmem:[%s12189_s2] sm:$0xff] }
 0x17f   : > { %9094 = vmatmul.msk.f32.vlgmr.msra.gmra.mxu3 %vm855_vm6, %v837_v57  ;;  %9095 = vmatpush.msk.msrb.mxu0 %vm859_vm5, %v1199_v63 }
 0x183   : > { %v1197_v0 = vpop.permute.xlu1 %1196 }
 0x184   : > { %v1200_v2 = vsel %vm1198_vm12, %v1195_v62, %v1197_v0  ;;  %v1263_v22 = vpop.permute.xlu0 %1262 }
 0x185   : > { %9097 = vmatpush.msk.msrb.mxu1 %vm859_vm5, %v1200_v2  ;;  %v1265_v32 = vmul.f32 %v1263_v22, %v1257_v23  ;;  %v1266_v34 = vmul.f32 %v1263_v22, %v1258_v27  ;;  %v1292_v2 = vld [vmem:[%s12188_s27 + $0x8] sm:$0xff]  ;;  %vm12142_vm5 = vcmask 793600  }
 0x186   : > { %9096 = vmatmul.msk.f32.vlgmr.msrb.gmra.mxu0 %vm855_vm6, %v838_v1  ;;  %9098 = vmatmul.msk.f32.vlgmr.msrb.gmra.mxu1 %vm855_vm6, %v838_v1  ;;  %vm12143_vm6 = vcmask 769024  }
 0x1da   : > { %v937_v5 = vpop.f32.mrf.mxu2  ;;  %v957_v6 = vpop.f32.mrf.mxu3 }
 0x1ea   : > { %v1051_v10 = vpop.f32.mrf.mxu2  ;;  %v1071_v14 = vpop.f32.mrf.mxu3 }
 0x1eb   : > { %v881_v3 = vpop.f32.mrf.mxu0  ;;  %v901_v4 = vpop.f32.mrf.mxu1 }
 0x1ec   : > { %v958_v7 = vadd.f32 %v957_v6, %v901_v4  ;;  %v938_v11 = vadd.f32 %v937_v5, %v881_v3 }
 0x1f3   : > { %v993_v8 = vpop.f32.mrf.mxu0  ;;  %v1013_v9 = vpop.f32.mrf.mxu1 }
 0x1f4   : > { %v1017_v12 = vadd.f32 %v1013_v9, %v958_v7  ;;  %v1016_v13 = vadd.f32 %v993_v8, %v938_v11 }
 0x1f6   : > { %v1075_v15 = vadd.f32 %v1071_v14, %v1017_v12  ;;  %v1074_v18 = vadd.f32 %v1051_v10, %v1016_v13  ;;  %v1293_v10 = vld [vmem:[%s12188_s27 + $0x10] sm:$0xff] }
 0x1fb   : > { %v1109_v16 = vpop.f32.mrf.mxu0  ;;  %v1129_v17 = vpop.f32.mrf.mxu1 }
 0x1fc   : > { %v1132_v19 = vadd.f32 %v1109_v16, %v1074_v18  ;;  %v1133_v20 = vadd.f32 %v1129_v17, %v1075_v15  ;;  %v1167_v21 = vpop.f32.mrf.mxu2 }
 0x1fe   : > { %v1190_v24 = vadd.f32 %v1167_v21, %v1132_v19 }
 0x202   : > { %v1187_v25 = vpop.f32.mrf.mxu3 }
 0x203   : > { %v1191_v28 = vadd.f32 %v1187_v25, %v1133_v20  ;;  %v1225_v29 = vpop.f32.mrf.mxu0  ;;  %v1245_v30 = vpop.f32.mrf.mxu1 }
 0x204   : > { %v1248_v31 = vadd.f32 %v1225_v29, %v1190_v24 }
 0x205   : > { %v1249_v33 = vadd.f32 %v1245_v30, %v1191_v28 }
 0x206   : > { %v10550_v35 = vadd.f32 %v1253_v26, %v1248_v31 }
 0x207   : > { %v10552_v36 = vadd.f32 %v1253_v26, %v1249_v33 }
 0x208   : > { %v1267_v37 = vadd.f32 %v1265_v32, %v10550_v35 }
 0x209   : > { %v1268_v38 = vadd.f32 %v1266_v34, %v10552_v36  ;;  %v1490_v34 = vld [vmem:[%s12072_s8] sm:$0xff] }
 0x20a   : > { %v1269_v39 = vmul.f32 0.2, %v1267_v37 }
 0x20b   : > { %v1270_v40 = vmul.f32 0.2, %v1268_v38 }
 0x20c   : > { %v10556_v41 = vmax.f32 %v1267_v37, %v1269_v39 }
 0x20d   : > { %v10558_v42 = vmax.f32 %v1268_v38, %v1270_v40 }
 0x20e   : > { %v1273_v43 = vmul.f32 0.2, %v10556_v41 }
 0x20f   : > { %v1274_v44 = vmul.f32 0.2, %v10558_v42 }
 0x210   : > { %v1275_v45 = vmax.f32 %v10556_v41, %v1273_v43 }
 0x211   : > { %v1276_v46 = vmax.f32 %v10558_v42, %v1274_v44 }
 0x212   : > { %1279 = vrot.lane.b32.xlu1 %v1275_v45, %s12109_s6 }
 0x213   : > { %1281 = vrot.lane.b32.xlu2 %v1276_v46, %s12109_s6  ;;  %s12190_s6 = smov 25  }
 0x26d   : > { %v1282_v47 = vpop.permute.xlu2 %1281 }
 0x26e   : > { %1290 = vst.msk [vmem:[#allocation2 + $0x10] sm:$0xff] %vm822_vm2, %v1282_v47 }
 0x275   : > { %v1297_v48 = vld [vmem:[#allocation2 + $0x10] sm:$0xff] }
 0x276   : > { %1305 = vrot.lane.b32.xlu2 %v1297_v48, %s12111_s7 }
 0x284   : > { %v1280_v49 = vpop.permute.xlu1 %1279 }
 0x285   : > { %1288 = vst.msk [vmem:[#allocation2] sm:$0xff] %vm1287_vm13, %v1280_v49  ;;  %v1283_v50 = vsel %vm822_vm2, %v1280_v49, %v1282_v47  ;;  %v1488_v49 = vld [vmem:[%s12192_s30 + $0x8] sm:$0xff]  ;;  %s12123_s30 = smov 108  }
 0x28c   : > { %v1295_v51 = vld [vmem:[#allocation2] sm:$0xff] }
 0x28d   : > { %v9545_v52 = vpack.i.bf16 %v1283_v50, %v1295_v51 }
 0x28f   : > { %9546 = vrot.lane.b32.xlu2 %v9545_v52, %s12186_s0  ;;  %9541 = vrot.lane.b32.xlu0 %v9545_v52, %s12187_s1 }
 0x290   : > { %9536 = vrot.lane.b32.xlu1 %v9545_v52, %s12111_s7  ;;  %s12191_s7 = smov 103  }
 0x297   : > { %1359 = vrot.lane.b32.xlu0 %v1297_v48, %s12186_s0 }
 0x298   : > { %1412 = vrot.lane.b32.xlu1 %v1297_v48, %s12187_s1 }
 0x2a0   : > { %1465 = vperm.xlu1 %9550, %v1294_v59   ;;  %v1489_v59 = vld [vmem:[%s12193_s28 + $0x10] sm:$0xff] }
 0x2d0   : > { %v1306_v53 = vpop.permute.xlu2 %1305 }
 0x2e9   : > { %v9547_v54 = vpop.permute.xlu2 %9546 }
 0x2ea   : > { %v9549_v55 = vunpack.i.h.bf16 %v9547_v54  ;;  %v9548_v56 = vunpack.i.l.bf16 %v9547_v54 }
 0x2ec   : > { %v1361_v57 = vsel %vm966_vm10, %v9548_v56, %v9549_v55 }
 0x2ed   : > { %1383 = vmatpush.msra.mxu0 %v1361_v57 }
 0x2ee   : > { %9101 = vmatmul.msk.f32.vlgmr.msra.gmra.mxu0 %vm1311_vm14, %v1291_v58 }
 0x301   : > { %v9542_v60 = vpop.permute.xlu0 %9541 }
 0x302   : > { %v9544_v61 = vunpack.i.h.bf16 %v9542_v60  ;;  %v9543_v62 = vunpack.i.l.bf16 %v9542_v60  ;;  %v9537_v63 = vpop.permute.xlu1 %9536 }
 0x303   : > { %v9539_v0 = vunpack.i.h.bf16 %v9537_v63  ;;  %v9538_v1 = vunpack.i.l.bf16 %v9537_v63 }
 0x304   : > { %v1414_v5 = vsel %vm1082_vm9, %v9543_v62, %v9544_v61 }
 0x305   : > { %v1307_v3 = vsel %vm1024_vm7, %v9538_v1, %v9539_v0  ;;  %v1308_v4 = vsel %vm1024_vm7, %v9539_v0, %v1306_v53  ;;  %v1487_v53 = vld [vmem:[%s12193_s28] sm:$0xff] }
 0x306   : > { %1330 = vmatpush.msrb.mxu2 %v1307_v3  ;;  %1350 = vmatpush.msrb.mxu3 %v1308_v4 }
 0x307   : > { %9099 = vmatmul.msk.f32.vlgmr.msrb.gmra.mxu2 %vm1311_vm14, %v1292_v2  ;;  %9100 = vmatmul.msk.f32.vlgmr.msrb.gmra.mxu3 %vm1311_vm14, %v1292_v2 }
 0x308   : > { %1436 = vmatpush.msra.mxu2 %v1414_v5 }
 0x309   : > { %v1360_v6 = vpop.permute.xlu0 %1359 }
 0x30a   : > { %v1362_v7 = vsel %vm966_vm10, %v9549_v55, %v1360_v6  ;;  %v1413_v8 = vpop.permute.xlu1 %1412 }
 0x30b   : > { %v1415_v9 = vsel %vm1082_vm9, %v9544_v61, %v1413_v8  ;;  %1403 = vmatpush.msra.mxu1 %v1362_v7 }
 0x30c   : > { %1456 = vmatpush.msra.mxu3 %v1415_v9  ;;  %9102 = vmatmul.msk.f32.vlgmr.msra.gmra.mxu1 %vm1311_vm14, %v1291_v58 }
 0x30f   : > { %9103 = vmatmul.msk.f32.vlgmr.msra.gmra.mxu2 %vm1311_vm14, %v1293_v10  ;;  %9104 = vmatmul.msk.f32.vlgmr.msra.gmra.mxu3 %vm1311_vm14, %v1293_v10 }
 0x312   : > { %v1466_v17 = vpop.permute.xlu1 %1465 }
 0x36b   : > { %v1385_v13 = vpop.f32.mrf.mxu0 }
 0x389   : > { %v1405_v14 = vpop.f32.mrf.mxu1 }
 0x38a   : > { %v1332_v11 = vpop.f32.mrf.mxu2  ;;  %v1352_v12 = vpop.f32.mrf.mxu3 }
 0x38b   : > { %v1386_v15 = vadd.f32 %v1385_v13, %v1332_v11  ;;  %v1406_v16 = vadd.f32 %v1405_v14, %v1352_v12 }
 0x392   : > { %v1438_v18 = vpop.f32.mrf.mxu2  ;;  %v1458_v19 = vpop.f32.mrf.mxu3 }
 0x393   : > { %v1461_v20 = vadd.f32 %v1438_v18, %v1386_v15  ;;  %v1462_v21 = vadd.f32 %v1458_v19, %v1406_v16  ;;  %v9114_v19 = vld [vmem:[%s12189_s2 + $0x8] sm:$0xff] }
 0x395   : > { %v1468_v22 = vadd.f32 %v1466_v17, %v1461_v20  ;;  %v1469_v23 = vadd.f32 %v1466_v17, %v1462_v21 }
 0x397   : > { %v1470_v24 = vmul.f32 0.2, %v1468_v22  ;;  %v1471_v25 = vmul.f32 0.2, %v1469_v23 }
 0x399   : > { %v1473_v26 = vmax.f32 %v1469_v23, %v1471_v25  ;;  %v1472_v27 = vmax.f32 %v1468_v22, %v1470_v24  ;;  %v9111_v25 = vld [vmem:[%s12188_s27 + $0x18] sm:$0xff] }
 0x39b   : > { %1478 = vrot.lane.b32.xlu0 %v1473_v26, %s12190_s6  ;;  %1476 = vrot.lane.b32.xlu2 %v1472_v27, %s12190_s6 }
 0x3f5   : > { %v1477_v28 = vpop.permute.xlu2 %1476 }
 0x3f6   : > { %1484 = vst.msk [vmem:[#allocation2] sm:$0xff] %vm1287_vm13, %v1477_v28 }
 0x3fd   : > { %v1491_v31 = vld [vmem:[#allocation2] sm:$0xff] }
 0x40d   : > { %v1479_v29 = vpop.permute.xlu0 %1478 }
 0x40e   : > { %v1480_v30 = vsel %vm822_vm2, %v1477_v28, %v1479_v29  ;;  %1486 = vst.msk [vmem:[#allocation2 + $0x10] sm:$0xff] %vm822_vm2, %v1479_v29 }
 0x40f   : > { %v9556_v32 = vpack.i.bf16 %v1480_v30, %v1491_v31 }
 0x411   : > { %9557 = vrot.lane.b32.xlu0 %v9556_v32, %s12186_s0  ;;  %9552 = vrot.lane.b32.xlu1 %v9556_v32, %s12191_s7 }
 0x415   : > { %v1493_v33 = vld [vmem:[#allocation2 + $0x10] sm:$0xff] }
 0x416   : > { %1501 = vrot.lane.b32.xlu2 %v1493_v33, %s12191_s7 }
 0x419   : > { %1607 = vrot.lane.b32.xlu0 %v1493_v33, %s12187_s1  ;;  %1554 = vrot.lane.b32.xlu1 %v1493_v33, %s12186_s0 }
 0x41e   : > { %9562 = vrot.lane.b32.xlu2 %v9556_v32, %s12187_s1  ;;  %v9112_v32 = vld [vmem:[%s12188_s27 + $0x20] sm:$0xff] }
 0x421   : > { %1660 = vperm.xlu1 %9550, %v1490_v34  }
 0x470   : > { %v1502_v37 = vpop.permute.xlu2 %1501 }
 0x478   : > { %v9563_v38 = vpop.permute.xlu2 %9562 }
 0x479   : > { %v9565_v39 = vunpack.i.h.bf16 %v9563_v38  ;;  %v9564_v40 = vunpack.i.l.bf16 %v9563_v38 }
 0x47b   : > { %v1609_v54 = vsel %vm1082_vm9, %v9564_v40, %v9565_v39 }
 0x483   : > { %v9558_v43 = vpop.permute.xlu0 %9557  ;;  %v9553_v44 = vpop.permute.xlu1 %9552 }
 0x484   : > { %v9560_v45 = vunpack.i.h.bf16 %v9558_v43  ;;  %v9559_v46 = vunpack.i.l.bf16 %v9558_v43  ;;  %v9555_v47 = vunpack.i.h.bf16 %v9553_v44  ;;  %v9554_v48 = vunpack.i.l.bf16 %v9553_v44  ;;  %v9113_v44 = vld [vmem:[%s12188_s27 + $0x28] sm:$0xff] }
 0x486   : > { %v1503_v50 = vsel %vm1024_vm7, %v9554_v48, %v9555_v47  ;;  %v1504_v51 = vsel %vm1024_vm7, %v9555_v47, %v1502_v37  ;;  %v1556_v52 = vsel %vm966_vm10, %v9559_v46, %v9560_v45 }
 0x487   : > { %1525 = vmatpush.msrb.mxu0 %v1503_v50  ;;  %1545 = vmatpush.msrb.mxu1 %v1504_v51 }
 0x488   : > { %1578 = vmatpush.msrb.mxu2 %v1556_v52  ;;  %9105 = vmatmul.msk.f32.vlgmr.msrb.gmra.mxu0 %vm1311_vm14, %v1488_v49 }
 0x489   : > { %9107 = vmatmul.msk.f32.vlgmr.msrb.gmra.mxu2 %vm1311_vm14, %v1487_v53  ;;  %1631 = vmatpush.msra.mxu0 %v1609_v54 }
 0x48a   : > { %9106 = vmatmul.msk.f32.vlgmr.msrb.gmra.mxu1 %vm1311_vm14, %v1488_v49 }
 0x48b   : > { %v1608_v55 = vpop.permute.xlu0 %1607  ;;  %v1555_v56 = vpop.permute.xlu1 %1554 }
 0x48c   : > { %v1610_v57 = vsel %vm1082_vm9, %v9565_v39, %v1608_v55  ;;  %v1557_v58 = vsel %vm966_vm10, %v9560_v45, %v1555_v56 }
 0x48d   : > { %1598 = vmatpush.msrb.mxu3 %v1557_v58  ;;  %1651 = vmatpush.msra.mxu1 %v1610_v57 }
 0x48e   : > { %9108 = vmatmul.msk.f32.vlgmr.msrb.gmra.mxu3 %vm1311_vm14, %v1487_v53 }
 0x490   : > { %9109 = vmatmul.msk.f32.vlgmr.msra.gmra.mxu0 %vm1311_vm14, %v1489_v59 }
 0x492   : > { %9110 = vmatmul.msk.f32.vlgmr.msra.gmra.mxu1 %vm1311_vm14, %v1489_v59 }
 0x493   : > { %v1661_v2 = vpop.permute.xlu1 %1660 }
 0x505   : > { %v1527_v60 = vpop.f32.mrf.mxu0 }
 0x507   : > { %v1547_v61 = vpop.f32.mrf.mxu1 }
 0x50c   : > { %v1580_v62 = vpop.f32.mrf.mxu2 }
 0x50d   : > { %v1581_v63 = vadd.f32 %v1580_v62, %v1527_v60  ;;  %v1633_v0 = vpop.f32.mrf.mxu0 }
 0x50f   : > { %v1656_v1 = vadd.f32 %v1633_v0, %v1581_v63  ;;  %v1653_v5 = vpop.f32.mrf.mxu1 }
 0x511   : > { %v1663_v3 = vadd.f32 %v1661_v2, %v1656_v1  ;;  %v1600_v4 = vpop.f32.mrf.mxu3 }
 0x512   : > { %v1601_v6 = vadd.f32 %v1600_v4, %v1547_v61  ;;  %v9124_v4 = vld [vmem:[%s12072_s8 + $0x8] sm:$0xff] }
 0x513   : > { %v10635_v7 = vadd.f32 %v1663_v3, %v10556_v41 }
 0x514   : > { %v1657_v8 = vadd.f32 %v1653_v5, %v1601_v6 }
 0x515   : > { %v1667_v9 = vmul.f32 0.2, %v10635_v7 }
 0x516   : > { %v1664_v10 = vadd.f32 %v1661_v2, %v1657_v8 }
 0x517   : > { %v1669_v11 = vmax.f32 %v10635_v7, %v1667_v9 }
 0x518   : > { %v10640_v12 = vadd.f32 %v1664_v10, %v10558_v42 }
 0x519   : > { %1673 = vrot.lane.b32.xlu2 %v1669_v11, %s12190_s6 }
 0x51a   : > { %v1668_v13 = vmul.f32 0.2, %v10640_v12 }
 0x51c   : > { %v1670_v14 = vmax.f32 %v10640_v12, %v1668_v13 }
 0x51e   : > { %1675 = vrot.lane.b32.xlu0 %v1670_v14, %s12190_s6 }
 0x573   : > { %v1674_v15 = vpop.permute.xlu2 %1673 }
 0x574   : > { %1681 = vst.msk [vmem:[#allocation2] sm:$0xff] %vm1287_vm13, %v1674_v15 }
 0x57b   : > { %v1690_v17 = vld [vmem:[#allocation2] sm:$0xff] }
 0x590   : > { %v1676_v41 = vpop.permute.xlu0 %1675 }
 0x591   : > { %v1677_v16 = vsel %vm822_vm2, %v1674_v15, %v1676_v41  ;;  %1683 = vst.msk [vmem:[#allocation2 + $0x10] sm:$0xff] %vm822_vm2, %v1676_v41 }
 0x592   : > { %v9571_v18 = vpack.i.bf16 %v1677_v16, %v1690_v17  ;;  %v9122_v16 = vld [vmem:[%s12193_s28 + $0x20] sm:$0xff] }
 0x594   : > { %9572 = vrot.lane.b32.xlu0 %v9571_v18, %s12194_s24  ;;  %9567 = vrot.lane.b32.xlu1 %v9571_v18, %s12191_s7 }
 0x598   : > { %v1692_v42 = vld [vmem:[#allocation2 + $0x10] sm:$0xff] }
 0x599   : > { %1700 = vrot.lane.b32.xlu2 %v1692_v42, %s12191_s7 }
 0x59c   : > { %1753 = vrot.lane.b32.xlu0 %v1692_v42, %s12195_s4  ;;  %1806 = vrot.lane.b32.xlu1 %v1692_v42, %s12194_s24 }
 0x5a1   : > { %9577 = vrot.lane.b32.xlu2 %v9571_v18, %s12195_s4 }
 0x5a4   : > { %1859 = vperm.xlu1 %9550, %v9114_v19   ;;  %v9121_v19 = vld [vmem:[%s12193_s28 + $0x18] sm:$0xff] }
 0x5f3   : > { %v1701_v20 = vpop.permute.xlu2 %1700 }
 0x5fb   : > { %v9578_v21 = vpop.permute.xlu2 %9577 }
 0x5fc   : > { %v9580_v22 = vunpack.i.h.bf16 %v9578_v21  ;;  %v9579_v23 = vunpack.i.l.bf16 %v9578_v21 }
 0x5fe   : > { %v1755_v24 = vsel %vm910_vm4, %v9579_v23, %v9580_v22 }
 0x5ff   : > { %1777 = vmatpush.msrb.mxu0 %v1755_v24 }
 0x600   : > { %9117 = vmatmul.msk.f32.vlgmr.msrb.gmra.mxu0 %vm1311_vm14, %v9111_v25 }
 0x606   : > { %v9573_v26 = vpop.permute.xlu0 %9572  ;;  %v9568_v27 = vpop.permute.xlu1 %9567 }
 0x607   : > { %v9575_v28 = vunpack.i.h.bf16 %v9573_v26  ;;  %v9574_v29 = vunpack.i.l.bf16 %v9573_v26  ;;  %v9570_v30 = vunpack.i.h.bf16 %v9568_v27  ;;  %v9569_v31 = vunpack.i.l.bf16 %v9568_v27 }
 0x609   : > { %v1702_v33 = vsel %vm1024_vm7, %v9569_v31, %v9570_v30  ;;  %v1703_v34 = vsel %vm1024_vm7, %v9570_v30, %v1701_v20  ;;  %v1808_v37 = vsel %vm1198_vm12, %v9574_v29, %v9575_v28 }
 0x60a   : > { %1724 = vmatpush.msra.mxu2 %v1702_v33  ;;  %1744 = vmatpush.msra.mxu3 %v1703_v34 }
 0x60b   : > { %9115 = vmatmul.msk.f32.vlgmr.msra.gmra.mxu2 %vm1311_vm14, %v9112_v32  ;;  %9116 = vmatmul.msk.f32.vlgmr.msra.gmra.mxu3 %vm1311_vm14, %v9112_v32 }
 0x60c   : > { %1830 = vmatpush.msrb.mxu2 %v1808_v37 }
 0x60e   : > { %v1754_v38 = vpop.permute.xlu0 %1753  ;;  %v1807_v39 = vpop.permute.xlu1 %1806 }
 0x60f   : > { %v1756_v40 = vsel %vm910_vm4, %v9580_v22, %v1754_v38  ;;  %v1809_v43 = vsel %vm1198_vm12, %v9575_v28, %v1807_v39 }
 0x610   : > { %1797 = vmatpush.msrb.mxu1 %v1756_v40  ;;  %1850 = vmatpush.msrb.mxu3 %v1809_v43 }
 0x611   : > { %9118 = vmatmul.msk.f32.vlgmr.msrb.gmra.mxu1 %vm1311_vm14, %v9111_v25  ;;  %v9123_v25 = vld [vmem:[%s12193_s28 + $0x28] sm:$0xff] }
 0x613   : > { %9119 = vmatmul.msk.f32.vlgmr.msrb.gmra.mxu2 %vm1311_vm14, %v9113_v44  ;;  %9120 = vmatmul.msk.f32.vlgmr.msrb.gmra.mxu3 %vm1311_vm14, %v9113_v44 }
 0x616   : > { %v1860_v55 = vpop.permute.xlu1 %1859 }
 0x67d   : > { %v1779_v47 = vpop.f32.mrf.mxu0 }
 0x68e   : > { %v1726_v45 = vpop.f32.mrf.mxu2  ;;  %v1746_v46 = vpop.f32.mrf.mxu3 }
 0x68f   : > { %v1799_v48 = vpop.f32.mrf.mxu1  ;;  %v1780_v49 = vadd.f32 %v1779_v47, %v1726_v45 }
 0x690   : > { %v1800_v50 = vadd.f32 %v1799_v48, %v1746_v46 }
 0x696   : > { %v1832_v51 = vpop.f32.mrf.mxu2  ;;  %v1852_v52 = vpop.f32.mrf.mxu3 }
 0x697   : > { %v1855_v53 = vadd.f32 %v1832_v51, %v1780_v49  ;;  %v1856_v54 = vadd.f32 %v1852_v52, %v1800_v50 }
 0x699   : > { %v1862_v56 = vadd.f32 %v1860_v55, %v1855_v53  ;;  %v1863_v57 = vadd.f32 %v1860_v55, %v1856_v54  ;;  %v9134_v53 = vld [vmem:[%s12189_s2 + $0x10] sm:$0xff]  ;;  %v2480_v54 = vld [vmem:[%s12196_s15] sm:$0xff]  ;;  %s12134_s15 = smov 94   ;;  %s12138_s2 = smov 118  }
 0x69b   : > { %v1864_v58 = vmul.f32 0.2, %v1862_v56  ;;  %v1865_v59 = vmul.f32 0.2, %v1863_v57 }
 0x69d   : > { %v1867_v60 = vmax.f32 %v1863_v57, %v1865_v59  ;;  %v1866_v61 = vmax.f32 %v1862_v56, %v1864_v58 }
 0x69f   : > { %1872 = vrot.lane.b32.xlu0 %v1867_v60, %s12190_s6  ;;  %1870 = vrot.lane.b32.xlu2 %v1866_v61, %s12190_s6  ;;  %v9131_v60 = vld [vmem:[%s12188_s27 + $0x30] sm:$0xff] }
 0x6a0   : > { %v9151_v61 = vld [vmem:[%s10546_s3 + $0x10] sm:$0xff] }
 0x6f9   : > { %v1871_v62 = vpop.permute.xlu2 %1870 }
 0x6fa   : > { %1878 = vst.msk [vmem:[#allocation2] sm:$0xff] %vm1287_vm13, %v1871_v62 }
 0x701   : > { %v1887_v1 = vld [vmem:[#allocation2] sm:$0xff] }
 0x711   : > { %v1873_v63 = vpop.permute.xlu0 %1872 }
 0x712   : > { %v1874_v0 = vsel %vm822_vm2, %v1871_v62, %v1873_v63  ;;  %1880 = vst.msk [vmem:[#allocation2 + $0x10] sm:$0xff] %vm822_vm2, %v1873_v63 }
 0x713   : > { %v9586_v2 = vpack.i.bf16 %v1874_v0, %v1887_v1 }
 0x715   : > { %9587 = vrot.lane.b32.xlu0 %v9586_v2, %s12195_s4  ;;  %9582 = vrot.lane.b32.xlu1 %v9586_v2, %s12191_s7 }
 0x719   : > { %v1889_v3 = vld [vmem:[#allocation2 + $0x10] sm:$0xff] }
 0x71a   : > { %1897 = vrot.lane.b32.xlu2 %v1889_v3, %s12191_s7 }
 0x71d   : > { %2003 = vrot.lane.b32.xlu0 %v1889_v3, %s12194_s24  ;;  %1950 = vrot.lane.b32.xlu1 %v1889_v3, %s12195_s4 }
 0x722   : > { %9592 = vrot.lane.b32.xlu2 %v9586_v2, %s12194_s24 }
 0x725   : > { %2056 = vperm.xlu1 %9550, %v9124_v4  }
 0x774   : > { %v1898_v5 = vpop.permute.xlu2 %1897 }
 0x77c   : > { %v9593_v6 = vpop.permute.xlu2 %9592 }
 0x77d   : > { %v9595_v8 = vunpack.i.h.bf16 %v9593_v6  ;;  %v9594_v9 = vunpack.i.l.bf16 %v9593_v6 }
 0x77f   : > { %v2005_v20 = vsel %vm1198_vm12, %v9594_v9, %v9595_v8  ;;  %v9132_v9 = vld [vmem:[%s12188_s27 + $0x38] sm:$0xff] }
 0x787   : > { %v9588_v10 = vpop.permute.xlu0 %9587  ;;  %v9583_v11 = vpop.permute.xlu1 %9582 }
 0x788   : > { %v9590_v13 = vunpack.i.h.bf16 %v9588_v10  ;;  %v9589_v14 = vunpack.i.l.bf16 %v9588_v10  ;;  %v9585_v15 = vunpack.i.h.bf16 %v9583_v11  ;;  %v9584_v41 = vunpack.i.l.bf16 %v9583_v11 }
 0x78a   : > { %v1899_v17 = vsel %vm1024_vm7, %v9584_v41, %v9585_v15  ;;  %v1900_v18 = vsel %vm1024_vm7, %v9585_v15, %v1898_v5  ;;  %v1952_v42 = vsel %vm910_vm4, %v9589_v14, %v9590_v13 }
 0x78b   : > { %1921 = vmatpush.msra.mxu0 %v1899_v17  ;;  %1941 = vmatpush.msra.mxu1 %v1900_v18 }
 0x78c   : > { %1974 = vmatpush.msra.mxu2 %v1952_v42  ;;  %9125 = vmatmul.msk.f32.vlgmr.msra.gmra.mxu0 %vm1311_vm14, %v9122_v16 }
 0x78d   : > { %9127 = vmatmul.msk.f32.vlgmr.msra.gmra.mxu2 %vm1311_vm14, %v9121_v19  ;;  %2027 = vmatpush.msrb.mxu0 %v2005_v20  ;;  %v9152_v20 = vld [vmem:[%s10546_s3 + $0x18] sm:$0xff] }
 0x78e   : > { %9126 = vmatmul.msk.f32.vlgmr.msra.gmra.mxu1 %vm1311_vm14, %v9122_v16 }
 0x78f   : > { %v2004_v21 = vpop.permute.xlu0 %2003  ;;  %v1951_v22 = vpop.permute.xlu1 %1950 }
 0x790   : > { %v2006_v23 = vsel %vm1198_vm12, %v9595_v8, %v2004_v21  ;;  %v1953_v24 = vsel %vm910_vm4, %v9590_v13, %v1951_v22 }
 0x791   : > { %1994 = vmatpush.msra.mxu3 %v1953_v24  ;;  %2047 = vmatpush.msrb.mxu1 %v2006_v23 }
 0x792   : > { %9128 = vmatmul.msk.f32.vlgmr.msra.gmra.mxu3 %vm1311_vm14, %v9121_v19  ;;  %v9133_v19 = vld [vmem:[%s12188_s27 + $0x40] sm:$0xff]  ;;  %s12128_s27 = smov 109  }
 0x794   : > { %9129 = vmatmul.msk.f32.vlgmr.msrb.gmra.mxu0 %vm1311_vm14, %v9123_v25 }
 0x796   : > { %9130 = vmatmul.msk.f32.vlgmr.msrb.gmra.mxu1 %vm1311_vm14, %v9123_v25 }
 0x797   : > { %v2057_v32 = vpop.permute.xlu1 %2056 }
 0x809   : > { %v1923_v26 = vpop.f32.mrf.mxu0 }
 0x80b   : > { %v1943_v27 = vpop.f32.mrf.mxu1 }
 0x810   : > { %v1976_v28 = vpop.f32.mrf.mxu2 }
 0x811   : > { %v1977_v29 = vadd.f32 %v1976_v28, %v1923_v26  ;;  %v2029_v30 = vpop.f32.mrf.mxu0 }
 0x813   : > { %v2052_v31 = vadd.f32 %v2029_v30, %v1977_v29  ;;  %v2049_v37 = vpop.f32.mrf.mxu1 }
 0x815   : > { %v2059_v33 = vadd.f32 %v2057_v32, %v2052_v31  ;;  %v1996_v34 = vpop.f32.mrf.mxu3 }
 0x816   : > { %v1997_v38 = vadd.f32 %v1996_v34, %v1943_v27 }
 0x817   : > { %v10715_v39 = vadd.f32 %v2059_v33, %v10635_v7 }
 0x818   : > { %v2053_v40 = vadd.f32 %v2049_v37, %v1997_v38 }
 0x819   : > { %v2063_v43 = vmul.f32 0.2, %v10715_v39 }
 0x81a   : > { %v2060_v44 = vadd.f32 %v2057_v32, %v2053_v40 }
 0x81b   : > { %v2065_v45 = vmax.f32 %v10715_v39, %v2063_v43 }
 0x81c   : > { %v10720_v46 = vadd.f32 %v2060_v44, %v10640_v12 }
 0x81d   : > { %2069 = vrot.lane.b32.xlu2 %v2065_v45, %s12190_s6 }
 0x81e   : > { %v2064_v47 = vmul.f32 0.2, %v10720_v46 }
 0x820   : > { %v2066_v48 = vmax.f32 %v10720_v46, %v2064_v47 }
 0x822   : > { %2071 = vrot.lane.b32.xlu0 %v2066_v48, %s12190_s6 }
 0x877   : > { %v2070_v49 = vpop.permute.xlu2 %2069 }
 0x878   : > { %2077 = vst.msk [vmem:[#allocation2] sm:$0xff] %vm1287_vm13, %v2070_v49 }
 0x87f   : > { %v2086_v51 = vld [vmem:[#allocation2] sm:$0xff] }
 0x894   : > { %v2072_v7 = vpop.permute.xlu0 %2071 }
 0x895   : > { %v2073_v50 = vsel %vm822_vm2, %v2070_v49, %v2072_v7  ;;  %2079 = vst.msk [vmem:[#allocation2 + $0x10] sm:$0xff] %vm822_vm2, %v2072_v7 }
 0x896   : > { %v9601_v52 = vpack.i.bf16 %v2073_v50, %v2086_v51 }
 0x898   : > { %9602 = vrot.lane.b32.xlu0 %v9601_v52, %s12121_s26  ;;  %9597 = vrot.lane.b32.xlu1 %v9601_v52, %s12191_s7 }
 0x89c   : > { %v2088_v12 = vld [vmem:[#allocation2 + $0x10] sm:$0xff] }
 0x89d   : > { %2096 = vrot.lane.b32.xlu2 %v2088_v12, %s12191_s7 }
 0x8a0   : > { %2149 = vrot.lane.b32.xlu0 %v2088_v12, %s12123_s30  ;;  %2203 = vrot.lane.b32.xlu1 %v2088_v12, %s12121_s26  ;;  %s12140_s26 = smov 113  }
 0x8a5   : > { %9607 = vrot.lane.b32.xlu2 %v9601_v52, %s12123_s30  ;;  %s12132_s30 = smov 97  }
 0x8a8   : > { %2257 = vperm.xlu1 %9550, %v9134_v53  }
 0x8ad   : > { %2483 = vperm.xlu2 %9533, %v2480_v54  }
 0x8f7   : > { %v2097_v55 = vpop.permute.xlu2 %2096 }
 0x8ff   : > { %v9608_v56 = vpop.permute.xlu2 %9607 }
 0x900   : > { %v9610_v57 = vunpack.i.h.bf16 %v9608_v56  ;;  %v9609_v58 = vunpack.i.l.bf16 %v9608_v56 }
 0x902   : > { %v2152_v59 = vsel %vm2151_vm15, %v9609_v58, %v9610_v57 }
 0x903   : > { %2174 = vmatpush.msra.mxu0 %v2152_v59 }
 0x904   : > { %9137 = vmatmul.msk.f32.vlgmr.msra.gmra.mxu0 %vm1311_vm14, %v9131_v60 }
 0x907   : > { %v2484_v62 = vpop.permute.xlu2 %2483 }
 0x908   : > { %v2486_v63 = vmul.f32 %v9151_v61, %v2484_v62  ;;  %v2487_v23 = vmul.f32 %v9152_v20, %v2484_v62 }
 0x90a   : > { %v2488_v0 = vadd.f32 %v2486_v63, %v10550_v35  ;;  %v9603_v1 = vpop.permute.xlu0 %9602  ;;  %v9598_v2 = vpop.permute.xlu1 %9597  ;;  %v2489_v26 = vadd.f32 %v2487_v23, %v10552_v36 }
 0x90b   : > { %v9605_v3 = vunpack.i.h.bf16 %v9603_v1  ;;  %v9604_v4 = vunpack.i.l.bf16 %v9603_v1  ;;  %v9600_v5 = vunpack.i.h.bf16 %v9598_v2  ;;  %v9599_v6 = vunpack.i.l.bf16 %v9598_v2 }
 0x90c   : > { %v2490_v8 = vmul.f32 0.2, %v2488_v0  ;;  %v2491_v34 = vmul.f32 0.2, %v2489_v26 }
 0x90d   : > { %v2098_v10 = vsel %vm1024_vm7, %v9599_v6, %v9600_v5  ;;  %v2099_v11 = vsel %vm1024_vm7, %v9600_v5, %v2097_v55  ;;  %v2206_v13 = vsel %vm2205_vm0, %v9604_v4, %v9605_v3  ;;  %v9142_v5 = vld [vmem:[%s12193_s28 + $0x38] sm:$0xff] }
 0x90e   : > { %v10754_v14 = vmax.f32 %v2488_v0, %v2490_v8  ;;  %2120 = vmatpush.msrb.mxu2 %v2098_v10  ;;  %2140 = vmatpush.msrb.mxu3 %v2099_v11  ;;  %v10771_v44 = vmax.f32 %v2489_v26, %v2491_v34 }
 0x90f   : > { %9135 = vmatmul.msk.f32.vlgmr.msrb.gmra.mxu2 %vm1311_vm14, %v9132_v9  ;;  %9136 = vmatmul.msk.f32.vlgmr.msrb.gmra.mxu3 %vm1311_vm14, %v9132_v9 }
 0x910   : > { %v2494_v15 = vmul.f32 0.2, %v10754_v14  ;;  %2228 = vmatpush.msra.mxu2 %v2206_v13  ;;  %v2495_v48 = vmul.f32 0.2, %v10771_v44 }
 0x912   : > { %v2496_v41 = vmax.f32 %v10754_v14, %v2494_v15  ;;  %v2150_v16 = vpop.permute.xlu0 %2149  ;;  %v2204_v17 = vpop.permute.xlu1 %2203  ;;  %v2497_v49 = vmax.f32 %v10771_v44, %v2495_v48 }
 0x913   : > { %v2153_v18 = vsel %vm2151_vm15, %v9610_v57, %v2150_v16  ;;  %v2207_v42 = vsel %vm2205_vm0, %v9605_v3, %v2204_v17 }
 0x914   : > { %2500 = vrot.lane.b32.xlu2 %v2496_v41, %s12190_s6  ;;  %2194 = vmatpush.msra.mxu1 %v2153_v18  ;;  %v9141_v18 = vld [vmem:[%s12193_s28 + $0x30] sm:$0xff] }
 0x915   : > { %2248 = vmatpush.msra.mxu3 %v2207_v42  ;;  %9138 = vmatmul.msk.f32.vlgmr.msra.gmra.mxu1 %vm1311_vm14, %v9131_v60  ;;  %v2518_v60 = vld [vmem:[%s12076_s12] sm:$0xff] }
 0x917   : > { %9139 = vmatmul.msk.f32.vlgmr.msra.gmra.mxu2 %vm1311_vm14, %v9133_v19  ;;  %9140 = vmatmul.msk.f32.vlgmr.msra.gmra.mxu3 %vm1311_vm14, %v9133_v19 }
 0x91a   : > { %v2258_v33 = vpop.permute.xlu1 %2257 }
 0x96e   : > { %v2501_v12 = vpop.permute.xlu2 %2500 }
 0x981   : > { %v2176_v25 = vpop.f32.mrf.mxu0 }
 0x992   : > { %v2122_v21 = vpop.f32.mrf.mxu2  ;;  %v2142_v22 = vpop.f32.mrf.mxu3 }
 0x993   : > { %v2196_v24 = vpop.f32.mrf.mxu1  ;;  %v2177_v28 = vadd.f32 %v2176_v25, %v2122_v21 }
 0x994   : > { %v2197_v27 = vadd.f32 %v2196_v24, %v2142_v22 }
 0x99a   : > { %v2230_v29 = vpop.f32.mrf.mxu2  ;;  %v2250_v30 = vpop.f32.mrf.mxu3 }
 0x99b   : > { %v2253_v31 = vadd.f32 %v2230_v29, %v2177_v28  ;;  %v2254_v32 = vadd.f32 %v2250_v30, %v2197_v27  ;;  %v9143_v29 = vld [vmem:[%s12193_s28 + $0x40] sm:$0xff]  ;;  %v2512_v30 = vld [vmem:[%s12201_s11 + $0x8] sm:$0xff]  ;;  %s12130_s28 = smov 112  }
 0x99d   : > { %v2260_v37 = vadd.f32 %v2258_v33, %v2253_v31  ;;  %v2261_v38 = vadd.f32 %v2258_v33, %v2254_v32 }
 0x99f   : > { %v2262_v40 = vmul.f32 0.2, %v2260_v37  ;;  %v2263_v43 = vmul.f32 0.2, %v2261_v38 }
 0x9a1   : > { %v2265_v45 = vmax.f32 %v2261_v38, %v2263_v43  ;;  %v2264_v47 = vmax.f32 %v2260_v37, %v2262_v40  ;;  %v2511_v37 = vld [vmem:[%s12201_s11] sm:$0xff] }
 0x9a3   : > { %2270 = vrot.lane.b32.xlu1 %v2265_v45, %s12190_s6  ;;  %2268 = vrot.lane.b32.xlu0 %v2264_v47, %s12190_s6  ;;  %v2513_v45 = vld [vmem:[%s12201_s11 + $0x10] sm:$0xff] }
 0x9ab   : > { %2502 = vrot.lane.b32.xlu0 %v2497_v49, %s12190_s6 }
 0xa15   : > { %v2271_v7 = vpop.permute.xlu1 %2270  ;;  %v2269_v50 = vpop.permute.xlu0 %2268 }
 0xa16   : > { %2278 = vst.msk [vmem:[#allocation2 + $0x10] sm:$0xff] %vm822_vm2, %v2271_v7  ;;  %v2272_v53 = vsel %vm822_vm2, %v2269_v50, %v2271_v7 }
 0xa17   : > { %2276 = vst.msk [vmem:[#allocation2] sm:$0xff] %vm1287_vm13, %v2269_v50 }
 0xa1d   : > { %v2287_v51 = vld [vmem:[#allocation2 + $0x10] sm:$0xff]  ;;  %v2503_v52 = vpop.permute.xlu0 %2502 }
 0xa1e   : > { %v2285_v54 = vld [vmem:[#allocation2] sm:$0xff]  ;;  %2510 = vst.msk [vmem:[#allocation2 + $0x10] sm:$0xff] %vm822_vm2, %v2503_v52  ;;  %2295 = vrot.lane.b32.xlu1 %v2287_v51, %s12191_s7  ;;  %2348 = vrot.lane.b32.xlu2 %v2287_v51, %s12197_s25  ;;  %v2504_v58 = vsel %vm822_vm2, %v2501_v12, %v2503_v52 }
 0xa1f   : > { %2508 = vst.msk [vmem:[#allocation2] sm:$0xff] %vm1287_vm13, %v2501_v12  ;;  %v9616_v55 = vpack.i.bf16 %v2272_v53, %v2285_v54 }
 0xa21   : > { %9617 = vrot.lane.b32.xlu0 %v9616_v55, %s12191_s7 }
 0xa25   : > { %v2521_v56 = vld [vmem:[#allocation2 + $0x10] sm:$0xff] }
 0xa26   : > { %2401 = vrot.lane.b32.xlu2 %v2287_v51, %s12198_s9  ;;  %9612 = vrot.lane.b32.xlu1 %v9616_v55, %s12197_s25  ;;  %v2519_v57 = vld [vmem:[#allocation2] sm:$0xff] }
 0xa27   : > { %v9626_v59 = vpack.i.bf16 %v2504_v58, %v2519_v57  ;;  %v2514_v58 = vld [vmem:[%s12201_s11 + $0x18] sm:$0xff] }
 0xa29   : > { %2529 = vrot.lane.b32.xlu0 %v2521_v56, %s12199_s23 }
 0xa2e   : > { %9622 = vrot.lane.b32.xlu1 %v9616_v55, %s12198_s9  ;;  %9627 = vrot.lane.b32.xlu2 %v9626_v59, %s12199_s23 }
 0xa31   : > { %2582 = vrot.lane.b32.xlu0 %v2521_v56, %s12195_s4 }
 0xa36   : > { %2635 = vrot.lane.b32.xlu1 %v2521_v56, %s12186_s0  ;;  %2745 = vrot.lane.b32.xlu2 %v2521_v56, %s12187_s1 }
 0xa39   : > { %9632 = vrot.lane.b32.xlu0 %v9626_v59, %s12186_s0 }
 0xa3e   : > { %9642 = vrot.lane.b32.xlu1 %v9626_v59, %s12187_s1  ;;  %9637 = vrot.lane.b32.xlu2 %v9626_v59, %s12195_s4 }
 0xa41   : > { %9647 = vrot.lane.b32.xlu0 %v9626_v59, %s12191_s7 }
 0xa46   : > { %2690 = vrot.lane.b32.xlu1 %v2521_v56, %s12191_s7  ;;  %9652 = vrot.lane.b32.xlu2 %v9626_v59, %s12194_s24 }
 0xa49   : > { %2855 = vrot.lane.b32.xlu0 %v2521_v56, %s12194_s24 }
 0xa4e   : > { %9657 = vrot.lane.b32.xlu1 %v9626_v59, %s12200_s5  ;;  %2800 = vrot.lane.b32.xlu2 %v2521_v56, %s12200_s5  ;;  %v2515_v59 = vld [vmem:[%s12201_s11 + $0x20] sm:$0xff] }
 0xa51   : > { %2908 = vperm.xlu0 %9534, %v2518_v60  }
 0xa78   : > { %v2349_v61 = vpop.permute.xlu2 %2348 }
 0xa80   : > { %v2402_v62 = vpop.permute.xlu2 %2401 }
 0xa88   : > { %v9628_v63 = vpop.permute.xlu2 %9627 }
 0xa89   : > { %v9630_v9 = vunpack.i.h.bf16 %v9628_v63  ;;  %v9629_v10 = vunpack.i.l.bf16 %v9628_v63 }
 0xa8b   : > { %v2531_v19 = vsel %vm852_vm8, %v9629_v10, %v9630_v9 }
 0xa90   : > { %v2296_v0 = vpop.permute.xlu1 %2295  ;;  %v10807_v1 = vpop.permute.xlu2 %2745 }
 0xa93   : > { %v9618_v2 = vpop.permute.xlu0 %9617 }
 0xa94   : > { %v9620_v3 = vunpack.i.h.bf16 %v9618_v2  ;;  %v9619_v4 = vunpack.i.l.bf16 %v9618_v2 }
 0xa96   : > { %v2297_v6 = vsel %vm1024_vm7, %v9619_v4, %v9620_v3  ;;  %v2298_v8 = vsel %vm1024_vm7, %v9620_v3, %v2296_v0 }
 0xa97   : > { %2319 = vmatpush.msrb.mxu0 %v2297_v6  ;;  %2339 = vmatpush.msrb.mxu1 %v2298_v8  ;;  %v2516_v6 = vld [vmem:[%s12201_s11 + $0x28] sm:$0xff] }
 0xa98   : > { %v9613_v11 = vpop.permute.xlu1 %9612  ;;  %9145 = vmatmul.msk.f32.vlgmr.msrb.gmra.mxu0 %vm1311_vm14, %v9142_v5  ;;  %9146 = vmatmul.msk.f32.vlgmr.msrb.gmra.mxu1 %vm1311_vm14, %v9142_v5  ;;  %v9638_v20 = vpop.permute.xlu2 %9637 }
 0xa99   : > { %v9615_v13 = vunpack.i.h.bf16 %v9613_v11  ;;  %v9614_v15 = vunpack.i.l.bf16 %v9613_v11  ;;  %v9640_v21 = vunpack.i.h.bf16 %v9638_v20  ;;  %v9639_v22 = vunpack.i.l.bf16 %v9638_v20 }
 0xa9b   : > { %v2530_v41 = vpop.permute.xlu0 %2529  ;;  %v2350_v16 = vsel %vm2151_vm15, %v9614_v15, %v9615_v13  ;;  %v2351_v17 = vsel %vm2151_vm15, %v9615_v13, %v2349_v61  ;;  %v2584_v32 = vsel %vm910_vm4, %v9639_v22, %v9640_v21 }
 0xa9c   : > { %v2532_v42 = vsel %vm852_vm8, %v9630_v9, %v2530_v41  ;;  %2372 = vmatpush.msrb.mxu2 %v2350_v16  ;;  %2392 = vmatpush.msrb.mxu3 %v2351_v17 }
 0xa9d   : > { %9147 = vmatmul.msk.f32.vlgmr.msrb.gmra.mxu2 %vm1311_vm14, %v9141_v18  ;;  %9148 = vmatmul.msk.f32.vlgmr.msrb.gmra.mxu3 %vm1311_vm14, %v9141_v18 }
 0xa9e   : > { %2553 = vmatpush.msra.mxu2 %v2531_v19  ;;  %2573 = vmatpush.msra.mxu3 %v2532_v42 }
 0xaa0   : > { %v9623_v23 = vpop.permute.xlu1 %9622  ;;  %v9653_v43 = vpop.permute.xlu2 %9652 }
 0xaa1   : > { %v9625_v24 = vunpack.i.h.bf16 %v9623_v23  ;;  %v9624_v25 = vunpack.i.l.bf16 %v9623_v23  ;;  %v9655_v49 = vunpack.i.h.bf16 %v9653_v43  ;;  %v9654_v7 = vunpack.i.l.bf16 %v9653_v43 }
 0xaa3   : > { %v2583_v26 = vpop.permute.xlu0 %2582  ;;  %v2403_v27 = vsel %vm2205_vm0, %v9624_v25, %v9625_v24  ;;  %v2404_v28 = vsel %vm2205_vm0, %v9625_v24, %v2402_v62  ;;  %v2857_v57 = vsel %vm1198_vm12, %v9654_v7, %v9655_v49 }
 0xaa4   : > { %v2585_v31 = vsel %vm910_vm4, %v9640_v21, %v2583_v26  ;;  %2425 = vmatpush.msra.mxu0 %v2403_v27  ;;  %2445 = vmatpush.msra.mxu1 %v2404_v28 }
 0xaa5   : > { %9149 = vmatmul.msk.f32.vlgmr.msra.gmra.mxu0 %vm1311_vm14, %v9143_v29  ;;  %9153 = vmatmul.msk.f32.vlgmr.msra.gmra.mxu2 %vm1311_vm14, %v2512_v30 }
 0xaa6   : > { %2606 = vmatpush.msrb.mxu0 %v2584_v32  ;;  %2626 = vmatpush.msrb.mxu1 %v2585_v31 }
 0xaa7   : > { %9154 = vmatmul.msk.f32.vlgmr.msra.gmra.mxu3 %vm1311_vm14, %v2512_v30  ;;  %9150 = vmatmul.msk.f32.vlgmr.msra.gmra.mxu1 %vm1311_vm14, %v9143_v29 }
 0xaa8   : > { %v2636_v33 = vpop.permute.xlu1 %2635  ;;  %v2801_v5 = vpop.permute.xlu2 %2800 }
 0xaab   : > { %v9633_v34 = vpop.permute.xlu0 %9632 }
 0xaac   : > { %v9635_v38 = vunpack.i.h.bf16 %v9633_v34  ;;  %v9634_v40 = vunpack.i.l.bf16 %v9633_v34 }
 0xaad   : > { %9155 = vmatmul.msk.f32.vlgmr.msrb.gmra.mxu0 %vm1311_vm14, %v2511_v37 }
 0xaae   : > { %v2637_v47 = vsel %vm966_vm10, %v9634_v40, %v9635_v38  ;;  %v2638_v48 = vsel %vm966_vm10, %v9635_v38, %v2636_v33 }
 0xaaf   : > { %2659 = vmatpush.msrb.mxu2 %v2637_v47  ;;  %2679 = vmatpush.msrb.mxu3 %v2638_v48 }
 0xab0   : > { %v9643_v50 = vpop.permute.xlu1 %9642  ;;  %9157 = vmatmul.msk.f32.vlgmr.msrb.gmra.mxu2 %vm1311_vm14, %v2513_v45  ;;  %9158 = vmatmul.msk.f32.vlgmr.msrb.gmra.mxu3 %vm1311_vm14, %v2513_v45 }
 0xab1   : > { %v9645_v51 = vunpack.i.h.bf16 %v9643_v50  ;;  %v9644_v52 = vunpack.i.l.bf16 %v9643_v50  ;;  %9156 = vmatmul.msk.f32.vlgmr.msrb.gmra.mxu1 %vm1311_vm14, %v2511_v37 }
 0xab3   : > { %v9648_v12 = vpop.permute.xlu0 %9647  ;;  %v2747_v53 = vsel %vm1082_vm9, %v9644_v52, %v9645_v51  ;;  %v2748_v54 = vsel %vm1082_vm9, %v9645_v51, %v10807_v1  ;;  %v2517_v1 = vld [vmem:[%s12201_s11 + $0x30] sm:$0xff] }
 0xab4   : > { %v9650_v55 = vunpack.i.h.bf16 %v9648_v12  ;;  %v9649_v56 = vunpack.i.l.bf16 %v9648_v12  ;;  %2769 = vmatpush.msra.mxu2 %v2747_v53  ;;  %2789 = vmatpush.msra.mxu3 %v2748_v54 }
 0xab6   : > { %2879 = vmatpush.msrb.mxu2 %v2857_v57  ;;  %v2692_v60 = vsel %vm1024_vm7, %v9649_v56, %v9650_v55 }
 0xab7   : > { %2714 = vmatpush.msra.mxu0 %v2692_v60  ;;  %v2937_v60 = vld [vmem:[%s12202_s14] sm:$0xff] }
 0xab8   : > { %v2691_v61 = vpop.permute.xlu1 %2690  ;;  %9159 = vmatmul.msk.f32.vlgmr.msra.gmra.mxu0 %vm1311_vm14, %v2514_v58  ;;  %9161 = vmatmul.msk.f32.vlgmr.msra.gmra.mxu2 %vm1311_vm14, %v2515_v59 }
 0xab9   : > { %v2693_v62 = vsel %vm1024_vm7, %v9650_v55, %v2691_v61  ;;  %9162 = vmatmul.msk.f32.vlgmr.msra.gmra.mxu3 %vm1311_vm14, %v2515_v59 }
 0xaba   : > { %2734 = vmatpush.msra.mxu1 %v2693_v62 }
 0xabb   : > { %v2856_v63 = vpop.permute.xlu0 %2855  ;;  %9160 = vmatmul.msk.f32.vlgmr.msra.gmra.mxu1 %vm1311_vm14, %v2514_v58 }
 0xabc   : > { %v2858_v0 = vsel %vm1198_vm12, %v9655_v49, %v2856_v63 }
 0xabd   : > { %2899 = vmatpush.msrb.mxu3 %v2858_v0 }
 0xac0   : > { %v9658_v2 = vpop.permute.xlu1 %9657  ;;  %9165 = vmatmul.msk.f32.vlgmr.msrb.gmra.mxu2 %vm1311_vm14, %v2517_v1 }
 0xac1   : > { %v9660_v3 = vunpack.i.h.bf16 %v9658_v2  ;;  %v9659_v4 = vunpack.i.l.bf16 %v9658_v2  ;;  %9166 = vmatmul.msk.f32.vlgmr.msrb.gmra.mxu3 %vm1311_vm14, %v2517_v1  ;;  %v2930_v2 = vld [vmem:[%s12077_s13] sm:$0xff] }
 0xac3   : > { %v2802_v8 = vsel %vm1140_vm11, %v9659_v4, %v9660_v3  ;;  %v2803_v9 = vsel %vm1140_vm11, %v9660_v3, %v2801_v5  ;;  %v2909_v49 = vpop.permute.xlu0 %2908 }
 0xac4   : > { %2824 = vmatpush.msrb.mxu0 %v2802_v8  ;;  %2844 = vmatpush.msrb.mxu1 %v2803_v9 }
 0xac5   : > { %9163 = vmatmul.msk.f32.vlgmr.msrb.gmra.mxu0 %vm1311_vm14, %v2516_v6  ;;  %9164 = vmatmul.msk.f32.vlgmr.msrb.gmra.mxu1 %vm1311_vm14, %v2516_v6 }
 0xb15   : > { %v10880_v10 = vpop.f32.mrf.mxu1  ;;  %v10882_v11 = vpop.f32.mrf.mxu0 }
 0xb20   : > { %v10884_v13 = vpop.f32.mrf.mxu2  ;;  %v10886_v15 = vpop.f32.mrf.mxu3 }
 0xb22   : > { %v10890_v16 = vpop.f32.mrf.mxu0 }
 0xb24   : > { %v10888_v41 = vpop.f32.mrf.mxu1 }
 0xb28   : > { %v2555_v17 = vpop.f32.mrf.mxu2 }
 0xb2a   : > { %v2575_v18 = vpop.f32.mrf.mxu3  ;;  %v2608_v19 = vpop.f32.mrf.mxu0 }
 0xb2b   : > { %v2609_v25 = vadd.f32 %v2608_v19, %v2555_v17 }
 0xb2e   : > { %v2628_v42 = vpop.f32.mrf.mxu1 }
 0xb2f   : > { %v2629_v20 = vadd.f32 %v2628_v42, %v2575_v18 }
 0xb33   : > { %v2661_v21 = vpop.f32.mrf.mxu2  ;;  %v2681_v22 = vpop.f32.mrf.mxu3 }
 0xb34   : > { %v2685_v23 = vadd.f32 %v2681_v22, %v2629_v20  ;;  %v2684_v27 = vadd.f32 %v2661_v21, %v2609_v25 }
 0xb35   : > { %v2716_v26 = vpop.f32.mrf.mxu0 }
 0xb36   : > { %v2739_v31 = vadd.f32 %v2716_v26, %v2684_v27 }
 0xb38   : > { %v2736_v24 = vpop.f32.mrf.mxu1 }
 0xb39   : > { %v2740_v28 = vadd.f32 %v2736_v24, %v2685_v23  ;;  %v2931_v23 = vld [vmem:[%s12077_s13 + $0x8] sm:$0xff] }
 0xb3b   : > { %v2771_v29 = vpop.f32.mrf.mxu2 }
 0xb3c   : > { %v2791_v30 = vpop.f32.mrf.mxu3  ;;  %v2794_v33 = vadd.f32 %v2771_v29, %v2739_v31 }
 0xb3d   : > { %v2795_v32 = vadd.f32 %v2791_v30, %v2740_v28 }
 0xb42   : > { %v2826_v34 = vpop.f32.mrf.mxu0  ;;  %v2846_v37 = vpop.f32.mrf.mxu1 }
 0xb43   : > { %v2849_v38 = vadd.f32 %v2826_v34, %v2794_v33  ;;  %v2850_v40 = vadd.f32 %v2846_v37, %v2795_v32  ;;  %v2881_v43 = vpop.f32.mrf.mxu2  ;;  %v2932_v37 = vld [vmem:[%s12077_s13 + $0x10] sm:$0xff] }
 0xb44   : > { %v2901_v45 = vpop.f32.mrf.mxu3 }
 0xb45   : > { %v2904_v47 = vadd.f32 %v2881_v43, %v2849_v38  ;;  %v2905_v48 = vadd.f32 %v2901_v45, %v2850_v40  ;;  %v2933_v45 = vld [vmem:[%s12077_s13 + $0x18] sm:$0xff] }
 0xb47   : > { %v2911_v7 = vadd.f32 %v2909_v49, %v2904_v47  ;;  %v2912_v50 = vadd.f32 %v2909_v49, %v2905_v48 }
 0xb49   : > { %v2913_v51 = vmul.f32 0.2, %v2911_v7  ;;  %v2914_v52 = vmul.f32 0.2, %v2912_v50 }
 0xb4b   : > { %v2916_v12 = vmax.f32 %v2912_v50, %v2914_v52  ;;  %v2915_v53 = vmax.f32 %v2911_v7, %v2913_v51  ;;  %v2934_v50 = vld [vmem:[%s12077_s13 + $0x20] sm:$0xff]  ;;  %v2935_v51 = vld [vmem:[%s12077_s13 + $0x28] sm:$0xff] }
 0xb4d   : > { %2921 = vrot.lane.b32.xlu2 %v2916_v12, %s12190_s6  ;;  %2919 = vrot.lane.b32.xlu1 %v2915_v53, %s12190_s6 }
 0xba7   : > { %v2922_v54 = vpop.permute.xlu2 %2921 }
 0xba8   : > { %2929 = vst.msk [vmem:[#allocation2 + $0x10] sm:$0xff] %vm822_vm2, %v2922_v54 }
 0xbaf   : > { %v2940_v55 = vld [vmem:[#allocation2 + $0x10] sm:$0xff] }
 0xbb0   : > { %3054 = vrot.lane.b32.xlu2 %v2940_v55, %s12186_s0  ;;  %3001 = vrot.lane.b32.xlu0 %v2940_v55, %s12195_s4 }
 0xbb1   : > { %2948 = vrot.lane.b32.xlu1 %v2940_v55, %s12199_s23 }
 0xbb9   : > { %3109 = vrot.lane.b32.xlu1 %v2940_v55, %s12191_s7 }
 0xbbf   : > { %v2920_v56 = vpop.permute.xlu1 %2919 }
 0xbc0   : > { %2927 = vst.msk [vmem:[#allocation2] sm:$0xff] %vm1287_vm13, %v2920_v56  ;;  %v2923_v57 = vsel %vm822_vm2, %v2920_v56, %v2922_v54 }
 0xbc7   : > { %v2938_v58 = vld [vmem:[#allocation2] sm:$0xff] }
 0xbc8   : > { %v9671_v59 = vpack.i.bf16 %v2923_v57, %v2938_v58 }
 0xbca   : > { %9672 = vrot.lane.b32.xlu1 %v9671_v59, %s12186_s0  ;;  %9667 = vrot.lane.b32.xlu2 %v9671_v59, %s12195_s4 }
 0xbcb   : > { %9662 = vrot.lane.b32.xlu0 %v9671_v59, %s12199_s23 }
 0xbd2   : > { %9687 = vrot.lane.b32.xlu1 %v9671_v59, %s12200_s5  ;;  %9682 = vrot.lane.b32.xlu2 %v9671_v59, %s12187_s1 }
 0xbd3   : > { %9677 = vrot.lane.b32.xlu0 %v9671_v59, %s12191_s7 }
 0xbda   : > { %3274 = vrot.lane.b32.xlu1 %v2940_v55, %s12194_s24  ;;  %3219 = vrot.lane.b32.xlu2 %v2940_v55, %s12200_s5 }
 0xbdb   : > { %3164 = vrot.lane.b32.xlu0 %v2940_v55, %s12187_s1  ;;  %v2936_v55 = vld [vmem:[%s12077_s13 + $0x30] sm:$0xff] }
 0xbe2   : > { %3327 = vperm.xlu2 %9533, %v2937_v60  }
 0xbe3   : > { %9692 = vrot.lane.b32.xlu0 %v9671_v59, %s12194_s24 }
 0xc0a   : > { %v3055_v61 = vpop.permute.xlu2 %3054 }
 0xc22   : > { %v3002_v1 = vpop.permute.xlu0 %3001 }
 0xc23   : > { %v2949_v5 = vpop.permute.xlu1 %2948 }
 0xc24   : > { %v9668_v62 = vpop.permute.xlu2 %9667 }
 0xc25   : > { %v9670_v63 = vunpack.i.h.bf16 %v9668_v62  ;;  %v9669_v0 = vunpack.i.l.bf16 %v9668_v62 }
 0xc27   : > { %v3003_v3 = vsel %vm910_vm4, %v9669_v0, %v9670_v63  ;;  %v3004_v4 = vsel %vm910_vm4, %v9670_v63, %v3002_v1 }
 0xc28   : > { %3025 = vmatpush.msra.mxu2 %v3003_v3  ;;  %3045 = vmatpush.msra.mxu3 %v3004_v4 }
 0xc29   : > { %9170 = vmatmul.msk.f32.vlgmr.msra.gmra.mxu3 %vm1311_vm14, %v2930_v2  ;;  %9169 = vmatmul.msk.f32.vlgmr.msra.gmra.mxu2 %vm1311_vm14, %v2930_v2 }
 0xc2b   : > { %v3110_v6 = vpop.permute.xlu1 %3109 }
 0xc2c   : > { %v9683_v8 = vpop.permute.xlu2 %9682 }
 0xc2d   : > { %v9685_v21 = vunpack.i.h.bf16 %v9683_v8  ;;  %v9684_v22 = vunpack.i.l.bf16 %v9683_v8 }
 0xc2f   : > { %v3166_v28 = vsel %vm1082_vm9, %v9684_v22, %v9685_v21 }
 0xc34   : > { %v3220_v38 = vpop.permute.xlu2 %3219 }
 0xc3c   : > { %v9673_v9 = vpop.permute.xlu1 %9672 }
 0xc3d   : > { %v9663_v17 = vpop.permute.xlu0 %9662  ;;  %v9675_v18 = vunpack.i.h.bf16 %v9673_v9  ;;  %v9674_v42 = vunpack.i.l.bf16 %v9673_v9 }
 0xc3e   : > { %v9665_v19 = vunpack.i.h.bf16 %v9663_v17  ;;  %v9664_v20 = vunpack.i.l.bf16 %v9663_v17 }
 0xc3f   : > { %v3056_v26 = vsel %vm966_vm10, %v9674_v42, %v9675_v18  ;;  %v3057_v27 = vsel %vm966_vm10, %v9675_v18, %v3055_v61 }
 0xc40   : > { %v2950_v24 = vsel %vm852_vm8, %v9664_v20, %v9665_v19  ;;  %v2951_v25 = vsel %vm852_vm8, %v9665_v19, %v2949_v5 }
 0xc41   : > { %2972 = vmatpush.msra.mxu0 %v2950_v24  ;;  %2992 = vmatpush.msra.mxu1 %v2951_v25 }
 0xc42   : > { %9167 = vmatmul.msk.f32.vlgmr.msra.gmra.mxu0 %vm1311_vm14, %v2931_v23  ;;  %9168 = vmatmul.msk.f32.vlgmr.msra.gmra.mxu1 %vm1311_vm14, %v2931_v23 }
 0xc43   : > { %3078 = vmatpush.msrb.mxu0 %v3056_v26  ;;  %3098 = vmatpush.msrb.mxu1 %v3057_v27  ;;  %v3328_v27 = vpop.permute.xlu2 %3327 }
 0xc44   : > { %v9688_v29 = vpop.permute.xlu1 %9687 }
 0xc45   : > { %3188 = vmatpush.msra.mxu0 %v3166_v28  ;;  %v9678_v30 = vpop.permute.xlu0 %9677  ;;  %v9690_v31 = vunpack.i.h.bf16 %v9688_v29  ;;  %v9689_v32 = vunpack.i.l.bf16 %v9688_v29 }
 0xc46   : > { %v9680_v33 = vunpack.i.h.bf16 %v9678_v30  ;;  %v9679_v34 = vunpack.i.l.bf16 %v9678_v30 }
 0xc47   : > { %v3221_v47 = vsel %vm1140_vm11, %v9689_v32, %v9690_v31  ;;  %v3222_v48 = vsel %vm1140_vm11, %v9690_v31, %v3220_v38 }
 0xc48   : > { %v3111_v40 = vsel %vm1024_vm7, %v9679_v34, %v9680_v33  ;;  %v3112_v43 = vsel %vm1024_vm7, %v9680_v33, %v3110_v6 }
 0xc49   : > { %3133 = vmatpush.msrb.mxu2 %v3111_v40  ;;  %3153 = vmatpush.msrb.mxu3 %v3112_v43 }
 0xc4a   : > { %9171 = vmatmul.msk.f32.vlgmr.msrb.gmra.mxu0 %vm1311_vm14, %v2932_v37  ;;  %9172 = vmatmul.msk.f32.vlgmr.msrb.gmra.mxu1 %vm1311_vm14, %v2932_v37 }
 0xc4b   : > { %9173 = vmatmul.msk.f32.vlgmr.msrb.gmra.mxu2 %vm1311_vm14, %v2933_v45  ;;  %9174 = vmatmul.msk.f32.vlgmr.msrb.gmra.mxu3 %vm1311_vm14, %v2933_v45 }
 0xc4c   : > { %3243 = vmatpush.msra.mxu2 %v3221_v47  ;;  %3263 = vmatpush.msra.mxu3 %v3222_v48  ;;  %v3275_v54 = vpop.permute.xlu1 %3274  ;;  %v9188_v47 = vld [vmem:[%s12076_s12 + $0x8] sm:$0xff] }
 0xc4d   : > { %v3165_v49 = vpop.permute.xlu0 %3164 }
 0xc4e   : > { %v3167_v7 = vsel %vm1082_vm9, %v9685_v21, %v3165_v49 }
 0xc4f   : > { %3208 = vmatpush.msra.mxu1 %v3167_v7 }
 0xc52   : > { %9175 = vmatmul.msk.f32.vlgmr.msra.gmra.mxu0 %vm1311_vm14, %v2934_v50  ;;  %9176 = vmatmul.msk.f32.vlgmr.msra.gmra.mxu1 %vm1311_vm14, %v2934_v50  ;;  %v9182_v50 = vld [vmem:[%s12201_s11 + $0x40] sm:$0xff] }
 0xc53   : > { %9177 = vmatmul.msk.f32.vlgmr.msra.gmra.mxu2 %vm1311_vm14, %v2935_v51  ;;  %9178 = vmatmul.msk.f32.vlgmr.msra.gmra.mxu3 %vm1311_vm14, %v2935_v51 }
 0xc55   : > { %v9693_v52 = vpop.permute.xlu0 %9692 }
 0xc56   : > { %v9695_v12 = vunpack.i.h.bf16 %v9693_v52  ;;  %v9694_v53 = vunpack.i.l.bf16 %v9693_v52 }
 0xc58   : > { %v3276_v56 = vsel %vm1198_vm12, %v9694_v53, %v9695_v12  ;;  %v3277_v57 = vsel %vm1198_vm12, %v9695_v12, %v3275_v54 }
 0xc59   : > { %3298 = vmatpush.msrb.mxu0 %v3276_v56  ;;  %3318 = vmatpush.msrb.mxu1 %v3277_v57 }
 0xc5a   : > { %9179 = vmatmul.msk.f32.vlgmr.msrb.gmra.mxu0 %vm1311_vm14, %v2936_v55  ;;  %9180 = vmatmul.msk.f32.vlgmr.msrb.gmra.mxu1 %vm1311_vm14, %v2936_v55 }
 0xcac   : > { %v3027_v60 = vpop.f32.mrf.mxu2  ;;  %v3047_v61 = vpop.f32.mrf.mxu3 }
 0xcbf   : > { %v2974_v58 = vpop.f32.mrf.mxu0  ;;  %v2994_v59 = vpop.f32.mrf.mxu1 }
 0xcc0   : > { %v3028_v0 = vadd.f32 %v3027_v60, %v2974_v58  ;;  %v3048_v1 = vadd.f32 %v3047_v61, %v2994_v59 }
 0xcc7   : > { %v3080_v62 = vpop.f32.mrf.mxu0  ;;  %v3100_v63 = vpop.f32.mrf.mxu1 }
 0xcc8   : > { %v3103_v2 = vadd.f32 %v3080_v62, %v3028_v0  ;;  %v3104_v5 = vadd.f32 %v3100_v63, %v3048_v1  ;;  %v9183_v1 = vld [vmem:[%s12201_s11 + $0x48] sm:$0xff] }
 0xcce   : > { %v3135_v3 = vpop.f32.mrf.mxu2  ;;  %v3155_v4 = vpop.f32.mrf.mxu3 }
 0xccf   : > { %v3190_v6 = vpop.f32.mrf.mxu0  ;;  %v3210_v8 = vpop.f32.mrf.mxu1  ;;  %v3158_v9 = vadd.f32 %v3135_v3, %v3103_v2  ;;  %v3159_v17 = vadd.f32 %v3155_v4, %v3104_v5 }
 0xcd1   : > { %v3213_v18 = vadd.f32 %v3190_v6, %v3158_v9  ;;  %v3214_v42 = vadd.f32 %v3210_v8, %v3159_v17 }
 0xcd6   : > { %v3245_v19 = vpop.f32.mrf.mxu2  ;;  %v3265_v20 = vpop.f32.mrf.mxu3 }
 0xcd7   : > { %v3268_v21 = vadd.f32 %v3245_v19, %v3213_v18  ;;  %v3269_v22 = vadd.f32 %v3265_v20, %v3214_v42  ;;  %v3300_v23 = vpop.f32.mrf.mxu0  ;;  %v3320_v24 = vpop.f32.mrf.mxu1  ;;  %v9181_v20 = vld [vmem:[%s12201_s11 + $0x38] sm:$0xff] }
 0xcd9   : > { %v3323_v25 = vadd.f32 %v3300_v23, %v3268_v21  ;;  %v3324_v26 = vadd.f32 %v3320_v24, %v3269_v22 }
 0xcdb   : > { %v3330_v28 = vadd.f32 %v3328_v27, %v3323_v25  ;;  %v3331_v29 = vadd.f32 %v3328_v27, %v3324_v26  ;;  %v9185_v25 = vld [vmem:[%s12201_s11 + $0x58] sm:$0xff] }
 0xcdd   : > { %v10964_v30 = vadd.f32 %v3330_v28, %v10754_v14  ;;  %v10967_v31 = vadd.f32 %v3331_v29, %v10771_v44 }
 0xcdf   : > { %v3335_v32 = vmul.f32 0.2, %v10967_v31  ;;  %v3334_v33 = vmul.f32 0.2, %v10964_v30 }
 0xce1   : > { %v3337_v34 = vmax.f32 %v10967_v31, %v3335_v32  ;;  %v3336_v37 = vmax.f32 %v10964_v30, %v3334_v33  ;;  %v9184_v33 = vld [vmem:[%s12201_s11 + $0x50] sm:$0xff] }
 0xce3   : > { %3342 = vrot.lane.b32.xlu1 %v3337_v34, %s12190_s6  ;;  %3340 = vrot.lane.b32.xlu0 %v3336_v37, %s12190_s6 }
 0xd55   : > { %v3343_v38 = vpop.permute.xlu1 %3342  ;;  %v3341_v40 = vpop.permute.xlu0 %3340 }
 0xd56   : > { %3350 = vst.msk [vmem:[#allocation2 + $0x10] sm:$0xff] %vm822_vm2, %v3343_v38  ;;  %v3344_v44 = vsel %vm822_vm2, %v3341_v40, %v3343_v38  ;;  %v9187_v38 = vld [vmem:[%s12201_s11 + $0x68] sm:$0xff] }
 0xd57   : > { %3348 = vst.msk [vmem:[#allocation2] sm:$0xff] %vm1287_vm13, %v3341_v40 }
 0xd5d   : > { %v3363_v14 = vld [vmem:[#allocation2 + $0x10] sm:$0xff] }
 0xd5e   : > { %3425 = vrot.lane.b32.xlu1 %v3363_v14, %s12130_s28  ;;  %3371 = vrot.lane.b32.xlu0 %v3363_v14, %s12128_s27  ;;  %v3361_v43 = vld [vmem:[#allocation2] sm:$0xff] }
 0xd5f   : > { %v9696_v45 = vpack.i.bf16 %v3344_v44, %v3361_v43  ;;  %v9186_v44 = vld [vmem:[%s12201_s11 + $0x60] sm:$0xff] }
 0xd61   : > { %9697 = vrot.lane.b32.xlu2 %v9696_v45, %s12128_s27  ;;  %s12204_s27 = smov 109  }
 0xd66   : > { %3589 = vrot.lane.b32.xlu0 %v3363_v14, %s12194_s24  ;;  %9702 = vrot.lane.b32.xlu1 %v9696_v45, %s12195_s4 }
 0xd69   : > { %3479 = vrot.lane.b32.xlu2 %v3363_v14, %s12195_s4 }
 0xd6e   : > { %9707 = vrot.lane.b32.xlu0 %v9696_v45, %s12130_s28  ;;  %9717 = vrot.lane.b32.xlu1 %v9696_v45, %s12191_s7  ;;  %s12203_s28 = smov 112  }
 0xd71   : > { %9712 = vrot.lane.b32.xlu2 %v9696_v45, %s12194_s24 }
 0xd76   : > { %9722 = vrot.lane.b32.xlu0 %v9696_v45, %s12134_s15  ;;  %3700 = vrot.lane.b32.xlu1 %v3363_v14, %s12134_s15 }
 0xd79   : > { %3534 = vrot.lane.b32.xlu2 %v3363_v14, %s12191_s7 }
 0xd7e   : > { %3644 = vrot.lane.b32.xlu0 %v3363_v14, %s12132_s30  ;;  %3754 = vperm.xlu1 %9550, %v9188_v47  }
 0xd81   : > { %9727 = vrot.lane.b32.xlu2 %v9696_v45, %s12132_s30 }
 0xdbb   : > { %v9698_v48 = vpop.permute.xlu2 %9697 }
 0xdbc   : > { %v9700_v49 = vunpack.i.h.bf16 %v9698_v48  ;;  %v9699_v7 = vunpack.i.l.bf16 %v9698_v48 }
 0xdbe   : > { %v3374_v51 = vsel %vm12144_vm1, %v9699_v7, %v9700_v49 }
 0xdbf   : > { %3396 = vmatpush.msrb.mxu2 %v3374_v51 }
 0xdc0   : > { %9189 = vmatmul.msk.f32.vlgmr.msrb.gmra.mxu2 %vm1311_vm14, %v9182_v50 }
 0xdc3   : > { %v3480_v52 = vpop.permute.xlu2 %3479 }
 0xdcb   : > { %v9713_v12 = vpop.permute.xlu2 %9712 }
 0xdcc   : > { %v9715_v57 = vunpack.i.h.bf16 %v9713_v12  ;;  %v9714_v58 = vunpack.i.l.bf16 %v9713_v12 }
 0xdce   : > { %v3591_v3 = vsel %vm1198_vm12, %v9714_v58, %v9715_v57 }
 0xdd0   : > { %v3426_v53 = vpop.permute.xlu1 %3425  ;;  %v3372_v54 = vpop.permute.xlu0 %3371 }
 0xdd1   : > { %v3375_v55 = vsel %vm12144_vm1, %v9700_v49, %v3372_v54 }
 0xdd2   : > { %3416 = vmatpush.msrb.mxu3 %v3375_v55 }
 0xdd3   : > { %9190 = vmatmul.msk.f32.vlgmr.msrb.gmra.mxu3 %vm1311_vm14, %v9182_v50  ;;  %v3535_v56 = vpop.permute.xlu2 %3534 }
 0xdd8   : > { %v9703_v59 = vpop.permute.xlu1 %9702  ;;  %v3590_v60 = vpop.permute.xlu0 %3589 }
 0xdd9   : > { %v9705_v61 = vunpack.i.h.bf16 %v9703_v59  ;;  %v9704_v62 = vunpack.i.l.bf16 %v9703_v59  ;;  %v3592_v2 = vsel %vm1198_vm12, %v9715_v57, %v3590_v60 }
 0xddb   : > { %v3481_v63 = vsel %vm910_vm4, %v9704_v62, %v9705_v61  ;;  %v3482_v0 = vsel %vm910_vm4, %v9705_v61, %v3480_v52  ;;  %v9728_v4 = vpop.permute.xlu2 %9727 }
 0xddc   : > { %3503 = vmatpush.msra.mxu2 %v3481_v63  ;;  %3523 = vmatpush.msra.mxu3 %v3482_v0  ;;  %v9730_v42 = vunpack.i.h.bf16 %v9728_v4  ;;  %v9729_v19 = vunpack.i.l.bf16 %v9728_v4 }
 0xddd   : > { %9193 = vmatmul.msk.f32.vlgmr.msra.gmra.mxu2 %vm1311_vm14, %v9183_v1  ;;  %9194 = vmatmul.msk.f32.vlgmr.msra.gmra.mxu3 %vm1311_vm14, %v9183_v1 }
 0xdde   : > { %3613 = vmatpush.msrb.mxu2 %v3591_v3  ;;  %3633 = vmatpush.msrb.mxu3 %v3592_v2  ;;  %v3647_v26 = vsel %vm12142_vm5, %v9729_v19, %v9730_v42 }
 0xde0   : > { %v9718_v5 = vpop.permute.xlu1 %9717  ;;  %v9708_v6 = vpop.permute.xlu0 %9707 }
 0xde1   : > { %v9720_v8 = vunpack.i.h.bf16 %v9718_v5  ;;  %v9719_v9 = vunpack.i.l.bf16 %v9718_v5  ;;  %v9710_v17 = vunpack.i.h.bf16 %v9708_v6  ;;  %v9709_v18 = vunpack.i.l.bf16 %v9708_v6 }
 0xde3   : > { %v3428_v21 = vsel %vm12147_vm3, %v9709_v18, %v9710_v17  ;;  %v3429_v22 = vsel %vm12147_vm3, %v9710_v17, %v3426_v53  ;;  %v3536_v23 = vsel %vm1024_vm7, %v9719_v9, %v9720_v8  ;;  %v3537_v24 = vsel %vm1024_vm7, %v9720_v8, %v3535_v56 }
 0xde4   : > { %3450 = vmatpush.msra.mxu0 %v3428_v21  ;;  %3470 = vmatpush.msra.mxu1 %v3429_v22 }
 0xde5   : > { %9191 = vmatmul.msk.f32.vlgmr.msra.gmra.mxu0 %vm1311_vm14, %v9181_v20  ;;  %9192 = vmatmul.msk.f32.vlgmr.msra.gmra.mxu1 %vm1311_vm14, %v9181_v20 }
 0xde6   : > { %3558 = vmatpush.msrb.mxu0 %v3536_v23  ;;  %3578 = vmatpush.msrb.mxu1 %v3537_v24 }
 0xde7   : > { %9197 = vmatmul.msk.f32.vlgmr.msrb.gmra.mxu2 %vm1311_vm14, %v9185_v25  ;;  %9198 = vmatmul.msk.f32.vlgmr.msrb.gmra.mxu3 %vm1311_vm14, %v9185_v25  ;;  %v9210_v25 = vld [vmem:[%s12202_s14 + $0x8] sm:$0xff]  ;;  %s12206_s14 = smov 118  }
 0xde8   : > { %3669 = vmatpush.msra.mxu0 %v3647_v26  ;;  %v9723_v27 = vpop.permute.xlu0 %9722  ;;  %v3701_v32 = vpop.permute.xlu1 %3700 }
 0xde9   : > { %v9725_v28 = vunpack.i.h.bf16 %v9723_v27  ;;  %v9724_v29 = vunpack.i.l.bf16 %v9723_v27 }
 0xdeb   : > { %v3703_v34 = vsel %vm12143_vm6, %v9724_v29, %v9725_v28  ;;  %v3704_v37 = vsel %vm12143_vm6, %v9725_v28, %v3701_v32 }
 0xdec   : > { %3725 = vmatpush.msra.mxu2 %v3703_v34  ;;  %3745 = vmatpush.msra.mxu3 %v3704_v37 }
 0xded   : > { %9195 = vmatmul.msk.f32.vlgmr.msrb.gmra.mxu0 %vm1311_vm14, %v9184_v33  ;;  %9196 = vmatmul.msk.f32.vlgmr.msrb.gmra.mxu1 %vm1311_vm14, %v9184_v33 }
 0xdef   : > { %9201 = vmatmul.msk.f32.vlgmr.msra.gmra.mxu2 %vm1311_vm14, %v9187_v38  ;;  %9202 = vmatmul.msk.f32.vlgmr.msra.gmra.mxu3 %vm1311_vm14, %v9187_v38 }
 0xdf0   : > { %v3645_v40 = vpop.permute.xlu0 %3644  ;;  %v3755_v5 = vpop.permute.xlu1 %3754 }
 0xdf1   : > { %v3648_v14 = vsel %vm12142_vm5, %v9730_v42, %v3645_v40 }
 0xdf2   : > { %3689 = vmatpush.msra.mxu1 %v3648_v14 }
 0xdf5   : > { %9199 = vmatmul.msk.f32.vlgmr.msra.gmra.mxu0 %vm1311_vm14, %v9186_v44  ;;  %9200 = vmatmul.msk.f32.vlgmr.msra.gmra.mxu1 %vm1311_vm14, %v9186_v44 }
 0xe43   : > { %v3398_v43 = vpop.f32.mrf.mxu2 }
 0xe56   : > { %v3418_v45 = vpop.f32.mrf.mxu3 }
 0xe60   : > { %v3505_v47 = vpop.f32.mrf.mxu2  ;;  %v3525_v48 = vpop.f32.mrf.mxu3 }
 0xe62   : > { %v3452_v49 = vpop.f32.mrf.mxu0  ;;  %v3472_v7 = vpop.f32.mrf.mxu1 }
 0xe63   : > { %v3453_v50 = vadd.f32 %v3452_v49, %v3398_v43  ;;  %v3473_v51 = vadd.f32 %v3472_v7, %v3418_v45  ;;  %v9204_v7 = vld [vmem:[%s12077_s13 + $0x40] sm:$0xff] }
 0xe65   : > { %v3528_v52 = vadd.f32 %v3505_v47, %v3453_v50  ;;  %v3529_v54 = vadd.f32 %v3525_v48, %v3473_v51  ;;  %v9203_v50 = vld [vmem:[%s12077_s13 + $0x38] sm:$0xff] }
 0xe6a   : > { %v3560_v12 = vpop.f32.mrf.mxu0  ;;  %v3580_v53 = vpop.f32.mrf.mxu1 }
 0xe6b   : > { %v3583_v55 = vadd.f32 %v3560_v12, %v3528_v52  ;;  %v3615_v56 = vpop.f32.mrf.mxu2  ;;  %v3635_v57 = vpop.f32.mrf.mxu3  ;;  %v3584_v58 = vadd.f32 %v3580_v53, %v3529_v54 }
 0xe6d   : > { %v3638_v59 = vadd.f32 %v3615_v56, %v3583_v55  ;;  %v3639_v60 = vadd.f32 %v3635_v57, %v3584_v58 }
 0xe72   : > { %v3671_v61 = vpop.f32.mrf.mxu0  ;;  %v3691_v62 = vpop.f32.mrf.mxu1 }
 0xe73   : > { %v3694_v63 = vadd.f32 %v3671_v61, %v3638_v59  ;;  %v3695_v0 = vadd.f32 %v3691_v62, %v3639_v60  ;;  %v3727_v1 = vpop.f32.mrf.mxu2  ;;  %v3747_v2 = vpop.f32.mrf.mxu3 }
 0xe75   : > { %v3750_v3 = vadd.f32 %v3727_v1, %v3694_v63  ;;  %v3751_v4 = vadd.f32 %v3747_v2, %v3695_v0  ;;  %v9205_v0 = vld [vmem:[%s12077_s13 + $0x48] sm:$0xff]  ;;  %v9206_v1 = vld [vmem:[%s12077_s13 + $0x50] sm:$0xff] }
 0xe77   : > { %v3757_v6 = vadd.f32 %v3755_v5, %v3750_v3  ;;  %v3758_v8 = vadd.f32 %v3755_v5, %v3751_v4 }
 0xe79   : > { %v3759_v9 = vmul.f32 0.2, %v3757_v6  ;;  %v3760_v17 = vmul.f32 0.2, %v3758_v8 }
 0xe7b   : > { %v3762_v18 = vmax.f32 %v3758_v8, %v3760_v17  ;;  %v3761_v42 = vmax.f32 %v3757_v6, %v3759_v9  ;;  %v9207_v8 = vld [vmem:[%s12077_s13 + $0x58] sm:$0xff]  ;;  %v9208_v9 = vld [vmem:[%s12077_s13 + $0x60] sm:$0xff] }
 0xe7d   : > { %3767 = vrot.lane.b32.xlu0 %v3762_v18, %s12190_s6  ;;  %3765 = vrot.lane.b32.xlu2 %v3761_v42, %s12190_s6 }
 0xed7   : > { %v3766_v19 = vpop.permute.xlu2 %3765 }
 0xed8   : > { %3773 = vst.msk [vmem:[#allocation2] sm:$0xff] %vm1287_vm13, %v3766_v19 }
 0xedf   : > { %v3786_v23 = vld [vmem:[#allocation2] sm:$0xff] }
 0xeef   : > { %v3768_v20 = vpop.permute.xlu0 %3767 }
 0xef0   : > { %3775 = vst.msk [vmem:[#allocation2 + $0x10] sm:$0xff] %vm822_vm2, %v3768_v20  ;;  %v3769_v22 = vsel %vm822_vm2, %v3766_v19, %v3768_v20 }
 0xef1   : > { %v9736_v24 = vpack.i.bf16 %v3769_v22, %v3786_v23  ;;  %v9209_v22 = vld [vmem:[%s12077_s13 + $0x68] sm:$0xff] }
 0xef7   : > { %v3788_v21 = vld [vmem:[#allocation2 + $0x10] sm:$0xff] }
 0xef8   : > { %3902 = vrot.lane.b32.xlu0 %v3788_v21, %s12195_s4  ;;  %3849 = vrot.lane.b32.xlu1 %v3788_v21, %s12203_s28 }
 0xef9   : > { %3796 = vrot.lane.b32.xlu2 %v3788_v21, %s12204_s27 }
 0xf00   : > { %9737 = vrot.lane.b32.xlu0 %v9736_v24, %s12203_s28  ;;  %9732 = vrot.lane.b32.xlu1 %v9736_v24, %s12204_s27 }
 0xf01   : > { %3957 = vrot.lane.b32.xlu2 %v3788_v21, %s12191_s7 }
 0xf08   : > { %9752 = vrot.lane.b32.xlu0 %v9736_v24, %s12194_s24  ;;  %9747 = vrot.lane.b32.xlu1 %v9736_v24, %s12191_s7 }
 0xf09   : > { %9742 = vrot.lane.b32.xlu2 %v9736_v24, %s12195_s4 }
 0xf10   : > { %4067 = vrot.lane.b32.xlu0 %v3788_v21, %s12132_s30  ;;  %4012 = vrot.lane.b32.xlu1 %v3788_v21, %s12194_s24 }
 0xf11   : > { %9757 = vrot.lane.b32.xlu2 %v9736_v24, %s12132_s30  ;;  %s12148_s30 = smov 93  }
 0xf18   : > { %4175 = vperm.xlu0 %9534, %v9210_v25   ;;  %9762 = vrot.lane.b32.xlu1 %v9736_v24, %s12134_s15 }
 0xf19   : > { %4122 = vrot.lane.b32.xlu2 %v3788_v21, %s12134_s15  ;;  %s12145_s15 = smov 88  }
 0xf53   : > { %v3797_v26 = vpop.permute.xlu2 %3796 }
 0xf5b   : > { %v3958_v27 = vpop.permute.xlu2 %3957 }
 0xf63   : > { %v9743_v32 = vpop.permute.xlu2 %9742 }
 0xf64   : > { %v9745_v44 = vunpack.i.h.bf16 %v9743_v32  ;;  %v9744_v43 = vunpack.i.l.bf16 %v9743_v32 }
 0xf66   : > { %v3904_v12 = vsel %vm910_vm4, %v9744_v43, %v9745_v44 }
 0xf6a   : > { %v3903_v28 = vpop.permute.xlu0 %3902  ;;  %v3850_v29 = vpop.permute.xlu1 %3849 }
 0xf6b   : > { %v9758_v51 = vpop.permute.xlu2 %9757  ;;  %v3905_v52 = vsel %vm910_vm4, %v9745_v44, %v3903_v28 }
 0xf6c   : > { %v9760_v53 = vunpack.i.h.bf16 %v9758_v51  ;;  %v9759_v54 = vunpack.i.l.bf16 %v9758_v51 }
 0xf6e   : > { %v4069_v2 = vsel %vm12142_vm5, %v9759_v54, %v9760_v53 }
 0xf72   : > { %v9738_v33 = vpop.permute.xlu0 %9737  ;;  %v9733_v34 = vpop.permute.xlu1 %9732 }
 0xf73   : > { %v9740_v37 = vunpack.i.h.bf16 %v9738_v33  ;;  %v9739_v38 = vunpack.i.l.bf16 %v9738_v33  ;;  %v9735_v40 = vunpack.i.h.bf16 %v9733_v34  ;;  %v9734_v14 = vunpack.i.l.bf16 %v9733_v34  ;;  %v4123_v19 = vpop.permute.xlu2 %4122 }
 0xf75   : > { %v3798_v45 = vsel %vm12144_vm1, %v9734_v14, %v9735_v40  ;;  %v3799_v47 = vsel %vm12144_vm1, %v9735_v40, %v3797_v26  ;;  %v3851_v48 = vsel %vm12147_vm3, %v9739_v38, %v9740_v37  ;;  %v3852_v49 = vsel %vm12147_vm3, %v9740_v37, %v3850_v29 }
 0xf76   : > { %3820 = vmatpush.msrb.mxu0 %v3798_v45  ;;  %3840 = vmatpush.msrb.mxu1 %v3799_v47  ;;  %vm4550_vm1 = vcmask 719872   ;;  %vm12153_vm3 = vcmask 760832  }
 0xf77   : > { %3873 = vmatpush.msrb.mxu2 %v3851_v48  ;;  %3893 = vmatpush.msrb.mxu3 %v3852_v49 }
 0xf78   : > { %9211 = vmatmul.msk.f32.vlgmr.msrb.gmra.mxu0 %vm1311_vm14, %v9204_v7  ;;  %9212 = vmatmul.msk.f32.vlgmr.msrb.gmra.mxu1 %vm1311_vm14, %v9204_v7 }
 0xf79   : > { %9213 = vmatmul.msk.f32.vlgmr.msrb.gmra.mxu2 %vm1311_vm14, %v9203_v50  ;;  %9214 = vmatmul.msk.f32.vlgmr.msrb.gmra.mxu3 %vm1311_vm14, %v9203_v50 }
 0xf7a   : > { %3926 = vmatpush.msra.mxu0 %v3904_v12  ;;  %3946 = vmatpush.msra.mxu1 %v3905_v52  ;;  %v9753_v55 = vpop.permute.xlu0 %9752  ;;  %v9748_v56 = vpop.permute.xlu1 %9747 }
 0xf7b   : > { %v9755_v57 = vunpack.i.h.bf16 %v9753_v55  ;;  %v9754_v58 = vunpack.i.l.bf16 %v9753_v55  ;;  %v9750_v59 = vunpack.i.h.bf16 %v9748_v56  ;;  %v9749_v60 = vunpack.i.l.bf16 %v9748_v56 }
 0xf7d   : > { %v3959_v61 = vsel %vm1024_vm7, %v9749_v60, %v9750_v59  ;;  %v3960_v62 = vsel %vm1024_vm7, %v9750_v59, %v3958_v27  ;;  %v4014_v63 = vsel %vm1198_vm12, %v9754_v58, %v9755_v57 }
 0xf7e   : > { %3981 = vmatpush.msra.mxu2 %v3959_v61  ;;  %4001 = vmatpush.msra.mxu3 %v3960_v62 }
 0xf7f   : > { %4036 = vmatpush.msrb.mxu0 %v4014_v63 }
 0xf80   : > { %4091 = vmatpush.msrb.mxu2 %v4069_v2  ;;  %9215 = vmatmul.msk.f32.vlgmr.msra.gmra.mxu0 %vm1311_vm14, %v9205_v0 }
 0xf81   : > { %9216 = vmatmul.msk.f32.vlgmr.msra.gmra.mxu1 %vm1311_vm14, %v9205_v0  ;;  %9217 = vmatmul.msk.f32.vlgmr.msra.gmra.mxu2 %vm1311_vm14, %v9206_v1 }
 0xf82   : > { %9218 = vmatmul.msk.f32.vlgmr.msra.gmra.mxu3 %vm1311_vm14, %v9206_v1  ;;  %v4068_v3 = vpop.permute.xlu0 %4067  ;;  %v4013_v4 = vpop.permute.xlu1 %4012 }
 0xf83   : > { %v4070_v5 = vsel %vm12142_vm5, %v9760_v53, %v4068_v3  ;;  %v4015_v6 = vsel %vm1198_vm12, %v9755_v57, %v4013_v4  ;;  %v9232_v3 = vld [vmem:[%s12076_s12 + $0x10] sm:$0xff]  ;;  %v5052_v4 = vld [vmem:[%s12085_s21] sm:$0xff]  ;;  %vm12152_vm5 = vcmask 924672  }
 0xf84   : > { %4056 = vmatpush.msrb.mxu1 %v4015_v6  ;;  %4111 = vmatpush.msrb.mxu3 %v4070_v5 }
 0xf88   : > { %9219 = vmatmul.msk.f32.vlgmr.msrb.gmra.mxu0 %vm1311_vm14, %v9207_v8 }
 0xf89   : > { %9220 = vmatmul.msk.f32.vlgmr.msrb.gmra.mxu1 %vm1311_vm14, %v9207_v8  ;;  %9221 = vmatmul.msk.f32.vlgmr.msrb.gmra.mxu2 %vm1311_vm14, %v9208_v9 }
 0xf8a   : > { %9222 = vmatmul.msk.f32.vlgmr.msrb.gmra.mxu3 %vm1311_vm14, %v9208_v9  ;;  %v9763_v17 = vpop.permute.xlu1 %9762  ;;  %v4176_v54 = vpop.permute.xlu0 %4175 }
 0xf8b   : > { %v9765_v18 = vunpack.i.h.bf16 %v9763_v17  ;;  %v9764_v42 = vunpack.i.l.bf16 %v9763_v17 }
 0xf8d   : > { %v4124_v20 = vsel %vm12143_vm6, %v9764_v42, %v9765_v18  ;;  %v4125_v21 = vsel %vm12143_vm6, %v9765_v18, %v4123_v19  ;;  %vm4275_vm6 = vcmask 965632  }
 0xf8e   : > { %4146 = vmatpush.msra.mxu0 %v4124_v20  ;;  %4166 = vmatpush.msra.mxu1 %v4125_v21 }
 0xf90   : > { %9223 = vmatmul.msk.f32.vlgmr.msra.gmra.mxu0 %vm1311_vm14, %v9209_v22 }
 0xf91   : > { %9224 = vmatmul.msk.f32.vlgmr.msra.gmra.mxu1 %vm1311_vm14, %v9209_v22 }
 0xff5   : > { %v3822_v23 = vpop.f32.mrf.mxu0  ;;  %v3842_v24 = vpop.f32.mrf.mxu1 }
 0xffc   : > { %v3875_v25 = vpop.f32.mrf.mxu2  ;;  %v3895_v26 = vpop.f32.mrf.mxu3 }
 0xffd   : > { %v3896_v27 = vadd.f32 %v3895_v26, %v3842_v24  ;;  %v3928_v28 = vpop.f32.mrf.mxu0  ;;  %v3876_v32 = vadd.f32 %v3875_v25, %v3822_v23 }
 0xffe   : > { %v3948_v29 = vpop.f32.mrf.mxu1 }
 0xfff   : > { %v3952_v33 = vadd.f32 %v3948_v29, %v3896_v27  ;;  %v3951_v38 = vadd.f32 %v3928_v28, %v3876_v32  ;;  %v9226_v29 = vld [vmem:[%s12201_s11 + $0x78] sm:$0xff] }
0x1004   : > { %v3983_v34 = vpop.f32.mrf.mxu2 }
0x1005   : > { %v4003_v37 = vpop.f32.mrf.mxu3  ;;  %v4038_v14 = vpop.f32.mrf.mxu0  ;;  %v4006_v43 = vadd.f32 %v3983_v34, %v3951_v38 }
0x1006   : > { %v4007_v40 = vadd.f32 %v4003_v37, %v3952_v33  ;;  %v4058_v44 = vpop.f32.mrf.mxu1  ;;  %v9225_v37 = vld [vmem:[%s12201_s11 + $0x70] sm:$0xff] }
0x1007   : > { %v4061_v47 = vadd.f32 %v4038_v14, %v4006_v43  ;;  %v9228_v43 = vld [vmem:[%s12201_s11 + $0x88] sm:$0xff] }
0x1008   : > { %v4062_v45 = vadd.f32 %v4058_v44, %v4007_v40  ;;  %v9227_v44 = vld [vmem:[%s12201_s11 + $0x80] sm:$0xff] }
0x100c   : > { %v4093_v48 = vpop.f32.mrf.mxu2 }
0x100d   : > { %v4113_v49 = vpop.f32.mrf.mxu3  ;;  %v4116_v7 = vadd.f32 %v4093_v48, %v4061_v47  ;;  %v4148_v51 = vpop.f32.mrf.mxu0 }
0x100e   : > { %v4117_v50 = vadd.f32 %v4113_v49, %v4062_v45  ;;  %v4168_v52 = vpop.f32.mrf.mxu1 }
0x100f   : > { %v4171_v12 = vadd.f32 %v4148_v51, %v4116_v7  ;;  %v9229_v51 = vld [vmem:[%s12201_s11 + $0x90] sm:$0xff] }
0x1010   : > { %v4172_v53 = vadd.f32 %v4168_v52, %v4117_v50 }
0x1011   : > { %v4178_v55 = vadd.f32 %v4176_v54, %v4171_v12 }
0x1012   : > { %v4179_v56 = vadd.f32 %v4176_v54, %v4172_v53 }
0x1013   : > { %v11116_v57 = vadd.f32 %v4178_v55, %v10964_v30 }
0x1014   : > { %v11119_v58 = vadd.f32 %v4179_v56, %v10967_v31 }
0x1015   : > { %v4182_v60 = vmul.f32 0.2, %v11116_v57 }
0x1016   : > { %v4183_v59 = vmul.f32 0.2, %v11119_v58 }
0x1017   : > { %v4184_v62 = vmax.f32 %v11116_v57, %v4182_v60  ;;  %v9231_v60 = vld [vmem:[%s12201_s11 + $0xa0] sm:$0xff] }
0x1018   : > { %v4185_v61 = vmax.f32 %v11119_v58, %v4183_v59 }
0x1019   : > { %4188 = vrot.lane.b32.xlu1 %v4184_v62, %s12190_s6 }
0x101a   : > { %4190 = vrot.lane.b32.xlu2 %v4185_v61, %s12190_s6 }
0x1074   : > { %v4191_v63 = vpop.permute.xlu2 %4190 }
0x1075   : > { %4198 = vst.msk [vmem:[#allocation2 + $0x10] sm:$0xff] %vm822_vm2, %v4191_v63 }
0x107c   : > { %v4211_v30 = vld [vmem:[#allocation2 + $0x10] sm:$0xff] }
0x107d   : > { %4273 = vrot.lane.b32.xlu2 %v4211_v30, %s12138_s2  ;;  %4219 = vrot.lane.b32.xlu1 %v4211_v30, %s12140_s26 }
0x1085   : > { %4437 = vrot.lane.b32.xlu1 %v4211_v30, %s12198_s9 }
0x108b   : > { %v4189_v31 = vpop.permute.xlu1 %4188 }
0x108c   : > { %4196 = vst.msk [vmem:[#allocation2] sm:$0xff] %vm1287_vm13, %v4189_v31  ;;  %v4192_v0 = vsel %vm822_vm2, %v4189_v31, %v4191_v63  ;;  %v9230_v31 = vld [vmem:[%s12201_s11 + $0x98] sm:$0xff]  ;;  %s10247_s11 = smov 115  }
0x1093   : > { %v4209_v1 = vld [vmem:[#allocation2] sm:$0xff] }
0x1094   : > { %v9776_v2 = vpack.i.bf16 %v4192_v0, %v4209_v1 }
0x1096   : > { %9777 = vrot.lane.b32.xlu1 %v9776_v2, %s12138_s2  ;;  %9772 = vrot.lane.b32.xlu2 %v9776_v2, %s12197_s25  ;;  %s12208_s2 = smov 107  }
0x1097   : > { %9767 = vrot.lane.b32.xlu0 %v9776_v2, %s12140_s26 }
0x109e   : > { %9792 = vrot.lane.b32.xlu1 %v9776_v2, %s12145_s15  ;;  %9787 = vrot.lane.b32.xlu2 %v9776_v2, %s12191_s7 }
0x109f   : > { %4327 = vrot.lane.b32.xlu0 %v4211_v30, %s12197_s25 }
0x10a6   : > { %4492 = vrot.lane.b32.xlu1 %v4211_v30, %s12148_s30  ;;  %4548 = vrot.lane.b32.xlu2 %v4211_v30, %s12145_s15  ;;  %s12207_s15 = smov 88  }
0x10a7   : > { %9782 = vrot.lane.b32.xlu0 %v9776_v2, %s12198_s9 }
0x10ae   : > { %4602 = vperm.xlu2 %9533, %v9232_v3  }
0x10af   : > { %4382 = vrot.lane.b32.xlu0 %v4211_v30, %s12191_s7 }
0x10b7   : > { %9797 = vrot.lane.b32.xlu0 %v9776_v2, %s12148_s30  ;;  %v9271_v2 = vld [vmem:[%s10546_s3 + $0x20] sm:$0xff] }
0x10bf   : > { %5055 = vperm.xlu0 %9534, %v5052_v4  }
0x10d7   : > { %v4274_v5 = vpop.permute.xlu2 %4273 }
0x10ef   : > { %v4220_v6 = vpop.permute.xlu1 %4219 }
0x10f0   : > { %v9773_v8 = vpop.permute.xlu2 %9772 }
0x10f1   : > { %v9775_v23 = vunpack.i.h.bf16 %v9773_v8  ;;  %v9774_v24 = vunpack.i.l.bf16 %v9773_v8 }
0x10f3   : > { %v4329_v38 = vsel %vm2151_vm15, %v9774_v24, %v9775_v23 }
0x10f7   : > { %v4438_v9 = vpop.permute.xlu1 %4437 }
0x10f8   : > { %v9788_v17 = vpop.permute.xlu2 %9787 }
0x10f9   : > { %v9790_v42 = vunpack.i.h.bf16 %v9788_v17  ;;  %v9789_v19 = vunpack.i.l.bf16 %v9788_v17 }
0x10fb   : > { %v4384_v34 = vsel %vm1024_vm7, %v9789_v19, %v9790_v42 }
0x1100   : > { %v4549_v52 = vpop.permute.xlu2 %4548 }
0x1108   : > { %v9778_v18 = vpop.permute.xlu1 %9777 }
0x1109   : > { %v9768_v20 = vpop.permute.xlu0 %9767  ;;  %v9780_v21 = vunpack.i.h.bf16 %v9778_v18  ;;  %v9779_v22 = vunpack.i.l.bf16 %v9778_v18 }
0x110a   : > { %v9770_v25 = vunpack.i.h.bf16 %v9768_v20  ;;  %v9769_v26 = vunpack.i.l.bf16 %v9768_v20 }
0x110b   : > { %v4276_v27 = vsel %vm4275_vm6, %v9779_v22, %v9780_v21  ;;  %v4277_v28 = vsel %vm4275_vm6, %v9780_v21, %v4274_v5 }
0x110c   : > { %v4222_v32 = vsel %vm12152_vm5, %v9769_v26, %v9770_v25  ;;  %v4223_v33 = vsel %vm12152_vm5, %v9770_v25, %v4220_v6  ;;  %4298 = vmatpush.msrb.mxu0 %v4276_v27  ;;  %4318 = vmatpush.msrb.mxu1 %v4277_v28 }
0x110d   : > { %4244 = vmatpush.msra.mxu2 %v4222_v32  ;;  %4264 = vmatpush.msra.mxu3 %v4223_v33  ;;  %v9272_v33 = vld [vmem:[%s10546_s3 + $0x28] sm:$0xff]  ;;  %s12205_s3 = smov 113  }
0x110e   : > { %9233 = vmatmul.msk.f32.vlgmr.msra.gmra.mxu2 %vm1311_vm14, %v9226_v29  ;;  %4406 = vmatpush.msra.mxu0 %v4384_v34 }
0x110f   : > { %4351 = vmatpush.msrb.mxu2 %v4329_v38  ;;  %9234 = vmatmul.msk.f32.vlgmr.msra.gmra.mxu3 %vm1311_vm14, %v9226_v29 }
0x1110   : > { %9235 = vmatmul.msk.f32.vlgmr.msrb.gmra.mxu0 %vm1311_vm14, %v9225_v37  ;;  %9236 = vmatmul.msk.f32.vlgmr.msrb.gmra.mxu1 %vm1311_vm14, %v9225_v37  ;;  %v9793_v45 = vpop.permute.xlu1 %9792 }
0x1111   : > { %v4328_v40 = vpop.permute.xlu0 %4327  ;;  %v9795_v47 = vunpack.i.h.bf16 %v9793_v45  ;;  %v9794_v49 = vunpack.i.l.bf16 %v9793_v45 }
0x1112   : > { %v4330_v14 = vsel %vm2151_vm15, %v9775_v23, %v4328_v40 }
0x1113   : > { %4371 = vmatpush.msrb.mxu3 %v4330_v14  ;;  %v4552_v54 = vsel %vm4550_vm1, %v9795_v47, %v4549_v52  ;;  %v4551_v55 = vsel %vm4550_vm1, %v9794_v49, %v9795_v47 }
0x1116   : > { %9237 = vmatmul.msk.f32.vlgmr.msrb.gmra.mxu2 %vm1311_vm14, %v9227_v44 }
0x1117   : > { %9238 = vmatmul.msk.f32.vlgmr.msrb.gmra.mxu3 %vm1311_vm14, %v9227_v44 }
0x1118   : > { %9239 = vmatmul.msk.f32.vlgmr.msra.gmra.mxu0 %vm1311_vm14, %v9228_v43  ;;  %v4493_v30 = vpop.permute.xlu1 %4492 }
0x1119   : > { %v9783_v48 = vpop.permute.xlu0 %9782 }
0x111a   : > { %v9785_v7 = vunpack.i.h.bf16 %v9783_v48  ;;  %v9784_v50 = vunpack.i.l.bf16 %v9783_v48 }
0x111c   : > { %v4439_v12 = vsel %vm2205_vm0, %v9784_v50, %v9785_v7  ;;  %v4440_v53 = vsel %vm2205_vm0, %v9785_v7, %v4438_v9 }
0x111d   : > { %4461 = vmatpush.msra.mxu2 %v4439_v12  ;;  %4481 = vmatpush.msra.mxu3 %v4440_v53 }
0x111e   : > { %9241 = vmatmul.msk.f32.vlgmr.msra.gmra.mxu2 %vm1311_vm14, %v9229_v51 }
0x111f   : > { %4593 = vmatpush.msrb.mxu3 %v4552_v54  ;;  %4573 = vmatpush.msrb.mxu2 %v4551_v55 }
0x1120   : > { %9242 = vmatmul.msk.f32.vlgmr.msra.gmra.mxu3 %vm1311_vm14, %v9229_v51  ;;  %v4603_v51 = vpop.permute.xlu2 %4602 }
0x1121   : > { %v4383_v56 = vpop.permute.xlu0 %4382 }
0x1122   : > { %v4385_v59 = vsel %vm1024_vm7, %v9790_v42, %v4383_v56 }
0x1123   : > { %4426 = vmatpush.msra.mxu1 %v4385_v59 }
0x1124   : > { %9240 = vmatmul.msk.f32.vlgmr.msra.gmra.mxu1 %vm1311_vm14, %v9228_v43 }
0x1126   : > { %9245 = vmatmul.msk.f32.vlgmr.msrb.gmra.mxu2 %vm1311_vm14, %v9231_v60 }
0x1128   : > { %9246 = vmatmul.msk.f32.vlgmr.msrb.gmra.mxu3 %vm1311_vm14, %v9231_v60 }
0x1129   : > { %v9798_v61 = vpop.permute.xlu0 %9797 }
0x112a   : > { %v9800_v62 = vunpack.i.h.bf16 %v9798_v61  ;;  %v9799_v63 = vunpack.i.l.bf16 %v9798_v61 }
0x112c   : > { %v4495_v0 = vsel %vm12153_vm3, %v9799_v63, %v9800_v62  ;;  %v4496_v1 = vsel %vm12153_vm3, %v9800_v62, %v4493_v30 }
0x112d   : > { %4517 = vmatpush.msrb.mxu0 %v4495_v0  ;;  %4537 = vmatpush.msrb.mxu1 %v4496_v1 }
0x112e   : > { %9243 = vmatmul.msk.f32.vlgmr.msrb.gmra.mxu0 %vm1311_vm14, %v9230_v31  ;;  %9244 = vmatmul.msk.f32.vlgmr.msrb.gmra.mxu1 %vm1311_vm14, %v9230_v31 }
0x1131   : > { %v5056_v3 = vpop.permute.xlu0 %5055 }
0x1132   : > { %v5058_v4 = vmul.f32 %v9271_v2, %v5056_v3  ;;  %v5059_v34 = vmul.f32 %v9272_v33, %v5056_v3 }
0x1134   : > { %v5060_v5 = vadd.f32 %v5058_v4, %v10550_v35  ;;  %v5061_v47 = vadd.f32 %v5059_v34, %v10552_v36 }
0x1136   : > { %v5062_v6 = vmul.f32 0.2, %v5060_v5  ;;  %v5063_v52 = vmul.f32 0.2, %v5061_v47 }
0x1138   : > { %v11201_v8 = vmax.f32 %v5060_v5, %v5062_v6  ;;  %v11208_v56 = vmax.f32 %v5061_v47, %v5063_v52 }
0x113a   : > { %v5066_v9 = vmul.f32 0.2, %v11201_v8  ;;  %v5067_v36 = vmul.f32 0.2, %v11208_v56 }
0x113c   : > { %v5068_v17 = vmax.f32 %v11201_v8, %v5066_v9  ;;  %v5069_v61 = vmax.f32 %v11208_v56, %v5067_v36 }
0x113e   : > { %5072 = vrot.lane.b32.xlu0 %v5068_v17, %s12190_s6 }
0x118d   : > { %v4320_v19 = vpop.f32.mrf.mxu1  ;;  %v4300_v20 = vpop.f32.mrf.mxu0 }
0x1191   : > { %v4246_v18 = vpop.f32.mrf.mxu2 }
0x1192   : > { %v4266_v42 = vpop.f32.mrf.mxu3  ;;  %v4301_v35 = vadd.f32 %v4300_v20, %v4246_v18 }
0x1193   : > { %v4321_v23 = vadd.f32 %v4320_v19, %v4266_v42  ;;  %v5094_v42 = vld [vmem:[%s12082_s18] sm:$0xff] }
0x1195   : > { %v4408_v28 = vpop.f32.mrf.mxu0 }
0x1199   : > { %v4353_v21 = vpop.f32.mrf.mxu2 }
0x119a   : > { %v4373_v22 = vpop.f32.mrf.mxu3  ;;  %v4376_v29 = vadd.f32 %v4353_v21, %v4301_v35 }
0x119b   : > { %v4377_v24 = vadd.f32 %v4373_v22, %v4321_v23 }
0x119c   : > { %v4431_v37 = vadd.f32 %v4408_v28, %v4376_v29 }
0x11a1   : > { %v4428_v25 = vpop.f32.mrf.mxu1  ;;  %v4463_v26 = vpop.f32.mrf.mxu2 }
0x11a2   : > { %v4432_v32 = vadd.f32 %v4428_v25, %v4377_v24  ;;  %v4486_v40 = vadd.f32 %v4463_v26, %v4431_v37  ;;  %v9247_v25 = vld [vmem:[%s12077_s13 + $0x70] sm:$0xff] }
0x11a3   : > { %v4483_v27 = vpop.f32.mrf.mxu3 }
0x11a4   : > { %v4487_v38 = vadd.f32 %v4483_v27, %v4432_v32 }
0x11a9   : > { %v4575_v14 = vpop.f32.mrf.mxu2 }
0x11ab   : > { %v4595_v44 = vpop.f32.mrf.mxu3  ;;  %v4519_v43 = vpop.f32.mrf.mxu0 }
0x11ac   : > { %v4539_v45 = vpop.f32.mrf.mxu1  ;;  %v4542_v48 = vadd.f32 %v4519_v43, %v4486_v40 }
0x11ad   : > { %v4543_v49 = vadd.f32 %v4539_v45, %v4487_v38 }
0x11ae   : > { %v4598_v7 = vadd.f32 %v4575_v14, %v4542_v48 }
0x11af   : > { %v4599_v50 = vadd.f32 %v4595_v44, %v4543_v49 }
0x11b0   : > { %v4605_v12 = vadd.f32 %v4603_v51, %v4598_v7  ;;  %v5073_v31 = vpop.permute.xlu0 %5072 }
0x11b1   : > { %v4606_v53 = vadd.f32 %v4603_v51, %v4599_v50  ;;  %v9248_v50 = vld [vmem:[%s12077_s13 + $0x78] sm:$0xff]  ;;  %v9250_v51 = vld [vmem:[%s12077_s13 + $0x88] sm:$0xff] }
0x11b2   : > { %v4607_v54 = vmul.f32 0.2, %v4605_v12 }
0x11b3   : > { %v4608_v55 = vmul.f32 0.2, %v4606_v53 }
0x11b4   : > { %v4609_v59 = vmax.f32 %v4605_v12, %v4607_v54 }
0x11b5   : > { %v4610_v60 = vmax.f32 %v4606_v53, %v4608_v55 }
0x11b6   : > { %4613 = vrot.lane.b32.xlu1 %v4609_v59, %s12190_s6 }
0x11b7   : > { %4615 = vrot.lane.b32.xlu2 %v4610_v60, %s12190_s6 }
0x11be   : > { %5074 = vrot.lane.b32.xlu1 %v5069_v61, %s12190_s6 }
0x1211   : > { %v4616_v62 = vpop.permute.xlu2 %4615 }
0x1212   : > { %4623 = vst.msk [vmem:[#allocation2 + $0x10] sm:$0xff] %vm822_vm2, %v4616_v62 }
0x1219   : > { %v4636_v63 = vld [vmem:[#allocation2 + $0x10] sm:$0xff] }
0x121a   : > { %4644 = vrot.lane.b32.xlu2 %v4636_v63, %s12205_s3  ;;  %4697 = vrot.lane.b32.xlu0 %v4636_v63, %s12206_s14 }
0x121b   : > { %4805 = vrot.lane.b32.xlu1 %v4636_v63, %s12191_s7 }
0x1222   : > { %4915 = vrot.lane.b32.xlu2 %v4636_v63, %s12148_s30 }
0x1223   : > { %4860 = vrot.lane.b32.xlu1 %v4636_v63, %s12198_s9 }
0x1228   : > { %v4614_v30 = vpop.permute.xlu1 %4613 }
0x1229   : > { %4621 = vst.msk [vmem:[#allocation2] sm:$0xff] %vm1287_vm13, %v4614_v30  ;;  %v4617_v0 = vsel %vm822_vm2, %v4614_v30, %v4616_v62 }
0x1230   : > { %v4634_v1 = vld [vmem:[#allocation2] sm:$0xff]  ;;  %v5075_v2 = vpop.permute.xlu1 %5074 }
0x1231   : > { %5080 = vst.msk [vmem:[#allocation2] sm:$0xff] %vm1287_vm13, %v5073_v31  ;;  %v9811_v3 = vpack.i.bf16 %v4617_v0, %v4634_v1  ;;  %v5076_v6 = vsel %vm822_vm2, %v5073_v31, %v5075_v2  ;;  %v9249_v0 = vld [vmem:[%s12077_s13 + $0x80] sm:$0xff] }
0x1232   : > { %5082 = vst.msk [vmem:[#allocation2 + $0x10] sm:$0xff] %vm822_vm2, %v5075_v2  ;;  %v9252_v2 = vld [vmem:[%s12077_s13 + $0x98] sm:$0xff] }
0x1233   : > { %9812 = vrot.lane.b32.xlu0 %v9811_v3, %s12191_s7  ;;  %9807 = vrot.lane.b32.xlu1 %v9811_v3, %s12205_s3 }
0x1234   : > { %9802 = vrot.lane.b32.xlu2 %v9811_v3, %s12206_s14 }
0x1238   : > { %v5095_v4 = vld [vmem:[#allocation2] sm:$0xff] }
0x1239   : > { %v9836_v5 = vpack.i.bf16 %v5095_v4, %v4636_v63  ;;  %v5097_v9 = vld [vmem:[#allocation2 + $0x10] sm:$0xff]  ;;  %v9841_v17 = vpack.i.bf16 %v5076_v6, %v5095_v4 }
0x123a   : > { %v9851_v18 = vpack.i.bf16 %v5097_v9, %v5076_v6 }
0x123b   : > { %9827 = vrot.lane.b32.xlu0 %v9811_v3, %s12198_s9  ;;  %9822 = vrot.lane.b32.xlu1 %v9811_v3, %s12148_s30  ;;  %s10246_s30 = smov 99  }
0x123c   : > { %4970 = vrot.lane.b32.xlu2 %v4636_v63, %s12207_s15 }
0x1243   : > { %9837 = vrot.lane.b32.xlu0 %v9836_v5, %s12197_s25  ;;  %9832 = vrot.lane.b32.xlu1 %v9811_v3, %s12207_s15 }
0x1244   : > { %9817 = vrot.lane.b32.xlu2 %v9811_v3, %s12197_s25 }
0x124b   : > { %5212 = vrot.lane.b32.xlu1 %v5097_v9, %s12195_s4  ;;  %5105 = vrot.lane.b32.xlu0 %v5097_v9, %s12150_s29 }
0x124c   : > { %9842 = vrot.lane.b32.xlu2 %v9841_v17, %s12150_s29  ;;  %s12209_s29 = smov 94  }
0x1253   : > { %5322 = vrot.lane.b32.xlu1 %v5097_v9, %s12186_s0  ;;  %5267 = vrot.lane.b32.xlu0 %v5097_v9, %s12199_s23 }
0x1254   : > { %5432 = vrot.lane.b32.xlu2 %v5097_v9, %s12187_s1 }
0x125b   : > { %5377 = vrot.lane.b32.xlu1 %v5097_v9, %s12191_s7  ;;  %9847 = vrot.lane.b32.xlu0 %v9841_v17, %s12195_s4 }
0x125c   : > { %9852 = vrot.lane.b32.xlu2 %v9851_v18, %s12197_s25 }
0x1263   : > { %9867 = vrot.lane.b32.xlu1 %v9841_v17, %s12187_s1  ;;  %9857 = vrot.lane.b32.xlu0 %v9841_v17, %s12186_s0 }
0x1264   : > { %9862 = vrot.lane.b32.xlu2 %v9841_v17, %s12199_s23 }
0x126b   : > { %9882 = vrot.lane.b32.xlu1 %v9841_v17, %s12200_s5  ;;  %5542 = vrot.lane.b32.xlu0 %v5097_v9, %s12194_s24 }
0x126c   : > { %9877 = vrot.lane.b32.xlu2 %v9841_v17, %s12194_s24 }
0x1273   : > { %5653 = vrot.lane.b32.xlu1 %v5097_v9, %s12198_s9  ;;  %9872 = vrot.lane.b32.xlu0 %v9841_v17, %s12191_s7 }
0x1274   : > { %5487 = vrot.lane.b32.xlu2 %v5097_v9, %s12200_s5  ;;  %v4645_v19 = vpop.permute.xlu2 %4644 }
0x127b   : > { %5706 = vperm.xlu1 %9550, %v5094_v42   ;;  %9887 = vrot.lane.b32.xlu0 %v9841_v17, %s12198_s9 }
0x127c   : > { %9892 = vrot.lane.b32.xlu2 %v9841_v17, %s10246_s30  ;;  %v4916_v20 = vpop.permute.xlu2 %4915 }
0x1283   : > { %5597 = vrot.lane.b32.xlu0 %v5097_v9, %s10246_s30 }
0x128c   : > { %v4698_v24 = vpop.permute.xlu0 %4697 }
0x128d   : > { %v4806_v27 = vpop.permute.xlu1 %4805 }
0x128e   : > { %v9803_v21 = vpop.permute.xlu2 %9802 }
0x128f   : > { %v9805_v22 = vunpack.i.h.bf16 %v9803_v21  ;;  %v9804_v23 = vunpack.i.l.bf16 %v9803_v21  ;;  %v9251_v21 = vld [vmem:[%s12077_s13 + $0x90] sm:$0xff] }
0x1291   : > { %v4699_v35 = vsel %vm4275_vm6, %v9804_v23, %v9805_v22  ;;  %v4700_v26 = vsel %vm4275_vm6, %v9805_v22, %v4698_v24  ;;  %v5084_v24 = vld [vmem:[%s12081_s17 + $0x8] sm:$0xff] }
0x1292   : > { %4721 = vmatpush.msra.mxu2 %v4699_v35  ;;  %4741 = vmatpush.msra.mxu3 %v4700_v26 }
0x1293   : > { %9257 = vmatmul.msk.f32.vlgmr.msra.gmra.mxu2 %vm1311_vm14, %v9247_v25  ;;  %9258 = vmatmul.msk.f32.vlgmr.msra.gmra.mxu3 %vm1311_vm14, %v9247_v25 }
0x1295   : > { %v11268_v29 = vpop.permute.xlu1 %4860 }
0x1296   : > { %v11266_v28 = vpop.permute.xlu2 %4970 }
0x129e   : > { %v9818_v32 = vpop.permute.xlu2 %9817 }
0x129f   : > { %v9820_v43 = vunpack.i.h.bf16 %v9818_v32  ;;  %v9819_v45 = vunpack.i.l.bf16 %v9818_v32 }
0x12a1   : > { %v4752_v52 = vsel %vm2151_vm15, %v9819_v45, %v9820_v43 }
0x12a5   : > { %v9813_v33 = vpop.permute.xlu0 %9812  ;;  %v9808_v34 = vpop.permute.xlu1 %9807 }
0x12a6   : > { %v9815_v37 = vunpack.i.h.bf16 %v9813_v33  ;;  %v9814_v38 = vunpack.i.l.bf16 %v9813_v33  ;;  %v11270_v40 = vpop.permute.xlu2 %9842  ;;  %v9810_v14 = vunpack.i.h.bf16 %v9808_v34  ;;  %v9809_v44 = vunpack.i.l.bf16 %v9808_v34 }
0x12a7   : > { %v9845_v12 = vunpack.i.h.bf16 %v11270_v40  ;;  %v9844_v53 = vunpack.i.l.bf16 %v11270_v40 }
0x12a8   : > { %v4646_v47 = vsel %vm12152_vm5, %v9809_v44, %v9810_v14  ;;  %v4647_v48 = vsel %vm12152_vm5, %v9810_v14, %v4645_v19  ;;  %v4807_v49 = vsel %vm1024_vm7, %v9814_v38, %v9815_v37  ;;  %v4808_v7 = vsel %vm1024_vm7, %v9815_v37, %v4806_v27  ;;  %v9253_v37 = vld [vmem:[%s12077_s13 + $0xa0] sm:$0xff] }
0x12a9   : > { %4668 = vmatpush.msra.mxu0 %v4646_v47  ;;  %4688 = vmatpush.msra.mxu1 %v4647_v48  ;;  %vm5107_vm5 = vcmask 875520  }
0x12aa   : > { %4829 = vmatpush.msrb.mxu2 %v4807_v49  ;;  %4849 = vmatpush.msrb.mxu3 %v4808_v7  ;;  %v5108_v1 = vsel %vm5107_vm5, %v9844_v53, %v9845_v12  ;;  %v5085_v7 = vld [vmem:[%s12081_s17 + $0x10] sm:$0xff] }
0x12ab   : > { %9255 = vmatmul.msk.f32.vlgmr.msra.gmra.mxu0 %vm1311_vm14, %v9248_v50  ;;  %9256 = vmatmul.msk.f32.vlgmr.msra.gmra.mxu1 %vm1311_vm14, %v9248_v50 }
0x12ac   : > { %4774 = vmatpush.msrb.mxu0 %v4752_v52  ;;  %9261 = vmatmul.msk.f32.vlgmr.msrb.gmra.mxu2 %vm1311_vm14, %v9250_v51 }
0x12ad   : > { %v9828_v54 = vpop.permute.xlu0 %9827  ;;  %v9823_v55 = vpop.permute.xlu1 %9822  ;;  %9262 = vmatmul.msk.f32.vlgmr.msrb.gmra.mxu3 %vm1311_vm14, %v9250_v51 }
0x12ae   : > { %v9830_v59 = vunpack.i.h.bf16 %v9828_v54  ;;  %v9829_v60 = vunpack.i.l.bf16 %v9828_v54  ;;  %v11289_v36 = vpop.permute.xlu2 %5432  ;;  %v9825_v61 = vunpack.i.h.bf16 %v9823_v55  ;;  %v9824_v62 = vunpack.i.l.bf16 %v9823_v55 }
0x12b0   : > { %v4862_v63 = vsel %vm2205_vm0, %v9829_v60, %v9830_v59  ;;  %v4917_v30 = vsel %vm12153_vm3, %v9824_v62, %v9825_v61  ;;  %v4918_v31 = vsel %vm12153_vm3, %v9825_v61, %v4916_v20  ;;  %v4863_v23 = vsel %vm2205_vm0, %v9830_v59, %v11268_v29 }
0x12b1   : > { %4884 = vmatpush.msra.mxu0 %v4862_v63  ;;  %4939 = vmatpush.msra.mxu2 %v4917_v30  ;;  %v5087_v30 = vld [vmem:[%s12081_s17 + $0x20] sm:$0xff]  ;;  %vm5599_vm3 = vcmask 809984  }
0x12b2   : > { %4959 = vmatpush.msra.mxu3 %v4918_v31 }
0x12b3   : > { %5130 = vmatpush.msrb.mxu2 %v5108_v1  ;;  %9259 = vmatmul.msk.f32.vlgmr.msrb.gmra.mxu0 %vm1311_vm14, %v9249_v0 }
0x12b4   : > { %9265 = vmatmul.msk.f32.vlgmr.msra.gmra.mxu2 %vm1311_vm14, %v9252_v2 }
0x12b5   : > { %v9838_v3 = vpop.permute.xlu0 %9837  ;;  %v9833_v4 = vpop.permute.xlu1 %9832  ;;  %9266 = vmatmul.msk.f32.vlgmr.msra.gmra.mxu3 %vm1311_vm14, %v9252_v2 }
0x12b6   : > { %v9840_v5 = vunpack.i.h.bf16 %v9838_v3  ;;  %v9839_v6 = vunpack.i.l.bf16 %v9838_v3  ;;  %v9853_v9 = vpop.permute.xlu2 %9852  ;;  %v9835_v17 = vunpack.i.h.bf16 %v9833_v4  ;;  %v9834_v18 = vunpack.i.l.bf16 %v9833_v4 }
0x12b7   : > { %v9854_v42 = vunpack.i.l.bf16 %v9853_v9  ;;  %v9855_v27 = vunpack.i.h.bf16 %v9853_v9 }
0x12b8   : > { %v4753_v19 = vsel %vm2151_vm15, %v9820_v43, %v9839_v6  ;;  %v4972_v20 = vsel %vm4550_vm1, %v9834_v18, %v9835_v17  ;;  %v4973_v25 = vsel %vm4550_vm1, %v9835_v17, %v11266_v28  ;;  %v5083_v43 = vld [vmem:[%s12081_s17] sm:$0xff] }
0x12b9   : > { %4794 = vmatpush.msrb.mxu1 %v4753_v19  ;;  %4994 = vmatpush.msrb.mxu0 %v4972_v20  ;;  %v5161_v22 = vsel %vm2151_vm15, %v9840_v5, %v9854_v42  ;;  %v5162_v38 = vsel %vm2151_vm15, %v9854_v42, %v9855_v27 }
0x12ba   : > { %9260 = vmatmul.msk.f32.vlgmr.msrb.gmra.mxu1 %vm1311_vm14, %v9249_v0 }
0x12bb   : > { %9263 = vmatmul.msk.f32.vlgmr.msra.gmra.mxu0 %vm1311_vm14, %v9251_v21  ;;  %4904 = vmatpush.msra.mxu1 %v4863_v23 }
0x12bc   : > { %5183 = vmatpush.msra.mxu0 %v5161_v22  ;;  %9273 = vmatmul.msk.f32.vlgmr.msrb.gmra.mxu2 %vm1311_vm14, %v5084_v24 }
0x12bd   : > { %5014 = vmatpush.msrb.mxu1 %v4973_v25  ;;  %v5106_v35 = vpop.permute.xlu0 %5105  ;;  %v5213_v26 = vpop.permute.xlu1 %5212 }
0x12be   : > { %v5109_v32 = vsel %vm5107_vm5, %v9845_v12, %v5106_v35  ;;  %v9863_v29 = vpop.permute.xlu2 %9862  ;;  %v5086_v12 = vld [vmem:[%s12081_s17 + $0x18] sm:$0xff] }
0x12bf   : > { %v9865_v33 = vunpack.i.h.bf16 %v9863_v29  ;;  %v9864_v34 = vunpack.i.l.bf16 %v9863_v29  ;;  %5150 = vmatpush.msrb.mxu3 %v5109_v32 }
0x12c0   : > { %9274 = vmatmul.msk.f32.vlgmr.msrb.gmra.mxu3 %vm1311_vm14, %v5084_v24  ;;  %v5088_v24 = vld [vmem:[%s12081_s17 + $0x28] sm:$0xff] }
0x12c1   : > { %v5269_v28 = vsel %vm852_vm8, %v9864_v34, %v9865_v33 }
0x12c2   : > { %9264 = vmatmul.msk.f32.vlgmr.msra.gmra.mxu1 %vm1311_vm14, %v9251_v21 }
0x12c3   : > { %9267 = vmatmul.msk.f32.vlgmr.msrb.gmra.mxu0 %vm1311_vm14, %v9253_v37  ;;  %5203 = vmatpush.msra.mxu1 %v5162_v38  ;;  %v5090_v38 = vld [vmem:[%s12081_s17 + $0x38] sm:$0xff] }
0x12c4   : > { %5291 = vmatpush.msrb.mxu0 %v5269_v28 }
0x12c5   : > { %v5268_v40 = vpop.permute.xlu0 %5267  ;;  %v5323_v14 = vpop.permute.xlu1 %5322 }
0x12c6   : > { %v5270_v44 = vsel %vm852_vm8, %v9865_v33, %v5268_v40  ;;  %v9878_v50 = vpop.permute.xlu2 %9877 }
0x12c7   : > { %v9880_v62 = vunpack.i.h.bf16 %v9878_v50  ;;  %v9879_v63 = vunpack.i.l.bf16 %v9878_v50 }
0x12c9   : > { %v5544_v4 = vsel %vm1198_vm12, %v9879_v63, %v9880_v62 }
0x12ca   : > { %9268 = vmatmul.msk.f32.vlgmr.msrb.gmra.mxu1 %vm1311_vm14, %v9253_v37 }
0x12cb   : > { %5311 = vmatpush.msrb.mxu1 %v5270_v44  ;;  %9275 = vmatmul.msk.f32.vlgmr.msra.gmra.mxu0 %vm1311_vm14, %v5083_v43  ;;  %v5093_v44 = vld [vmem:[%s12081_s17 + $0x50] sm:$0xff] }
0x12cd   : > { %v9848_v45 = vpop.permute.xlu0 %9847  ;;  %v5378_v47 = vpop.permute.xlu1 %5377 }
0x12ce   : > { %v9850_v48 = vunpack.i.h.bf16 %v9848_v45  ;;  %v9849_v49 = vunpack.i.l.bf16 %v9848_v45  ;;  %v5488_v3 = vpop.permute.xlu2 %5487 }
0x12d0   : > { %v5214_v51 = vsel %vm910_vm4, %v9849_v49, %v9850_v48  ;;  %v5215_v52 = vsel %vm910_vm4, %v9850_v48, %v5213_v26  ;;  %v5091_v26 = vld [vmem:[%s12081_s17 + $0x40] sm:$0xff] }
0x12d1   : > { %5236 = vmatpush.msra.mxu2 %v5214_v51  ;;  %5256 = vmatpush.msra.mxu3 %v5215_v52 }
0x12d2   : > { %9276 = vmatmul.msk.f32.vlgmr.msra.gmra.mxu1 %vm1311_vm14, %v5083_v43  ;;  %9278 = vmatmul.msk.f32.vlgmr.msra.gmra.mxu3 %vm1311_vm14, %v5085_v7 }
0x12d3   : > { %9277 = vmatmul.msk.f32.vlgmr.msra.gmra.mxu2 %vm1311_vm14, %v5085_v7  ;;  %9279 = vmatmul.msk.f32.vlgmr.msrb.gmra.mxu0 %vm1311_vm14, %v5086_v12 }
0x12d5   : > { %v9858_v53 = vpop.permute.xlu0 %9857  ;;  %v9868_v54 = vpop.permute.xlu1 %9867 }
0x12d6   : > { %v9860_v55 = vunpack.i.h.bf16 %v9858_v53  ;;  %v9859_v59 = vunpack.i.l.bf16 %v9858_v53  ;;  %v9870_v60 = vunpack.i.h.bf16 %v9868_v54  ;;  %v9869_v61 = vunpack.i.l.bf16 %v9868_v54  ;;  %v9893_v17 = vpop.permute.xlu2 %9892 }
0x12d7   : > { %v9895_v22 = vunpack.i.h.bf16 %v9893_v17  ;;  %v9894_v23 = vunpack.i.l.bf16 %v9893_v17 }
0x12d8   : > { %v5324_v31 = vsel %vm966_vm10, %v9859_v59, %v9860_v55  ;;  %v5325_v0 = vsel %vm966_vm10, %v9860_v55, %v5323_v14  ;;  %v5434_v1 = vsel %vm1082_vm9, %v9869_v61, %v9870_v60  ;;  %v5435_v2 = vsel %vm1082_vm9, %v9870_v60, %v11289_v36  ;;  %v5089_v36 = vld [vmem:[%s12081_s17 + $0x30] sm:$0xff] }
0x12d9   : > { %5346 = vmatpush.msrb.mxu2 %v5324_v31  ;;  %5366 = vmatpush.msrb.mxu3 %v5325_v0  ;;  %v5600_v29 = vsel %vm5599_vm3, %v9894_v23, %v9895_v22 }
0x12da   : > { %9280 = vmatmul.msk.f32.vlgmr.msrb.gmra.mxu1 %vm1311_vm14, %v5086_v12  ;;  %9282 = vmatmul.msk.f32.vlgmr.msrb.gmra.mxu3 %vm1311_vm14, %v5087_v30 }
0x12db   : > { %5456 = vmatpush.msra.mxu2 %v5434_v1  ;;  %5476 = vmatpush.msra.mxu3 %v5435_v2 }
0x12dc   : > { %9281 = vmatmul.msk.f32.vlgmr.msrb.gmra.mxu2 %vm1311_vm14, %v5087_v30 }
0x12dd   : > { %5566 = vmatpush.msrb.mxu2 %v5544_v4  ;;  %v5543_v5 = vpop.permute.xlu0 %5542  ;;  %v9883_v9 = vpop.permute.xlu1 %9882 }
0x12de   : > { %v5545_v6 = vsel %vm1198_vm12, %v9880_v62, %v5543_v5  ;;  %v9885_v42 = vunpack.i.h.bf16 %v9883_v9  ;;  %v9884_v19 = vunpack.i.l.bf16 %v9883_v9 }
0x12df   : > { %5586 = vmatpush.msrb.mxu3 %v5545_v6 }
0x12e0   : > { %v5489_v27 = vsel %vm1140_vm11, %v9884_v19, %v9885_v42  ;;  %v5490_v32 = vsel %vm1140_vm11, %v9885_v42, %v5488_v3 }
0x12e2   : > { %9286 = vmatmul.msk.f32.vlgmr.msra.gmra.mxu3 %vm1311_vm14, %v5089_v36 }
0x12e4   : > { %9285 = vmatmul.msk.f32.vlgmr.msra.gmra.mxu2 %vm1311_vm14, %v5089_v36 }
0x12e5   : > { %v9873_v18 = vpop.permute.xlu0 %9872  ;;  %v5654_v28 = vpop.permute.xlu1 %5653 }
0x12e6   : > { %v9875_v20 = vunpack.i.h.bf16 %v9873_v18  ;;  %v9874_v21 = vunpack.i.l.bf16 %v9873_v18 }
0x12e8   : > { %v5379_v25 = vsel %vm1024_vm7, %v9874_v21, %v9875_v20  ;;  %v5380_v35 = vsel %vm1024_vm7, %v9875_v20, %v5378_v47  ;;  %v5092_v47 = vld [vmem:[%s12081_s17 + $0x48] sm:$0xff] }
0x12e9   : > { %5401 = vmatpush.msra.mxu0 %v5379_v25  ;;  %5421 = vmatpush.msra.mxu1 %v5380_v35 }
0x12ea   : > { %9283 = vmatmul.msk.f32.vlgmr.msra.gmra.mxu0 %vm1311_vm14, %v5088_v24  ;;  %9284 = vmatmul.msk.f32.vlgmr.msra.gmra.mxu1 %vm1311_vm14, %v5088_v24 }
0x12eb   : > { %5511 = vmatpush.msrb.mxu0 %v5489_v27  ;;  %5531 = vmatpush.msrb.mxu1 %v5490_v32 }
0x12ec   : > { %9289 = vmatmul.msk.f32.vlgmr.msrb.gmra.mxu2 %vm1311_vm14, %v5091_v26  ;;  %9290 = vmatmul.msk.f32.vlgmr.msrb.gmra.mxu3 %vm1311_vm14, %v5091_v26 }
0x12ed   : > { %5622 = vmatpush.msra.mxu0 %v5600_v29  ;;  %v9888_v33 = vpop.permute.xlu0 %9887 }
0x12ee   : > { %v9890_v34 = vunpack.i.h.bf16 %v9888_v33  ;;  %v9889_v37 = vunpack.i.l.bf16 %v9888_v33 }
0x12f0   : > { %v5655_v40 = vsel %vm2205_vm0, %v9889_v37, %v9890_v34  ;;  %v5656_v14 = vsel %vm2205_vm0, %v9890_v34, %v5654_v28 }
0x12f1   : > { %5677 = vmatpush.msra.mxu2 %v5655_v40  ;;  %5697 = vmatpush.msra.mxu3 %v5656_v14 }
0x12f2   : > { %9287 = vmatmul.msk.f32.vlgmr.msrb.gmra.mxu0 %vm1311_vm14, %v5090_v38  ;;  %9288 = vmatmul.msk.f32.vlgmr.msrb.gmra.mxu1 %vm1311_vm14, %v5090_v38 }
0x12f4   : > { %9293 = vmatmul.msk.f32.vlgmr.msra.gmra.mxu2 %vm1311_vm14, %v5093_v44  ;;  %9294 = vmatmul.msk.f32.vlgmr.msra.gmra.mxu3 %vm1311_vm14, %v5093_v44 }
0x12f5   : > { %v5598_v43 = vpop.permute.xlu0 %5597 }
0x12f6   : > { %v5601_v45 = vsel %vm5599_vm3, %v9895_v22, %v5598_v43 }
0x12f7   : > { %5642 = vmatpush.msra.mxu1 %v5601_v45 }
0x12fa   : > { %9291 = vmatmul.msk.f32.vlgmr.msra.gmra.mxu0 %vm1311_vm14, %v5092_v47  ;;  %9292 = vmatmul.msk.f32.vlgmr.msra.gmra.mxu1 %vm1311_vm14, %v5092_v47 }
0x1316   : > { %v11402_v7 = vpop.f32.mrf.mxu2  ;;  %v11404_v50 = vpop.f32.mrf.mxu3 }
0x1328   : > { %v11398_v48 = vpop.f32.mrf.mxu0  ;;  %v11400_v49 = vpop.f32.mrf.mxu1 }
0x132f   : > { %v11410_v12 = vpop.f32.mrf.mxu2 }
0x1330   : > { %v11406_v51 = vpop.f32.mrf.mxu0  ;;  %v11412_v53 = vpop.f32.mrf.mxu3 }
0x1337   : > { %v11408_v52 = vpop.f32.mrf.mxu1  ;;  %v11418_v59 = vpop.f32.mrf.mxu2 }
0x1338   : > { %v11414_v54 = vpop.f32.mrf.mxu0  ;;  %v11420_v60 = vpop.f32.mrf.mxu3 }
0x133f   : > { %v11416_v55 = vpop.f32.mrf.mxu1  ;;  %v5132_v30 = vpop.f32.mrf.mxu2 }
0x1340   : > { %v11422_v61 = vpop.f32.mrf.mxu0 }
0x1343   : > { %v5152_v63 = vpop.f32.mrf.mxu3 }
0x1347   : > { %v11424_v62 = vpop.f32.mrf.mxu1 }
0x1348   : > { %v5185_v31 = vpop.f32.mrf.mxu0 }
0x1349   : > { %v5186_v3 = vadd.f32 %v5185_v31, %v5132_v30 }
0x134f   : > { %v5205_v0 = vpop.f32.mrf.mxu1 }
0x1350   : > { %v5293_v5 = vpop.f32.mrf.mxu0  ;;  %v5206_v18 = vadd.f32 %v5205_v0, %v5152_v63 }
0x1355   : > { %v5258_v1 = vpop.f32.mrf.mxu3 }
0x1356   : > { %v5238_v2 = vpop.f32.mrf.mxu2  ;;  %v5262_v42 = vadd.f32 %v5258_v1, %v5206_v18  ;;  %v5707_v1 = vpop.permute.xlu1 %5706 }
0x1357   : > { %v5261_v4 = vadd.f32 %v5238_v2, %v5186_v3  ;;  %v5313_v36 = vpop.f32.mrf.mxu1 }
0x1358   : > { %v5317_v23 = vadd.f32 %v5313_v36, %v5262_v42 }
0x1359   : > { %v5316_v17 = vadd.f32 %v5293_v5, %v5261_v4 }
0x135d   : > { %v5368_v6 = vpop.f32.mrf.mxu3 }
0x135e   : > { %v5372_v35 = vadd.f32 %v5368_v6, %v5317_v23 }
0x135f   : > { %v5348_v9 = vpop.f32.mrf.mxu2 }
0x1360   : > { %v5371_v19 = vadd.f32 %v5348_v9, %v5316_v17 }
0x1365   : > { %v5478_v20 = vpop.f32.mrf.mxu3 }
0x1367   : > { %v5403_v21 = vpop.f32.mrf.mxu0  ;;  %v5423_v22 = vpop.f32.mrf.mxu1 }
0x1368   : > { %v5426_v24 = vadd.f32 %v5403_v21, %v5371_v19  ;;  %v5458_v25 = vpop.f32.mrf.mxu2  ;;  %v5427_v26 = vadd.f32 %v5423_v22, %v5372_v35  ;;  %v5739_v21 = vld [vmem:[%s12084_s20] sm:$0xff] }
0x136a   : > { %v5481_v27 = vadd.f32 %v5458_v25, %v5426_v24  ;;  %v5482_v33 = vadd.f32 %v5478_v20, %v5427_v26 }
0x136f   : > { %v5513_v32 = vpop.f32.mrf.mxu0  ;;  %v5533_v29 = vpop.f32.mrf.mxu1 }
0x1370   : > { %v5536_v34 = vadd.f32 %v5513_v32, %v5481_v27  ;;  %v5568_v37 = vpop.f32.mrf.mxu2  ;;  %v5588_v28 = vpop.f32.mrf.mxu3  ;;  %v5537_v38 = vadd.f32 %v5533_v29, %v5482_v33  ;;  %v5728_v33 = vld [vmem:[%s12083_s19] sm:$0xff] }
0x1372   : > { %v5591_v40 = vadd.f32 %v5568_v37, %v5536_v34  ;;  %v5592_v14 = vadd.f32 %v5588_v28, %v5537_v38 }
0x1377   : > { %v5624_v44 = vpop.f32.mrf.mxu0  ;;  %v5644_v43 = vpop.f32.mrf.mxu1 }
0x1378   : > { %v5647_v45 = vadd.f32 %v5624_v44, %v5591_v40  ;;  %v5648_v47 = vadd.f32 %v5644_v43, %v5592_v14  ;;  %v5679_v63 = vpop.f32.mrf.mxu2  ;;  %v5699_v30 = vpop.f32.mrf.mxu3 }
0x137a   : > { %v5702_v31 = vadd.f32 %v5679_v63, %v5647_v45  ;;  %v5703_v0 = vadd.f32 %v5699_v30, %v5648_v47  ;;  %v5729_v47 = vld [vmem:[%s12083_s19 + $0x8] sm:$0xff] }
0x137c   : > { %v5709_v2 = vadd.f32 %v5707_v1, %v5702_v31  ;;  %v5710_v3 = vadd.f32 %v5707_v1, %v5703_v0 }
0x137e   : > { %v5711_v4 = vmul.f32 0.2, %v5709_v2  ;;  %v5712_v5 = vmul.f32 0.2, %v5710_v3 }
0x1380   : > { %v5713_v6 = vmax.f32 %v5709_v2, %v5711_v4  ;;  %v5714_v36 = vmax.f32 %v5710_v3, %v5712_v5 }
0x1382   : > { %5719 = vrot.lane.b32.xlu0 %v5714_v36, %s12190_s6  ;;  %5717 = vrot.lane.b32.xlu2 %v5713_v6, %s12190_s6 }
0x13dc   : > { %v5718_v9 = vpop.permute.xlu2 %5717 }
0x13dd   : > { %5725 = vst.msk [vmem:[#allocation2] sm:$0xff] %vm1287_vm13, %v5718_v9 }
0x13e4   : > { %v5740_v19 = vld [vmem:[#allocation2] sm:$0xff] }
0x13f4   : > { %v5720_v17 = vpop.permute.xlu0 %5719 }
0x13f5   : > { %5727 = vst.msk [vmem:[#allocation2 + $0x10] sm:$0xff] %vm822_vm2, %v5720_v17  ;;  %v5721_v42 = vsel %vm822_vm2, %v5718_v9, %v5720_v17 }
0x13f6   : > { %v9901_v20 = vpack.i.bf16 %v5721_v42, %v5740_v19 }
0x13fc   : > { %v5742_v18 = vld [vmem:[#allocation2 + $0x10] sm:$0xff] }
0x13fd   : > { %5856 = vrot.lane.b32.xlu0 %v5742_v18, %s12195_s4  ;;  %5803 = vrot.lane.b32.xlu1 %v5742_v18, %s12197_s25 }
0x13fe   : > { %5750 = vrot.lane.b32.xlu2 %v5742_v18, %s12208_s2 }
0x1405   : > { %5966 = vrot.lane.b32.xlu1 %v5742_v18, %s12186_s0  ;;  %9902 = vrot.lane.b32.xlu0 %v9901_v20, %s12197_s25 }
0x1406   : > { %5911 = vrot.lane.b32.xlu2 %v5742_v18, %s12199_s23 }
0x140d   : > { %6021 = vrot.lane.b32.xlu0 %v5742_v18, %s12191_s7  ;;  %9897 = vrot.lane.b32.xlu1 %v9901_v20, %s12208_s2  ;;  %s12210_s2 = smov 97  }
0x140e   : > { %6076 = vrot.lane.b32.xlu2 %v5742_v18, %s12187_s1 }
0x1415   : > { %9917 = vrot.lane.b32.xlu0 %v9901_v20, %s12186_s0  ;;  %9912 = vrot.lane.b32.xlu1 %v9901_v20, %s12199_s23  ;;  %s10248_s0 = smov 91   ;;  %s12232_s23 = sld [smem:[#allocation28_spill]] }
0x1416   : > { %9907 = vrot.lane.b32.xlu2 %v9901_v20, %s12195_s4 }
0x141d   : > { %9932 = vrot.lane.b32.xlu0 %v9901_v20, %s12200_s5  ;;  %6131 = vrot.lane.b32.xlu1 %v5742_v18, %s12200_s5  ;;  %s10249_s5 = smov 123  }
0x141e   : > { %9922 = vrot.lane.b32.xlu2 %v9901_v20, %s12191_s7 }
0x1425   : > { %6186 = vrot.lane.b32.xlu0 %v5742_v18, %s12194_s24  ;;  %9927 = vrot.lane.b32.xlu1 %v9901_v20, %s12187_s1 }
0x1426   : > { %9937 = vrot.lane.b32.xlu2 %v9901_v20, %s12194_s24 }
0x142d   : > { %9947 = vrot.lane.b32.xlu0 %v9901_v20, %s12198_s9  ;;  %9942 = vrot.lane.b32.xlu1 %v9901_v20, %s10246_s30 }
0x142e   : > { %6241 = vrot.lane.b32.xlu2 %v5742_v18, %s10246_s30  ;;  %s12227_s30 = smov 93  }
0x1435   : > { %6296 = vrot.lane.b32.xlu1 %v5742_v18, %s12198_s9 }
0x1436   : > { %6349 = vperm.xlu2 %9533, %v5739_v21   ;;  %v5730_v21 = vld [vmem:[%s12083_s19 + $0x10] sm:$0xff] }
0x1458   : > { %v5751_v22 = vpop.permute.xlu2 %5750 }
0x1460   : > { %v5912_v23 = vpop.permute.xlu2 %5911 }
0x1468   : > { %v11456_v35 = vpop.permute.xlu2 %6076 }
0x146f   : > { %v5857_v24 = vpop.permute.xlu0 %5856  ;;  %v5804_v25 = vpop.permute.xlu1 %5803 }
0x1470   : > { %v9908_v28 = vpop.permute.xlu2 %9907 }
0x1471   : > { %v9910_v14 = vunpack.i.h.bf16 %v9908_v28  ;;  %v9909_v44 = vunpack.i.l.bf16 %v9908_v28 }
0x1473   : > { %v5858_v31 = vsel %vm910_vm4, %v9909_v44, %v9910_v14  ;;  %v5859_v0 = vsel %vm910_vm4, %v9910_v14, %v5857_v24 }
0x1477   : > { %v5967_v26 = vpop.permute.xlu1 %5966  ;;  %v9903_v27 = vpop.permute.xlu0 %9902 }
0x1478   : > { %v9905_v32 = vunpack.i.h.bf16 %v9903_v27  ;;  %v9904_v29 = vunpack.i.l.bf16 %v9903_v27  ;;  %v9923_v1 = vpop.permute.xlu2 %9922 }
0x1479   : > { %v9925_v9 = vunpack.i.h.bf16 %v9923_v1  ;;  %v9924_v17 = vunpack.i.l.bf16 %v9923_v1 }
0x147a   : > { %v5805_v34 = vsel %vm2151_vm15, %v9904_v29, %v9905_v32  ;;  %v5806_v37 = vsel %vm2151_vm15, %v9905_v32, %v5804_v25 }
0x147b   : > { %5827 = vmatpush.msrb.mxu2 %v5805_v34  ;;  %5847 = vmatpush.msrb.mxu3 %v5806_v37  ;;  %v6023_v24 = vsel %vm1024_vm7, %v9924_v17, %v9925_v9  ;;  %v5732_v34 = vld [vmem:[%s12083_s19 + $0x20] sm:$0xff]  ;;  %v5733_v37 = vld [vmem:[%s12083_s19 + $0x28] sm:$0xff] }
0x147c   : > { %9298 = vmatmul.msk.f32.vlgmr.msrb.gmra.mxu3 %vm1311_vm14, %v5728_v33  ;;  %9297 = vmatmul.msk.f32.vlgmr.msrb.gmra.mxu2 %vm1311_vm14, %v5728_v33 }
0x147f   : > { %v6022_v38 = vpop.permute.xlu0 %6021  ;;  %v9898_v40 = vpop.permute.xlu1 %9897 }
0x1480   : > { %v9900_v43 = vunpack.i.h.bf16 %v9898_v40  ;;  %v9899_v45 = vunpack.i.l.bf16 %v9898_v40  ;;  %v9938_v28 = vpop.permute.xlu2 %9937 }
0x1481   : > { %v9939_v40 = vunpack.i.l.bf16 %v9938_v28 }
0x1482   : > { %v5752_v63 = vsel %vm5107_vm5, %v9899_v45, %v9900_v43  ;;  %v5753_v30 = vsel %vm5107_vm5, %v9900_v43, %v5751_v22  ;;  %v5731_v22 = vld [vmem:[%s12083_s19 + $0x18] sm:$0xff]  ;;  %vm12215_vm5 = vcmask 769024  }
0x1483   : > { %5774 = vmatpush.msrb.mxu0 %v5752_v63  ;;  %5794 = vmatpush.msrb.mxu1 %v5753_v30  ;;  %v5734_v30 = vld [vmem:[%s12083_s19 + $0x30] sm:$0xff] }
0x1484   : > { %9295 = vmatmul.msk.f32.vlgmr.msrb.gmra.mxu0 %vm1311_vm14, %v5729_v47  ;;  %9296 = vmatmul.msk.f32.vlgmr.msrb.gmra.mxu1 %vm1311_vm14, %v5729_v47 }
0x1485   : > { %5880 = vmatpush.msra.mxu0 %v5858_v31  ;;  %5900 = vmatpush.msra.mxu1 %v5859_v0  ;;  %v5735_v0 = vld [vmem:[%s12083_s19 + $0x38] sm:$0xff] }
0x1487   : > { %v9918_v2 = vpop.permute.xlu0 %9917  ;;  %v9913_v3 = vpop.permute.xlu1 %9912 }
0x1488   : > { %v9920_v4 = vunpack.i.h.bf16 %v9918_v2  ;;  %v9919_v5 = vunpack.i.l.bf16 %v9918_v2  ;;  %v9915_v6 = vunpack.i.h.bf16 %v9913_v3  ;;  %v9914_v36 = vunpack.i.l.bf16 %v9913_v3 }
0x148a   : > { %v5913_v18 = vsel %vm852_vm8, %v9914_v36, %v9915_v6  ;;  %v5914_v42 = vsel %vm852_vm8, %v9915_v6, %v5912_v23  ;;  %v5968_v19 = vsel %vm966_vm10, %v9919_v5, %v9920_v4  ;;  %v5969_v20 = vsel %vm966_vm10, %v9920_v4, %v5967_v26  ;;  %v6242_v36 = vpop.permute.xlu2 %6241 }
0x148b   : > { %5935 = vmatpush.msra.mxu2 %v5913_v18  ;;  %5955 = vmatpush.msra.mxu3 %v5914_v42  ;;  %v6024_v23 = vsel %vm1024_vm7, %v9925_v9, %v6022_v38  ;;  %v9940_v38 = vunpack.i.h.bf16 %v9938_v28  ;;  %v5736_v42 = vld [vmem:[%s12083_s19 + $0x40] sm:$0xff]  ;;  %vm6399_vm8 = vcmask 941056  }
0x148c   : > { %5990 = vmatpush.msrb.mxu0 %v5968_v19  ;;  %6010 = vmatpush.msrb.mxu1 %v5969_v20  ;;  %v5737_v19 = vld [vmem:[%s12083_s19 + $0x48] sm:$0xff] }
0x148d   : > { %9299 = vmatmul.msk.f32.vlgmr.msra.gmra.mxu0 %vm1311_vm14, %v5730_v21  ;;  %9300 = vmatmul.msk.f32.vlgmr.msra.gmra.mxu1 %vm1311_vm14, %v5730_v21  ;;  %v6188_v1 = vsel %vm1198_vm12, %v9939_v40, %v9940_v38 }
0x148e   : > { %9301 = vmatmul.msk.f32.vlgmr.msra.gmra.mxu2 %vm1311_vm14, %v5731_v22  ;;  %9302 = vmatmul.msk.f32.vlgmr.msra.gmra.mxu3 %vm1311_vm14, %v5731_v22  ;;  %v5738_v22 = vld [vmem:[%s12083_s19 + $0x50] sm:$0xff] }
0x148f   : > { %6045 = vmatpush.msrb.mxu2 %v6023_v24  ;;  %6065 = vmatpush.msrb.mxu3 %v6024_v23  ;;  %v9933_v25 = vpop.permute.xlu0 %9932  ;;  %v6132_v26 = vpop.permute.xlu1 %6131 }
0x1490   : > { %v9935_v27 = vunpack.i.h.bf16 %v9933_v25  ;;  %v9934_v32 = vunpack.i.l.bf16 %v9933_v25 }
0x1492   : > { %v6134_v29 = vsel %vm1140_vm11, %v9935_v27, %v6132_v26  ;;  %v6133_v33 = vsel %vm1140_vm11, %v9934_v32, %v9935_v27  ;;  %vm12213_vm11 = vcmask 891904  }
0x1493   : > { %6155 = vmatpush.msra.mxu2 %v6133_v33  ;;  %6175 = vmatpush.msra.mxu3 %v6134_v29 }
0x1495   : > { %9303 = vmatmul.msk.f32.vlgmr.msrb.gmra.mxu0 %vm1311_vm14, %v5732_v34  ;;  %9304 = vmatmul.msk.f32.vlgmr.msrb.gmra.mxu1 %vm1311_vm14, %v5732_v34 }
0x1496   : > { %9305 = vmatmul.msk.f32.vlgmr.msrb.gmra.mxu2 %vm1311_vm14, %v5733_v37  ;;  %9306 = vmatmul.msk.f32.vlgmr.msrb.gmra.mxu3 %vm1311_vm14, %v5733_v37 }
0x1497   : > { %v6187_v14 = vpop.permute.xlu0 %6186  ;;  %v9928_v44 = vpop.permute.xlu1 %9927 }
0x1498   : > { %v9930_v43 = vunpack.i.h.bf16 %v9928_v44  ;;  %v9929_v45 = vunpack.i.l.bf16 %v9928_v44  ;;  %v6189_v31 = vsel %vm1198_vm12, %v9940_v38, %v6187_v14 }
0x149a   : > { %v6078_v47 = vsel %vm1082_vm9, %v9929_v45, %v9930_v43  ;;  %v6079_v63 = vsel %vm1082_vm9, %v9930_v43, %v11456_v35  ;;  %vm12211_vm9 = vcmask 916480  }
0x149b   : > { %6100 = vmatpush.msra.mxu0 %v6078_v47  ;;  %6120 = vmatpush.msra.mxu1 %v6079_v63  ;;  %vm12212_vm10 = vmmov %vm12211_vm9 }
0x149d   : > { %6210 = vmatpush.msrb.mxu0 %v6188_v1  ;;  %6230 = vmatpush.msrb.mxu1 %v6189_v31 }
0x149e   : > { %9307 = vmatmul.msk.f32.vlgmr.msra.gmra.mxu0 %vm1311_vm14, %v5734_v30  ;;  %9308 = vmatmul.msk.f32.vlgmr.msra.gmra.mxu1 %vm1311_vm14, %v5734_v30 }
0x149f   : > { %9309 = vmatmul.msk.f32.vlgmr.msra.gmra.mxu2 %vm1311_vm14, %v5735_v0  ;;  %9310 = vmatmul.msk.f32.vlgmr.msra.gmra.mxu3 %vm1311_vm14, %v5735_v0  ;;  %v9948_v35 = vpop.permute.xlu0 %9947  ;;  %v9943_v2 = vpop.permute.xlu1 %9942 }
0x14a0   : > { %v9950_v3 = vunpack.i.h.bf16 %v9948_v35  ;;  %v9949_v4 = vunpack.i.l.bf16 %v9948_v35  ;;  %v9945_v5 = vunpack.i.h.bf16 %v9943_v2  ;;  %v9944_v6 = vunpack.i.l.bf16 %v9943_v2 }
0x14a2   : > { %v6243_v9 = vsel %vm5599_vm3, %v9944_v6, %v9945_v5  ;;  %v6244_v17 = vsel %vm5599_vm3, %v9945_v5, %v6242_v36  ;;  %v6298_v18 = vsel %vm2205_vm0, %v9949_v4, %v9950_v3  ;;  %vm12214_vm3 = vmmov %vm12213_vm11 }
0x14a3   : > { %6265 = vmatpush.msrb.mxu2 %v6243_v9  ;;  %6285 = vmatpush.msrb.mxu3 %v6244_v17 }
0x14a4   : > { %6320 = vmatpush.msra.mxu0 %v6298_v18 }
0x14a6   : > { %9311 = vmatmul.msk.f32.vlgmr.msrb.gmra.mxu0 %vm1311_vm14, %v5736_v42  ;;  %9312 = vmatmul.msk.f32.vlgmr.msrb.gmra.mxu1 %vm1311_vm14, %v5736_v42 }
0x14a7   : > { %9313 = vmatmul.msk.f32.vlgmr.msrb.gmra.mxu2 %vm1311_vm14, %v5737_v19  ;;  %9314 = vmatmul.msk.f32.vlgmr.msrb.gmra.mxu3 %vm1311_vm14, %v5737_v19  ;;  %v6297_v20 = vpop.permute.xlu1 %6296 }
0x14a8   : > { %v6299_v21 = vsel %vm2205_vm0, %v9950_v3, %v6297_v20 }
0x14a9   : > { %6340 = vmatpush.msra.mxu1 %v6299_v21 }
0x14ae   : > { %9315 = vmatmul.msk.f32.vlgmr.msra.gmra.mxu0 %vm1311_vm14, %v5738_v22  ;;  %9316 = vmatmul.msk.f32.vlgmr.msra.gmra.mxu1 %vm1311_vm14, %v5738_v22 }
0x14ff   : > { %v5829_v25 = vpop.f32.mrf.mxu2  ;;  %v5849_v26 = vpop.f32.mrf.mxu3 }
0x1501   : > { %v5776_v23 = vpop.f32.mrf.mxu0  ;;  %v5796_v24 = vpop.f32.mrf.mxu1 }
0x1502   : > { %v5830_v29 = vadd.f32 %v5829_v25, %v5776_v23  ;;  %v5850_v38 = vadd.f32 %v5849_v26, %v5796_v24 }
0x150a   : > { %v5882_v27 = vpop.f32.mrf.mxu0  ;;  %v5902_v32 = vpop.f32.mrf.mxu1 }
0x150b   : > { %v5905_v40 = vadd.f32 %v5882_v27, %v5830_v29  ;;  %v5906_v14 = vadd.f32 %v5902_v32, %v5850_v38  ;;  %v6350_v27 = vpop.permute.xlu2 %6349 }
0x1511   : > { %v5937_v33 = vpop.f32.mrf.mxu2  ;;  %v5957_v34 = vpop.f32.mrf.mxu3 }
0x1512   : > { %v5992_v37 = vpop.f32.mrf.mxu0  ;;  %v6012_v28 = vpop.f32.mrf.mxu1  ;;  %v5960_v44 = vadd.f32 %v5937_v33, %v5905_v40  ;;  %v5961_v43 = vadd.f32 %v5957_v34, %v5906_v14 }
0x1514   : > { %v6015_v31 = vadd.f32 %v5992_v37, %v5960_v44  ;;  %v6016_v0 = vadd.f32 %v6012_v28, %v5961_v43 }
0x1519   : > { %v6047_v45 = vpop.f32.mrf.mxu2  ;;  %v6067_v47 = vpop.f32.mrf.mxu3 }
0x151a   : > { %v6070_v1 = vadd.f32 %v6047_v45, %v6015_v31  ;;  %v6071_v35 = vadd.f32 %v6067_v47, %v6016_v0  ;;  %v9328_v47 = vld [vmem:[%s12082_s18 + $0x8] sm:$0xff] }
0x151b   : > { %v6102_v63 = vpop.f32.mrf.mxu0  ;;  %v6122_v30 = vpop.f32.mrf.mxu1 }
0x151c   : > { %v6125_v4 = vadd.f32 %v6102_v63, %v6070_v1  ;;  %v6126_v5 = vadd.f32 %v6122_v30, %v6071_v35  ;;  %v9318_v1 = vld [vmem:[%s12081_s17 + $0x60] sm:$0xff] }
0x1522   : > { %v6157_v2 = vpop.f32.mrf.mxu2  ;;  %v6177_v3 = vpop.f32.mrf.mxu3 }
0x1523   : > { %v6212_v6 = vpop.f32.mrf.mxu0  ;;  %v6232_v36 = vpop.f32.mrf.mxu1  ;;  %v6180_v9 = vadd.f32 %v6157_v2, %v6125_v4  ;;  %v6181_v17 = vadd.f32 %v6177_v3, %v6126_v5 }
0x1525   : > { %v6235_v18 = vadd.f32 %v6212_v6, %v6180_v9  ;;  %v6236_v42 = vadd.f32 %v6232_v36, %v6181_v17 }
0x152a   : > { %v6267_v19 = vpop.f32.mrf.mxu2  ;;  %v6287_v20 = vpop.f32.mrf.mxu3 }
0x152b   : > { %v6290_v21 = vadd.f32 %v6267_v19, %v6235_v18  ;;  %v6291_v22 = vadd.f32 %v6287_v20, %v6236_v42  ;;  %v6322_v23 = vpop.f32.mrf.mxu0  ;;  %v6342_v24 = vpop.f32.mrf.mxu1 }
0x152d   : > { %v6345_v25 = vadd.f32 %v6322_v23, %v6290_v21  ;;  %v6346_v26 = vadd.f32 %v6342_v24, %v6291_v22  ;;  %v9319_v23 = vld [vmem:[%s12081_s17 + $0x68] sm:$0xff] }
0x152f   : > { %v6352_v32 = vadd.f32 %v6350_v27, %v6345_v25  ;;  %v6353_v29 = vadd.f32 %v6350_v27, %v6346_v26 }
0x1531   : > { %v11537_v33 = vadd.f32 %v6352_v32, %v11201_v8  ;;  %v11540_v34 = vadd.f32 %v6353_v29, %v11208_v56 }
0x1533   : > { %v6356_v37 = vmul.f32 0.2, %v11537_v33  ;;  %v6357_v28 = vmul.f32 0.2, %v11540_v34 }
0x1535   : > { %v6359_v38 = vmax.f32 %v11540_v34, %v6357_v28  ;;  %v6358_v40 = vmax.f32 %v11537_v33, %v6356_v37  ;;  %v9317_v37 = vld [vmem:[%s12081_s17 + $0x58] sm:$0xff] }
0x1537   : > { %6364 = vrot.lane.b32.xlu1 %v6359_v38, %s12190_s6  ;;  %6362 = vrot.lane.b32.xlu0 %v6358_v40, %s12190_s6  ;;  %v9321_v40 = vld [vmem:[%s12081_s17 + $0x78] sm:$0xff] }
0x15a9   : > { %v6365_v14 = vpop.permute.xlu1 %6364  ;;  %v6363_v44 = vpop.permute.xlu0 %6362 }
0x15aa   : > { %6372 = vst.msk [vmem:[#allocation2 + $0x10] sm:$0xff] %vm822_vm2, %v6365_v14  ;;  %v6366_v43 = vsel %vm822_vm2, %v6363_v44, %v6365_v14 }
0x15ab   : > { %6370 = vst.msk [vmem:[#allocation2] sm:$0xff] %vm1287_vm13, %v6363_v44 }
0x15b1   : > { %v6389_v8 = vld [vmem:[#allocation2 + $0x10] sm:$0xff] }
0x15b2   : > { %6451 = vrot.lane.b32.xlu1 %v6389_v8, %s12206_s14  ;;  %6504 = vrot.lane.b32.xlu2 %v6389_v8, %s12203_s28  ;;  %v6387_v56 = vld [vmem:[#allocation2] sm:$0xff] }
0x15b3   : > { %6397 = vrot.lane.b32.xlu0 %v6389_v8, %s10247_s11  ;;  %v9956_v45 = vpack.i.bf16 %v6366_v43, %v6387_v56 }
0x15ba   : > { %9957 = vrot.lane.b32.xlu1 %v9956_v45, %s12203_s28  ;;  %9952 = vrot.lane.b32.xlu2 %v9956_v45, %s10247_s11 }
0x15bb   : > { %6614 = vrot.lane.b32.xlu0 %v6389_v8, %s12195_s4 }
0x15c2   : > { %6724 = vrot.lane.b32.xlu1 %v6389_v8, %s12194_s24  ;;  %6559 = vrot.lane.b32.xlu2 %v6389_v8, %s12204_s27 }
0x15c3   : > { %9962 = vrot.lane.b32.xlu0 %v9956_v45, %s12206_s14 }
0x15ca   : > { %9972 = vrot.lane.b32.xlu1 %v9956_v45, %s12204_s27  ;;  %9967 = vrot.lane.b32.xlu2 %v9956_v45, %s12195_s4 }
0x15cb   : > { %6669 = vrot.lane.b32.xlu0 %v6389_v8, %s12191_s7 }
0x15d2   : > { %9987 = vrot.lane.b32.xlu1 %v9956_v45, %s12209_s29  ;;  %6834 = vrot.lane.b32.xlu2 %v6389_v8, %s12209_s29 }
0x15d3   : > { %9977 = vrot.lane.b32.xlu0 %v9956_v45, %s12194_s24 }
0x15da   : > { %6779 = vrot.lane.b32.xlu1 %v6389_v8, %s12210_s2  ;;  %9982 = vrot.lane.b32.xlu2 %v9956_v45, %s12191_s7 }
0x15db   : > { %9992 = vrot.lane.b32.xlu0 %v9956_v45, %s12210_s2 }
0x15e2   : > { %10002 = vrot.lane.b32.xlu1 %v9956_v45, %s10248_s0  ;;  %9997 = vrot.lane.b32.xlu2 %v9956_v45, %s12207_s15 }
0x15e3   : > { %6945 = vrot.lane.b32.xlu0 %v6389_v8, %s12207_s15 }
0x15ea   : > { %6889 = vrot.lane.b32.xlu2 %v6389_v8, %s10248_s0 }
0x15eb   : > { %6998 = vperm.xlu0 %9534, %v9328_v47  }
0x160c   : > { %v6505_v63 = vpop.permute.xlu2 %6504 }
0x1614   : > { %v9953_v30 = vpop.permute.xlu2 %9952 }
0x1615   : > { %v9955_v31 = vunpack.i.h.bf16 %v9953_v30  ;;  %v9954_v0 = vunpack.i.l.bf16 %v9953_v30 }
0x1617   : > { %v6400_v35 = vsel %vm6399_vm8, %v9954_v0, %v9955_v31 }
0x1618   : > { %6422 = vmatpush.msra.mxu2 %v6400_v35 }
0x1619   : > { %9329 = vmatmul.msk.f32.vlgmr.msra.gmra.mxu2 %vm1311_vm14, %v9318_v1 }
0x161c   : > { %v6560_v2 = vpop.permute.xlu2 %6559 }
0x1624   : > { %v6452_v3 = vpop.permute.xlu1 %6451  ;;  %v9968_v4 = vpop.permute.xlu2 %9967 }
0x1625   : > { %v6398_v5 = vpop.permute.xlu0 %6397  ;;  %v9970_v36 = vunpack.i.h.bf16 %v9968_v4  ;;  %v9969_v9 = vunpack.i.l.bf16 %v9968_v4 }
0x1626   : > { %v6401_v6 = vsel %vm6399_vm8, %v9955_v31, %v6398_v5  ;;  %v9320_v31 = vld [vmem:[%s12081_s17 + $0x70] sm:$0xff] }
0x1627   : > { %6442 = vmatpush.msra.mxu3 %v6401_v6  ;;  %v6616_v25 = vsel %vm910_vm4, %v9969_v9, %v9970_v36  ;;  %v9322_v9 = vld [vmem:[%s12081_s17 + $0x80] sm:$0xff] }
0x1628   : > { %9330 = vmatmul.msk.f32.vlgmr.msra.gmra.mxu3 %vm1311_vm14, %v9318_v1 }
0x162c   : > { %v9958_v17 = vpop.permute.xlu1 %9957  ;;  %v6835_v20 = vpop.permute.xlu2 %6834 }
0x162d   : > { %v9960_v18 = vunpack.i.h.bf16 %v9958_v17  ;;  %v9959_v42 = vunpack.i.l.bf16 %v9958_v17  ;;  %v6615_v19 = vpop.permute.xlu0 %6614 }
0x162e   : > { %v6617_v24 = vsel %vm910_vm4, %v9970_v36, %v6615_v19 }
0x162f   : > { %v6506_v21 = vsel %vm12211_vm9, %v9959_v42, %v9960_v18  ;;  %v6507_v22 = vsel %vm12212_vm10, %v9960_v18, %v6505_v63  ;;  %vm12216_vm9 = vmmov %vm12215_vm5  ;;  %vm12217_vm10 = vcmask 793600  }
0x1630   : > { %6528 = vmatpush.msrb.mxu2 %v6506_v21  ;;  %6548 = vmatpush.msrb.mxu3 %v6507_v22  ;;  %v9323_v21 = vld [vmem:[%s12081_s17 + $0x88] sm:$0xff] }
0x1631   : > { %9333 = vmatmul.msk.f32.vlgmr.msrb.gmra.mxu2 %vm1311_vm14, %v9319_v23  ;;  %9334 = vmatmul.msk.f32.vlgmr.msrb.gmra.mxu3 %vm1311_vm14, %v9319_v23 }
0x1632   : > { %6638 = vmatpush.msra.mxu2 %v6616_v25  ;;  %6658 = vmatpush.msra.mxu3 %v6617_v24 }
0x1634   : > { %v6725_v26 = vpop.permute.xlu1 %6724  ;;  %v9983_v14 = vpop.permute.xlu2 %9982 }
0x1635   : > { %v9963_v27 = vpop.permute.xlu0 %9962  ;;  %v9985_v44 = vunpack.i.h.bf16 %v9983_v14  ;;  %v9984_v8 = vunpack.i.l.bf16 %v9983_v14 }
0x1636   : > { %v9965_v32 = vunpack.i.h.bf16 %v9963_v27  ;;  %v9964_v29 = vunpack.i.l.bf16 %v9963_v27 }
0x1637   : > { %v6671_v1 = vsel %vm1024_vm7, %v9984_v8, %v9985_v44 }
0x1638   : > { %v6453_v28 = vsel %vm4275_vm6, %v9964_v29, %v9965_v32  ;;  %v6454_v38 = vsel %vm4275_vm6, %v9965_v32, %v6452_v3 }
0x1639   : > { %6475 = vmatpush.msrb.mxu0 %v6453_v28  ;;  %6495 = vmatpush.msrb.mxu1 %v6454_v38  ;;  %v9325_v28 = vld [vmem:[%s12081_s17 + $0x98] sm:$0xff] }
0x163a   : > { %9331 = vmatmul.msk.f32.vlgmr.msrb.gmra.mxu0 %vm1311_vm14, %v9317_v37  ;;  %9332 = vmatmul.msk.f32.vlgmr.msrb.gmra.mxu1 %vm1311_vm14, %v9317_v37 }
0x163b   : > { %9337 = vmatmul.msk.f32.vlgmr.msra.gmra.mxu2 %vm1311_vm14, %v9321_v40  ;;  %9338 = vmatmul.msk.f32.vlgmr.msra.gmra.mxu3 %vm1311_vm14, %v9321_v40 }
0x163c   : > { %v9973_v56 = vpop.permute.xlu1 %9972  ;;  %v9998_v3 = vpop.permute.xlu2 %9997 }
0x163d   : > { %v9975_v43 = vunpack.i.h.bf16 %v9973_v56  ;;  %v9974_v45 = vunpack.i.l.bf16 %v9973_v56  ;;  %v6670_v47 = vpop.permute.xlu0 %6669  ;;  %v10000_v17 = vunpack.i.h.bf16 %v9998_v3  ;;  %v9999_v18 = vunpack.i.l.bf16 %v9998_v3 }
0x163e   : > { %v6672_v0 = vsel %vm1024_vm7, %v9985_v44, %v6670_v47  ;;  %v9326_v47 = vld [vmem:[%s12081_s17 + $0xa0] sm:$0xff] }
0x163f   : > { %v6561_v63 = vsel %vm12213_vm11, %v9974_v45, %v9975_v43  ;;  %v6562_v30 = vsel %vm12214_vm3, %v9975_v43, %v6560_v2  ;;  %v6947_v24 = vsel %vm4550_vm1, %v9999_v18, %v10000_v17  ;;  %vm12218_vm11 = vmmov %vm12217_vm10  ;;  %vm6891_vm3 = vcmask 744448  }
0x1640   : > { %6583 = vmatpush.msra.mxu0 %v6561_v63  ;;  %6603 = vmatpush.msra.mxu1 %v6562_v30  ;;  %v9327_v63 = vld [vmem:[%s12081_s17 + $0xa8] sm:$0xff] }
0x1642   : > { %6693 = vmatpush.msrb.mxu0 %v6671_v1  ;;  %6713 = vmatpush.msrb.mxu1 %v6672_v0 }
0x1643   : > { %9335 = vmatmul.msk.f32.vlgmr.msra.gmra.mxu0 %vm1311_vm14, %v9320_v31  ;;  %9336 = vmatmul.msk.f32.vlgmr.msra.gmra.mxu1 %vm1311_vm14, %v9320_v31 }
0x1644   : > { %v9988_v35 = vpop.permute.xlu1 %9987  ;;  %v6890_v8 = vpop.permute.xlu2 %6889 }
0x1645   : > { %v9990_v4 = vunpack.i.h.bf16 %v9988_v35  ;;  %v9989_v2 = vunpack.i.l.bf16 %v9988_v35  ;;  %v9978_v5 = vpop.permute.xlu0 %9977 }
0x1646   : > { %v9980_v6 = vunpack.i.h.bf16 %v9978_v5  ;;  %v9979_v36 = vunpack.i.l.bf16 %v9978_v5 }
0x1647   : > { %v6836_v22 = vsel %vm12215_vm5, %v9989_v2, %v9990_v4  ;;  %v6837_v23 = vsel %vm12216_vm9, %v9990_v4, %v6835_v20  ;;  %v9324_v20 = vld [vmem:[%s12081_s17 + $0x90] sm:$0xff]  ;;  %vm12219_vm5 = vcmask 916480  }
0x1648   : > { %v6726_v42 = vsel %vm1198_vm12, %v9979_v36, %v9980_v6  ;;  %v6727_v19 = vsel %vm1198_vm12, %v9980_v6, %v6725_v26  ;;  %vm12220_vm9 = vmmov %vm12219_vm5 }
0x1649   : > { %6748 = vmatpush.msrb.mxu2 %v6726_v42  ;;  %6768 = vmatpush.msrb.mxu3 %v6727_v19 }
0x164a   : > { %9341 = vmatmul.msk.f32.vlgmr.msrb.gmra.mxu2 %vm1311_vm14, %v9323_v21  ;;  %9342 = vmatmul.msk.f32.vlgmr.msrb.gmra.mxu3 %vm1311_vm14, %v9323_v21 }
0x164b   : > { %9339 = vmatmul.msk.f32.vlgmr.msrb.gmra.mxu0 %vm1311_vm14, %v9322_v9  ;;  %9340 = vmatmul.msk.f32.vlgmr.msrb.gmra.mxu1 %vm1311_vm14, %v9322_v9 }
0x164c   : > { %6858 = vmatpush.msra.mxu2 %v6836_v22  ;;  %6878 = vmatpush.msra.mxu3 %v6837_v23  ;;  %v6780_v25 = vpop.permute.xlu1 %6779 }
0x164d   : > { %v9993_v26 = vpop.permute.xlu0 %9992 }
0x164e   : > { %6969 = vmatpush.msrb.mxu2 %v6947_v24  ;;  %v9995_v27 = vunpack.i.h.bf16 %v9993_v26  ;;  %v9994_v32 = vunpack.i.l.bf16 %v9993_v26 }
0x1650   : > { %v6781_v29 = vsel %vm12217_vm10, %v9994_v32, %v9995_v27  ;;  %v6782_v37 = vsel %vm12218_vm11, %v9995_v27, %v6780_v25 }
0x1651   : > { %6803 = vmatpush.msra.mxu0 %v6781_v29  ;;  %6823 = vmatpush.msra.mxu1 %v6782_v37 }
0x1652   : > { %9345 = vmatmul.msk.f32.vlgmr.msra.gmra.mxu2 %vm1311_vm14, %v9325_v28  ;;  %9346 = vmatmul.msk.f32.vlgmr.msra.gmra.mxu3 %vm1311_vm14, %v9325_v28 }
0x1653   : > { %9343 = vmatmul.msk.f32.vlgmr.msra.gmra.mxu0 %vm1311_vm14, %v9324_v20  ;;  %9344 = vmatmul.msk.f32.vlgmr.msra.gmra.mxu1 %vm1311_vm14, %v9324_v20 }
0x1654   : > { %v10003_v38 = vpop.permute.xlu1 %10002 }
0x1655   : > { %v10005_v40 = vunpack.i.h.bf16 %v10003_v38  ;;  %v10004_v14 = vunpack.i.l.bf16 %v10003_v38  ;;  %v6946_v44 = vpop.permute.xlu0 %6945 }
0x1656   : > { %v6948_v56 = vsel %vm4550_vm1, %v10000_v17, %v6946_v44 }
0x1657   : > { %6989 = vmatpush.msrb.mxu3 %v6948_v56  ;;  %v6892_v43 = vsel %vm6891_vm3, %v10004_v14, %v10005_v40  ;;  %v6893_v45 = vsel %vm6891_vm3, %v10005_v40, %v6890_v8 }
0x1658   : > { %6914 = vmatpush.msrb.mxu0 %v6892_v43  ;;  %6934 = vmatpush.msrb.mxu1 %v6893_v45 }
0x165a   : > { %9349 = vmatmul.msk.f32.vlgmr.msrb.gmra.mxu2 %vm1311_vm14, %v9327_v63  ;;  %9350 = vmatmul.msk.f32.vlgmr.msrb.gmra.mxu3 %vm1311_vm14, %v9327_v63 }
0x165b   : > { %9347 = vmatmul.msk.f32.vlgmr.msrb.gmra.mxu0 %vm1311_vm14, %v9326_v47  ;;  %9348 = vmatmul.msk.f32.vlgmr.msrb.gmra.mxu1 %vm1311_vm14, %v9326_v47 }
0x169c   : > { %v6424_v31 = vpop.f32.mrf.mxu2 }
0x16ab   : > { %v6444_v30 = vpop.f32.mrf.mxu3 }
0x16b4   : > { %v6550_v35 = vpop.f32.mrf.mxu3  ;;  %v6530_v3 = vpop.f32.mrf.mxu2 }
0x16b7   : > { %v6477_v0 = vpop.f32.mrf.mxu0  ;;  %v6497_v1 = vpop.f32.mrf.mxu1 }
0x16b8   : > { %v6498_v5 = vadd.f32 %v6497_v1, %v6444_v30  ;;  %v6478_v36 = vadd.f32 %v6477_v0, %v6424_v31 }
0x16ba   : > { %v6554_v9 = vadd.f32 %v6550_v35, %v6498_v5  ;;  %v6553_v19 = vadd.f32 %v6530_v3, %v6478_v36  ;;  %v6999_v35 = vpop.permute.xlu0 %6998 }
0x16be   : > { %v6660_v6 = vpop.f32.mrf.mxu3  ;;  %v6640_v17 = vpop.f32.mrf.mxu2 }
0x16c0   : > { %v6585_v4 = vpop.f32.mrf.mxu0  ;;  %v6605_v2 = vpop.f32.mrf.mxu1 }
0x16c1   : > { %v6609_v21 = vadd.f32 %v6605_v2, %v6554_v9  ;;  %v6608_v22 = vadd.f32 %v6585_v4, %v6553_v19 }
0x16c3   : > { %v6664_v23 = vadd.f32 %v6660_v6, %v6609_v21  ;;  %v6663_v26 = vadd.f32 %v6640_v17, %v6608_v22  ;;  %v9362_v22 = vld [vmem:[%s12084_s20 + $0x8] sm:$0xff] }
0x16c8   : > { %v6695_v18 = vpop.f32.mrf.mxu0  ;;  %v6715_v42 = vpop.f32.mrf.mxu1 }
0x16c9   : > { %v6718_v20 = vadd.f32 %v6695_v18, %v6663_v26  ;;  %v6719_v29 = vadd.f32 %v6715_v42, %v6664_v23 }
0x16cd   : > { %v6750_v24 = vpop.f32.mrf.mxu2  ;;  %v6770_v25 = vpop.f32.mrf.mxu3 }
0x16ce   : > { %v6773_v37 = vadd.f32 %v6750_v24, %v6718_v20  ;;  %v6774_v28 = vadd.f32 %v6770_v25, %v6719_v29  ;;  %v9351_v20 = vld [vmem:[%s12083_s19 + $0x58] sm:$0xff] }
0x16d0   : > { %v6805_v27 = vpop.f32.mrf.mxu0  ;;  %v6825_v32 = vpop.f32.mrf.mxu1 }
0x16d1   : > { %v6828_v14 = vadd.f32 %v6805_v27, %v6773_v37  ;;  %v6829_v44 = vadd.f32 %v6825_v32, %v6774_v28 }
0x16d5   : > { %v6860_v38 = vpop.f32.mrf.mxu2  ;;  %v6880_v40 = vpop.f32.mrf.mxu3 }
0x16d6   : > { %v6883_v8 = vadd.f32 %v6860_v38, %v6828_v14  ;;  %v6884_v56 = vadd.f32 %v6880_v40, %v6829_v44 }
0x16d8   : > { %v6916_v43 = vpop.f32.mrf.mxu0  ;;  %v6936_v45 = vpop.f32.mrf.mxu1 }
0x16d9   : > { %v6939_v47 = vadd.f32 %v6916_v43, %v6883_v8  ;;  %v6940_v63 = vadd.f32 %v6936_v45, %v6884_v56 }
0x16dd   : > { %v6971_v30 = vpop.f32.mrf.mxu2  ;;  %v6991_v31 = vpop.f32.mrf.mxu3 }
0x16de   : > { %v6994_v0 = vadd.f32 %v6971_v30, %v6939_v47  ;;  %v6995_v1 = vadd.f32 %v6991_v31, %v6940_v63 }
0x16e0   : > { %v7001_v3 = vadd.f32 %v6999_v35, %v6994_v0  ;;  %v7002_v4 = vadd.f32 %v6999_v35, %v6995_v1  ;;  %v9352_v0 = vld [vmem:[%s12083_s19 + $0x60] sm:$0xff] }
0x16e2   : > { %v7003_v2 = vmul.f32 0.2, %v7001_v3  ;;  %v7004_v5 = vmul.f32 0.2, %v7002_v4 }
0x16e4   : > { %v7005_v6 = vmax.f32 %v7001_v3, %v7003_v2  ;;  %v7006_v36 = vmax.f32 %v7002_v4, %v7004_v5 }
0x16e6   : > { %7011 = vrot.lane.b32.xlu2 %v7006_v36, %s12190_s6  ;;  %7009 = vrot.lane.b32.xlu1 %v7005_v6, %s12190_s6 }
0x1740   : > { %v7012_v9 = vpop.permute.xlu2 %7011 }
0x1741   : > { %7019 = vst.msk [vmem:[#allocation2 + $0x10] sm:$0xff] %vm822_vm2, %v7012_v9 }
0x1748   : > { %v7036_v17 = vld [vmem:[#allocation2 + $0x10] sm:$0xff] }
0x1749   : > { %7150 = vrot.lane.b32.xlu2 %v7036_v17, %s12203_s28  ;;  %7097 = vrot.lane.b32.xlu0 %v7036_v17, %s12206_s14 }
0x174a   : > { %7044 = vrot.lane.b32.xlu1 %v7036_v17, %s10247_s11 }
0x1751   : > { %7260 = vrot.lane.b32.xlu0 %v7036_v17, %s12195_s4 }
0x1752   : > { %7205 = vrot.lane.b32.xlu1 %v7036_v17, %s12204_s27 }
0x1758   : > { %v7010_v18 = vpop.permute.xlu1 %7009 }
0x1759   : > { %7017 = vst.msk [vmem:[#allocation2] sm:$0xff] %vm1287_vm13, %v7010_v18  ;;  %v7013_v42 = vsel %vm822_vm2, %v7010_v18, %v7012_v9 }
0x175a   : > { %7370 = vrot.lane.b32.xlu1 %v7036_v17, %s12194_s24 }
0x1760   : > { %v7034_v19 = vld [vmem:[#allocation2] sm:$0xff] }
0x1761   : > { %v10016_v21 = vpack.i.bf16 %v7013_v42, %v7034_v19 }
0x1763   : > { %10017 = vrot.lane.b32.xlu1 %v10016_v21, %s12203_s28  ;;  %10012 = vrot.lane.b32.xlu2 %v10016_v21, %s12206_s14  ;;  %s10250_s28 = smov 78  }
0x1764   : > { %10007 = vrot.lane.b32.xlu0 %v10016_v21, %s10247_s11  ;;  %s10251_s11 = smov 83  }
0x176b   : > { %10032 = vrot.lane.b32.xlu1 %v10016_v21, %s12191_s7  ;;  %7315 = vrot.lane.b32.xlu2 %v7036_v17, %s12191_s7 }
0x176c   : > { %10022 = vrot.lane.b32.xlu0 %v10016_v21, %s12204_s27 }
0x1773   : > { %10047 = vrot.lane.b32.xlu1 %v10016_v21, %s12209_s29  ;;  %10027 = vrot.lane.b32.xlu2 %v10016_v21, %s12195_s4 }
0x1774   : > { %7425 = vrot.lane.b32.xlu0 %v7036_v17, %s12210_s2 }
0x177b   : > { %7535 = vrot.lane.b32.xlu1 %v7036_v17, %s10248_s0  ;;  %10042 = vrot.lane.b32.xlu2 %v10016_v21, %s12210_s2  ;;  %s12239_s2 = sld [smem:[#allocation12_spill]] }
0x177c   : > { %10037 = vrot.lane.b32.xlu0 %v10016_v21, %s12194_s24 }
0x1783   : > { %7643 = vperm.xlu1 %9550, %v9362_v22   ;;  %7480 = vrot.lane.b32.xlu2 %v7036_v17, %s12209_s29 }
0x1784   : > { %10052 = vrot.lane.b32.xlu0 %v10016_v21, %s10248_s0 }
0x178b   : > { %10057 = vrot.lane.b32.xlu2 %v10016_v21, %s12207_s15  ;;  %v9353_v21 = vld [vmem:[%s12083_s19 + $0x68] sm:$0xff] }
0x178c   : > { %7590 = vrot.lane.b32.xlu0 %v7036_v17, %s12207_s15 }
0x17a3   : > { %v7151_v23 = vpop.permute.xlu2 %7150 }
0x17bb   : > { %v7098_v32 = vpop.permute.xlu0 %7097 }
0x17bc   : > { %v7045_v24 = vpop.permute.xlu1 %7044 }
0x17bd   : > { %v10013_v25 = vpop.permute.xlu2 %10012 }
0x17be   : > { %v10015_v26 = vunpack.i.h.bf16 %v10013_v25  ;;  %v10014_v27 = vunpack.i.l.bf16 %v10013_v25 }
0x17c0   : > { %v7099_v29 = vsel %vm4275_vm6, %v10014_v27, %v10015_v26  ;;  %v7100_v37 = vsel %vm4275_vm6, %v10015_v26, %v7098_v32  ;;  %v9354_v26 = vld [vmem:[%s12083_s19 + $0x70] sm:$0xff] }
0x17c1   : > { %7121 = vmatpush.msra.mxu2 %v7099_v29  ;;  %7141 = vmatpush.msra.mxu3 %v7100_v37 }
0x17c2   : > { %9366 = vmatmul.msk.f32.vlgmr.msra.gmra.mxu3 %vm1311_vm14, %v9351_v20  ;;  %9365 = vmatmul.msk.f32.vlgmr.msra.gmra.mxu2 %vm1311_vm14, %v9351_v20 }
0x17c3   : > { %v7261_v14 = vpop.permute.xlu0 %7260 }
0x17c4   : > { %v7206_v28 = vpop.permute.xlu1 %7205 }
0x17c5   : > { %v7316_v38 = vpop.permute.xlu2 %7315 }
0x17cc   : > { %v11690_v40 = vpop.permute.xlu1 %7370 }
0x17cd   : > { %v10028_v44 = vpop.permute.xlu2 %10027 }
0x17ce   : > { %v10030_v30 = vunpack.i.h.bf16 %v10028_v44  ;;  %v10029_v31 = vunpack.i.l.bf16 %v10028_v44 }
0x17d0   : > { %v7262_v5 = vsel %vm910_vm4, %v10029_v31, %v10030_v30  ;;  %v7263_v6 = vsel %vm910_vm4, %v10030_v30, %v7261_v14  ;;  %vm12223_vm4 = vmmov %vm12218_vm11  ;;  %v9356_v14 = vld [vmem:[%s12083_s19 + $0x80] sm:$0xff]  ;;  %v9357_v30 = vld [vmem:[%s12083_s19 + $0x88] sm:$0xff] }
0x17d1   : > { %vm12224_vm11 = vmmov %vm12223_vm4 }
0x17d5   : > { %v10018_v8 = vpop.permute.xlu1 %10017  ;;  %v10043_v2 = vpop.permute.xlu2 %10042 }
0x17d6   : > { %v10008_v56 = vpop.permute.xlu0 %10007  ;;  %v10020_v43 = vunpack.i.h.bf16 %v10018_v8  ;;  %v10019_v45 = vunpack.i.l.bf16 %v10018_v8  ;;  %v10045_v22 = vunpack.i.h.bf16 %v10043_v2 }
0x17d7   : > { %v10010_v47 = vunpack.i.h.bf16 %v10008_v56  ;;  %v10009_v63 = vunpack.i.l.bf16 %v10008_v56 }
0x17d8   : > { %v7152_v3 = vsel %vm12219_vm5, %v10019_v45, %v10020_v43  ;;  %v7153_v4 = vsel %vm12220_vm9, %v10020_v43, %v7151_v23  ;;  %v10044_v23 = vunpack.i.l.bf16 %v10043_v2  ;;  %vm12225_vm5 = vcmask 769024  }
0x17d9   : > { %v7046_v1 = vsel %vm6399_vm8, %v10009_v63, %v10010_v47  ;;  %v7047_v35 = vsel %vm6399_vm8, %v10010_v47, %v7045_v24  ;;  %vm12221_vm8 = vcmask 891904   ;;  %vm12226_vm9 = vmmov %vm12225_vm5 }
0x17da   : > { %7068 = vmatpush.msra.mxu0 %v7046_v1  ;;  %7088 = vmatpush.msra.mxu1 %v7047_v35  ;;  %vm12222_vm10 = vmmov %vm12221_vm8  ;;  %v7427_v29 = vsel %vm12223_vm4, %v10044_v23, %v10045_v22  ;;  %v9361_v23 = vld [vmem:[%s12083_s19 + $0xa8] sm:$0xff]  ;;  %vm12230_vm4 = vcmask 760832  }
0x17db   : > { %9363 = vmatmul.msk.f32.vlgmr.msra.gmra.mxu0 %vm1311_vm14, %v9352_v0  ;;  %9364 = vmatmul.msk.f32.vlgmr.msra.gmra.mxu1 %vm1311_vm14, %v9352_v0 }
0x17dc   : > { %7174 = vmatpush.msrb.mxu0 %v7152_v3  ;;  %7194 = vmatpush.msrb.mxu1 %v7153_v4  ;;  %v9358_v3 = vld [vmem:[%s12083_s19 + $0x90] sm:$0xff] }
0x17dd   : > { %v10033_v36 = vpop.permute.xlu1 %10032  ;;  %v7481_v20 = vpop.permute.xlu2 %7480 }
0x17de   : > { %7284 = vmatpush.msra.mxu0 %v7262_v5  ;;  %7304 = vmatpush.msra.mxu1 %v7263_v6  ;;  %v10023_v9 = vpop.permute.xlu0 %10022  ;;  %v10035_v17 = vunpack.i.h.bf16 %v10033_v36  ;;  %v10034_v18 = vunpack.i.l.bf16 %v10033_v36 }
0x17df   : > { %v10025_v42 = vunpack.i.h.bf16 %v10023_v9  ;;  %v10024_v19 = vunpack.i.l.bf16 %v10023_v9 }
0x17e0   : > { %v7317_v27 = vsel %vm1024_vm7, %v10034_v18, %v10035_v17  ;;  %v7318_v32 = vsel %vm1024_vm7, %v10035_v17, %v7316_v38  ;;  %v9355_v38 = vld [vmem:[%s12083_s19 + $0x78] sm:$0xff] }
0x17e1   : > { %v7207_v24 = vsel %vm12221_vm8, %v10024_v19, %v10025_v42  ;;  %v7208_v25 = vsel %vm12222_vm10, %v10025_v42, %v7206_v28  ;;  %v9359_v17 = vld [vmem:[%s12083_s19 + $0x98] sm:$0xff]  ;;  %v9360_v19 = vld [vmem:[%s12083_s19 + $0xa0] sm:$0xff]  ;;  %vm8231_vm10 = vcmask 637952  }
0x17e2   : > { %7229 = vmatpush.msrb.mxu2 %v7207_v24  ;;  %7249 = vmatpush.msrb.mxu3 %v7208_v25 }
0x17e3   : > { %9367 = vmatmul.msk.f32.vlgmr.msrb.gmra.mxu0 %vm1311_vm14, %v9353_v21  ;;  %9368 = vmatmul.msk.f32.vlgmr.msrb.gmra.mxu1 %vm1311_vm14, %v9353_v21 }
0x17e4   : > { %9369 = vmatmul.msk.f32.vlgmr.msrb.gmra.mxu2 %vm1311_vm14, %v9354_v26  ;;  %9370 = vmatmul.msk.f32.vlgmr.msrb.gmra.mxu3 %vm1311_vm14, %v9354_v26 }
0x17e5   : > { %7339 = vmatpush.msra.mxu2 %v7317_v27  ;;  %7359 = vmatpush.msra.mxu3 %v7318_v32  ;;  %v10048_v44 = vpop.permute.xlu1 %10047  ;;  %v10058_v8 = vpop.permute.xlu2 %10057 }
0x17e6   : > { %v7426_v37 = vpop.permute.xlu0 %7425  ;;  %v10050_v47 = vunpack.i.h.bf16 %v10048_v44  ;;  %v10049_v63 = vunpack.i.l.bf16 %v10048_v44  ;;  %v10060_v31 = vunpack.i.h.bf16 %v10058_v8  ;;  %v10059_v0 = vunpack.i.l.bf16 %v10058_v8 }
0x17e7   : > { %7449 = vmatpush.msrb.mxu2 %v7427_v29  ;;  %v7428_v28 = vsel %vm12224_vm11, %v10045_v22, %v7426_v37  ;;  %vm12231_vm11 = vmmov %vm12230_vm4 }
0x17e8   : > { %7469 = vmatpush.msrb.mxu3 %v7428_v28  ;;  %v7482_v4 = vsel %vm12225_vm5, %v10049_v63, %v10050_v47  ;;  %v7483_v2 = vsel %vm12226_vm9, %v10050_v47, %v7481_v20  ;;  %vm8175_vm5 = vcmask 678912  }
0x17eb   : > { %9371 = vmatmul.msk.f32.vlgmr.msra.gmra.mxu0 %vm1311_vm14, %v9355_v38  ;;  %9372 = vmatmul.msk.f32.vlgmr.msra.gmra.mxu1 %vm1311_vm14, %v9355_v38 }
0x17ec   : > { %9373 = vmatmul.msk.f32.vlgmr.msra.gmra.mxu2 %vm1311_vm14, %v9356_v14  ;;  %9374 = vmatmul.msk.f32.vlgmr.msra.gmra.mxu3 %vm1311_vm14, %v9356_v14 }
0x17ed   : > { %v7536_v9 = vpop.permute.xlu1 %7535 }
0x17ee   : > { %v10038_v56 = vpop.permute.xlu0 %10037 }
0x17ef   : > { %v10040_v43 = vunpack.i.h.bf16 %v10038_v56  ;;  %v10039_v45 = vunpack.i.l.bf16 %v10038_v56 }
0x17f1   : > { %v7372_v1 = vsel %vm1198_vm12, %v10039_v45, %v10040_v43  ;;  %v7373_v35 = vsel %vm1198_vm12, %v10040_v43, %v11690_v40  ;;  %v7592_v40 = vsel %vm4550_vm1, %v10059_v0, %v10060_v31  ;;  %vm7693_vm12 = vcmask 1006592  }
0x17f2   : > { %7394 = vmatpush.msrb.mxu0 %v7372_v1  ;;  %7414 = vmatpush.msrb.mxu1 %v7373_v35 }
0x17f3   : > { %9375 = vmatmul.msk.f32.vlgmr.msrb.gmra.mxu0 %vm1311_vm14, %v9357_v30  ;;  %9376 = vmatmul.msk.f32.vlgmr.msrb.gmra.mxu1 %vm1311_vm14, %v9357_v30 }
0x17f4   : > { %9377 = vmatmul.msk.f32.vlgmr.msrb.gmra.mxu2 %vm1311_vm14, %v9358_v3  ;;  %9378 = vmatmul.msk.f32.vlgmr.msrb.gmra.mxu3 %vm1311_vm14, %v9358_v3 }
0x17f5   : > { %7504 = vmatpush.msra.mxu0 %v7482_v4  ;;  %7524 = vmatpush.msra.mxu1 %v7483_v2 }
0x17f6   : > { %v10053_v5 = vpop.permute.xlu0 %10052 }
0x17f7   : > { %7614 = vmatpush.msrb.mxu0 %v7592_v40  ;;  %v10055_v6 = vunpack.i.h.bf16 %v10053_v5  ;;  %v10054_v36 = vunpack.i.l.bf16 %v10053_v5 }
0x17f9   : > { %v7537_v18 = vsel %vm6891_vm3, %v10054_v36, %v10055_v6  ;;  %v7538_v42 = vsel %vm6891_vm3, %v10055_v6, %v7536_v9  ;;  %vm12228_vm3 = vcmask 924672  }
0x17fa   : > { %7559 = vmatpush.msra.mxu2 %v7537_v18  ;;  %7579 = vmatpush.msra.mxu3 %v7538_v42  ;;  %vm12229_vm8 = vmmov %vm12228_vm3 }
0x17fb   : > { %9379 = vmatmul.msk.f32.vlgmr.msra.gmra.mxu0 %vm1311_vm14, %v9359_v17  ;;  %9380 = vmatmul.msk.f32.vlgmr.msra.gmra.mxu1 %vm1311_vm14, %v9359_v17 }
0x17fc   : > { %9381 = vmatmul.msk.f32.vlgmr.msra.gmra.mxu2 %vm1311_vm14, %v9360_v19  ;;  %9382 = vmatmul.msk.f32.vlgmr.msra.gmra.mxu3 %vm1311_vm14, %v9360_v19 }
0x17fe   : > { %v7591_v21 = vpop.permute.xlu0 %7590 }
0x17ff   : > { %v7593_v22 = vsel %vm4550_vm1, %v10060_v31, %v7591_v21 }
0x1800   : > { %7634 = vmatpush.msrb.mxu1 %v7593_v22 }
0x1803   : > { %9383 = vmatmul.msk.f32.vlgmr.msrb.gmra.mxu0 %vm1311_vm14, %v9361_v23  ;;  %9384 = vmatmul.msk.f32.vlgmr.msrb.gmra.mxu1 %vm1311_vm14, %v9361_v23 }
0x1845   : > { %v7123_v26 = vpop.f32.mrf.mxu2  ;;  %v7143_v27 = vpop.f32.mrf.mxu3 }
0x1858   : > { %v7070_v24 = vpop.f32.mrf.mxu0  ;;  %v7090_v25 = vpop.f32.mrf.mxu1 }
0x1859   : > { %v7124_v29 = vadd.f32 %v7123_v26, %v7070_v24  ;;  %v7144_v8 = vadd.f32 %v7143_v27, %v7090_v25 }
0x1860   : > { %v7176_v32 = vpop.f32.mrf.mxu0  ;;  %v7196_v20 = vpop.f32.mrf.mxu1 }
0x1861   : > { %v7199_v37 = vadd.f32 %v7176_v32, %v7124_v29  ;;  %v7200_v43 = vadd.f32 %v7196_v20, %v7144_v8  ;;  %v7644_v32 = vpop.permute.xlu1 %7643 }
0x1867   : > { %v7231_v28 = vpop.f32.mrf.mxu2  ;;  %v7251_v38 = vpop.f32.mrf.mxu3 }
0x1868   : > { %v7286_v14 = vpop.f32.mrf.mxu0  ;;  %v7306_v44 = vpop.f32.mrf.mxu1  ;;  %v7254_v56 = vadd.f32 %v7231_v28, %v7199_v37  ;;  %v7255_v45 = vadd.f32 %v7251_v38, %v7200_v43 }
0x186a   : > { %v7309_v47 = vadd.f32 %v7286_v14, %v7254_v56  ;;  %v7310_v1 = vadd.f32 %v7306_v44, %v7255_v45 }
0x186f   : > { %v7341_v63 = vpop.f32.mrf.mxu2  ;;  %v7361_v30 = vpop.f32.mrf.mxu3 }
0x1870   : > { %v7396_v31 = vpop.f32.mrf.mxu0  ;;  %v7416_v0 = vpop.f32.mrf.mxu1  ;;  %v7364_v35 = vadd.f32 %v7341_v63, %v7309_v47  ;;  %v7365_v3 = vadd.f32 %v7361_v30, %v7310_v1  ;;  %v9396_v63 = vld [vmem:[%s12082_s18 + $0x10] sm:$0xff] }
0x1872   : > { %v7419_v4 = vadd.f32 %v7396_v31, %v7364_v35  ;;  %v7420_v5 = vadd.f32 %v7416_v0, %v7365_v3  ;;  %v9385_v31 = vld [vmem:[%s12081_s17 + $0xb0] sm:$0xff] }
0x1877   : > { %v7451_v2 = vpop.f32.mrf.mxu2  ;;  %v7471_v40 = vpop.f32.mrf.mxu3 }
0x1878   : > { %v7506_v6 = vpop.f32.mrf.mxu0  ;;  %v7526_v36 = vpop.f32.mrf.mxu1  ;;  %v7474_v9 = vadd.f32 %v7451_v2, %v7419_v4  ;;  %v7475_v17 = vadd.f32 %v7471_v40, %v7420_v5  ;;  %v9386_v2 = vld [vmem:[%s12081_s17 + $0xb8] sm:$0xff] }
0x187a   : > { %v7529_v18 = vadd.f32 %v7506_v6, %v7474_v9  ;;  %v7530_v42 = vadd.f32 %v7526_v36, %v7475_v17 }
0x187f   : > { %v7561_v19 = vpop.f32.mrf.mxu2  ;;  %v7581_v21 = vpop.f32.mrf.mxu3 }
0x1880   : > { %v7584_v22 = vadd.f32 %v7561_v19, %v7529_v18  ;;  %v7585_v23 = vadd.f32 %v7581_v21, %v7530_v42  ;;  %v7616_v24 = vpop.f32.mrf.mxu0  ;;  %v7636_v25 = vpop.f32.mrf.mxu1 }
0x1882   : > { %v7639_v26 = vadd.f32 %v7616_v24, %v7584_v22  ;;  %v7640_v27 = vadd.f32 %v7636_v25, %v7585_v23  ;;  %v9387_v24 = vld [vmem:[%s12081_s17 + $0xc0] sm:$0xff] }
0x1884   : > { %v7646_v20 = vadd.f32 %v7644_v32, %v7639_v26  ;;  %v7647_v29 = vadd.f32 %v7644_v32, %v7640_v27 }
0x1886   : > { %v11764_v37 = vadd.f32 %v7646_v20, %v11537_v33  ;;  %v11767_v28 = vadd.f32 %v7647_v29, %v11540_v34 }
0x1888   : > { %v7650_v38 = vmul.f32 0.2, %v11764_v37  ;;  %v7651_v14 = vmul.f32 0.2, %v11767_v28 }
0x188a   : > { %v7653_v44 = vmax.f32 %v11767_v28, %v7651_v14  ;;  %v7652_v8 = vmax.f32 %v11764_v37, %v7650_v38  ;;  %v9389_v38 = vld [vmem:[%s12081_s17 + $0xd0] sm:$0xff] }
0x188c   : > { %7658 = vrot.lane.b32.xlu0 %v7653_v44, %s12190_s6  ;;  %7656 = vrot.lane.b32.xlu2 %v7652_v8, %s12190_s6 }
0x18e6   : > { %v7657_v56 = vpop.permute.xlu2 %7656 }
0x18e7   : > { %7664 = vst.msk [vmem:[#allocation2] sm:$0xff] %vm1287_vm13, %v7657_v56 }
0x18ee   : > { %v7681_v33 = vld [vmem:[#allocation2] sm:$0xff] }
0x18ef   : > { %7759 = vmatpush.msra.mxu0 %v7681_v33 }
0x18f0   : > { %9399 = vmatmul.msk.f32.vlgmr.msra.gmra.mxu0 %vm1311_vm14, %v9385_v31 }
0x18fe   : > { %v7659_v43 = vpop.permute.xlu0 %7658 }
0x18ff   : > { %v7660_v34 = vsel %vm822_vm2, %v7657_v56, %v7659_v43  ;;  %7666 = vst.msk [vmem:[#allocation2 + $0x10] sm:$0xff] %vm822_vm2, %v7659_v43 }
0x1900   : > { %7779 = vmatpush.msra.mxu1 %v7660_v34  ;;  %v10061_v45 = vpack.i.bf16 %v7660_v34, %v7681_v33  ;;  %v9388_v33 = vld [vmem:[%s12081_s17 + $0xc8] sm:$0xff] }
0x1901   : > { %9400 = vmatmul.msk.f32.vlgmr.msra.gmra.mxu1 %vm1311_vm14, %v9385_v31 }
0x1902   : > { %10062 = vrot.lane.b32.xlu1 %v10061_v45, %s10249_s5 }
0x1906   : > { %v7683_v47 = vld [vmem:[#allocation2 + $0x10] sm:$0xff] }
0x1907   : > { %7898 = vrot.lane.b32.xlu0 %v7683_v47, %s12197_s25  ;;  %7691 = vrot.lane.b32.xlu2 %v7683_v47, %s10249_s5 }
0x190a   : > { %7788 = vrot.lane.b32.xlu1 %v7683_v47, %s12206_s14 }
0x190f   : > { %7843 = vrot.lane.b32.xlu2 %v7683_v47, %s12205_s3  ;;  %10067 = vrot.lane.b32.xlu0 %v10061_v45, %s12206_s14 }
0x1912   : > { %8008 = vrot.lane.b32.xlu1 %v7683_v47, %s12198_s9 }
0x1917   : > { %10072 = vrot.lane.b32.xlu2 %v10061_v45, %s12197_s25  ;;  %7953 = vrot.lane.b32.xlu0 %v7683_v47, %s12191_s7 }
0x191a   : > { %10077 = vrot.lane.b32.xlu1 %v10061_v45, %s12205_s3 }
0x191f   : > { %8118 = vrot.lane.b32.xlu2 %v7683_v47, %s12207_s15  ;;  %10082 = vrot.lane.b32.xlu0 %v10061_v45, %s12198_s9 }
0x1922   : > { %10092 = vrot.lane.b32.xlu1 %v10061_v45, %s12207_s15 }
0x1927   : > { %10087 = vrot.lane.b32.xlu2 %v10061_v45, %s12191_s7  ;;  %10097 = vrot.lane.b32.xlu0 %v10061_v45, %s12227_s30 }
0x192a   : > { %8063 = vrot.lane.b32.xlu1 %v7683_v47, %s12227_s30 }
0x192f   : > { %10102 = vrot.lane.b32.xlu2 %v10061_v45, %s10250_s28  ;;  %8229 = vrot.lane.b32.xlu0 %v7683_v47, %s10250_s28 }
0x1932   : > { %10107 = vrot.lane.b32.xlu1 %v10061_v45, %s10251_s11 }
0x1937   : > { %8173 = vrot.lane.b32.xlu2 %v7683_v47, %s10251_s11  ;;  %8283 = vperm.xlu0 %9534, %v9396_v63  }
0x1961   : > { %v7692_v30 = vpop.permute.xlu2 %7691 }
0x1969   : > { %v7844_v0 = vpop.permute.xlu2 %7843 }
0x1971   : > { %v10073_v1 = vpop.permute.xlu2 %10072 }
0x1972   : > { %v10075_v17 = vunpack.i.h.bf16 %v10073_v1  ;;  %v10074_v18 = vunpack.i.l.bf16 %v10073_v1 }
0x1974   : > { %v10063_v35 = vpop.permute.xlu1 %10062  ;;  %v7900_v27 = vsel %vm2151_vm15, %v10074_v18, %v10075_v17 }
0x1975   : > { %v10065_v3 = vunpack.i.h.bf16 %v10063_v35  ;;  %v10064_v4 = vunpack.i.l.bf16 %v10063_v35 }
0x1977   : > { %v7694_v40 = vsel %vm7693_vm12, %v10064_v4, %v10065_v3  ;;  %v7695_v5 = vsel %vm7693_vm12, %v10065_v3, %v7692_v30  ;;  %v9391_v4 = vld [vmem:[%s12081_s17 + $0xe0] sm:$0xff] }
0x1978   : > { %7716 = vmatpush.msrb.mxu2 %v7694_v40  ;;  %7736 = vmatpush.msrb.mxu3 %v7695_v5 }
0x1979   : > { %v7899_v6 = vpop.permute.xlu0 %7898  ;;  %9397 = vmatmul.msk.f32.vlgmr.msrb.gmra.mxu2 %vm1311_vm14, %v9386_v2  ;;  %9398 = vmatmul.msk.f32.vlgmr.msrb.gmra.mxu3 %vm1311_vm14, %v9386_v2  ;;  %v8119_v9 = vpop.permute.xlu2 %8118 }
0x197a   : > { %v7901_v26 = vsel %vm2151_vm15, %v10075_v17, %v7899_v6 }
0x197c   : > { %v7789_v36 = vpop.permute.xlu1 %7788 }
0x1981   : > { %v10068_v42 = vpop.permute.xlu0 %10067  ;;  %v10088_v32 = vpop.permute.xlu2 %10087 }
0x1982   : > { %v10070_v19 = vunpack.i.h.bf16 %v10068_v42  ;;  %v10069_v21 = vunpack.i.l.bf16 %v10068_v42  ;;  %v10090_v14 = vunpack.i.h.bf16 %v10088_v32  ;;  %v10089_v44 = vunpack.i.l.bf16 %v10088_v32 }
0x1984   : > { %v7791_v22 = vsel %vm4275_vm6, %v10070_v19, %v7789_v36  ;;  %v7790_v23 = vsel %vm4275_vm6, %v10069_v21, %v10070_v19  ;;  %v8009_v25 = vpop.permute.xlu1 %8008  ;;  %v7955_v63 = vsel %vm1024_vm7, %v10089_v44, %v10090_v14  ;;  %v9390_v36 = vld [vmem:[%s12081_s17 + $0xd8] sm:$0xff] }
0x1985   : > { %7812 = vmatpush.msra.mxu2 %v7790_v23  ;;  %7832 = vmatpush.msra.mxu3 %v7791_v22 }
0x1986   : > { %9401 = vmatmul.msk.f32.vlgmr.msra.gmra.mxu2 %vm1311_vm14, %v9387_v24  ;;  %9402 = vmatmul.msk.f32.vlgmr.msra.gmra.mxu3 %vm1311_vm14, %v9387_v24 }
0x1987   : > { %7922 = vmatpush.msrb.mxu2 %v7900_v27  ;;  %7942 = vmatpush.msrb.mxu3 %v7901_v26  ;;  %v9392_v26 = vld [vmem:[%s12081_s17 + $0xe8] sm:$0xff] }
0x1989   : > { %v7954_v20 = vpop.permute.xlu0 %7953  ;;  %v10103_v30 = vpop.permute.xlu2 %10102 }
0x198a   : > { %v7956_v45 = vsel %vm1024_vm7, %v10090_v14, %v7954_v20  ;;  %v10105_v2 = vunpack.i.h.bf16 %v10103_v30  ;;  %v10104_v40 = vunpack.i.l.bf16 %v10103_v30 }
0x198c   : > { %v10078_v29 = vpop.permute.xlu1 %10077  ;;  %v8232_v19 = vsel %vm8231_vm10, %v10104_v40, %v10105_v2 }
0x198d   : > { %v10080_v8 = vunpack.i.h.bf16 %v10078_v29  ;;  %v10079_v56 = vunpack.i.l.bf16 %v10078_v29  ;;  %v9395_v29 = vld [vmem:[%s12081_s17 + $0x100] sm:$0xff] }
0x198e   : > { %9405 = vmatmul.msk.f32.vlgmr.msrb.gmra.mxu2 %vm1311_vm14, %v9389_v38  ;;  %9406 = vmatmul.msk.f32.vlgmr.msrb.gmra.mxu3 %vm1311_vm14, %v9389_v38 }
0x198f   : > { %v7845_v43 = vsel %vm12228_vm3, %v10079_v56, %v10080_v8  ;;  %v7846_v34 = vsel %vm12229_vm8, %v10080_v8, %v7844_v0  ;;  %v9394_v8 = vld [vmem:[%s12081_s17 + $0xf8] sm:$0xff] }
0x1990   : > { %7867 = vmatpush.msrb.mxu0 %v7845_v43  ;;  %7887 = vmatpush.msrb.mxu1 %v7846_v34 }
0x1991   : > { %v10083_v47 = vpop.permute.xlu0 %10082  ;;  %9403 = vmatmul.msk.f32.vlgmr.msrb.gmra.mxu0 %vm1311_vm14, %v9388_v33  ;;  %9404 = vmatmul.msk.f32.vlgmr.msrb.gmra.mxu1 %vm1311_vm14, %v9388_v33  ;;  %v8174_v44 = vpop.permute.xlu2 %8173 }
0x1992   : > { %v10085_v31 = vunpack.i.h.bf16 %v10083_v47  ;;  %v10084_v1 = vunpack.i.l.bf16 %v10083_v47  ;;  %7977 = vmatpush.msra.mxu0 %v7955_v63  ;;  %7997 = vmatpush.msra.mxu1 %v7956_v45  ;;  %v7781_v45 = vpop.f32.mrf.mxu1  ;;  %v7761_v47 = vpop.f32.mrf.mxu0 }
0x1994   : > { %v8010_v35 = vsel %vm2205_vm0, %v10084_v1, %v10085_v31  ;;  %v8011_v0 = vsel %vm2205_vm0, %v10085_v31, %v8009_v25  ;;  %v10093_v3 = vpop.permute.xlu1 %10092  ;;  %v9393_v25 = vld [vmem:[%s12081_s17 + $0xf0] sm:$0xff] }
0x1995   : > { %8032 = vmatpush.msra.mxu2 %v8010_v35  ;;  %8052 = vmatpush.msra.mxu3 %v8011_v0  ;;  %v10095_v5 = vunpack.i.h.bf16 %v10093_v3  ;;  %v10094_v6 = vunpack.i.l.bf16 %v10093_v3 }
0x1996   : > { %9409 = vmatmul.msk.f32.vlgmr.msra.gmra.mxu2 %vm1311_vm14, %v9391_v4  ;;  %9410 = vmatmul.msk.f32.vlgmr.msra.gmra.mxu3 %vm1311_vm14, %v9391_v4 }
0x1997   : > { %v8120_v17 = vsel %vm4550_vm1, %v10094_v6, %v10095_v5  ;;  %v8121_v18 = vsel %vm4550_vm1, %v10095_v5, %v8119_v9 }
0x1998   : > { %8142 = vmatpush.msrb.mxu2 %v8120_v17  ;;  %8162 = vmatpush.msrb.mxu3 %v8121_v18 }
0x1999   : > { %v10098_v42 = vpop.permute.xlu0 %10097  ;;  %9407 = vmatmul.msk.f32.vlgmr.msra.gmra.mxu0 %vm1311_vm14, %v9390_v36  ;;  %9408 = vmatmul.msk.f32.vlgmr.msra.gmra.mxu1 %vm1311_vm14, %v9390_v36 }
0x199a   : > { %v10100_v21 = vunpack.i.h.bf16 %v10098_v42  ;;  %v10099_v22 = vunpack.i.l.bf16 %v10098_v42  ;;  %8254 = vmatpush.msra.mxu2 %v8232_v19 }
0x199c   : > { %v8065_v23 = vsel %vm12230_vm4, %v10099_v22, %v10100_v21  ;;  %v8064_v24 = vpop.permute.xlu1 %8063 }
0x199d   : > { %8087 = vmatpush.msrb.mxu0 %v8065_v23  ;;  %v8066_v9 = vsel %vm12231_vm11, %v10100_v21, %v8064_v24 }
0x199e   : > { %8107 = vmatpush.msrb.mxu1 %v8066_v9  ;;  %9413 = vmatmul.msk.f32.vlgmr.msrb.gmra.mxu2 %vm1311_vm14, %v9393_v25 }
0x199f   : > { %9414 = vmatmul.msk.f32.vlgmr.msrb.gmra.mxu3 %vm1311_vm14, %v9393_v25 }
0x19a1   : > { %v8230_v27 = vpop.permute.xlu0 %8229  ;;  %9411 = vmatmul.msk.f32.vlgmr.msrb.gmra.mxu0 %vm1311_vm14, %v9392_v26  ;;  %9412 = vmatmul.msk.f32.vlgmr.msrb.gmra.mxu1 %vm1311_vm14, %v9392_v26 }
0x19a2   : > { %v8233_v32 = vsel %vm8231_vm10, %v10105_v2, %v8230_v27 }
0x19a3   : > { %8274 = vmatpush.msra.mxu3 %v8233_v32 }
0x19a4   : > { %v10108_v20 = vpop.permute.xlu1 %10107 }
0x19a5   : > { %v10110_v38 = vunpack.i.h.bf16 %v10108_v20  ;;  %v10109_v14 = vunpack.i.l.bf16 %v10108_v20 }
0x19a6   : > { %9417 = vmatmul.msk.f32.vlgmr.msra.gmra.mxu2 %vm1311_vm14, %v9395_v29 }
0x19a7   : > { %9418 = vmatmul.msk.f32.vlgmr.msra.gmra.mxu3 %vm1311_vm14, %v9395_v29  ;;  %v8176_v56 = vsel %vm8175_vm5, %v10109_v14, %v10110_v38  ;;  %v8177_v33 = vsel %vm8175_vm5, %v10110_v38, %v8174_v44 }
0x19a8   : > { %8198 = vmatpush.msra.mxu0 %v8176_v56  ;;  %8218 = vmatpush.msra.mxu1 %v8177_v33 }
0x19a9   : > { %9415 = vmatmul.msk.f32.vlgmr.msra.gmra.mxu0 %vm1311_vm14, %v9394_v8  ;;  %9416 = vmatmul.msk.f32.vlgmr.msra.gmra.mxu1 %vm1311_vm14, %v9394_v8 }
0x19fc   : > { %v7718_v43 = vpop.f32.mrf.mxu2  ;;  %v7738_v34 = vpop.f32.mrf.mxu3 }
0x19fd   : > { %v7782_v63 = vadd.f32 %v7781_v45, %v7738_v34  ;;  %v7762_v3 = vadd.f32 %v7761_v47, %v7718_v43 }
0x1a09   : > { %v7814_v30 = vpop.f32.mrf.mxu2  ;;  %v7834_v31 = vpop.f32.mrf.mxu3 }
0x1a0a   : > { %v7838_v1 = vadd.f32 %v7834_v31, %v7782_v63  ;;  %v7837_v5 = vadd.f32 %v7814_v30, %v7762_v3  ;;  %v8284_v63 = vpop.permute.xlu0 %8283 }
0x1a0e   : > { %v7869_v35 = vpop.f32.mrf.mxu0  ;;  %v7889_v0 = vpop.f32.mrf.mxu1 }
0x1a0f   : > { %v7893_v4 = vadd.f32 %v7889_v0, %v7838_v1  ;;  %v7892_v6 = vadd.f32 %v7869_v35, %v7837_v5 }
0x1a11   : > { %v7924_v2 = vpop.f32.mrf.mxu2  ;;  %v7944_v40 = vpop.f32.mrf.mxu3 }
0x1a12   : > { %v7948_v36 = vadd.f32 %v7944_v40, %v7893_v4  ;;  %v7947_v42 = vadd.f32 %v7924_v2, %v7892_v6 }
0x1a16   : > { %v7979_v17 = vpop.f32.mrf.mxu0  ;;  %v7999_v18 = vpop.f32.mrf.mxu1 }
0x1a17   : > { %v8003_v19 = vadd.f32 %v7999_v18, %v7948_v36  ;;  %v8002_v23 = vadd.f32 %v7979_v17, %v7947_v42  ;;  %v9144_v17 = vld [vmem:[%s12072_s8 + $0x10] sm:$0xff]  ;;  %v2463_v18 = vld [vmem:[%s12074_s10] sm:$0xff] }
0x1a18   : > { %v5033_v42 = vld [vmem:[%s12080_s16] sm:$0xff] }
0x1a19   : > { %v8034_v21 = vpop.f32.mrf.mxu2  ;;  %v8054_v22 = vpop.f32.mrf.mxu3 }
0x1a1a   : > { %v8058_v24 = vadd.f32 %v8054_v22, %v8003_v19  ;;  %v8057_v26 = vadd.f32 %v8034_v21, %v8002_v23  ;;  %v8928_v19 = vld [vmem:[%s12086_s22] sm:$0xff]  ;;  %v9254_v21 = vld [vmem:[%s12232_s23 + $0x10] sm:$0xff] }
0x1a1b   : > { %v9430_v22 = vld [vmem:[%s12084_s20 + $0x10] sm:$0xff] }
0x1a1c   : > { %v9419_v23 = vld [vmem:[%s12083_s19 + $0xb0] sm:$0xff] }
0x1a1e   : > { %v8089_v25 = vpop.f32.mrf.mxu0  ;;  %v8109_v9 = vpop.f32.mrf.mxu1 }
0x1a1f   : > { %v8112_v27 = vadd.f32 %v8089_v25, %v8057_v26  ;;  %v8113_v32 = vadd.f32 %v8109_v9, %v8058_v24 }
0x1a21   : > { %v8144_v20 = vpop.f32.mrf.mxu2 }
0x1a22   : > { %v8164_v29 = vpop.f32.mrf.mxu3  ;;  %v8167_v38 = vadd.f32 %v8144_v20, %v8112_v27 }
0x1a23   : > { %v8168_v14 = vadd.f32 %v8164_v29, %v8113_v32 }
0x1a26   : > { %v8200_v44 = vpop.f32.mrf.mxu0  ;;  %v8220_v8 = vpop.f32.mrf.mxu1 }
0x1a27   : > { %v8223_v56 = vadd.f32 %v8200_v44, %v8167_v38  ;;  %v8224_v33 = vadd.f32 %v8220_v8, %v8168_v14 }
0x1a29   : > { %v8256_v43 = vpop.f32.mrf.mxu2 }
0x1a2a   : > { %v8276_v34 = vpop.f32.mrf.mxu3  ;;  %v8279_v45 = vadd.f32 %v8256_v43, %v8223_v56 }
0x1a2b   : > { %v8280_v47 = vadd.f32 %v8276_v34, %v8224_v33 }
0x1a2c   : > { %v8286_v30 = vadd.f32 %v8284_v63, %v8279_v45 }
0x1a2d   : > { %v8287_v31 = vadd.f32 %v8284_v63, %v8280_v47 }
0x1a2e   : > { %v8288_v1 = vmul.f32 0.2, %v8286_v30 }
0x1a2f   : > { %v8289_v35 = vmul.f32 0.2, %v8287_v31 }
0x1a30   : > { %v8290_v0 = vmax.f32 %v8286_v30, %v8288_v1  ;;  %v9420_v30 = vld [vmem:[%s12083_s19 + $0xb8] sm:$0xff] }
0x1a31   : > { %v8291_v3 = vmax.f32 %v8287_v31, %v8289_v35  ;;  %v9422_v35 = vld [vmem:[%s12083_s19 + $0xc8] sm:$0xff] }
0x1a32   : > { %8294 = vrot.lane.b32.xlu1 %v8290_v0, %s12190_s6 }
0x1a33   : > { %8296 = vrot.lane.b32.xlu2 %v8291_v3, %s12190_s6  ;;  %s9463_s6 = sshll.u32 %s12239_s2, 4 }
0x1a8d   : > { %v8297_v4 = vpop.permute.xlu2 %8296 }
0x1a8e   : > { %8304 = vst.msk [vmem:[#allocation2 + $0x10] sm:$0xff] %vm822_vm2, %v8297_v4 }
0x1a95   : > { %v8321_v2 = vld [vmem:[#allocation2 + $0x10] sm:$0xff] }
0x1a96   : > { %8480 = vrot.lane.b32.xlu2 %v8321_v2, %s12205_s3  ;;  %8425 = vrot.lane.b32.xlu0 %v8321_v2, %s12206_s14 }
0x1a97   : > { %8329 = vrot.lane.b32.xlu1 %v8321_v2, %s10249_s5 }
0x1a9e   : > { %8645 = vrot.lane.b32.xlu2 %v8321_v2, %s12198_s9 }
0x1a9f   : > { %8535 = vrot.lane.b32.xlu1 %v8321_v2, %s12197_s25 }
0x1aa4   : > { %v8295_v40 = vpop.permute.xlu1 %8294 }
0x1aa5   : > { %v8298_v5 = vsel %vm822_vm2, %v8295_v40, %v8297_v4  ;;  %8302 = vst.msk [vmem:[#allocation2] sm:$0xff] %vm1287_vm13, %v8295_v40  ;;  %vm12233_vm2 = vmmov %vm12228_vm3 }
0x1aa6   : > { %8303 = vst [vmem:[#allocation2 + $0x8] sm:$0xff] %v8298_v5  ;;  %8416 = vmatpush.msrb.mxu3 %v8298_v5  ;;  %vm12234_vm13 = vmmov %vm12233_vm2 }
0x1aa7   : > { %9434 = vmatmul.msk.f32.vlgmr.msrb.gmra.mxu3 %vm1311_vm14, %v9419_v23 }
0x1aac   : > { %v8319_v6 = vld [vmem:[#allocation2] sm:$0xff] }
0x1aad   : > { %8396 = vmatpush.msrb.mxu2 %v8319_v6  ;;  %v10121_v36 = vpack.i.bf16 %v8298_v5, %v8319_v6  ;;  %v9421_v6 = vld [vmem:[%s12083_s19 + $0xc0] sm:$0xff] }
0x1aae   : > { %9433 = vmatmul.msk.f32.vlgmr.msrb.gmra.mxu2 %vm1311_vm14, %v9419_v23 }
0x1aaf   : > { %10122 = vrot.lane.b32.xlu1 %v10121_v36, %s12205_s3  ;;  %10117 = vrot.lane.b32.xlu2 %v10121_v36, %s12206_s14 }
0x1ab0   : > { %10112 = vrot.lane.b32.xlu0 %v10121_v36, %s10249_s5 }
0x1ab7   : > { %8700 = vrot.lane.b32.xlu1 %v8321_v2, %s12227_s30  ;;  %10132 = vrot.lane.b32.xlu2 %v10121_v36, %s12191_s7 }
0x1ab8   : > { %8590 = vrot.lane.b32.xlu0 %v8321_v2, %s12191_s7 }
0x1abf   : > { %10137 = vrot.lane.b32.xlu1 %v10121_v36, %s12198_s9  ;;  %10147 = vrot.lane.b32.xlu2 %v10121_v36, %s12207_s15  ;;  %s12240_s9 = sld [smem:[#allocation30_spill]] }
0x1ac0   : > { %10127 = vrot.lane.b32.xlu0 %v10121_v36, %s12197_s25 }
0x1ac5   : > { %s8960_s25 = scalar_lea.hbm %s12240_s9, %s9463_s6  ;;  %s10181_s4 = scalar_lea.hbm %s12240_s9, 32 }
0x1ac7   : > { %10152 = vrot.lane.b32.xlu1 %v10121_v36, %s10251_s11  ;;  %8810 = vrot.lane.b32.xlu2 %v8321_v2, %s10251_s11  ;;  %s8964_s11 = sshll.u32 %s8960_s25, 4  ;;  %s8965_s11 = int_to_ptr.hbm [resolvable:$true] %s8964_s11 }
0x1ac8   : > { %10142 = vrot.lane.b32.xlu0 %v10121_v36, %s12227_s30  ;;  %s10175_s23 = sshra.s32 %s8965_s11, 4  ;;  %s10176_s23 = int_to_ptr.hbm [resolvable:$true] %s10175_s23 }
0x1ac9   : > { %p10182_p3 = scmp.lt.s32.totalorder %s10176_s23, %s12240_s9 }
0x1acf   : > { %8865 = vrot.lane.b32.xlu1 %v8321_v2, %s10250_s28  ;;  %2454 = vperm.xlu2 %9533, %v9144_v17  }
0x1ad0   : > { %8755 = vrot.lane.b32.xlu0 %v8321_v2, %s12207_s15  ;;  %s10177_s15 = scalar_lea.hbm %s10176_s23, 16 }
0x1ad1   : > { %p10178_p0 = scmp.ne.s32.totalorder %s10176_s23, %s10177_s15  ;;  %p10183_p4 = scmp.lt.s32.totalorder %s10181_s4, %s10177_s15 }
0x1ad3   : > { %p10179_p1 = pnand %p10178_p0, %p10415_p6  ;;  %p10184_p5 = por %p10183_p4, %p10182_p3 }
0x1ad5   : > { %p10180_p2 = pneg %p10179_p1 }
0x1ad7   : > { %2466 = vperm.xlu1 %9550, %v2463_v18   ;;  %5036 = vperm.xlu2 %9533, %v5033_v42   ;;  %p10185_p7 = pnand %p10184_p5, %p10180_p2 }
0x1ad8   : > { %10157 = vrot.lane.b32.xlu0 %v10121_v36, %s10250_s28  ;;  %v9424_v36 = vld [vmem:[%s12083_s19 + $0xd8] sm:$0xff]  ;;  %s12237_s28 = sld [smem:[#allocation17_spill]] }
0x1ade   : > { %s12238_s27 = smul.u32 48, %s12237_s28  ;;  %s9068_s0 = sshll.u32 %s12237_s28, 4 }
0x1adf   : > { %8931 = vperm.xlu1 %9550, %v8928_v19   ;;  %s803_s5 = scalar_lea.vmem [#allocation5], %s9068_s0  ;;  %s8949_s26 = scalar_lea.sflag [#allocation6], %s12237_s28 }
0x1ae0   : > { %5023 = vperm.xlu0 %9534, %v9254_v21   ;;  %s12016_s29 = scalar_lea.vmem [#allocation4], %s12238_s27  ;;  %s8962_s30 = sshll.u32 %s803_s5, 4  ;;  %s8963_s30 = int_to_ptr.vmem [resolvable:$true] %s8962_s30 }
0x1ae8   : > { %8918 = vperm.xlu0 %9534, %v9430_v22  }
0x1af0   : > { %v8481_v24 = vpop.permute.xlu2 %8480 }
0x1af8   : > { %v8646_v25 = vpop.permute.xlu2 %8645 }
0x1b08   : > { %v8426_v32 = vpop.permute.xlu0 %8425 }
0x1b09   : > { %v8330_v9 = vpop.permute.xlu1 %8329  ;;  %v10118_v26 = vpop.permute.xlu2 %10117 }
0x1b0a   : > { %v10120_v8 = vunpack.i.h.bf16 %v10118_v26  ;;  %v10119_v56 = vunpack.i.l.bf16 %v10118_v26  ;;  %v9423_v26 = vld [vmem:[%s12083_s19 + $0xd0] sm:$0xff] }
0x1b0c   : > { %v8427_v0 = vsel %vm4275_vm6, %v10119_v56, %v10120_v8  ;;  %v8428_v3 = vsel %vm4275_vm6, %v10120_v8, %v8426_v32 }
0x1b11   : > { %v8536_v27 = vpop.permute.xlu1 %8535  ;;  %v10133_v20 = vpop.permute.xlu2 %10132 }
0x1b12   : > { %v10135_v34 = vunpack.i.h.bf16 %v10133_v20  ;;  %v10134_v45 = vunpack.i.l.bf16 %v10133_v20 }
0x1b14   : > { %v8592_v4 = vsel %vm1024_vm7, %v10134_v45, %v10135_v34 }
0x1b19   : > { %v10148_v17 = vpop.permute.xlu2 %10147 }
0x1b21   : > { %v10123_v29 = vpop.permute.xlu1 %10122 }
0x1b22   : > { %v10113_v38 = vpop.permute.xlu0 %10112  ;;  %v10125_v14 = vunpack.i.h.bf16 %v10123_v29  ;;  %v10124_v44 = vunpack.i.l.bf16 %v10123_v29 }
0x1b23   : > { %v10115_v33 = vunpack.i.h.bf16 %v10113_v38  ;;  %v10114_v43 = vunpack.i.l.bf16 %v10113_v38 }
0x1b24   : > { %v8482_v47 = vsel %vm12233_vm2, %v10124_v44, %v10125_v14  ;;  %v8483_v63 = vsel %vm12234_vm13, %v10125_v14, %v8481_v24  ;;  %v10150_v24 = vunpack.i.h.bf16 %v10148_v17 }
0x1b25   : > { %v8331_v31 = vsel %vm7693_vm12, %v10114_v43, %v10115_v33  ;;  %v8332_v1 = vsel %vm7693_vm12, %v10115_v33, %v8330_v9  ;;  %8504 = vmatpush.msra.mxu2 %v8482_v47  ;;  %8524 = vmatpush.msra.mxu3 %v8483_v63  ;;  %v10149_v9 = vunpack.i.l.bf16 %v10148_v17  ;;  %v9426_v63 = vld [vmem:[%s12083_s19 + $0xe8] sm:$0xff] }
0x1b26   : > { %8353 = vmatpush.msrb.mxu0 %v8331_v31  ;;  %8373 = vmatpush.msrb.mxu1 %v8332_v1 }
0x1b27   : > { %9431 = vmatmul.msk.f32.vlgmr.msrb.gmra.mxu0 %vm1311_vm14, %v9420_v30  ;;  %9432 = vmatmul.msk.f32.vlgmr.msrb.gmra.mxu1 %vm1311_vm14, %v9420_v30  ;;  %v8757_v14 = vsel %vm4550_vm1, %v10149_v9, %v10150_v24 }
0x1b28   : > { %8449 = vmatpush.msra.mxu0 %v8427_v0  ;;  %8469 = vmatpush.msra.mxu1 %v8428_v3  ;;  %v9427_v0 = vld [vmem:[%s12083_s19 + $0xf0] sm:$0xff]  ;;  %v9428_v3 = vld [vmem:[%s12083_s19 + $0xf8] sm:$0xff] }
0x1b29   : > { %8614 = vmatpush.msrb.mxu2 %v8592_v4  ;;  %v8701_v2 = vpop.permute.xlu1 %8700  ;;  %9438 = vmatmul.msk.f32.vlgmr.msra.gmra.mxu3 %vm1311_vm14, %v9422_v35 }
0x1b2a   : > { %v8591_v40 = vpop.permute.xlu0 %8590  ;;  %9437 = vmatmul.msk.f32.vlgmr.msra.gmra.mxu2 %vm1311_vm14, %v9422_v35 }
0x1b2b   : > { %v8593_v5 = vsel %vm1024_vm7, %v10135_v34, %v8591_v40  ;;  %v8811_v34 = vpop.permute.xlu2 %8810  ;;  %vm12235_vm7 = vmmov %vm12230_vm4 }
0x1b2c   : > { %8634 = vmatpush.msrb.mxu3 %v8593_v5 }
0x1b2f   : > { %9435 = vmatmul.msk.f32.vlgmr.msra.gmra.mxu0 %vm1311_vm14, %v9421_v6  ;;  %9436 = vmatmul.msk.f32.vlgmr.msra.gmra.mxu1 %vm1311_vm14, %v9421_v6  ;;  %v9429_v6 = vld [vmem:[%s12083_s19 + $0x100] sm:$0xff] }
0x1b31   : > { %v10138_v18 = vpop.permute.xlu1 %10137  ;;  %9442 = vmatmul.msk.f32.vlgmr.msrb.gmra.mxu3 %vm1311_vm14, %v9424_v36 }
0x1b32   : > { %v10128_v42 = vpop.permute.xlu0 %10127  ;;  %v10140_v19 = vunpack.i.h.bf16 %v10138_v18  ;;  %v10139_v21 = vunpack.i.l.bf16 %v10138_v18  ;;  %9441 = vmatmul.msk.f32.vlgmr.msrb.gmra.mxu2 %vm1311_vm14, %v9424_v36 }
0x1b33   : > { %v10130_v22 = vunpack.i.h.bf16 %v10128_v42  ;;  %v10129_v23 = vunpack.i.l.bf16 %v10128_v42 }
0x1b34   : > { %v8647_v29 = vsel %vm2205_vm0, %v10139_v21, %v10140_v19  ;;  %v8648_v38 = vsel %vm2205_vm0, %v10140_v19, %v8646_v25  ;;  %v9425_v25 = vld [vmem:[%s12083_s19 + $0xe0] sm:$0xff]  ;;  %v8398_v19 = vpop.f32.mrf.mxu2  ;;  %v8418_v21 = vpop.f32.mrf.mxu3 }
0x1b35   : > { %v8537_v32 = vsel %vm2151_vm15, %v10129_v23, %v10130_v22  ;;  %v8538_v20 = vsel %vm2151_vm15, %v10130_v22, %v8536_v27  ;;  %vm12236_vm15 = vmmov %vm12230_vm4 }
0x1b36   : > { %8559 = vmatpush.msrb.mxu0 %v8537_v32  ;;  %8579 = vmatpush.msrb.mxu1 %v8538_v20  ;;  %v4744_v32 = vadd.f32 %v11404_v50, %v11400_v49 }
0x1b37   : > { %9439 = vmatmul.msk.f32.vlgmr.msrb.gmra.mxu0 %vm1311_vm14, %v9423_v26  ;;  %9440 = vmatmul.msk.f32.vlgmr.msrb.gmra.mxu1 %vm1311_vm14, %v9423_v26 }
0x1b38   : > { %8669 = vmatpush.msra.mxu0 %v8647_v29  ;;  %8689 = vmatpush.msra.mxu1 %v8648_v38 }
0x1b39   : > { %v10153_v44 = vpop.permute.xlu1 %10152 }
0x1b3a   : > { %8779 = vmatpush.msrb.mxu0 %v8757_v14  ;;  %v10143_v8 = vpop.permute.xlu0 %10142  ;;  %v10155_v56 = vunpack.i.h.bf16 %v10153_v44  ;;  %v10154_v33 = vunpack.i.l.bf16 %v10153_v44  ;;  %v4800_v14 = vadd.f32 %v11408_v52, %v4744_v32 }
0x1b3b   : > { %v10145_v27 = vunpack.i.h.bf16 %v10143_v8  ;;  %v10144_v43 = vunpack.i.l.bf16 %v10143_v8 }
0x1b3c   : > { %v8812_v30 = vsel %vm8175_vm5, %v10154_v33, %v10155_v56  ;;  %v8813_v31 = vsel %vm8175_vm5, %v10155_v56, %v8811_v34 }
0x1b3d   : > { %v8702_v45 = vsel %vm12235_vm7, %v10144_v43, %v10145_v27  ;;  %v8703_v47 = vsel %vm12236_vm15, %v10145_v27, %v8701_v2  ;;  %v4855_v43 = vadd.f32 %v11412_v53, %v4800_v14  ;;  %v2375_v53 = vadd.f32 %v10884_v13, %v10882_v11 }
0x1b3e   : > { %8724 = vmatpush.msra.mxu2 %v8702_v45  ;;  %8744 = vmatpush.msra.mxu3 %v8703_v47  ;;  %v2455_v47 = vpop.permute.xlu2 %2454 }
0x1b3f   : > { %9443 = vmatmul.msk.f32.vlgmr.msra.gmra.mxu0 %vm1311_vm14, %v9425_v25  ;;  %9444 = vmatmul.msk.f32.vlgmr.msra.gmra.mxu1 %vm1311_vm14, %v9425_v25  ;;  %v4910_v49 = vadd.f32 %v11416_v55, %v4855_v43  ;;  %v2450_v11 = vadd.f32 %v10890_v16, %v2375_v53 }
0x1b40   : > { %9445 = vmatmul.msk.f32.vlgmr.msra.gmra.mxu2 %vm1311_vm14, %v9426_v63  ;;  %9446 = vmatmul.msk.f32.vlgmr.msra.gmra.mxu3 %vm1311_vm14, %v9426_v63 }
0x1b41   : > { %8834 = vmatpush.msrb.mxu2 %v8812_v30  ;;  %8854 = vmatpush.msrb.mxu3 %v8813_v31  ;;  %v8866_v5 = vpop.permute.xlu1 %8865  ;;  %v4965_v30 = vadd.f32 %v11420_v60, %v4910_v49  ;;  %v9454_v49 = vld [vmem:[%s12016_s29 + $0x28] sm:$0xff] }
0x1b42   : > { %v8756_v1 = vpop.permute.xlu0 %8755 }
0x1b43   : > { %v8758_v35 = vsel %vm4550_vm1, %v10150_v24, %v8756_v1  ;;  %v4724_v24 = vadd.f32 %v11402_v7, %v11398_v48  ;;  %v5020_v55 = vadd.f32 %v11424_v62, %v4965_v30 }
0x1b44   : > { %8799 = vmatpush.msrb.mxu1 %v8758_v35 }
0x1b45   : > { %v4799_v20 = vadd.f32 %v11406_v51, %v4724_v24 }
0x1b47   : > { %9447 = vmatmul.msk.f32.vlgmr.msrb.gmra.mxu0 %vm1311_vm14, %v9427_v0  ;;  %9448 = vmatmul.msk.f32.vlgmr.msrb.gmra.mxu1 %vm1311_vm14, %v9427_v0  ;;  %v4854_v44 = vadd.f32 %v11410_v12, %v4799_v20 }
0x1b48   : > { %9449 = vmatmul.msk.f32.vlgmr.msrb.gmra.mxu2 %vm1311_vm14, %v9428_v3  ;;  %9450 = vmatmul.msk.f32.vlgmr.msrb.gmra.mxu3 %vm1311_vm14, %v9428_v3 }
0x1b49   : > { %v4909_v48 = vadd.f32 %v11414_v54, %v4854_v44  ;;  %v2395_v54 = vadd.f32 %v10886_v15, %v10880_v10  ;;  %v2467_v13 = vpop.permute.xlu1 %2466  ;;  %v2461_v15 = vld [vmem:[%s12016_s29] sm:$0xff] }
0x1b4a   : > { %v10158_v4 = vpop.permute.xlu0 %10157 }
0x1b4b   : > { %v10160_v2 = vunpack.i.h.bf16 %v10158_v4  ;;  %v10159_v40 = vunpack.i.l.bf16 %v10158_v4  ;;  %v4964_v52 = vadd.f32 %v11418_v59, %v4909_v48  ;;  %v2451_v10 = vadd.f32 %v10888_v41, %v2395_v54 }
0x1b4d   : > { %v8867_v36 = vsel %vm8231_vm10, %v10159_v40, %v10160_v2  ;;  %v8868_v17 = vsel %vm8231_vm10, %v10160_v2, %v8866_v5  ;;  %v5019_v1 = vadd.f32 %v11422_v61, %v4964_v52  ;;  %v2462_v61 = vld [vmem:[%s12016_s29 + $0x8] sm:$0xff] }
0x1b4e   : > { %8889 = vmatpush.msra.mxu0 %v8867_v36  ;;  %8909 = vmatpush.msra.mxu1 %v8868_v17  ;;  %v2457_v17 = vadd.f32 %v2455_v47, %v2450_v11 }
0x1b4f   : > { %9451 = vmatmul.msk.f32.vlgmr.msra.gmra.mxu0 %vm1311_vm14, %v9429_v6  ;;  %9452 = vmatmul.msk.f32.vlgmr.msra.gmra.mxu1 %vm1311_vm14, %v9429_v6 }
0x1b50   : > { %v2459_v20 = vadd.f32 %v2457_v17, %v10715_v39 }
0x1b52   : > { %v5024_v31 = vpop.permute.xlu0 %5023 }
0x1b53   : > { %v5026_v4 = vadd.f32 %v5024_v31, %v5019_v1  ;;  %v5027_v2 = vadd.f32 %v5024_v31, %v5020_v55 }
0x1b55   : > { %v5028_v16 = vadd.f32 %v5026_v4, %v11116_v57  ;;  %v5029_v41 = vadd.f32 %v5027_v2, %v11119_v58 }
0x1ba4   : > { %v8355_v18 = vpop.f32.mrf.mxu0  ;;  %v8375_v42 = vpop.f32.mrf.mxu1 }
0x1ba5   : > { %v8399_v8 = vadd.f32 %v8398_v19, %v8355_v18  ;;  %v8419_v56 = vadd.f32 %v8418_v21, %v8375_v42  ;;  %v2458_v18 = vadd.f32 %v2455_v47, %v2451_v10  ;;  %v9269_v42 = vld [vmem:[%s12016_s29 + $0x10] sm:$0xff]  ;;  %v9270_v19 = vld [vmem:[%s12016_s29 + $0x18] sm:$0xff]  ;;  %v5037_v21 = vpop.permute.xlu2 %5036 }
0x1ba6   : > { %v5039_v24 = vmul.f32 %v9269_v42, %v5037_v21 }
0x1ba8   : > { %v5041_v44 = vadd.f32 %v5039_v24, %v5028_v16 }
0x1baa   : > { %v5043_v39 = vmul.f32 0.2, %v5041_v44 }
0x1bac   : > { %v8451_v22 = vpop.f32.mrf.mxu0  ;;  %v8471_v23 = vpop.f32.mrf.mxu1  ;;  %v5045_v54 = vmax.f32 %v5041_v44, %v5043_v39 }
0x1bad   : > { %v8506_v9 = vpop.f32.mrf.mxu2  ;;  %v8526_v26 = vpop.f32.mrf.mxu3  ;;  %v8474_v33 = vadd.f32 %v8451_v22, %v8399_v8  ;;  %v8475_v27 = vadd.f32 %v8471_v23, %v8419_v56  ;;  %v2469_v22 = vmul.f32 %v2467_v13, %v2461_v15  ;;  %v2470_v23 = vmul.f32 %v2467_v13, %v2462_v61 }
0x1baf   : > { %v8529_v50 = vadd.f32 %v8506_v9, %v8474_v33  ;;  %v8530_v51 = vadd.f32 %v8526_v26, %v8475_v27  ;;  %v5040_v9 = vmul.f32 %v9270_v19, %v5037_v21  ;;  %v2471_v27 = vadd.f32 %v2469_v22, %v2459_v20 }
0x1bb1   : > { %v5042_v8 = vadd.f32 %v5040_v9, %v5029_v41  ;;  %v2473_v47 = vmul.f32 0.2, %v2471_v27 }
0x1bb4   : > { %v8561_v29 = vpop.f32.mrf.mxu0  ;;  %v8581_v38 = vpop.f32.mrf.mxu1 }
0x1bb5   : > { %v8616_v7 = vpop.f32.mrf.mxu2  ;;  %v8636_v25 = vpop.f32.mrf.mxu3  ;;  %v8584_v12 = vadd.f32 %v8561_v29, %v8529_v50  ;;  %v8585_v63 = vadd.f32 %v8581_v38, %v8530_v51  ;;  %v2460_v29 = vadd.f32 %v2458_v18, %v10720_v46  ;;  %v5044_v46 = vmul.f32 0.2, %v5042_v8 }
0x1bb6   : > { %v8932_v50 = vpop.permute.xlu1 %8931  ;;  %v8919_v51 = vpop.permute.xlu0 %8918 }
0x1bb7   : > { %v8639_v35 = vadd.f32 %v8616_v7, %v8584_v12  ;;  %v8640_v0 = vadd.f32 %v8636_v25, %v8585_v63  ;;  %v2472_v43 = vadd.f32 %v2470_v23, %v2460_v29  ;;  %v9453_v25 = vld [vmem:[%s12016_s29 + $0x20] sm:$0xff]  ;;  %v8935_v63 = vmul.f32 %v9454_v49, %v8932_v50 }
0x1bb8   : > { %v8934_v12 = vmul.f32 %v9453_v25, %v8932_v50  ;;  %v5046_v31 = vmax.f32 %v5042_v8, %v5044_v46 }
0x1bb9   : > { %v2474_v52 = vmul.f32 0.2, %v2472_v43 }
0x1bbc   : > { %v8671_v34 = vpop.f32.mrf.mxu0  ;;  %v8691_v45 = vpop.f32.mrf.mxu1 }
0x1bbd   : > { %v8694_v40 = vadd.f32 %v8671_v34, %v8639_v35  ;;  %v8695_v60 = vadd.f32 %v8691_v45, %v8640_v0  ;;  %v2475_v35 = vmax.f32 %v2471_v27, %v2473_v47  ;;  %v2476_v0 = vmax.f32 %v2472_v43, %v2474_v52 }
0x1bbf   : > { %v5047_v4 = vadd.f32 %v5045_v54, %v2475_v35  ;;  %v5048_v2 = vadd.f32 %v5046_v31, %v2476_v0 }
0x1bc3   : > { %v8726_v3 = vpop.f32.mrf.mxu2  ;;  %v8746_v59 = vpop.f32.mrf.mxu3 }
0x1bc4   : > { %v8781_v5 = vpop.f32.mrf.mxu0  ;;  %v8801_v6 = vpop.f32.mrf.mxu1  ;;  %v8749_v62 = vadd.f32 %v8726_v3, %v8694_v40  ;;  %v8750_v36 = vadd.f32 %v8746_v59, %v8695_v60 }
0x1bc6   : > { %v8804_v26 = vadd.f32 %v8781_v5, %v8749_v62  ;;  %v8805_v32 = vadd.f32 %v8801_v6, %v8750_v36 }
0x1bcb   : > { %v8836_v38 = vpop.f32.mrf.mxu2  ;;  %v8856_v14 = vpop.f32.mrf.mxu3 }
0x1bcc   : > { %v8859_v56 = vadd.f32 %v8836_v38, %v8804_v26  ;;  %v8860_v57 = vadd.f32 %v8856_v14, %v8805_v32  ;;  %v8891_v33 = vpop.f32.mrf.mxu0  ;;  %v8911_v58 = vpop.f32.mrf.mxu1 }
0x1bce   : > { %v8914_v48 = vadd.f32 %v8891_v33, %v8859_v56  ;;  %v8915_v7 = vadd.f32 %v8911_v58, %v8860_v57 }
0x1bd0   : > { %v8921_v34 = vadd.f32 %v8919_v51, %v8914_v48  ;;  %v8922_v45 = vadd.f32 %v8919_v51, %v8915_v7 }
0x1bd2   : > { %v8923_v30 = vadd.f32 %v8921_v34, %v11764_v37  ;;  %v8924_v53 = vadd.f32 %v8922_v45, %v11767_v28 }
0x1bd4   : > { %v8936_v55 = vadd.f32 %v8934_v12, %v8923_v30  ;;  %v8937_v1 = vadd.f32 %v8935_v63, %v8924_v53 }
0x1bd6   : > { %v8938_v3 = vmul.f32 0.2, %v8936_v55  ;;  %v8939_v59 = vmul.f32 0.2, %v8937_v1 }
0x1bd8   : > { %v8940_v37 = vmax.f32 %v8936_v55, %v8938_v3  ;;  %v8941_v40 = vmax.f32 %v8937_v1, %v8939_v59 }
0x1bda   : > { %v8942_v28 = vadd.f32 %v8940_v37, %v5047_v4  ;;  %v8943_v60 = vadd.f32 %v8941_v40, %v5048_v2 }
0x1bdc   : > { %v8944_v5 = vmul.f32 0.33333334, %v8942_v28  ;;  %v8945_v6 = vmul.f32 0.33333334, %v8943_v60 }
0x1bde   : > { %8946 = vst [vmem:[%s803_s5] sm:$0xff] %v8944_v5 }
0x1bdf   : > { %8947 = vst [vmem:[%s803_s5 + $0x8] sm:$0xff] %v8945_v6 }
0x1be0   : > { %10188 = shalt.err (!%p10185_p7)
}
0x1be1   : > { %9467 = dma.vmem_to_hbm [thread:$0]  (%p10415_p6), %s8963_s30, 256, %s8965_s11, %s8949_s26  }
0x1be2 PF: > { %s12242_s28 = sld [smem:[#allocation8_spill]]  ;;  %p9470_p10 = pnand %p9062_p9, %p10419_p8 }
0x1be4   : > { %p9471_p11 = pneg %p9470_p10 }
0x1be8   : > { %s8976_s6 = sand.u32 1, %s12242_s28  }
0x1be9   : > { %s8977_s3 = scalar_lea.sflag [#allocation6], %s8976_s6 }
0x1bea   : > { %10206 = dma.done.wait (%p9471_p11), %s8977_s3, 256  }
0x1beb   : > { %10208 = vsyncadd (%p9471_p11), %s8977_s3, 4294967040  ;;  %s12245_s25 = sld [smem:[#allocation13_spill]] }
0x1bec   : > { %s12246_s4 = sld [smem:[#allocation9_spill]] }
0x1bed   : > { %s12247_s30 = sld [smem:[#allocation10_spill]] }
0x1bee   : > { %s12248_s24 = sld [smem:[#allocation14_spill]] }
0x1bf1   : > { %p33_p12 = scmp.ge.s32.totalorder %s12245_s25, 4  }
0x1bf3   :  { %35 = sbr.rel (!%p33_p12) target bundleno = 17 (0x11), region = 237 }
0x1bf8   :  { %8983 = vsyncpa [#allocation6], 1 }
0x1bf9   :  { %8985 = vsyncpa [#allocation6 + $0x1], 1 }

</bundles_post_ra>
